<compile_context>
chip_gen: v5e
topology: v5e:2x2
jax: 0.10.0
libtpu: 0.0.40
codegen_flags: <defaults>
</compile_context>

<pallas_src>
import jax
import jax.numpy as jnp
from jax.experimental import pallas as pl
from jax.experimental.pallas import tpu as pltpu


def lossnet_kernel(f1, f2, f3, f4,
                   w1, b1, w2, b2, w3, b3, w4, b4,
                   wl, bl, out_ref):
    """One batch tile: GAP -> FC -> ReLU per branch, then the final linear."""

    def branch(f_ref, w_ref, b_ref):
        # f_ref: (TN, HW, C) with C on the lane axis. Sum over HW (sublane
        # reduce), accumulated in f32; the 1/HW scale is pre-folded into w_ref.
        gap = jnp.sum(f_ref[...].astype(jnp.float32), axis=1)
        gap = gap.astype(w_ref.dtype)                      # MXU operand dtype
        h = jnp.dot(gap, w_ref[...], preferred_element_type=jnp.float32)
        h = h + b_ref[...]
        return jnp.maximum(h, 0.0)                         # (TN, D) f32

    h1 = branch(f1, w1, b1)
    h2 = branch(f2, w2, b2)
    h3 = branch(f3, w3, b3)
    h4 = branch(f4, w4, b4)

    d = h1.shape[-1]
    # Final Linear(4*D, 1) without a lane-axis concat: four MXU mat-vecs.
    out = jnp.dot(h1, wl[0 * d:1 * d, :], preferred_element_type=jnp.float32)
    out = out + jnp.dot(h2, wl[1 * d:2 * d, :], preferred_element_type=jnp.float32)
    out = out + jnp.dot(h3, wl[2 * d:3 * d, :], preferred_element_type=jnp.float32)
    out = out + jnp.dot(h4, wl[3 * d:4 * d, :], preferred_element_type=jnp.float32)
    out_ref[...] = out + bl[0, 0]


def lossnet_forward(features, params, *, interm_dim=128, batch_tile=8,
                    compute_dtype=jnp.float32):
    """features: list of 4 NCHW arrays. Returns (N, 1) float32."""
    n = features[0].shape[0]
    n_pad = ((n + batch_tile - 1) // batch_tile) * batch_tile

    # Layout plumbing: NCHW -> (N, HW, C) so channels land on the lane axis.
    flats, hws = [], []
    for f in features:
        b, c, h, w = f.shape
        hw = h * w
        hws.append(hw)
        x = jnp.transpose(f, (0, 2, 3, 1)).reshape(b, hw, c).astype(compute_dtype)
        if n_pad != n:
            x = jnp.pad(x, ((0, n_pad - n), (0, 0), (0, 0)))
        flats.append(x)

    # Fold the 1/HW GAP scale into the FC weights (MXU does the divide for free).
    ws = [(params[f"w{i + 1}"] / hws[i]).astype(compute_dtype) for i in range(4)]
    bs = [params[f"b{i + 1}"].astype(jnp.float32) for i in range(4)]
    wl = params["wl"].reshape(4 * interm_dim, 1).astype(jnp.float32)
    bl = params["bl"].astype(jnp.float32)

    def feat_spec(x):
        return pl.BlockSpec((batch_tile,) + x.shape[1:], lambda i: (i, 0, 0))

    def resident_spec(x):
        nd = x.ndim
        return pl.BlockSpec(x.shape, lambda i: (0,) * nd)

    args, in_specs = [], []
    for i in range(4):
        args.append(flats[i])
        in_specs.append(feat_spec(flats[i]))
    for i in range(4):
        args += [ws[i], bs[i]]
        in_specs += [resident_spec(ws[i]), resident_spec(bs[i])]
    args.append(wl)
    in_specs.append(resident_spec(wl))
    args.append(bl)
    in_specs.append(pl.BlockSpec(memory_space=pltpu.MemorySpace.SMEM))

    # Advisory cost: feature DMA bytes dominate (memory-bound kernel).
    itemsize = jnp.dtype(compute_dtype).itemsize
    flops = 0
    feat_bytes = 0
    for i in range(4):
        c = flats[i].shape[-1]
        flops += n_pad * hws[i] * c              # GAP adds
        flops += 2 * n_pad * c * interm_dim      # FC matmul
        feat_bytes += n_pad * hws[i] * c * itemsize
    flops += 2 * n_pad * 4 * interm_dim          # final linear
    const_bytes = (sum(int(w.size) * itemsize for w in ws)
                   + sum(int(b.size) * 4 for b in bs)
                   + int(wl.size) * 4 + 4)
    cost = pl.CostEstimate(flops=int(flops), transcendentals=0,
                           bytes_accessed=int(feat_bytes + const_bytes + n_pad * 4))

    out = pl.pallas_call(
        lossnet_kernel,
        out_shape=jax.ShapeDtypeStruct((n_pad, 1), jnp.float32),
        grid=(n_pad // batch_tile,),
        in_specs=in_specs,
        out_specs=pl.BlockSpec((batch_tile, 1), lambda i: (i, 0)),
        compiler_params=pltpu.CompilerParams(
            dimension_semantics=("parallel",),
            vmem_limit_bytes=48 * 1024 * 1024),
        cost_estimate=cost,
    )(*args)
    return out[:n]


def init_params(key, num_channels=(64, 128, 256, 512), interm_dim=128):
    """Deterministic PyTorch-style (uniform +-1/sqrt(fan_in)) init."""
    params = {}
    keys = jax.random.split(key, 10)
    for i, c in enumerate(num_channels):
        bound = 1.0 / (c ** 0.5)
        # stored transposed: (C_in, interm_dim)
        params[f"w{i+1}"] = jax.random.uniform(
            keys[2 * i], (c, interm_dim), jnp.float32, -bound, bound)
        params[f"b{i+1}"] = jax.random.uniform(
            keys[2 * i + 1], (1, interm_dim), jnp.float32, -bound, bound)
    fan_in = 4 * interm_dim
    bound = 1.0 / (fan_in ** 0.5)
    params["wl"] = jax.random.uniform(keys[8], (1, fan_in), jnp.float32, -bound, bound)
    params["bl"] = jax.random.uniform(keys[9], (1, 1), jnp.float32, -bound, bound)
    return params


def lossnet_reference(features, params):
    """Plain-JAX reference for validation."""
    hs = []
    for i, f in enumerate(features):
        gap = jnp.mean(f.astype(jnp.float32), axis=(2, 3))           # (N, C)
        h = gap @ params[f"w{i+1}"] + params[f"b{i+1}"]
        hs.append(jnp.maximum(h, 0.0))
    h = jnp.concatenate(hs, axis=-1)
    return jnp.sum(h * params["wl"], axis=-1, keepdims=True) + params["bl"][0, 0]


if __name__ == "__main__":
    key = jax.random.PRNGKey(0)
    k_feat, k_par = jax.random.split(key)

    batch = 2
    feature_sizes = [32, 16, 8, 4]
    num_channels = [64, 128, 256, 512]

    fkeys = jax.random.split(k_feat, 4)
    features = [
        jax.random.normal(fkeys[i], (batch, num_channels[i],
                                     feature_sizes[i], feature_sizes[i]),
                          dtype=jnp.float32)
        for i in range(4)
    ]

    params = init_params(k_par, tuple(num_channels), interm_dim=128)
    ref = lossnet_reference(features, params)

    # f32 path: matches the reference tightly.
    out = jax.block_until_ready(lossnet_forward(features, params))
    assert out.shape == (batch, 1)
    assert jnp.allclose(out, ref, atol=1e-4, rtol=1e-4), (out, ref)

    # bf16 feature/weight transfer path (halves DMA bytes on v6e/v7x);
    # GAP + post-MXU math stay f32, so only a small tolerance loosening.
    out_bf16 = jax.block_until_ready(
        lossnet_forward(features, params, compute_dtype=jnp.bfloat16))
    assert out_bf16.shape == (batch, 1)
    assert jnp.allclose(out_bf16, ref, atol=3e-2, rtol=3e-2), (out_bf16, ref)

    print("KERNEL_OK")
</pallas_src>

<mosaic_0001>
module attributes {stable_mosaic.version = 11 : i64} {
  func.func @lossnet_kernel(%arg0: i32, %arg1: memref<8x1024x64xf32, #tpu.memory_space<vmem>>, %arg2: memref<8x256x128xf32, #tpu.memory_space<vmem>>, %arg3: memref<8x64x256xf32, #tpu.memory_space<vmem>>, %arg4: memref<8x16x512xf32, #tpu.memory_space<vmem>>, %arg5: memref<64x128xf32, #tpu.memory_space<vmem>>, %arg6: memref<1x128xf32, #tpu.memory_space<vmem>>, %arg7: memref<128x128xf32, #tpu.memory_space<vmem>>, %arg8: memref<1x128xf32, #tpu.memory_space<vmem>>, %arg9: memref<256x128xf32, #tpu.memory_space<vmem>>, %arg10: memref<1x128xf32, #tpu.memory_space<vmem>>, %arg11: memref<512x128xf32, #tpu.memory_space<vmem>>, %arg12: memref<1x128xf32, #tpu.memory_space<vmem>>, %arg13: memref<512x1xf32, #tpu.memory_space<vmem>>, %arg14: memref<1x1xf32, #tpu.memory_space<smem>>, %arg15: memref<8x1xf32, #tpu.memory_space<vmem>>) attributes {dimension_semantics = [#tpu.dimension_semantics<parallel>], iteration_bounds = array<i64: 1>, scalar_prefetch = 0 : i64, scratch_operands = 0 : i64, tpu.core_type = #tpu.core_type<tc>, window_params = [{transform_indices = @transform_0, window_bounds = array<i64: 8, 1024, 64>}, {transform_indices = @transform_1, window_bounds = array<i64: 8, 256, 128>}, {transform_indices = @transform_2, window_bounds = array<i64: 8, 64, 256>}, {transform_indices = @transform_3, window_bounds = array<i64: 8, 16, 512>}, {pipeline_mode = #tpu.pipeline_mode<synchronous>, transform_indices = @transform_4, window_bounds = array<i64: 64, 128>}, {pipeline_mode = #tpu.pipeline_mode<synchronous>, transform_indices = @transform_5, window_bounds = array<i64: 1, 128>}, {pipeline_mode = #tpu.pipeline_mode<synchronous>, transform_indices = @transform_6, window_bounds = array<i64: 128, 128>}, {pipeline_mode = #tpu.pipeline_mode<synchronous>, transform_indices = @transform_7, window_bounds = array<i64: 1, 128>}, {pipeline_mode = #tpu.pipeline_mode<synchronous>, transform_indices = @transform_8, window_bounds = array<i64: 256, 128>}, {pipeline_mode = #tpu.pipeline_mode<synchronous>, transform_indices = @transform_9, window_bounds = array<i64: 1, 128>}, {pipeline_mode = #tpu.pipeline_mode<synchronous>, transform_indices = @transform_10, window_bounds = array<i64: 512, 128>}, {pipeline_mode = #tpu.pipeline_mode<synchronous>, transform_indices = @transform_11, window_bounds = array<i64: 1, 128>}, {pipeline_mode = #tpu.pipeline_mode<synchronous>, transform_indices = @transform_12, window_bounds = array<i64: 512, 1>}, {transform_indices = @transform_13, window_bounds = array<i64: 1, 1>}, {transform_indices = @transform_14, window_bounds = array<i64: 8, 1>}]} {
    %c0 = arith.constant 0 : index
    %c0_0 = arith.constant 0 : index
    %c0_1 = arith.constant 0 : index
    %0 = vector.load %arg1[%c0, %c0_0, %c0_1] : memref<8x1024x64xf32, #tpu.memory_space<vmem>>, vector<8x1024x64xf32>
    %cst = arith.constant dense<0.000000e+00> : vector<8x64xf32>
    %1 = vector.multi_reduction <add>, %0, %cst [1] : vector<8x1024x64xf32> to vector<8x64xf32>
    %c0_2 = arith.constant 0 : index
    %c0_3 = arith.constant 0 : index
    %2 = vector.load %arg5[%c0_2, %c0_3] : memref<64x128xf32, #tpu.memory_space<vmem>>, vector<64x128xf32>
    %cst_4 = arith.constant dense<0.000000e+00> : vector<8x128xf32>
    %3 = tpu.matmul %1, %2, %cst_4 {dimension_numbers = #tpu.dot_dimension_numbers<[1], [0], [0], [1], [0, 0, 1, 1], [], []>} : vector<8x64xf32>, vector<64x128xf32>, vector<8x128xf32> -> vector<8x128xf32>
    %c0_5 = arith.constant 0 : index
    %c0_6 = arith.constant 0 : index
    %4 = vector.load %arg6[%c0_5, %c0_6] : memref<1x128xf32, #tpu.memory_space<vmem>>, vector<1x128xf32>
    %5 = vector.broadcast %4 : vector<1x128xf32> to vector<8x128xf32>
    %6 = arith.addf %3, %5 : vector<8x128xf32>
    %cst_7 = arith.constant 0.000000e+00 : f32
    %7 = vector.broadcast %cst_7 : f32 to vector<8x128xf32>
    %8 = arith.maximumf %6, %7 : vector<8x128xf32>
    %c0_8 = arith.constant 0 : index
    %c0_9 = arith.constant 0 : index
    %c0_10 = arith.constant 0 : index
    %9 = vector.load %arg2[%c0_8, %c0_9, %c0_10] : memref<8x256x128xf32, #tpu.memory_space<vmem>>, vector<8x256x128xf32>
    %cst_11 = arith.constant dense<0.000000e+00> : vector<8x128xf32>
    %10 = vector.multi_reduction <add>, %9, %cst_11 [1] : vector<8x256x128xf32> to vector<8x128xf32>
    %c0_12 = arith.constant 0 : index
    %c0_13 = arith.constant 0 : index
    %11 = vector.load %arg7[%c0_12, %c0_13] : memref<128x128xf32, #tpu.memory_space<vmem>>, vector<128x128xf32>
    %cst_14 = arith.constant dense<0.000000e+00> : vector<8x128xf32>
    %12 = tpu.matmul %10, %11, %cst_14 {dimension_numbers = #tpu.dot_dimension_numbers<[1], [0], [0], [1], [0, 0, 1, 1], [], []>} : vector<8x128xf32>, vector<128x128xf32>, vector<8x128xf32> -> vector<8x128xf32>
    %c0_15 = arith.constant 0 : index
    %c0_16 = arith.constant 0 : index
    %13 = vector.load %arg8[%c0_15, %c0_16] : memref<1x128xf32, #tpu.memory_space<vmem>>, vector<1x128xf32>
    %14 = vector.broadcast %13 : vector<1x128xf32> to vector<8x128xf32>
    %15 = arith.addf %12, %14 : vector<8x128xf32>
    %cst_17 = arith.constant 0.000000e+00 : f32
    %16 = vector.broadcast %cst_17 : f32 to vector<8x128xf32>
    %17 = arith.maximumf %15, %16 : vector<8x128xf32>
    %c0_18 = arith.constant 0 : index
    %c0_19 = arith.constant 0 : index
    %c0_20 = arith.constant 0 : index
    %18 = vector.load %arg3[%c0_18, %c0_19, %c0_20] : memref<8x64x256xf32, #tpu.memory_space<vmem>>, vector<8x64x256xf32>
    %cst_21 = arith.constant dense<0.000000e+00> : vector<8x256xf32>
    %19 = vector.multi_reduction <add>, %18, %cst_21 [1] : vector<8x64x256xf32> to vector<8x256xf32>
    %c0_22 = arith.constant 0 : index
    %c0_23 = arith.constant 0 : index
    %20 = vector.load %arg9[%c0_22, %c0_23] : memref<256x128xf32, #tpu.memory_space<vmem>>, vector<256x128xf32>
    %cst_24 = arith.constant dense<0.000000e+00> : vector<8x128xf32>
    %21 = tpu.matmul %19, %20, %cst_24 {dimension_numbers = #tpu.dot_dimension_numbers<[1], [0], [0], [1], [0, 0, 1, 1], [], []>} : vector<8x256xf32>, vector<256x128xf32>, vector<8x128xf32> -> vector<8x128xf32>
    %c0_25 = arith.constant 0 : index
    %c0_26 = arith.constant 0 : index
    %22 = vector.load %arg10[%c0_25, %c0_26] : memref<1x128xf32, #tpu.memory_space<vmem>>, vector<1x128xf32>
    %23 = vector.broadcast %22 : vector<1x128xf32> to vector<8x128xf32>
    %24 = arith.addf %21, %23 : vector<8x128xf32>
    %cst_27 = arith.constant 0.000000e+00 : f32
    %25 = vector.broadcast %cst_27 : f32 to vector<8x128xf32>
    %26 = arith.maximumf %24, %25 : vector<8x128xf32>
    %c0_28 = arith.constant 0 : index
    %c0_29 = arith.constant 0 : index
    %c0_30 = arith.constant 0 : index
    %27 = vector.load %arg4[%c0_28, %c0_29, %c0_30] : memref<8x16x512xf32, #tpu.memory_space<vmem>>, vector<8x16x512xf32>
    %cst_31 = arith.constant dense<0.000000e+00> : vector<8x512xf32>
    %28 = vector.multi_reduction <add>, %27, %cst_31 [1] : vector<8x16x512xf32> to vector<8x512xf32>
    %c0_32 = arith.constant 0 : index
    %c0_33 = arith.constant 0 : index
    %29 = vector.load %arg11[%c0_32, %c0_33] : memref<512x128xf32, #tpu.memory_space<vmem>>, vector<512x128xf32>
    %cst_34 = arith.constant dense<0.000000e+00> : vector<8x128xf32>
    %30 = tpu.matmul %28, %29, %cst_34 {dimension_numbers = #tpu.dot_dimension_numbers<[1], [0], [0], [1], [0, 0, 1, 1], [], []>} : vector<8x512xf32>, vector<512x128xf32>, vector<8x128xf32> -> vector<8x128xf32>
    %c0_35 = arith.constant 0 : index
    %c0_36 = arith.constant 0 : index
    %31 = vector.load %arg12[%c0_35, %c0_36] : memref<1x128xf32, #tpu.memory_space<vmem>>, vector<1x128xf32>
    %32 = vector.broadcast %31 : vector<1x128xf32> to vector<8x128xf32>
    %33 = arith.addf %30, %32 : vector<8x128xf32>
    %cst_37 = arith.constant 0.000000e+00 : f32
    %34 = vector.broadcast %cst_37 : f32 to vector<8x128xf32>
    %35 = arith.maximumf %33, %34 : vector<8x128xf32>
    %c0_38 = arith.constant 0 : index
    %c0_39 = arith.constant 0 : index
    %36 = vector.load %arg13[%c0_38, %c0_39] : memref<512x1xf32, #tpu.memory_space<vmem>>, vector<128x1xf32>
    %cst_40 = arith.constant dense<0.000000e+00> : vector<8x1xf32>
    %37 = tpu.matmul %8, %36, %cst_40 {dimension_numbers = #tpu.dot_dimension_numbers<[1], [0], [0], [1], [0, 0, 1, 1], [], []>} : vector<8x128xf32>, vector<128x1xf32>, vector<8x1xf32> -> vector<8x1xf32>
    %c128 = arith.constant 128 : index
    %c0_41 = arith.constant 0 : index
    %38 = vector.load %arg13[%c128, %c0_41] : memref<512x1xf32, #tpu.memory_space<vmem>>, vector<128x1xf32>
    %cst_42 = arith.constant dense<0.000000e+00> : vector<8x1xf32>
    %39 = tpu.matmul %17, %38, %cst_42 {dimension_numbers = #tpu.dot_dimension_numbers<[1], [0], [0], [1], [0, 0, 1, 1], [], []>} : vector<8x128xf32>, vector<128x1xf32>, vector<8x1xf32> -> vector<8x1xf32>
    %40 = arith.addf %37, %39 : vector<8x1xf32>
    %c256 = arith.constant 256 : index
    %c0_43 = arith.constant 0 : index
    %41 = vector.load %arg13[%c256, %c0_43] : memref<512x1xf32, #tpu.memory_space<vmem>>, vector<128x1xf32>
    %cst_44 = arith.constant dense<0.000000e+00> : vector<8x1xf32>
    %42 = tpu.matmul %26, %41, %cst_44 {dimension_numbers = #tpu.dot_dimension_numbers<[1], [0], [0], [1], [0, 0, 1, 1], [], []>} : vector<8x128xf32>, vector<128x1xf32>, vector<8x1xf32> -> vector<8x1xf32>
    %43 = arith.addf %40, %42 : vector<8x1xf32>
    %c384 = arith.constant 384 : index
    %c0_45 = arith.constant 0 : index
    %44 = vector.load %arg13[%c384, %c0_45] : memref<512x1xf32, #tpu.memory_space<vmem>>, vector<128x1xf32>
    %cst_46 = arith.constant dense<0.000000e+00> : vector<8x1xf32>
    %45 = tpu.matmul %35, %44, %cst_46 {dimension_numbers = #tpu.dot_dimension_numbers<[1], [0], [0], [1], [0, 0, 1, 1], [], []>} : vector<8x128xf32>, vector<128x1xf32>, vector<8x1xf32> -> vector<8x1xf32>
    %46 = arith.addf %43, %45 : vector<8x1xf32>
    %c0_47 = arith.constant 0 : index
    %c0_48 = arith.constant 0 : index
    %47 = memref.load %arg14[%c0_47, %c0_48] : memref<1x1xf32, #tpu.memory_space<smem>>
    %48 = vector.broadcast %47 : f32 to vector<8x1xf32>
    %49 = arith.addf %46, %48 : vector<8x1xf32>
    %c0_49 = arith.constant 0 : index
    %c0_50 = arith.constant 0 : index
    %50 = vector.load %arg15[%c0_49, %c0_50] : memref<8x1xf32, #tpu.memory_space<vmem>>, vector<8x1xf32>
    tpu.vector_store %arg15[%c0_49, %c0_50], %49 {strides = array<i32>} : memref<8x1xf32, #tpu.memory_space<vmem>>, vector<8x1xf32>,
    return
  }
  func.func @transform_0(%arg0: i32) -> (i32, i32, i32) {
    %c0_i32 = arith.constant 0 : i32
    %c0_i32_0 = arith.constant 0 : i32
    %c0_i32_1 = arith.constant 0 : i32
    return %arg0, %c0_i32, %c0_i32_0 : i32, i32, i32
  }
  func.func @transform_1(%arg0: i32) -> (i32, i32, i32) {
    %c0_i32 = arith.constant 0 : i32
    %c0_i32_0 = arith.constant 0 : i32
    %c0_i32_1 = arith.constant 0 : i32
    return %arg0, %c0_i32, %c0_i32_0 : i32, i32, i32
  }
  func.func @transform_2(%arg0: i32) -> (i32, i32, i32) {
    %c0_i32 = arith.constant 0 : i32
    %c0_i32_0 = arith.constant 0 : i32
    %c0_i32_1 = arith.constant 0 : i32
    return %arg0, %c0_i32, %c0_i32_0 : i32, i32, i32
  }
  func.func @transform_3(%arg0: i32) -> (i32, i32, i32) {
    %c0_i32 = arith.constant 0 : i32
    %c0_i32_0 = arith.constant 0 : i32
    %c0_i32_1 = arith.constant 0 : i32
    return %arg0, %c0_i32, %c0_i32_0 : i32, i32, i32
  }
  func.func @transform_4(%arg0: i32) -> (i32, i32) {
    %c0_i32 = arith.constant 0 : i32
    %c0_i32_0 = arith.constant 0 : i32
    %c0_i32_1 = arith.constant 0 : i32
    return %c0_i32, %c0_i32_0 : i32, i32
  }
  func.func @transform_5(%arg0: i32) -> (i32, i32) {
    %c0_i32 = arith.constant 0 : i32
    %c0_i32_0 = arith.constant 0 : i32
    %c0_i32_1 = arith.constant 0 : i32
    return %c0_i32, %c0_i32_0 : i32, i32
  }
  func.func @transform_6(%arg0: i32) -> (i32, i32) {
    %c0_i32 = arith.constant 0 : i32
    %c0_i32_0 = arith.constant 0 : i32
    %c0_i32_1 = arith.constant 0 : i32
    return %c0_i32, %c0_i32_0 : i32, i32
  }
  func.func @transform_7(%arg0: i32) -> (i32, i32) {
    %c0_i32 = arith.constant 0 : i32
    %c0_i32_0 = arith.constant 0 : i32
    %c0_i32_1 = arith.constant 0 : i32
    return %c0_i32, %c0_i32_0 : i32, i32
  }
  func.func @transform_8(%arg0: i32) -> (i32, i32) {
    %c0_i32 = arith.constant 0 : i32
    %c0_i32_0 = arith.constant 0 : i32
    %c0_i32_1 = arith.constant 0 : i32
    return %c0_i32, %c0_i32_0 : i32, i32
  }
  func.func @transform_9(%arg0: i32) -> (i32, i32) {
    %c0_i32 = arith.constant 0 : i32
    %c0_i32_0 = arith.constant 0 : i32
    %c0_i32_1 = arith.constant 0 : i32
    return %c0_i32, %c0_i32_0 : i32, i32
  }
  func.func @transform_10(%arg0: i32) -> (i32, i32) {
    %c0_i32 = arith.constant 0 : i32
    %c0_i32_0 = arith.constant 0 : i32
    %c0_i32_1 = arith.constant 0 : i32
    return %c0_i32, %c0_i32_0 : i32, i32
  }
  func.func @transform_11(%arg0: i32) -> (i32, i32) {
    %c0_i32 = arith.constant 0 : i32
    %c0_i32_0 = arith.constant 0 : i32
    %c0_i32_1 = arith.constant 0 : i32
    return %c0_i32, %c0_i32_0 : i32, i32
  }
  func.func @transform_12(%arg0: i32) -> (i32, i32) {
    %c0_i32 = arith.constant 0 : i32
    %c0_i32_0 = arith.constant 0 : i32
    %c0_i32_1 = arith.constant 0 : i32
    return %c0_i32, %c0_i32_0 : i32, i32
  }
  func.func @transform_13(%arg0: i32) -> (i32, i32) {
    %c0_i32 = arith.constant 0 : i32
    %c0_i32_0 = arith.constant 0 : i32
    %c0_i32_1 = arith.constant 0 : i32
    return %c0_i32, %c0_i32_0 : i32, i32
  }
  func.func @transform_14(%arg0: i32) -> (i32, i32) {
    %c0_i32 = arith.constant 0 : i32
    %c0_i32_0 = arith.constant 0 : i32
    return %arg0, %c0_i32 : i32, i32
  }
}

</mosaic_0001>

<bundles_post_ra>
// kernel: tpu_custom_call.1
= control target key start
LH: loop header
LB: loop body
LE: loop exit
PB: predicated region body
PF: predicated region fallthrough
CT: control target
= control target key end

     0   :  { %vm3181_vm0 = vcmask 1041409   ;;  %vm3183_vm1 = vcmask 1042434   ;;  %vm3185_vm2 = vcmask 1043459   ;;  %vm3187_vm3 = vcmask 1044484   ;;  %s12519_s8 = inlined_call_operand.vmem [shape: f32[256,128], index: 8, kind: input, shape index: {}]   ;;  %s12520_s6 = inlined_call_operand.vmem [shape: f32[128,128], index: 6, kind: input, shape index: {}]   ;;  %s12521_s4 = inlined_call_operand.vmem [shape: f32[64,128], index: 4, kind: input, shape index: {}]   ;;  %s12522_s10 = inlined_call_operand.vmem [shape: f32[512,128], index: 10, kind: input, shape index: {}]   ;;  %s12523_s2 = inlined_call_operand.vmem [shape: f32[8,64,256], index: 2, kind: input, shape index: {}]   ;;  %s12524_s0 = inlined_call_operand.vmem [shape: f32[8,1024,64], index: 0, kind: input, shape index: {}]   ;;  %s12525_s1 = inlined_call_operand.vmem [shape: f32[8,256,128], index: 1, kind: input, shape index: {}]   ;;  %s12526_s9 = inlined_call_operand.vmem [shape: f32[1,128], index: 9, kind: input, shape index: {}]   ;;  %s12527_s5 = inlined_call_operand.vmem [shape: f32[1,128], index: 5, kind: input, shape index: {}]   ;;  %s12528_s7 = inlined_call_operand.vmem [shape: f32[1,128], index: 7, kind: input, shape index: {}]   ;;  %s12529_s3 = inlined_call_operand.vmem [shape: f32[8,16,512], index: 3, kind: input, shape index: {}]   ;;  %s12530_s12 = inlined_call_operand.vmem [shape: f32[512,1], index: 12, kind: input, shape index: {}]   ;;  %s12531_s11 = inlined_call_operand.vmem [shape: f32[1,128], index: 11, kind: input, shape index: {}]   ;;  %s12532_s13 = inlined_call_operand.<no memory space> [shape: f32[1,1], index: 13, kind: input, shape index: {}]   ;;  %s12533_s14 = inlined_call_operand.vmem [shape: f32[8,1], index: 14, kind: output, shape index: {}]  }
   0x1   :  { %v4178_v0 = vld [vmem:[%s12519_s8 + $0x78] sm:$0xff]  ;;  %v4177_v1 = vld [vmem:[%s12519_s8 + $0x70] sm:$0xff]  ;;  %v4176_v5 = vld [vmem:[%s12519_s8 + $0x68] sm:$0xff]  ;;  %vm3189_vm4 = vcmask 1045509   ;;  %vm3191_vm5 = vcmask 1046534   ;;  %vm3193_vm6 = vcmask 1047559  }
   0x2   :  { %v4194_v2 = vld [vmem:[%s12519_s8 + $0xf8] sm:$0xff]  ;;  %4231 = vmatpush.msra.mxu2 %v4178_v0  ;;  %v4193_v4 = vld [vmem:[%s12519_s8 + $0xf0] sm:$0xff]  ;;  %v4192_v7 = vld [vmem:[%s12519_s8 + $0xe8] sm:$0xff]  ;;  %vm1072_vm7 = vcmask 523264   ;;  %vm4922_vm8 = vcmask 7168  }
   0x3   :  { %4251 = vmatpush.msra.mxu3 %v4194_v2  ;;  %v3785_v3 = vld [vmem:[%s12520_s6 + $0x78] sm:$0xff]  ;;  %v3784_v6 = vld [vmem:[%s12520_s6 + $0x70] sm:$0xff]  ;;  %v3783_v8 = vld [vmem:[%s12520_s6 + $0x68] sm:$0xff] }
   0x4   :  { %3806 = vmatpush.msra.mxu1 %v3785_v3  ;;  %4232 = vmatpush.msra.mxu2 %v4177_v1  ;;  %v4175_v9 = vld [vmem:[%s12519_s8 + $0x60] sm:$0xff]  ;;  %v4174_v12 = vld [vmem:[%s12519_s8 + $0x58] sm:$0xff]  ;;  %v4173_v15 = vld [vmem:[%s12519_s8 + $0x50] sm:$0xff] }
   0x5   :  { %4252 = vmatpush.msra.mxu3 %v4193_v4  ;;  %v4191_v10 = vld [vmem:[%s12519_s8 + $0xe0] sm:$0xff]  ;;  %v4190_v13 = vld [vmem:[%s12519_s8 + $0xd8] sm:$0xff]  ;;  %v4189_v16 = vld [vmem:[%s12519_s8 + $0xd0] sm:$0xff] }
   0x6   :  { %3807 = vmatpush.msra.mxu1 %v3784_v6  ;;  %4233 = vmatpush.msra.mxu2 %v4176_v5  ;;  %v3782_v11 = vld [vmem:[%s12520_s6 + $0x60] sm:$0xff]  ;;  %v3781_v14 = vld [vmem:[%s12520_s6 + $0x58] sm:$0xff]  ;;  %v3780_v18 = vld [vmem:[%s12520_s6 + $0x50] sm:$0xff] }
   0x7   :  { %4253 = vmatpush.msra.mxu3 %v4192_v7  ;;  %v3168_v17 = vld [vmem:[%s12521_s4 + $0x38] sm:$0xff]  ;;  %v3167_v19 = vld [vmem:[%s12521_s4 + $0x30] sm:$0xff]  ;;  %v4172_v20 = vld [vmem:[%s12519_s8 + $0x48] sm:$0xff] }
   0x8   :  { %3808 = vmatpush.msra.mxu1 %v3783_v8  ;;  %4234 = vmatpush.msra.mxu2 %v4175_v9  ;;  %v4188_v21 = vld [vmem:[%s12519_s8 + $0xc8] sm:$0xff]  ;;  %v4171_v24 = vld [vmem:[%s12519_s8 + $0x40] sm:$0xff]  ;;  %v4170_v28 = vld [vmem:[%s12519_s8 + $0x38] sm:$0xff] }
   0x9   :  { %4254 = vmatpush.msra.mxu3 %v4191_v10  ;;  %3205 = vmatpush.msra.mxu0 %v3168_v17  ;;  %v3779_v22 = vld [vmem:[%s12520_s6 + $0x48] sm:$0xff]  ;;  %v4187_v25 = vld [vmem:[%s12519_s8 + $0xc0] sm:$0xff]  ;;  %v4186_v29 = vld [vmem:[%s12519_s8 + $0xb8] sm:$0xff] }
   0xa   :  { %3809 = vmatpush.msra.mxu1 %v3782_v11  ;;  %4235 = vmatpush.msra.mxu2 %v4174_v12  ;;  %v3166_v23 = vld [vmem:[%s12521_s4 + $0x28] sm:$0xff]  ;;  %v3778_v26 = vld [vmem:[%s12520_s6 + $0x40] sm:$0xff]  ;;  %v3777_v30 = vld [vmem:[%s12520_s6 + $0x38] sm:$0xff] }
   0xb   :  { %4255 = vmatpush.msra.mxu3 %v4190_v13  ;;  %3206 = vmatpush.msra.mxu0 %v3167_v19  ;;  %v3165_v27 = vld [vmem:[%s12521_s4 + $0x20] sm:$0xff]  ;;  %v3164_v31 = vld [vmem:[%s12521_s4 + $0x18] sm:$0xff]  ;;  %v4169_v32 = vld [vmem:[%s12519_s8 + $0x30] sm:$0xff] }
   0xc   :  { %3810 = vmatpush.msra.mxu1 %v3781_v14  ;;  %4236 = vmatpush.msra.mxu2 %v4173_v15  ;;  %v4185_v33 = vld [vmem:[%s12519_s8 + $0xb0] sm:$0xff]  ;;  %v4168_v36 = vld [vmem:[%s12519_s8 + $0x28] sm:$0xff]  ;;  %v4167_v40 = vld [vmem:[%s12519_s8 + $0x20] sm:$0xff] }
   0xd   :  { %4256 = vmatpush.msra.mxu3 %v4189_v16  ;;  %3207 = vmatpush.msra.mxu0 %v3166_v23  ;;  %v3776_v34 = vld [vmem:[%s12520_s6 + $0x30] sm:$0xff]  ;;  %v4184_v37 = vld [vmem:[%s12519_s8 + $0xa8] sm:$0xff]  ;;  %v4183_v41 = vld [vmem:[%s12519_s8 + $0xa0] sm:$0xff] }
   0xe   :  { %3811 = vmatpush.msra.mxu1 %v3780_v18  ;;  %4237 = vmatpush.msra.mxu2 %v4172_v20  ;;  %v3163_v35 = vld [vmem:[%s12521_s4 + $0x10] sm:$0xff]  ;;  %v3775_v38 = vld [vmem:[%s12520_s6 + $0x28] sm:$0xff]  ;;  %v3774_v42 = vld [vmem:[%s12520_s6 + $0x20] sm:$0xff] }
   0xf   :  { %4257 = vmatpush.msra.mxu3 %v4188_v21  ;;  %3208 = vmatpush.msra.mxu0 %v3165_v27  ;;  %v3162_v39 = vld [vmem:[%s12521_s4 + $0x8] sm:$0xff]  ;;  %v3161_v43 = vld [vmem:[%s12521_s4] sm:$0xff]  ;;  %v4166_v44 = vld [vmem:[%s12519_s8 + $0x18] sm:$0xff] }
  0x10   :  { %3812 = vmatpush.msra.mxu1 %v3779_v22  ;;  %4238 = vmatpush.msra.mxu2 %v4171_v24  ;;  %v4182_v45 = vld [vmem:[%s12519_s8 + $0x98] sm:$0xff]  ;;  %v4165_v48 = vld [vmem:[%s12519_s8 + $0x10] sm:$0xff]  ;;  %v4164_v50 = vld [vmem:[%s12519_s8 + $0x8] sm:$0xff] }
  0x11   :  { %4258 = vmatpush.msra.mxu3 %v4187_v25  ;;  %3209 = vmatpush.msra.mxu0 %v3164_v31  ;;  %v3773_v46 = vld [vmem:[%s12520_s6 + $0x18] sm:$0xff]  ;;  %v4181_v49 = vld [vmem:[%s12519_s8 + $0x90] sm:$0xff]  ;;  %v4163_v53 = vld [vmem:[%s12519_s8] sm:$0xff] }
  0x12   :  { %3813 = vmatpush.msra.mxu1 %v3778_v26  ;;  %4239 = vmatpush.msra.mxu2 %v4170_v28  ;;  %v4575_v47 = vld [vmem:[%s12522_s10 + $0x78] sm:$0xff]  ;;  %v3772_v51 = vld [vmem:[%s12520_s6 + $0x10] sm:$0xff]  ;;  %v4180_v54 = vld [vmem:[%s12519_s8 + $0x88] sm:$0xff] }
  0x13   :  { %4259 = vmatpush.msra.mxu3 %v4186_v29  ;;  %3210 = vmatpush.msra.mxu0 %v3163_v35  ;;  %v4574_v52 = vld [vmem:[%s12522_s10 + $0x70] sm:$0xff]  ;;  %v3771_v55 = vld [vmem:[%s12520_s6 + $0x8] sm:$0xff]  ;;  %v3827_v56 = vld [vmem:[%s12523_s2] sm:$0xff] }
  0x14   :  { %3814 = vmatpush.msra.mxu1 %v3777_v30  ;;  %4240 = vmatpush.msra.mxu2 %v4169_v32  ;;  %v4607_v57 = vld [vmem:[%s12522_s10 + $0x178] sm:$0xff]  ;;  %v4573_v58 = vld [vmem:[%s12522_s10 + $0x68] sm:$0xff]  ;;  %v3829_v59 = vld [vmem:[%s12523_s2 + $0x10] sm:$0xff] }
  0x15   :  { %4260 = vmatpush.msra.mxu3 %v4185_v33  ;;  %3211 = vmatpush.msra.mxu0 %v3162_v39  ;;  %v3831_v60 = vld [vmem:[%s12523_s2 + $0x20] sm:$0xff]  ;;  %v4623_v62 = vld [vmem:[%s12522_s10 + $0x1f8] sm:$0xff]  ;;  %v3955_v0 = vadd.f32 %v3829_v59, %v3827_v56  ;;  %v4606_v1 = vld [vmem:[%s12522_s10 + $0x170] sm:$0xff] }
  0x16   :  { %3815 = vmatpush.msra.mxu1 %v3776_v34  ;;  %4241 = vmatpush.msra.mxu2 %v4168_v36  ;;  %v4179_v61 = vld [vmem:[%s12519_s8 + $0x80] sm:$0xff]  ;;  %v4591_v2 = vld [vmem:[%s12522_s10 + $0xf8] sm:$0xff]  ;;  %v3833_v3 = vld [vmem:[%s12523_s2 + $0x30] sm:$0xff] }
  0x17   :  { %4261 = vmatpush.msra.mxu3 %v4184_v37  ;;  %3212 = vmatpush.msra.mxu0 %v3161_v43  ;;  %v3770_v63 = vld [vmem:[%s12520_s6] sm:$0xff]  ;;  %v3845_v5 = vld [vmem:[%s12523_s2 + $0x90] sm:$0xff]  ;;  %v3956_v9 = vadd.f32 %v3955_v0, %v3831_v60  ;;  %v4605_v11 = vld [vmem:[%s12522_s10 + $0x168] sm:$0xff] }
  0x18   :  { %3816 = vmatpush.msra.mxu1 %v3775_v38  ;;  %4242 = vmatpush.msra.mxu2 %v4167_v40  ;;  %v3843_v4 = vld [vmem:[%s12523_s2 + $0x80] sm:$0xff]  ;;  %v4622_v6 = vld [vmem:[%s12522_s10 + $0x1f0] sm:$0xff]  ;;  %v4571_v13 = vld [vmem:[%s12522_s10 + $0x58] sm:$0xff] }
  0x19   :  { %4262 = vmatpush.msra.mxu3 %v4183_v41  ;;  %4692 = vmatpush.msrb.mxu0 %v4575_v47  ;;  %v4572_v7 = vld [vmem:[%s12522_s10 + $0x60] sm:$0xff]  ;;  %v3981_v10 = vadd.f32 %v3845_v5, %v3843_v4  ;;  %v4590_v12 = vld [vmem:[%s12522_s10 + $0xf0] sm:$0xff]  ;;  %v4621_v16 = vld [vmem:[%s12522_s10 + $0x1e8] sm:$0xff]  ;;  %v3957_v20 = vadd.f32 %v3956_v9, %v3833_v3 }
  0x1a   :  { %3817 = vmatpush.msra.mxu1 %v3774_v42  ;;  %4243 = vmatpush.msra.mxu2 %v4166_v44  ;;  %v3847_v8 = vld [vmem:[%s12523_s2 + $0xa0] sm:$0xff]  ;;  %v3849_v15 = vld [vmem:[%s12523_s2 + $0xb0] sm:$0xff]  ;;  %v4589_v23 = vld [vmem:[%s12522_s10 + $0xe8] sm:$0xff] }
  0x1b   :  { %4263 = vmatpush.msra.mxu3 %v4182_v45  ;;  %4693 = vmatpush.msrb.mxu0 %v4574_v52  ;;  %v3835_v14 = vld [vmem:[%s12523_s2 + $0x40] sm:$0xff]  ;;  %v3861_v18 = vld [vmem:[%s12523_s2 + $0x110] sm:$0xff]  ;;  %v3982_v21 = vadd.f32 %v3981_v10, %v3847_v8  ;;  %v4603_v34 = vld [vmem:[%s12522_s10 + $0x158] sm:$0xff] }
  0x1c   :  { %3818 = vmatpush.msra.mxu1 %v3773_v46  ;;  %4244 = vmatpush.msra.mxu2 %v4165_v48  ;;  %v3859_v17 = vld [vmem:[%s12523_s2 + $0x100] sm:$0xff]  ;;  %v4570_v24 = vld [vmem:[%s12522_s10 + $0x50] sm:$0xff]  ;;  %v3958_v32 = vadd.f32 %v3957_v20, %v3835_v14  ;;  %v4619_v40 = vld [vmem:[%s12522_s10 + $0x1d8] sm:$0xff] }
  0x1d   :  { %4264 = vmatpush.msra.mxu3 %v4181_v49  ;;  %4694 = vmatpush.msrb.mxu0 %v4573_v58  ;;  %v3863_v19 = vld [vmem:[%s12523_s2 + $0x120] sm:$0xff]  ;;  %v3837_v25 = vld [vmem:[%s12523_s2 + $0x50] sm:$0xff]  ;;  %v4007_v27 = vadd.f32 %v3861_v18, %v3859_v17  ;;  %v3983_v33 = vadd.f32 %v3982_v21, %v3849_v15  ;;  %v4587_v48 = vld [vmem:[%s12522_s10 + $0xd8] sm:$0xff] }
  0x1e   :  { %3819 = vmatpush.msra.mxu1 %v3772_v51  ;;  %4245 = vmatpush.msra.mxu2 %v4164_v50  ;;  %v4604_v22 = vld [vmem:[%s12522_s10 + $0x160] sm:$0xff]  ;;  %v3865_v30 = vld [vmem:[%s12523_s2 + $0x130] sm:$0xff]  ;;  %v3959_v44 = vadd.f32 %v3958_v32, %v3837_v25  ;;  %v4601_v60 = vld [vmem:[%s12522_s10 + $0x148] sm:$0xff] }
  0x1f   :  { %4265 = vmatpush.msra.mxu3 %v4180_v54  ;;  %4695 = vmatpush.msrb.mxu0 %v4572_v7  ;;  %v3851_v26 = vld [vmem:[%s12523_s2 + $0xc0] sm:$0xff]  ;;  %v3853_v36 = vld [vmem:[%s12523_s2 + $0xd0] sm:$0xff]  ;;  %v4008_v39 = vadd.f32 %v4007_v27, %v3863_v19 }
  0x20   :  { %3820 = vmatpush.msra.mxu1 %v3771_v55  ;;  %4246 = vmatpush.msra.mxu2 %v4163_v53  ;;  %v4620_v28 = vld [vmem:[%s12522_s10 + $0x1e0] sm:$0xff]  ;;  %v3877_v37 = vld [vmem:[%s12523_s2 + $0x190] sm:$0xff]  ;;  %v3984_v45 = vadd.f32 %v3983_v33, %v3851_v26 }
  0x21   :  { %4266 = vmatpush.msra.mxu3 %v4179_v61  ;;  %v3839_v29 = vld [vmem:[%s12523_s2 + $0x60] sm:$0xff]  ;;  %4696 = vmatpush.msrb.mxu0 %v4571_v13  ;;  %v3841_v41 = vld [vmem:[%s12523_s2 + $0x70] sm:$0xff]  ;;  %v4009_v52 = vadd.f32 %v4008_v39, %v3865_v30 }
  0x22   :  { %4732 = vmatpush.msrb.mxu2 %v4607_v57  ;;  %3821 = vmatpush.msra.mxu1 %v3770_v63  ;;  %v3875_v31 = vld [vmem:[%s12523_s2 + $0x180] sm:$0xff]  ;;  %v4602_v47 = vld [vmem:[%s12522_s10 + $0x150] sm:$0xff]  ;;  %v3960_v57 = vadd.f32 %v3959_v44, %v3839_v29  ;;  %v3985_v58 = vadd.f32 %v3984_v45, %v3853_v36 }
  0x23   :  { %4752 = vmatpush.msrb.mxu3 %v4623_v62  ;;  %v4588_v35 = vld [vmem:[%s12522_s10 + $0xe0] sm:$0xff]  ;;  %v4033_v46 = vadd.f32 %v3877_v37, %v3875_v31  ;;  %4697 = vmatpush.msrb.mxu0 %v4570_v24  ;;  %v3881_v49 = vld [vmem:[%s12523_s2 + $0x1b0] sm:$0xff] }
  0x24   :  { %4733 = vmatpush.msrb.mxu2 %v4606_v1  ;;  %4712 = vmatpush.msrb.mxu1 %v4591_v2  ;;  %v3879_v38 = vld [vmem:[%s12523_s2 + $0x1a0] sm:$0xff]  ;;  %v3893_v51 = vld [vmem:[%s12523_s2 + $0x210] sm:$0xff]  ;;  %v3961_v5 = vadd.f32 %v3960_v57, %v3841_v41  ;;  %v4569_v57 = vld [vmem:[%s12522_s10 + $0x48] sm:$0xff] }
  0x25   :  { %4753 = vmatpush.msrb.mxu3 %v4622_v6  ;;  %v3855_v42 = vld [vmem:[%s12523_s2 + $0xe0] sm:$0xff]  ;;  %v4618_v53 = vld [vmem:[%s12522_s10 + $0x1d0] sm:$0xff]  ;;  %v4034_v59 = vadd.f32 %v4033_v46, %v3879_v38  ;;  %4698 = vmatpush.msrb.mxu0 %v4569_v57 }
  0x26   :  { %4734 = vmatpush.msrb.mxu2 %v4605_v11  ;;  %4713 = vmatpush.msrb.mxu1 %v4590_v12  ;;  %v3867_v43 = vld [vmem:[%s12523_s2 + $0x140] sm:$0xff]  ;;  %v3857_v54 = vld [vmem:[%s12523_s2 + $0xf0] sm:$0xff]  ;;  %v3986_v6 = vadd.f32 %v3985_v58, %v3855_v42  ;;  %v3962_v17 = vrot.slane %v3961_v5, 4 }
  0x27   :  { %4754 = vmatpush.msrb.mxu3 %v4621_v16  ;;  %v3891_v50 = vld [vmem:[%s12523_s2 + $0x200] sm:$0xff]  ;;  %v3869_v55 = vld [vmem:[%s12523_s2 + $0x150] sm:$0xff]  ;;  %v4010_v0 = vadd.f32 %v4009_v52, %v3867_v43  ;;  %v4035_v7 = vadd.f32 %v4034_v59, %v3881_v49 }
  0x28   :  { %4735 = vmatpush.msrb.mxu2 %v4604_v22  ;;  %4714 = vmatpush.msrb.mxu1 %v4589_v23  ;;  %v3895_v56 = vld [vmem:[%s12523_s2 + $0x220] sm:$0xff]  ;;  %v3897_v63 = vld [vmem:[%s12523_s2 + $0x230] sm:$0xff]  ;;  %v4059_v1 = vadd.f32 %v3893_v51, %v3891_v50  ;;  %v3987_v18 = vadd.f32 %v3986_v6, %v3857_v54  ;;  %v3963_v29 = vadd.f32 %v3962_v17, %v3961_v5 }
  0x29   :  { %4755 = vmatpush.msrb.mxu3 %v4620_v28  ;;  %v3871_v61 = vld [vmem:[%s12523_s2 + $0x160] sm:$0xff]  ;;  %v3909_v3 = vld [vmem:[%s12523_s2 + $0x290] sm:$0xff]  ;;  %v4011_v11 = vadd.f32 %v4010_v0, %v3869_v55 }
  0x2a   :  { %v3883_v62 = vld [vmem:[%s12523_s2 + $0x1c0] sm:$0xff]  ;;  %4736 = vmatpush.msrb.mxu2 %v4603_v34  ;;  %4715 = vmatpush.msrb.mxu1 %v4588_v35  ;;  %v3873_v8 = vld [vmem:[%s12523_s2 + $0x170] sm:$0xff]  ;;  %v4060_v12 = vadd.f32 %v4059_v1, %v3895_v56  ;;  %v3988_v30 = vrot.slane %v3987_v18, 4  ;;  %v3964_v42 = vrot.slane %v3963_v29, 2  ;;  %v4617_v1 = vld [vmem:[%s12522_s10 + $0x1c8] sm:$0xff] }
  0x2b   :  { %v3907_v2 = vld [vmem:[%s12523_s2 + $0x280] sm:$0xff]  ;;  %4756 = vmatpush.msrb.mxu3 %v4619_v40  ;;  %v3885_v9 = vld [vmem:[%s12523_s2 + $0x1d0] sm:$0xff]  ;;  %v4036_v19 = vadd.f32 %v4035_v7, %v3883_v62  ;;  %v4012_v23 = vadd.f32 %v4011_v11, %v3871_v61 }
  0x2c   :  { %v3911_v4 = vld [vmem:[%s12523_s2 + $0x2a0] sm:$0xff]  ;;  %v4085_v13 = vadd.f32 %v3909_v3, %v3907_v2  ;;  %4737 = vmatpush.msrb.mxu2 %v4602_v47  ;;  %4716 = vmatpush.msrb.mxu1 %v4587_v48  ;;  %v3913_v15 = vld [vmem:[%s12523_s2 + $0x2b0] sm:$0xff]  ;;  %v4061_v24 = vadd.f32 %v4060_v12, %v3897_v63  ;;  %v3989_v43 = vadd.f32 %v3988_v30, %v3987_v18 }
  0x2d   :  { %v3887_v10 = vld [vmem:[%s12523_s2 + $0x1e0] sm:$0xff]  ;;  %4757 = vmatpush.msrb.mxu3 %v4618_v53  ;;  %v3889_v20 = vld [vmem:[%s12523_s2 + $0x1f0] sm:$0xff]  ;;  %v4037_v31 = vadd.f32 %v4036_v19, %v3885_v9  ;;  %v4013_v36 = vadd.f32 %v4012_v23, %v3873_v8  ;;  %v3965_v53 = vadd.f32 %v3964_v42, %v3963_v29 }
  0x2e   :  { %v3899_v14 = vld [vmem:[%s12523_s2 + $0x240] sm:$0xff]  ;;  %v3925_v21 = vld [vmem:[%s12523_s2 + $0x310] sm:$0xff]  ;;  %v4086_v25 = vadd.f32 %v4085_v13, %v3911_v4  ;;  %4738 = vmatpush.msrb.mxu2 %v4601_v60  ;;  %v3990_v54 = vrot.slane %v3989_v43, 2  ;;  %v3828_v13 = vld [vmem:[%s12523_s2 + $0x8] sm:$0xff] }
  0x2f   :  { %v3923_v16 = vld [vmem:[%s12523_s2 + $0x300] sm:$0xff]  ;;  %v3901_v26 = vld [vmem:[%s12523_s2 + $0x250] sm:$0xff]  ;;  %v4062_v37 = vadd.f32 %v4061_v24, %v3899_v14  ;;  %v4038_v44 = vadd.f32 %v4037_v31, %v3887_v10  ;;  %v4014_v49 = vrot.slane %v4013_v36, 4  ;;  %v3966_v4 = vrot.slane %v3965_v53, 1  ;;  %4758 = vmatpush.msrb.mxu3 %v4617_v1  ;;  %v3830_v14 = vld [vmem:[%s12523_s2 + $0x18] sm:$0xff] }
  0x30   :  { %v3927_v22 = vld [vmem:[%s12523_s2 + $0x320] sm:$0xff]  ;;  %v4111_v32 = vadd.f32 %v3925_v21, %v3923_v16  ;;  %v3929_v33 = vld [vmem:[%s12523_s2 + $0x330] sm:$0xff]  ;;  %v4087_v38 = vadd.f32 %v4086_v25, %v3913_v15  ;;  %v3991_v5 = vadd.f32 %v3990_v54, %v3989_v43  ;;  %v3832_v25 = vld [vmem:[%s12523_s2 + $0x28] sm:$0xff]  ;;  %v3968_v30 = vadd.f32 %v3830_v14, %v3828_v13 }
  0x31   :  { %v3903_v27 = vld [vmem:[%s12523_s2 + $0x260] sm:$0xff]  ;;  %v3941_v35 = vld [vmem:[%s12523_s2 + $0x390] sm:$0xff]  ;;  %v4063_v50 = vadd.f32 %v4062_v37, %v3901_v26  ;;  %v4039_v55 = vadd.f32 %v4038_v44, %v3889_v20  ;;  %v4015_v61 = vadd.f32 %v4014_v49, %v4013_v36  ;;  %v3967_v16 = vadd.f32 %v3966_v4, %v3965_v53  ;;  %v3844_v36 = vld [vmem:[%s12523_s2 + $0x88] sm:$0xff] }
  0x32   :  { %v3915_v28 = vld [vmem:[%s12523_s2 + $0x2c0] sm:$0xff]  ;;  %v3905_v39 = vld [vmem:[%s12523_s2 + $0x270] sm:$0xff]  ;;  %v4112_v45 = vadd.f32 %v4111_v32, %v3927_v22  ;;  %v3992_v17 = vrot.slane %v3991_v5, 1  ;;  %v3846_v37 = vld [vmem:[%s12523_s2 + $0x98] sm:$0xff]  ;;  %v3969_v42 = vadd.f32 %v3968_v30, %v3832_v25 }
  0x33   :  { %v3939_v34 = vld [vmem:[%s12523_s2 + $0x380] sm:$0xff]  ;;  %v3917_v40 = vld [vmem:[%s12523_s2 + $0x2d0] sm:$0xff]  ;;  %v4088_v51 = vadd.f32 %v4087_v38, %v3915_v28  ;;  %v4064_v62 = vadd.f32 %v4063_v50, %v3903_v27  ;;  %v4040_v6 = vrot.slane %v4039_v55, 4  ;;  %v4016_v9 = vrot.slane %v4015_v61, 2  ;;  %v3866_v13 = vld [vmem:[%s12523_s2 + $0x138] sm:$0xff] }
  0x34   :  { %v3943_v41 = vld [vmem:[%s12523_s2 + $0x3a0] sm:$0xff]  ;;  %v3945_v48 = vld [vmem:[%s12523_s2 + $0x3b0] sm:$0xff]  ;;  %v4137_v52 = vadd.f32 %v3941_v35, %v3939_v34  ;;  %v4113_v56 = vadd.f32 %v4112_v45, %v3929_v33  ;;  %v3993_v27 = vadd.f32 %v3992_v17, %v3991_v5  ;;  %v3834_v35 = vld [vmem:[%s12523_s2 + $0x38] sm:$0xff]  ;;  %v3994_v54 = vadd.f32 %v3846_v37, %v3844_v36 }
  0x35   :  { %v3919_v46 = vld [vmem:[%s12523_s2 + $0x2e0] sm:$0xff]  ;;  %v4586_v58 = vld [vmem:[%s12522_s10 + $0xd0] sm:$0xff]  ;;  %v4089_v63 = vadd.f32 %v4088_v51, %v3917_v40  ;;  %v4065_v10 = vadd.f32 %v4064_v62, %v3905_v39  ;;  %v4041_v18 = vadd.f32 %v4040_v6, %v4039_v55  ;;  %v4017_v21 = vadd.f32 %v4016_v9, %v4015_v61  ;;  %v3860_v51 = vld [vmem:[%s12523_s2 + $0x108] sm:$0xff] }
  0x36   :  { %v3931_v47 = vld [vmem:[%s12523_s2 + $0x340] sm:$0xff]  ;;  %v3933_v60 = vld [vmem:[%s12523_s2 + $0x350] sm:$0xff]  ;;  %v4138_v0 = vadd.f32 %v4137_v52, %v3943_v41  ;;  %4717 = vmatpush.msrb.mxu1 %v4586_v58  ;;  %v4215_v41 = vsel %vm3181_vm0, %v3993_v27, %v3967_v16  ;;  %v3862_v52 = vld [vmem:[%s12523_s2 + $0x118] sm:$0xff]  ;;  %v3970_v53 = vadd.f32 %v3969_v42, %v3834_v35 }
  0x37   :  { %v4600_v59 = vld [vmem:[%s12522_s10 + $0x140] sm:$0xff]  ;;  %v3921_v2 = vld [vmem:[%s12523_s2 + $0x2f0] sm:$0xff]  ;;  %v4114_v7 = vadd.f32 %v4113_v56, %v3931_v47  ;;  %v4090_v11 = vadd.f32 %v4089_v63, %v3919_v46  ;;  %v4066_v22 = vrot.slane %v4065_v10, 4  ;;  %v4042_v28 = vrot.slane %v4041_v18, 2  ;;  %v3836_v47 = vld [vmem:[%s12523_s2 + $0x48] sm:$0xff] }
  0x38   :  { %v3947_v3 = vld [vmem:[%s12523_s2 + $0x3c0] sm:$0xff]  ;;  %4739 = vmatpush.msrb.mxu2 %v4600_v59  ;;  %v4139_v12 = vadd.f32 %v4138_v0, %v3945_v48  ;;  %v3949_v15 = vld [vmem:[%s12523_s2 + $0x3d0] sm:$0xff]  ;;  %v4018_v31 = vrot.slane %v4017_v21, 1  ;;  %v3848_v48 = vld [vmem:[%s12523_s2 + $0xa8] sm:$0xff]  ;;  %v3971_v1 = vadd.f32 %v3970_v53, %v3836_v47  ;;  %v4020_v9 = vadd.f32 %v3862_v52, %v3860_v51 }
  0x39   :  { %v3935_v8 = vld [vmem:[%s12523_s2 + $0x360] sm:$0xff]  ;;  %v4115_v19 = vadd.f32 %v4114_v7, %v3933_v60  ;;  %v3937_v20 = vld [vmem:[%s12523_s2 + $0x370] sm:$0xff]  ;;  %v4091_v23 = vadd.f32 %v4090_v11, %v3921_v2  ;;  %v4067_v32 = vadd.f32 %v4066_v22, %v4065_v10  ;;  %v4043_v39 = vadd.f32 %v4042_v28, %v4041_v18  ;;  %v3838_v59 = vld [vmem:[%s12523_s2 + $0x58] sm:$0xff] }
  0x3a   :  { %v4140_v24 = vadd.f32 %v4139_v12, %v3947_v3  ;;  %v3951_v26 = vld [vmem:[%s12523_s2 + $0x3e0] sm:$0xff]  ;;  %v3953_v38 = vld [vmem:[%s12523_s2 + $0x3f0] sm:$0xff]  ;;  %v4019_v43 = vadd.f32 %v4018_v31, %v4017_v21  ;;  %v3850_v60 = vld [vmem:[%s12523_s2 + $0xb8] sm:$0xff]  ;;  %v3995_v2 = vadd.f32 %v3994_v54, %v3848_v48  ;;  %v3972_v14 = vadd.f32 %v3971_v1, %v3838_v59 }
  0x3b   :  { %v4116_v29 = vadd.f32 %v4115_v19, %v3935_v8  ;;  %v4092_v33 = vrot.slane %v4091_v23, 4  ;;  %v4068_v44 = vrot.slane %v4067_v32, 2  ;;  %v4044_v49 = vrot.slane %v4043_v39, 1  ;;  %v3840_v63 = vld [vmem:[%s12523_s2 + $0x68] sm:$0xff]  ;;  %v3878_v8 = vld [vmem:[%s12523_s2 + $0x198] sm:$0xff] }
  0x3c   :  { %v4141_v34 = vadd.f32 %v4140_v24, %v3949_v15  ;;  %v4216_v58 = vsel %vm3183_vm1, %v4019_v43, %v4215_v41  ;;  %v3864_v0 = vld [vmem:[%s12523_s2 + $0x128] sm:$0xff]  ;;  %v3842_v12 = vld [vmem:[%s12523_s2 + $0x78] sm:$0xff]  ;;  %v3996_v15 = vadd.f32 %v3995_v2, %v3850_v60  ;;  %v3973_v27 = vadd.f32 %v3972_v14, %v3840_v63 }
  0x3d   :  { %v4117_v40 = vadd.f32 %v4116_v29, %v3937_v20  ;;  %v4093_v45 = vadd.f32 %v4092_v33, %v4091_v23  ;;  %v4069_v55 = vadd.f32 %v4068_v44, %v4067_v32  ;;  %v4045_v61 = vadd.f32 %v4044_v49, %v4043_v39  ;;  %v3852_v6 = vld [vmem:[%s12523_s2 + $0xc8] sm:$0xff]  ;;  %v3854_v19 = vld [vmem:[%s12523_s2 + $0xd8] sm:$0xff] }
  0x3e   :  { %v4142_v46 = vadd.f32 %v4141_v34, %v3951_v26  ;;  %v3876_v7 = vld [vmem:[%s12523_s2 + $0x188] sm:$0xff]  ;;  %v4021_v22 = vadd.f32 %v4020_v9, %v3864_v0  ;;  %v3894_v26 = vld [vmem:[%s12523_s2 + $0x218] sm:$0xff]  ;;  %v3997_v28 = vadd.f32 %v3996_v15, %v3852_v6  ;;  %v3974_v41 = vadd.f32 %v3973_v27, %v3842_v12 }
  0x3f   :  { %v4118_v50 = vrot.slane %v4117_v40, 4  ;;  %v4094_v56 = vrot.slane %v4093_v45, 2  ;;  %v4070_v3 = vrot.slane %v4069_v55, 1  ;;  %v4217_v11 = vsel %vm3185_vm2, %v4045_v61, %v4216_v58  ;;  %v3856_v20 = vld [vmem:[%s12523_s2 + $0xe8] sm:$0xff]  ;;  %v3858_v33 = vld [vmem:[%s12523_s2 + $0xf8] sm:$0xff] }
  0x40   :  { %v4143_v57 = vadd.f32 %v4142_v46, %v3953_v38  ;;  %v3880_v21 = vld [vmem:[%s12523_s2 + $0x1a8] sm:$0xff]  ;;  %v4046_v29 = vadd.f32 %v3878_v8, %v3876_v7  ;;  %v3870_v34 = vld [vmem:[%s12523_s2 + $0x158] sm:$0xff]  ;;  %v4022_v36 = vadd.f32 %v4021_v22, %v3866_v13  ;;  %v3998_v42 = vadd.f32 %v3997_v28, %v3854_v19  ;;  %v4616_v19 = vld [vmem:[%s12522_s10 + $0x1c0] sm:$0xff] }
  0x41   :  { %v4119_v62 = vadd.f32 %v4118_v50, %v4117_v40  ;;  %v4095_v4 = vadd.f32 %v4094_v56, %v4093_v45  ;;  %v4071_v16 = vadd.f32 %v4070_v3, %v4069_v55  ;;  %v3868_v24 = vld [vmem:[%s12523_s2 + $0x148] sm:$0xff]  ;;  %v3882_v35 = vld [vmem:[%s12523_s2 + $0x1b8] sm:$0xff]  ;;  %v3975_v56 = vrot.slane %v3974_v41, 4  ;;  %v4584_v28 = vld [vmem:[%s12522_s10 + $0xc0] sm:$0xff]  ;;  %4759 = vmatpush.msrb.mxu3 %v4616_v19 }
  0x42   :  { %v4144_v5 = vrot.slane %v4143_v57, 4  ;;  %v3892_v25 = vld [vmem:[%s12523_s2 + $0x208] sm:$0xff]  ;;  %v3910_v40 = vld [vmem:[%s12523_s2 + $0x298] sm:$0xff]  ;;  %v4047_v43 = vadd.f32 %v4046_v29, %v3880_v21  ;;  %v4023_v49 = vadd.f32 %v4022_v36, %v3868_v24 }
  0x43   :  { %v4120_v10 = vrot.slane %v4119_v62, 2  ;;  %v4096_v17 = vrot.slane %v4095_v4, 1  ;;  %v4218_v32 = vsel %vm3187_vm3, %v4071_v16, %v4217_v11  ;;  %v3896_v38 = vld [vmem:[%s12523_s2 + $0x228] sm:$0xff]  ;;  %v3886_v48 = vld [vmem:[%s12523_s2 + $0x1d8] sm:$0xff]  ;;  %v4072_v50 = vadd.f32 %v3894_v26, %v3892_v25  ;;  %v4568_v11 = vld [vmem:[%s12522_s10 + $0x40] sm:$0xff] }
  0x44   :  { %v4145_v18 = vadd.f32 %v4144_v5, %v4143_v57  ;;  %v3908_v39 = vld [vmem:[%s12523_s2 + $0x288] sm:$0xff]  ;;  %v3874_v52 = vld [vmem:[%s12523_s2 + $0x178] sm:$0xff]  ;;  %v3999_v57 = vadd.f32 %v3998_v42, %v3856_v20  ;;  %v4048_v58 = vadd.f32 %v4047_v43, %v3882_v35  ;;  %v4024_v0 = vadd.f32 %v4023_v49, %v3870_v34  ;;  %4699 = vmatpush.msrb.mxu0 %v4568_v11  ;;  %v4598_v34 = vld [vmem:[%s12522_s10 + $0x130] sm:$0xff] }
  0x45   :  { %v4121_v23 = vadd.f32 %v4120_v10, %v4119_v62  ;;  %v4097_v30 = vadd.f32 %v4096_v17, %v4095_v4  ;;  %v3872_v46 = vld [vmem:[%s12523_s2 + $0x168] sm:$0xff]  ;;  %v3898_v53 = vld [vmem:[%s12523_s2 + $0x238] sm:$0xff]  ;;  %v4073_v1 = vadd.f32 %v4072_v50, %v3896_v38  ;;  %v4098_v2 = vadd.f32 %v3910_v40, %v3908_v39  ;;  %v4566_v43 = vld [vmem:[%s12522_s10 + $0x30] sm:$0xff] }
  0x46   :  { %v4146_v31 = vrot.slane %v4145_v18, 2  ;;  %v3884_v47 = vld [vmem:[%s12523_s2 + $0x1c8] sm:$0xff]  ;;  %v3914_v61 = vld [vmem:[%s12523_s2 + $0x2b8] sm:$0xff]  ;;  %v3976_v8 = vadd.f32 %v3975_v56, %v3974_v41  ;;  %v4000_v9 = vadd.f32 %v3999_v57, %v3858_v33  ;;  %v4025_v14 = vadd.f32 %v4024_v0, %v3872_v46  ;;  %v4614_v57 = vld [vmem:[%s12522_s10 + $0x1b0] sm:$0xff] }
  0x47   :  { %v4122_v37 = vrot.slane %v4121_v23, 1  ;;  %v4219_v45 = vsel %vm3189_vm4, %v4097_v30, %v4218_v32  ;;  %v3900_v54 = vld [vmem:[%s12523_s2 + $0x248] sm:$0xff]  ;;  %v3926_v63 = vld [vmem:[%s12523_s2 + $0x318] sm:$0xff]  ;;  %v4049_v10 = vadd.f32 %v4048_v58, %v3884_v47  ;;  %v4074_v15 = vadd.f32 %v4073_v1, %v3898_v53  ;;  %v4582_v0 = vld [vmem:[%s12522_s10 + $0xb0] sm:$0xff] }
  0x48   :  { %v4147_v44 = vadd.f32 %v4146_v31, %v4145_v18  ;;  %v3912_v55 = vld [vmem:[%s12523_s2 + $0x2a8] sm:$0xff]  ;;  %v3902_v4 = vld [vmem:[%s12523_s2 + $0x258] sm:$0xff]  ;;  %v4001_v24 = vrot.slane %v4000_v9, 4  ;;  %v4026_v31 = vadd.f32 %v4025_v14, %v3874_v52  ;;  %v4596_v1 = vld [vmem:[%s12522_s10 + $0x120] sm:$0xff] }
  0x49   :  { %v4123_v51 = vadd.f32 %v4122_v37, %v4121_v23  ;;  %v3888_v60 = vld [vmem:[%s12523_s2 + $0x1e8] sm:$0xff]  ;;  %v3890_v13 = vld [vmem:[%s12523_s2 + $0x1f8] sm:$0xff]  ;;  %v4099_v16 = vadd.f32 %v4098_v2, %v3912_v55  ;;  %v3977_v23 = vrot.slane %v3976_v8, 2  ;;  %v4050_v25 = vadd.f32 %v4049_v10, %v3886_v48 }
  0x4a   :  { %v4148_v59 = vrot.slane %v4147_v44, 1  ;;  %v3924_v62 = vld [vmem:[%s12523_s2 + $0x308] sm:$0xff]  ;;  %v4599_v18 = vld [vmem:[%s12522_s10 + $0x138] sm:$0xff]  ;;  %v4075_v32 = vadd.f32 %v4074_v15, %v3900_v54  ;;  %v4002_v40 = vadd.f32 %v4001_v24, %v4000_v9 }
  0x4b   :  { %v4220_v3 = vsel %vm3191_vm5, %v4123_v51, %v4219_v45  ;;  %v3916_v5 = vld [vmem:[%s12523_s2 + $0x2c8] sm:$0xff]  ;;  %v3918_v21 = vld [vmem:[%s12523_s2 + $0x2d8] sm:$0xff]  ;;  %v4124_v26 = vadd.f32 %v3926_v63, %v3924_v62  ;;  %4740 = vmatpush.msrb.mxu2 %v4599_v18  ;;  %v4100_v33 = vadd.f32 %v4099_v16, %v3914_v61  ;;  %v3978_v39 = vadd.f32 %v3977_v23, %v3976_v8 }
  0x4c   :  { %v3928_v6 = vld [vmem:[%s12523_s2 + $0x328] sm:$0xff]  ;;  %v4149_v12 = vadd.f32 %v4148_v59, %v4147_v44  ;;  %v3942_v22 = vld [vmem:[%s12523_s2 + $0x398] sm:$0xff]  ;;  %v4051_v41 = vadd.f32 %v4050_v25, %v3888_v60  ;;  %v4027_v45 = vrot.slane %v4026_v31, 4  ;;  %v4076_v46 = vadd.f32 %v4075_v32, %v3902_v4 }
  0x4d   :  { %v3940_v7 = vld [vmem:[%s12523_s2 + $0x388] sm:$0xff]  ;;  %v4567_v27 = vld [vmem:[%s12522_s10 + $0x38] sm:$0xff]  ;;  %v4125_v42 = vadd.f32 %v4124_v26, %v3928_v6  ;;  %v4101_v47 = vadd.f32 %v4100_v33, %v3916_v5  ;;  %v3979_v53 = vrot.slane %v3978_v39, 1  ;;  %v4003_v54 = vrot.slane %v4002_v40, 2  ;;  %4741 = vmatpush.msrb.mxu2 %v4598_v34 }
  0x4e   :  { %v4585_v17 = vld [vmem:[%s12522_s10 + $0xc8] sm:$0xff]  ;;  %v4221_v29 = vsel %vm3193_vm6, %v4149_v12, %v4220_v3  ;;  %v3930_v30 = vld [vmem:[%s12523_s2 + $0x338] sm:$0xff]  ;;  %v4150_v48 = vadd.f32 %v3942_v22, %v3940_v7  ;;  %4700 = vmatpush.msrb.mxu0 %v4567_v27  ;;  %v4052_v55 = vadd.f32 %v4051_v41, %v3890_v13  ;;  %v4028_v60 = vadd.f32 %v4027_v45, %v4026_v31  ;;  %v4564_v7 = vld [vmem:[%s12522_s10 + $0x20] sm:$0xff] }
  0x4f   :  { %v3904_v20 = vld [vmem:[%s12523_s2 + $0x268] sm:$0xff]  ;;  %4718 = vmatpush.msrb.mxu1 %v4585_v17  ;;  %v4615_v35 = vld [vmem:[%s12522_s10 + $0x1b8] sm:$0xff]  ;;  %4247 = vmatmul.f32.vlgmr.msra.gmra.mxu2 %v4221_v29  ;;  %v4126_v56 = vadd.f32 %v4125_v42, %v3930_v30  ;;  %v4102_v62 = vadd.f32 %v4101_v47, %v3918_v21  ;;  %v4004_v3 = vadd.f32 %v4003_v54, %v4002_v40 }
  0x50   :  { %v3906_v36 = vld [vmem:[%s12523_s2 + $0x278] sm:$0xff]  ;;  %v3920_v37 = vld [vmem:[%s12523_s2 + $0x2e8] sm:$0xff]  ;;  %4760 = vmatpush.msrb.mxu3 %v4615_v35  ;;  %v4077_v61 = vadd.f32 %v4076_v46, %v3904_v20  ;;  %4701 = vmatpush.msrb.mxu0 %v4566_v43  ;;  %v4053_v4 = vrot.slane %v4052_v55, 4  ;;  %v4029_v9 = vrot.slane %v4028_v60, 2  ;;  %v3980_v16 = vadd.f32 %v3979_v53, %v3978_v39  ;;  %v4612_v20 = vld [vmem:[%s12522_s10 + $0x1a0] sm:$0xff] }
  0x51   :  { %v3944_v38 = vld [vmem:[%s12523_s2 + $0x3a8] sm:$0xff]  ;;  %4719 = vmatpush.msrb.mxu1 %v4584_v28  ;;  %v4583_v49 = vld [vmem:[%s12522_s10 + $0xb8] sm:$0xff]  ;;  %v4103_v11 = vadd.f32 %v4102_v62, %v3920_v37  ;;  %v4005_v17 = vrot.slane %v4004_v3, 1 }
  0x52   :  { %v3932_v44 = vld [vmem:[%s12523_s2 + $0x348] sm:$0xff]  ;;  %v3922_v51 = vld [vmem:[%s12523_s2 + $0x2f8] sm:$0xff]  ;;  %v4151_v63 = vadd.f32 %v4150_v48, %v3944_v38  ;;  %v4078_v10 = vadd.f32 %v4077_v61, %v3906_v36  ;;  %4761 = vmatpush.msrb.mxu3 %v4614_v57  ;;  %v4054_v18 = vadd.f32 %v4053_v4, %v4052_v55  ;;  %v4030_v22 = vadd.f32 %v4029_v9, %v4028_v60 }
  0x53   :  { %v4597_v50 = vld [vmem:[%s12522_s10 + $0x128] sm:$0xff]  ;;  %v3946_v52 = vld [vmem:[%s12523_s2 + $0x3b8] sm:$0xff]  ;;  %v4127_v5 = vadd.f32 %v4126_v56, %v3932_v44  ;;  %4720 = vmatpush.msrb.mxu1 %v4583_v49  ;;  %v4104_v24 = vadd.f32 %v4103_v11, %v3922_v51  ;;  %v4006_v27 = vadd.f32 %v4005_v17, %v4004_v3 }
  0x54   :  { %v4565_v58 = vld [vmem:[%s12522_s10 + $0x28] sm:$0xff]  ;;  %v3934_v59 = vld [vmem:[%s12523_s2 + $0x358] sm:$0xff]  ;;  %4742 = vmatpush.msrb.mxu2 %v4597_v50  ;;  %v4152_v12 = vadd.f32 %v4151_v63, %v3946_v52  ;;  %v4079_v23 = vrot.slane %v4078_v10, 4  ;;  %v4055_v28 = vrot.slane %v4054_v18, 2  ;;  %v4031_v30 = vrot.slane %v4030_v22, 1 }
  0x55   :  { %v3948_v2 = vld [vmem:[%s12523_s2 + $0x3c8] sm:$0xff]  ;;  %4702 = vmatpush.msrb.mxu0 %v4565_v58  ;;  %v4595_v14 = vld [vmem:[%s12522_s10 + $0x118] sm:$0xff]  ;;  %v4128_v19 = vadd.f32 %v4127_v5, %v3934_v59  ;;  %4721 = vmatpush.msrb.mxu1 %v4582_v0  ;;  %v4105_v32 = vrot.slane %v4104_v24, 4  ;;  %v4222_v37 = vsel %vm3181_vm0, %v4006_v27, %v3980_v16  ;;  %v434_v27 = vld [vmem:[%s12524_s0 + $0xc10] sm:$0xff] }
  0x56   :  { %v4613_v6 = vld [vmem:[%s12522_s10 + $0x1a8] sm:$0xff]  ;;  %v3950_v15 = vld [vmem:[%s12523_s2 + $0x3d8] sm:$0xff]  ;;  %4743 = vmatpush.msrb.mxu2 %v4596_v1  ;;  %v4153_v25 = vadd.f32 %v4152_v12, %v3948_v2  ;;  %v4080_v31 = vadd.f32 %v4079_v23, %v4078_v10  ;;  %v4056_v35 = vadd.f32 %v4055_v28, %v4054_v18  ;;  %v4032_v38 = vadd.f32 %v4031_v30, %v4030_v22  ;;  %v304_v10 = vld [vmem:[%s12524_s0 + $0x800] sm:$0xff] }
  0x57   :  { %v3936_v8 = vld [vmem:[%s12523_s2 + $0x368] sm:$0xff]  ;;  %v3938_v21 = vld [vmem:[%s12523_s2 + $0x378] sm:$0xff]  ;;  %4762 = vmatpush.msrb.mxu3 %v4613_v6  ;;  %4703 = vmatpush.msrb.mxu0 %v4564_v7  ;;  %v4106_v40 = vadd.f32 %v4105_v32, %v4104_v24  ;;  %v48_v6 = vld [vmem:[%s12524_s0] sm:$0xff]  ;;  %v1595_v24 = vsel %vm1072_vm7, %v304_v10, 0.0 }
  0x58   :  { %v4581_v13 = vld [vmem:[%s12522_s10 + $0xa8] sm:$0xff]  ;;  %v4129_v29 = vadd.f32 %v4128_v19, %v3936_v8  ;;  %4744 = vmatpush.msrb.mxu2 %v4595_v14  ;;  %v4154_v33 = vadd.f32 %v4153_v25, %v3950_v15  ;;  %v3954_v34 = vld [vmem:[%s12523_s2 + $0x3f8] sm:$0xff]  ;;  %v4081_v39 = vrot.slane %v4080_v31, 2  ;;  %v4057_v42 = vrot.slane %v4056_v35, 1  ;;  %v176_v8 = vld [vmem:[%s12524_s0 + $0x400] sm:$0xff] }
  0x59   :  { %v3952_v26 = vld [vmem:[%s12523_s2 + $0x3e8] sm:$0xff]  ;;  %4722 = vmatpush.msrb.mxu1 %v4581_v13  ;;  %4763 = vmatpush.msrb.mxu3 %v4612_v20  ;;  %v4107_v45 = vrot.slane %v4106_v40, 2  ;;  %v4223_v47 = vsel %vm3183_vm1, %v4032_v38, %v4222_v37  ;;  %v50_v12 = vld [vmem:[%s12524_s0 + $0x10] sm:$0xff]  ;;  %v432_v15 = vld [vmem:[%s12524_s0 + $0xc00] sm:$0xff]  ;;  %v1073_v17 = vsel %vm1072_vm7, %v48_v6, 0.0  ;;  %v1334_v19 = vsel %vm1072_vm7, %v176_v8, 0.0 }
  0x5a   :  { %v4130_v36 = vadd.f32 %v4129_v29, %v3938_v21  ;;  %v4155_v41 = vadd.f32 %v4154_v33, %v3952_v26  ;;  %v4082_v44 = vadd.f32 %v4081_v39, %v4080_v31  ;;  %v4058_v48 = vadd.f32 %v4057_v42, %v4056_v35  ;;  %v49_v7 = vld [vmem:[%s12524_s0 + $0x8] sm:$0xff]  ;;  %v178_v13 = vld [vmem:[%s12524_s0 + $0x410] sm:$0xff]  ;;  %v51_v20 = vld [vmem:[%s12524_s0 + $0x18] sm:$0xff] }
  0x5b   :  { %v4108_v51 = vadd.f32 %v4107_v45, %v4106_v40  ;;  %v177_v9 = vld [vmem:[%s12524_s0 + $0x408] sm:$0xff]  ;;  %v306_v14 = vld [vmem:[%s12524_s0 + $0x810] sm:$0xff]  ;;  %v1074_v18 = vsel %vm1072_vm7, %v49_v7, 0.0  ;;  %v179_v21 = vld [vmem:[%s12524_s0 + $0x418] sm:$0xff]  ;;  %v1076_v28 = vsel %vm1072_vm7, %v50_v12, 0.0  ;;  %v1337_v30 = vsel %vm1072_vm7, %v178_v13, 0.0 }
  0x5c   :  { %v4131_v43 = vrot.slane %v4130_v36, 4  ;;  %v4156_v46 = vadd.f32 %v4155_v41, %v3954_v34  ;;  %v4083_v50 = vrot.slane %v4082_v44, 1  ;;  %v4224_v54 = vsel %vm3185_vm2, %v4058_v48, %v4223_v47  ;;  %v305_v11 = vld [vmem:[%s12524_s0 + $0x808] sm:$0xff]  ;;  %v307_v26 = vld [vmem:[%s12524_s0 + $0x818] sm:$0xff]  ;;  %v52_v32 = vld [vmem:[%s12524_s0 + $0x20] sm:$0xff] }
  0x5d   :  { %v4109_v56 = vrot.slane %v4108_v51, 1  ;;  %v433_v16 = vld [vmem:[%s12524_s0 + $0xc08] sm:$0xff]  ;;  %v1075_v22 = vadd.f32 %v1074_v18, %v1073_v17  ;;  %v1335_v23 = vsel %vm1072_vm7, %v177_v9, 0.0  ;;  %v1596_v25 = vsel %vm1072_vm7, %v305_v11, 0.0  ;;  %v180_v33 = vld [vmem:[%s12524_s0 + $0x420] sm:$0xff]  ;;  %v435_v39 = vld [vmem:[%s12524_s0 + $0xc18] sm:$0xff] }
  0x5e   :  { %v4132_v49 = vadd.f32 %v4131_v43, %v4130_v36  ;;  %v4157_v52 = vrot.slane %v4156_v46, 4  ;;  %v4084_v55 = vadd.f32 %v4083_v50, %v4082_v44  ;;  %v1336_v29 = vadd.f32 %v1335_v23, %v1334_v19  ;;  %v308_v38 = vld [vmem:[%s12524_s0 + $0x820] sm:$0xff]  ;;  %v53_v44 = vld [vmem:[%s12524_s0 + $0x28] sm:$0xff]  ;;  %v311_v10 = vld [vmem:[%s12524_s0 + $0x838] sm:$0xff] }
  0x5f   :  { %v4110_v59 = vadd.f32 %v4109_v56, %v4108_v51  ;;  %v1597_v31 = vadd.f32 %v1596_v25, %v1595_v24  ;;  %v1077_v34 = vadd.f32 %v1076_v28, %v1075_v22  ;;  %v1598_v35 = vsel %vm1072_vm7, %v306_v14, 0.0  ;;  %v181_v45 = vld [vmem:[%s12524_s0 + $0x428] sm:$0xff]  ;;  %v436_v51 = vld [vmem:[%s12524_s0 + $0xc20] sm:$0xff]  ;;  %v54_v56 = vld [vmem:[%s12524_s0 + $0x30] sm:$0xff] }
  0x60   :  { %v4133_v53 = vrot.slane %v4132_v49, 2  ;;  %v4158_v57 = vadd.f32 %v4157_v52, %v4156_v46  ;;  %v4225_v61 = vsel %vm3187_vm3, %v4084_v55, %v4224_v54  ;;  %v1856_v36 = vsel %vm1072_vm7, %v432_v15, 0.0  ;;  %v309_v50 = vld [vmem:[%s12524_s0 + $0x828] sm:$0xff]  ;;  %v438_v11 = vld [vmem:[%s12524_s0 + $0xc30] sm:$0xff]  ;;  %v184_v17 = vld [vmem:[%s12524_s0 + $0x440] sm:$0xff] }
  0x61   :  { %v4226_v0 = vsel %vm3189_vm4, %v4110_v59, %v4225_v61  ;;  %v1857_v37 = vsel %vm1072_vm7, %v433_v16, 0.0  ;;  %v1078_v40 = vsel %vm1072_vm7, %v51_v20, 0.0  ;;  %v1338_v41 = vadd.f32 %v1337_v30, %v1336_v29  ;;  %v56_v16 = vld [vmem:[%s12524_s0 + $0x40] sm:$0xff]  ;;  %v439_v23 = vld [vmem:[%s12524_s0 + $0xc38] sm:$0xff]  ;;  %v57_v28 = vld [vmem:[%s12524_s0 + $0x48] sm:$0xff] }
  0x62   :  { %v4134_v58 = vadd.f32 %v4133_v53, %v4132_v49  ;;  %v4159_v60 = vrot.slane %v4158_v57, 2  ;;  %v1339_v42 = vsel %vm1072_vm7, %v179_v21, 0.0  ;;  %v1599_v43 = vadd.f32 %v1598_v35, %v1597_v31  ;;  %v312_v22 = vld [vmem:[%s12524_s0 + $0x840] sm:$0xff]  ;;  %v185_v29 = vld [vmem:[%s12524_s0 + $0x448] sm:$0xff] }
  0x63   :  { %v1079_v46 = vadd.f32 %v1078_v40, %v1077_v34  ;;  %v1600_v47 = vsel %vm1072_vm7, %v307_v26, 0.0  ;;  %v1858_v48 = vadd.f32 %v1857_v37, %v1856_v36  ;;  %v1859_v49 = vsel %vm1072_vm7, %v434_v27, 0.0  ;;  %v313_v34 = vld [vmem:[%s12524_s0 + $0x848] sm:$0xff]  ;;  %v440_v35 = vld [vmem:[%s12524_s0 + $0xc40] sm:$0xff]  ;;  %v58_v40 = vld [vmem:[%s12524_s0 + $0x50] sm:$0xff] }
  0x64   :  { %v4135_v62 = vrot.slane %v4134_v58, 1  ;;  %v4160_v63 = vadd.f32 %v4159_v60, %v4158_v57  ;;  %v1080_v52 = vsel %vm1072_vm7, %v52_v32, 0.0  ;;  %v1340_v53 = vadd.f32 %v1339_v42, %v1338_v41  ;;  %v182_v57 = vld [vmem:[%s12524_s0 + $0x430] sm:$0xff] }
  0x65   :  { %v1341_v54 = vsel %vm1072_vm7, %v180_v33, 0.0  ;;  %v1601_v55 = vadd.f32 %v1600_v47, %v1599_v43  ;;  %v1602_v59 = vsel %vm1072_vm7, %v308_v38, 0.0  ;;  %v1860_v60 = vadd.f32 %v1859_v49, %v1858_v48  ;;  %v186_v41 = vld [vmem:[%s12524_s0 + $0x450] sm:$0xff]  ;;  %v441_v47 = vld [vmem:[%s12524_s0 + $0xc48] sm:$0xff] }
  0x66   :  { %v4136_v1 = vadd.f32 %v4135_v62, %v4134_v58  ;;  %v4161_v2 = vrot.slane %v4160_v63, 1  ;;  %v1081_v58 = vadd.f32 %v1080_v52, %v1079_v46  ;;  %v1861_v61 = vsel %vm1072_vm7, %v435_v39, 0.0  ;;  %v310_v62 = vld [vmem:[%s12524_s0 + $0x830] sm:$0xff]  ;;  %v59_v52 = vld [vmem:[%s12524_s0 + $0x58] sm:$0xff] }
  0x67   :  { %v1604_v7 = vsel %vm1072_vm7, %v309_v50, 0.0  ;;  %v1862_v8 = vadd.f32 %v1861_v61, %v1860_v60  ;;  %v1863_v9 = vsel %vm1072_vm7, %v436_v51, 0.0  ;;  %v1084_v12 = vsel %vm1072_vm7, %v54_v56, 0.0  ;;  %v314_v46 = vld [vmem:[%s12524_s0 + $0x850] sm:$0xff] }
  0x68   :  { %v4227_v3 = vsel %vm3191_vm5, %v4136_v1, %v4226_v0  ;;  %v4162_v4 = vadd.f32 %v4161_v2, %v4160_v63  ;;  %v437_v63 = vld [vmem:[%s12524_s0 + $0xc28] sm:$0xff]  ;;  %v1082_v0 = vsel %vm1072_vm7, %v53_v44, 0.0  ;;  %v1342_v1 = vadd.f32 %v1341_v54, %v1340_v53  ;;  %v187_v53 = vld [vmem:[%s12524_s0 + $0x458] sm:$0xff] }
  0x69   :  { %v1343_v2 = vsel %vm1072_vm7, %v181_v45, 0.0  ;;  %v1083_v6 = vadd.f32 %v1082_v0, %v1081_v58  ;;  %v1345_v14 = vsel %vm1072_vm7, %v182_v57, 0.0  ;;  %v1606_v19 = vsel %vm1072_vm7, %v310_v62, 0.0  ;;  %v315_v58 = vld [vmem:[%s12524_s0 + $0x858] sm:$0xff]  ;;  %v60_v0 = vld [vmem:[%s12524_s0 + $0x60] sm:$0xff] }
  0x6a   :  { %v4228_v5 = vsel %vm3193_vm6, %v4162_v4, %v4227_v3  ;;  %v1603_v3 = vadd.f32 %v1602_v59, %v1601_v55  ;;  %v55_v4 = vld [vmem:[%s12524_s0 + $0x38] sm:$0xff]  ;;  %v1344_v13 = vadd.f32 %v1343_v2, %v1342_v1  ;;  %v1864_v20 = vadd.f32 %v1863_v9, %v1862_v8  ;;  %v442_v59 = vld [vmem:[%s12524_s0 + $0xc50] sm:$0xff]  ;;  %v188_v1 = vld [vmem:[%s12524_s0 + $0x460] sm:$0xff] }
  0x6b   :  { %4267 = vmatmul.f32.vlgmr.msra.gmra.mxu3 %v4228_v5  ;;  %v183_v5 = vld [vmem:[%s12524_s0 + $0x438] sm:$0xff]  ;;  %v1085_v18 = vadd.f32 %v1084_v12, %v1083_v6  ;;  %v1865_v21 = vsel %vm1072_vm7, %v437_v63, 0.0  ;;  %v1086_v24 = vsel %vm1072_vm7, %v55_v4, 0.0  ;;  %v1608_v31 = vsel %vm1072_vm7, %v311_v10, 0.0  ;;  %v316_v6 = vld [vmem:[%s12524_s0 + $0x860] sm:$0xff]  ;;  %v61_v12 = vld [vmem:[%s12524_s0 + $0x68] sm:$0xff] }
  0x6c   :  { %v1605_v15 = vadd.f32 %v1604_v7, %v1603_v3  ;;  %v1346_v25 = vadd.f32 %v1345_v14, %v1344_v13  ;;  %v1347_v26 = vsel %vm1072_vm7, %v183_v5, 0.0  ;;  %v1866_v32 = vadd.f32 %v1865_v21, %v1864_v20  ;;  %v443_v7 = vld [vmem:[%s12524_s0 + $0xc58] sm:$0xff]  ;;  %v189_v13 = vld [vmem:[%s12524_s0 + $0x468] sm:$0xff] }
  0x6d   :  { %v1087_v30 = vadd.f32 %v1086_v24, %v1085_v18  ;;  %v1867_v33 = vsel %vm1072_vm7, %v438_v11, 0.0  ;;  %v1088_v36 = vsel %vm1072_vm7, %v56_v16, 0.0  ;;  %v1349_v38 = vsel %vm1072_vm7, %v184_v17, 0.0  ;;  %v317_v18 = vld [vmem:[%s12524_s0 + $0x868] sm:$0xff]  ;;  %v62_v24 = vld [vmem:[%s12524_s0 + $0x70] sm:$0xff] }
  0x6e   :  { %v1607_v27 = vadd.f32 %v1606_v19, %v1605_v15  ;;  %v1348_v37 = vadd.f32 %v1347_v26, %v1346_v25  ;;  %v1610_v43 = vsel %vm1072_vm7, %v312_v22, 0.0  ;;  %v1868_v44 = vadd.f32 %v1867_v33, %v1866_v32  ;;  %v444_v19 = vld [vmem:[%s12524_s0 + $0xc60] sm:$0xff]  ;;  %v190_v25 = vld [vmem:[%s12524_s0 + $0x470] sm:$0xff] }
  0x6f   :  { %v1089_v42 = vadd.f32 %v1088_v36, %v1087_v30  ;;  %v1869_v45 = vsel %vm1072_vm7, %v439_v23, 0.0  ;;  %v1090_v48 = vsel %vm1072_vm7, %v57_v28, 0.0  ;;  %v1351_v50 = vsel %vm1072_vm7, %v185_v29, 0.0  ;;  %v318_v30 = vld [vmem:[%s12524_s0 + $0x870] sm:$0xff]  ;;  %v63_v36 = vld [vmem:[%s12524_s0 + $0x78] sm:$0xff] }
  0x70   :  { %v1609_v39 = vadd.f32 %v1608_v31, %v1607_v27  ;;  %v1350_v49 = vadd.f32 %v1349_v38, %v1348_v37  ;;  %v1612_v55 = vsel %vm1072_vm7, %v313_v34, 0.0  ;;  %v1870_v56 = vadd.f32 %v1869_v45, %v1868_v44  ;;  %v445_v31 = vld [vmem:[%s12524_s0 + $0xc68] sm:$0xff]  ;;  %v191_v37 = vld [vmem:[%s12524_s0 + $0x478] sm:$0xff] }
  0x71   :  { %v1091_v54 = vadd.f32 %v1090_v48, %v1089_v42  ;;  %v1871_v57 = vsel %vm1072_vm7, %v440_v35, 0.0  ;;  %v1092_v60 = vsel %vm1072_vm7, %v58_v40, 0.0  ;;  %v1353_v62 = vsel %vm1072_vm7, %v186_v41, 0.0  ;;  %v319_v42 = vld [vmem:[%s12524_s0 + $0x878] sm:$0xff]  ;;  %v64_v48 = vld [vmem:[%s12524_s0 + $0x80] sm:$0xff] }
  0x72   :  { %v1611_v51 = vadd.f32 %v1610_v43, %v1609_v39  ;;  %v1352_v61 = vadd.f32 %v1351_v50, %v1350_v49  ;;  %v1614_v3 = vsel %vm1072_vm7, %v314_v46, 0.0  ;;  %v1872_v4 = vadd.f32 %v1871_v57, %v1870_v56  ;;  %v446_v43 = vld [vmem:[%s12524_s0 + $0xc70] sm:$0xff]  ;;  %v192_v49 = vld [vmem:[%s12524_s0 + $0x480] sm:$0xff] }
  0x73   :  { %v1093_v2 = vadd.f32 %v1092_v60, %v1091_v54  ;;  %v1873_v5 = vsel %vm1072_vm7, %v441_v47, 0.0  ;;  %v1094_v8 = vsel %vm1072_vm7, %v59_v52, 0.0  ;;  %v1355_v10 = vsel %vm1072_vm7, %v187_v53, 0.0  ;;  %v320_v54 = vld [vmem:[%s12524_s0 + $0x880] sm:$0xff]  ;;  %v65_v60 = vld [vmem:[%s12524_s0 + $0x88] sm:$0xff] }
  0x74   :  { %v1613_v63 = vadd.f32 %v1612_v55, %v1611_v51  ;;  %v1354_v9 = vadd.f32 %v1353_v62, %v1352_v61  ;;  %v1616_v15 = vsel %vm1072_vm7, %v315_v58, 0.0  ;;  %v1874_v16 = vadd.f32 %v1873_v5, %v1872_v4  ;;  %v447_v55 = vld [vmem:[%s12524_s0 + $0xc78] sm:$0xff]  ;;  %v193_v61 = vld [vmem:[%s12524_s0 + $0x488] sm:$0xff] }
  0x75   :  { %v1095_v14 = vadd.f32 %v1094_v8, %v1093_v2  ;;  %v1875_v17 = vsel %vm1072_vm7, %v442_v59, 0.0  ;;  %v1096_v20 = vsel %vm1072_vm7, %v60_v0, 0.0  ;;  %v1357_v22 = vsel %vm1072_vm7, %v188_v1, 0.0  ;;  %v321_v2 = vld [vmem:[%s12524_s0 + $0x888] sm:$0xff]  ;;  %v66_v8 = vld [vmem:[%s12524_s0 + $0x90] sm:$0xff] }
  0x76   :  { %v1615_v11 = vadd.f32 %v1614_v3, %v1613_v63  ;;  %v1356_v21 = vadd.f32 %v1355_v10, %v1354_v9  ;;  %v1618_v27 = vsel %vm1072_vm7, %v316_v6, 0.0  ;;  %v1876_v28 = vadd.f32 %v1875_v17, %v1874_v16  ;;  %v448_v3 = vld [vmem:[%s12524_s0 + $0xc80] sm:$0xff]  ;;  %v194_v9 = vld [vmem:[%s12524_s0 + $0x490] sm:$0xff] }
  0x77   :  { %v1097_v26 = vadd.f32 %v1096_v20, %v1095_v14  ;;  %v1877_v29 = vsel %vm1072_vm7, %v443_v7, 0.0  ;;  %v1098_v32 = vsel %vm1072_vm7, %v61_v12, 0.0  ;;  %v1359_v34 = vsel %vm1072_vm7, %v189_v13, 0.0  ;;  %v322_v14 = vld [vmem:[%s12524_s0 + $0x890] sm:$0xff]  ;;  %v67_v20 = vld [vmem:[%s12524_s0 + $0x98] sm:$0xff] }
  0x78   :  { %v1617_v23 = vadd.f32 %v1616_v15, %v1615_v11  ;;  %v1358_v33 = vadd.f32 %v1357_v22, %v1356_v21  ;;  %v1620_v39 = vsel %vm1072_vm7, %v317_v18, 0.0  ;;  %v1878_v40 = vadd.f32 %v1877_v29, %v1876_v28  ;;  %v449_v15 = vld [vmem:[%s12524_s0 + $0xc88] sm:$0xff]  ;;  %v195_v21 = vld [vmem:[%s12524_s0 + $0x498] sm:$0xff] }
  0x79   :  { %v1099_v38 = vadd.f32 %v1098_v32, %v1097_v26  ;;  %v1879_v41 = vsel %vm1072_vm7, %v444_v19, 0.0  ;;  %v1100_v44 = vsel %vm1072_vm7, %v62_v24, 0.0  ;;  %v1361_v46 = vsel %vm1072_vm7, %v190_v25, 0.0  ;;  %v323_v26 = vld [vmem:[%s12524_s0 + $0x898] sm:$0xff]  ;;  %v68_v32 = vld [vmem:[%s12524_s0 + $0xa0] sm:$0xff] }
  0x7a   :  { %v1619_v35 = vadd.f32 %v1618_v27, %v1617_v23  ;;  %v1360_v45 = vadd.f32 %v1359_v34, %v1358_v33  ;;  %v1622_v51 = vsel %vm1072_vm7, %v318_v30, 0.0  ;;  %v1880_v52 = vadd.f32 %v1879_v41, %v1878_v40  ;;  %v450_v27 = vld [vmem:[%s12524_s0 + $0xc90] sm:$0xff]  ;;  %v196_v33 = vld [vmem:[%s12524_s0 + $0x4a0] sm:$0xff] }
  0x7b   :  { %v1101_v50 = vadd.f32 %v1100_v44, %v1099_v38  ;;  %v1881_v53 = vsel %vm1072_vm7, %v445_v31, 0.0  ;;  %v1102_v56 = vsel %vm1072_vm7, %v63_v36, 0.0  ;;  %v1363_v58 = vsel %vm1072_vm7, %v191_v37, 0.0  ;;  %v324_v38 = vld [vmem:[%s12524_s0 + $0x8a0] sm:$0xff]  ;;  %v69_v44 = vld [vmem:[%s12524_s0 + $0xa8] sm:$0xff] }
  0x7c   :  { %v1621_v47 = vadd.f32 %v1620_v39, %v1619_v35  ;;  %v1362_v57 = vadd.f32 %v1361_v46, %v1360_v45  ;;  %v1624_v63 = vsel %vm1072_vm7, %v319_v42, 0.0  ;;  %v1882_v0 = vadd.f32 %v1881_v53, %v1880_v52  ;;  %v451_v39 = vld [vmem:[%s12524_s0 + $0xc98] sm:$0xff]  ;;  %v197_v45 = vld [vmem:[%s12524_s0 + $0x4a8] sm:$0xff] }
  0x7d   :  { %v1103_v62 = vadd.f32 %v1102_v56, %v1101_v50  ;;  %v1883_v1 = vsel %vm1072_vm7, %v446_v43, 0.0  ;;  %v1104_v4 = vsel %vm1072_vm7, %v64_v48, 0.0  ;;  %v1365_v6 = vsel %vm1072_vm7, %v192_v49, 0.0  ;;  %v325_v50 = vld [vmem:[%s12524_s0 + $0x8a8] sm:$0xff]  ;;  %v198_v56 = vld [vmem:[%s12524_s0 + $0x4b0] sm:$0xff] }
  0x7e   :  { %v1623_v59 = vadd.f32 %v1622_v51, %v1621_v47  ;;  %v1364_v5 = vadd.f32 %v1363_v58, %v1362_v57  ;;  %v1626_v11 = vsel %vm1072_vm7, %v320_v54, 0.0  ;;  %v1884_v12 = vadd.f32 %v1883_v1, %v1882_v0 }
  0x7f   :  { %v1105_v10 = vadd.f32 %v1104_v4, %v1103_v62  ;;  %v1885_v13 = vsel %vm1072_vm7, %v447_v55, 0.0  ;;  %v1106_v16 = vsel %vm1072_vm7, %v65_v60, 0.0  ;;  %v1367_v18 = vsel %vm1072_vm7, %v193_v61, 0.0  ;;  %v70_v55 = vld [vmem:[%s12524_s0 + $0xb0] sm:$0xff]  ;;  %v452_v61 = vld [vmem:[%s12524_s0 + $0xca0] sm:$0xff] }
  0x80   :  { %v1625_v7 = vadd.f32 %v1624_v63, %v1623_v59  ;;  %v1366_v17 = vadd.f32 %v1365_v6, %v1364_v5  ;;  %v1628_v23 = vsel %vm1072_vm7, %v321_v2, 0.0  ;;  %v1886_v24 = vadd.f32 %v1885_v13, %v1884_v12  ;;  %v71_v2 = vld [vmem:[%s12524_s0 + $0xb8] sm:$0xff]  ;;  %v326_v6 = vld [vmem:[%s12524_s0 + $0x8b0] sm:$0xff] }
  0x81   :  { %v1107_v22 = vadd.f32 %v1106_v16, %v1105_v10  ;;  %v1887_v25 = vsel %vm1072_vm7, %v448_v3, 0.0  ;;  %v1108_v28 = vsel %vm1072_vm7, %v66_v8, 0.0  ;;  %v1369_v30 = vsel %vm1072_vm7, %v194_v9, 0.0  ;;  %v199_v3 = vld [vmem:[%s12524_s0 + $0x4b8] sm:$0xff]  ;;  %v72_v10 = vld [vmem:[%s12524_s0 + $0xc0] sm:$0xff] }
  0x82   :  { %v1627_v19 = vadd.f32 %v1626_v11, %v1625_v7  ;;  %v1368_v29 = vadd.f32 %v1367_v18, %v1366_v17  ;;  %v1630_v35 = vsel %vm1072_vm7, %v322_v14, 0.0  ;;  %v1888_v36 = vadd.f32 %v1887_v25, %v1886_v24  ;;  %v73_v14 = vld [vmem:[%s12524_s0 + $0xc8] sm:$0xff]  ;;  %v327_v24 = vld [vmem:[%s12524_s0 + $0x8b8] sm:$0xff] }
  0x83   :  { %v1109_v34 = vadd.f32 %v1108_v28, %v1107_v22  ;;  %v1889_v37 = vsel %vm1072_vm7, %v449_v15, 0.0  ;;  %v1110_v40 = vsel %vm1072_vm7, %v67_v20, 0.0  ;;  %v1371_v42 = vsel %vm1072_vm7, %v195_v21, 0.0  ;;  %v200_v15 = vld [vmem:[%s12524_s0 + $0x4c0] sm:$0xff]  ;;  %v74_v20 = vld [vmem:[%s12524_s0 + $0xd0] sm:$0xff]  ;;  %v453_v21 = vld [vmem:[%s12524_s0 + $0xca8] sm:$0xff] }
  0x84   :  { %v1629_v31 = vadd.f32 %v1628_v23, %v1627_v19  ;;  %v1370_v41 = vadd.f32 %v1369_v30, %v1368_v29  ;;  %v1632_v47 = vsel %vm1072_vm7, %v323_v26, 0.0  ;;  %v1890_v48 = vadd.f32 %v1889_v37, %v1888_v36  ;;  %v77_v36 = vld [vmem:[%s12524_s0 + $0xe8] sm:$0xff]  ;;  %v454_v37 = vld [vmem:[%s12524_s0 + $0xcb0] sm:$0xff] }
  0x85   :  { %v1111_v46 = vadd.f32 %v1110_v40, %v1109_v34  ;;  %v1891_v49 = vsel %vm1072_vm7, %v450_v27, 0.0  ;;  %v1112_v51 = vsel %vm1072_vm7, %v68_v32, 0.0  ;;  %v1373_v53 = vsel %vm1072_vm7, %v196_v33, 0.0  ;;  %v75_v27 = vld [vmem:[%s12524_s0 + $0xd8] sm:$0xff]  ;;  %v78_v40 = vld [vmem:[%s12524_s0 + $0xf0] sm:$0xff] }
  0x86   :  { %v1631_v43 = vadd.f32 %v1630_v35, %v1629_v31  ;;  %v1372_v52 = vadd.f32 %v1371_v42, %v1370_v41  ;;  %v1634_v58 = vsel %vm1072_vm7, %v324_v38, 0.0  ;;  %v1892_v59 = vadd.f32 %v1891_v49, %v1890_v48  ;;  %v76_v35 = vld [vmem:[%s12524_s0 + $0xe0] sm:$0xff]  ;;  %v79_v41 = vld [vmem:[%s12524_s0 + $0xf8] sm:$0xff]  ;;  %v201_v42 = vld [vmem:[%s12524_s0 + $0x4c8] sm:$0xff] }
  0x87   :  { %v1113_v57 = vadd.f32 %v1112_v51, %v1111_v46  ;;  %v1893_v60 = vsel %vm1072_vm7, %v451_v39, 0.0  ;;  %v1114_v62 = vsel %vm1072_vm7, %v69_v44, 0.0  ;;  %v1375_v0 = vsel %vm1072_vm7, %v197_v45, 0.0  ;;  %v80_v45 = vld [vmem:[%s12524_s0 + $0x100] sm:$0xff]  ;;  %v81_v46 = vld [vmem:[%s12524_s0 + $0x108] sm:$0xff] }
  0x88   :  { %v1633_v54 = vadd.f32 %v1632_v47, %v1631_v43  ;;  %v1374_v63 = vadd.f32 %v1373_v53, %v1372_v52  ;;  %v1636_v5 = vsel %vm1072_vm7, %v325_v50, 0.0  ;;  %v1116_v7 = vsel %vm1072_vm7, %v70_v55, 0.0  ;;  %v202_v47 = vld [vmem:[%s12524_s0 + $0x4d0] sm:$0xff]  ;;  %v203_v50 = vld [vmem:[%s12524_s0 + $0x4d8] sm:$0xff]  ;;  %v328_v51 = vld [vmem:[%s12524_s0 + $0x8c0] sm:$0xff] }
  0x89   :  { %v1115_v4 = vadd.f32 %v1114_v62, %v1113_v57  ;;  %v1377_v9 = vsel %vm1072_vm7, %v198_v56, 0.0  ;;  %v1894_v12 = vadd.f32 %v1893_v60, %v1892_v59  ;;  %v1895_v13 = vsel %vm1072_vm7, %v452_v61, 0.0  ;;  %v329_v52 = vld [vmem:[%s12524_s0 + $0x8c8] sm:$0xff]  ;;  %v82_v57 = vld [vmem:[%s12524_s0 + $0x110] sm:$0xff]  ;;  %v83_v62 = vld [vmem:[%s12524_s0 + $0x118] sm:$0xff] }
  0x8a   :  { %v1635_v1 = vadd.f32 %v1634_v58, %v1633_v54  ;;  %v1376_v8 = vadd.f32 %v1375_v0, %v1374_v63  ;;  %v1118_v16 = vsel %vm1072_vm7, %v71_v2, 0.0  ;;  %v1379_v18 = vsel %vm1072_vm7, %v199_v3, 0.0  ;;  %v204_v63 = vld [vmem:[%s12524_s0 + $0x4e0] sm:$0xff]  ;;  %v330_v0 = vld [vmem:[%s12524_s0 + $0x8d0] sm:$0xff] }
  0x8b   :  { %v1117_v11 = vadd.f32 %v1116_v7, %v1115_v4  ;;  %v1638_v23 = vsel %vm1072_vm7, %v326_v6, 0.0  ;;  %v1120_v25 = vsel %vm1072_vm7, %v72_v10, 0.0  ;;  %v1122_v29 = vsel %vm1072_vm7, %v73_v14, 0.0  ;;  %v85_v6 = vld [vmem:[%s12524_s0 + $0x128] sm:$0xff] }
  0x8c   :  { %v1378_v17 = vadd.f32 %v1377_v9, %v1376_v8  ;;  %v1637_v19 = vadd.f32 %v1636_v5, %v1635_v1  ;;  %v1381_v30 = vsel %vm1072_vm7, %v200_v15, 0.0  ;;  %v1896_v31 = vadd.f32 %v1895_v13, %v1894_v12  ;;  %v84_v5 = vld [vmem:[%s12524_s0 + $0x120] sm:$0xff]  ;;  %v331_v12 = vld [vmem:[%s12524_s0 + $0x8d8] sm:$0xff] }
  0x8d   :  { %v1119_v22 = vadd.f32 %v1118_v16, %v1117_v11  ;;  %v1124_v32 = vsel %vm1072_vm7, %v74_v20, 0.0  ;;  %v1897_v34 = vsel %vm1072_vm7, %v453_v21, 0.0  ;;  %v1640_v39 = vsel %vm1072_vm7, %v327_v24, 0.0  ;;  %v205_v11 = vld [vmem:[%s12524_s0 + $0x4e8] sm:$0xff]  ;;  %v455_v13 = vld [vmem:[%s12524_s0 + $0xcb8] sm:$0xff]  ;;  %v332_v24 = vld [vmem:[%s12524_s0 + $0x8e0] sm:$0xff] }
  0x8e   :  { %v1380_v26 = vadd.f32 %v1379_v18, %v1378_v17  ;;  %v1639_v33 = vadd.f32 %v1638_v23, %v1637_v19  ;;  %v1126_v43 = vsel %vm1072_vm7, %v75_v27, 0.0  ;;  %v1898_v49 = vadd.f32 %v1897_v34, %v1896_v31  ;;  %v86_v18 = vld [vmem:[%s12524_s0 + $0x130] sm:$0xff] }
  0x8f   :  { %v1121_v28 = vadd.f32 %v1120_v25, %v1119_v22  ;;  %v1128_v53 = vsel %vm1072_vm7, %v76_v35, 0.0  ;;  %v1130_v54 = vsel %vm1072_vm7, %v77_v36, 0.0  ;;  %v1899_v56 = vsel %vm1072_vm7, %v454_v37, 0.0  ;;  %v206_v23 = vld [vmem:[%s12524_s0 + $0x4f0] sm:$0xff]  ;;  %v456_v25 = vld [vmem:[%s12524_s0 + $0xcc0] sm:$0xff]  ;;  %v207_v35 = vld [vmem:[%s12524_s0 + $0x4f8] sm:$0xff] }
  0x90   :  { %v1382_v44 = vadd.f32 %v1381_v30, %v1380_v26  ;;  %v1641_v55 = vadd.f32 %v1640_v39, %v1639_v33  ;;  %v1132_v59 = vsel %vm1072_vm7, %v78_v40, 0.0  ;;  %v1134_v60 = vsel %vm1072_vm7, %v79_v41, 0.0  ;;  %v87_v30 = vld [vmem:[%s12524_s0 + $0x138] sm:$0xff]  ;;  %v333_v36 = vld [vmem:[%s12524_s0 + $0x8e8] sm:$0xff] }
  0x91   :  { %v1123_v38 = vadd.f32 %v1122_v29, %v1121_v28  ;;  %v1383_v61 = vsel %vm1072_vm7, %v201_v42, 0.0  ;;  %v1136_v1 = vsel %vm1072_vm7, %v80_v45, 0.0  ;;  %v6170_v2 = vsel %vm1072_vm7, %v81_v46, 0.0  ;;  %v457_v37 = vld [vmem:[%s12524_s0 + $0xcc8] sm:$0xff]  ;;  %v88_v42 = vld [vmem:[%s12524_s0 + $0x140] sm:$0xff] }
  0x92   :  { %v1384_v3 = vadd.f32 %v1383_v61, %v1382_v44  ;;  %v1385_v4 = vsel %vm1072_vm7, %v202_v47, 0.0  ;;  %v1387_v8 = vsel %vm1072_vm7, %v203_v50, 0.0  ;;  %v1642_v9 = vsel %vm1072_vm7, %v328_v51, 0.0  ;;  %v208_v47 = vld [vmem:[%s12524_s0 + $0x500] sm:$0xff]  ;;  %v459_v61 = vld [vmem:[%s12524_s0 + $0xcd8] sm:$0xff] }
  0x93   :  { %v1125_v48 = vadd.f32 %v1124_v32, %v1123_v38  ;;  %v1644_v10 = vsel %vm1072_vm7, %v329_v52, 0.0  ;;  %v6192_v14 = vsel %vm1072_vm7, %v82_v57, 0.0  ;;  %v1643_v16 = vadd.f32 %v1642_v9, %v1641_v55  ;;  %v336_v9 = vld [vmem:[%s12524_s0 + $0x900] sm:$0xff] }
  0x94   :  { %v1386_v15 = vadd.f32 %v1385_v4, %v1384_v3  ;;  %v1900_v17 = vadd.f32 %v1899_v56, %v1898_v49  ;;  %v6198_v20 = vsel %vm1072_vm7, %v83_v62, 0.0  ;;  %v1389_v21 = vsel %vm1072_vm7, %v204_v63, 0.0  ;;  %v458_v49 = vld [vmem:[%s12524_s0 + $0xcd0] sm:$0xff] }
  0x95   :  { %v1127_v58 = vadd.f32 %v1126_v43, %v1125_v48  ;;  %v1646_v22 = vsel %vm1072_vm7, %v330_v0, 0.0  ;;  %v6212_v26 = vsel %vm1072_vm7, %v84_v5, 0.0  ;;  %v6215_v27 = vsel %vm1072_vm7, %v85_v6, 0.0  ;;  %v334_v48 = vld [vmem:[%s12524_s0 + $0x8f0] sm:$0xff] }
  0x96   :  { %v1388_v28 = vadd.f32 %v1387_v8, %v1386_v15  ;;  %v1645_v29 = vadd.f32 %v1644_v10, %v1643_v16  ;;  %v1391_v32 = vsel %vm1072_vm7, %v205_v11, 0.0  ;;  %v1648_v33 = vsel %vm1072_vm7, %v331_v12, 0.0  ;;  %v90_v3 = vld [vmem:[%s12524_s0 + $0x150] sm:$0xff]  ;;  %v460_v10 = vld [vmem:[%s12524_s0 + $0xce0] sm:$0xff]  ;;  %v91_v15 = vld [vmem:[%s12524_s0 + $0x158] sm:$0xff] }
  0x97   :  { %v1129_v7 = vadd.f32 %v1128_v53, %v1127_v58  ;;  %v1901_v34 = vsel %vm1072_vm7, %v455_v13, 0.0  ;;  %v6233_v38 = vsel %vm1072_vm7, %v86_v18, 0.0  ;;  %v1393_v44 = vsel %vm1072_vm7, %v206_v23, 0.0  ;;  %v210_v8 = vld [vmem:[%s12524_s0 + $0x510] sm:$0xff]  ;;  %v461_v23 = vld [vmem:[%s12524_s0 + $0xce8] sm:$0xff] }
  0x98   :  { %v1390_v39 = vadd.f32 %v1389_v21, %v1388_v28  ;;  %v1647_v40 = vadd.f32 %v1646_v22, %v1645_v29  ;;  %v1902_v41 = vadd.f32 %v1901_v34, %v1900_v17  ;;  %v1650_v45 = vsel %vm1072_vm7, %v332_v24, 0.0  ;;  %v211_v21 = vld [vmem:[%s12524_s0 + $0x518] sm:$0xff]  ;;  %v337_v22 = vld [vmem:[%s12524_s0 + $0x908] sm:$0xff]  ;;  %v92_v29 = vld [vmem:[%s12524_s0 + $0x160] sm:$0xff] }
  0x99   :  { %v1131_v19 = vadd.f32 %v1130_v54, %v1129_v7  ;;  %v1903_v46 = vsel %vm1072_vm7, %v456_v25, 0.0  ;;  %v6251_v50 = vsel %vm1072_vm7, %v87_v30, 0.0  ;;  %v89_v54 = vld [vmem:[%s12524_s0 + $0x148] sm:$0xff]  ;;  %v1395_v56 = vsel %vm1072_vm7, %v207_v35, 0.0  ;;  %v212_v34 = vld [vmem:[%s12524_s0 + $0x520] sm:$0xff]  ;;  %v338_v35 = vld [vmem:[%s12524_s0 + $0x910] sm:$0xff] }
  0x9a   :  { %v1392_v51 = vadd.f32 %v1391_v32, %v1390_v39  ;;  %v1649_v52 = vadd.f32 %v1648_v33, %v1647_v40  ;;  %v1904_v53 = vadd.f32 %v1903_v46, %v1902_v41  ;;  %v1652_v57 = vsel %vm1072_vm7, %v333_v36, 0.0  ;;  %v462_v36 = vld [vmem:[%s12524_s0 + $0xcf0] sm:$0xff]  ;;  %v93_v41 = vld [vmem:[%s12524_s0 + $0x168] sm:$0xff] }
  0x9b   :  { %v1133_v31 = vadd.f32 %v1132_v59, %v1131_v19  ;;  %v1905_v58 = vsel %vm1072_vm7, %v457_v37, 0.0  ;;  %v209_v59 = vld [vmem:[%s12524_s0 + $0x508] sm:$0xff]  ;;  %v6269_v62 = vsel %vm1072_vm7, %v88_v42, 0.0  ;;  %v1397_v5 = vsel %vm1072_vm7, %v208_v47, 0.0  ;;  %v339_v47 = vld [vmem:[%s12524_s0 + $0x918] sm:$0xff] }
  0x9c   :  { %v1394_v63 = vadd.f32 %v1393_v44, %v1392_v51  ;;  %v1651_v0 = vadd.f32 %v1650_v45, %v1649_v52  ;;  %v1654_v6 = vsel %vm1072_vm7, %v334_v48, 0.0  ;;  %v1907_v7 = vsel %vm1072_vm7, %v458_v49, 0.0  ;;  %v213_v46 = vld [vmem:[%s12524_s0 + $0x528] sm:$0xff]  ;;  %v463_v48 = vld [vmem:[%s12524_s0 + $0xcf8] sm:$0xff] }
  0x9d   :  { %v1135_v43 = vadd.f32 %v1134_v60, %v1133_v31  ;;  %v335_v60 = vld [vmem:[%s12524_s0 + $0x8f8] sm:$0xff]  ;;  %v1399_v17 = vsel %vm1072_vm7, %v209_v59, 0.0  ;;  %v1909_v19 = vsel %vm1072_vm7, %v459_v61, 0.0  ;;  %v1401_v31 = vsel %vm1072_vm7, %v210_v8, 0.0  ;;  %v340_v59 = vld [vmem:[%s12524_s0 + $0x920] sm:$0xff]  ;;  %v341_v8 = vld [vmem:[%s12524_s0 + $0x928] sm:$0xff] }
  0x9e   :  { %v1396_v11 = vadd.f32 %v1395_v56, %v1394_v63  ;;  %v1653_v12 = vadd.f32 %v1652_v57, %v1651_v0  ;;  %v1656_v18 = vsel %vm1072_vm7, %v335_v60, 0.0  ;;  %v1658_v32 = vsel %vm1072_vm7, %v336_v9, 0.0  ;;  %v464_v60 = vld [vmem:[%s12524_s0 + $0xd00] sm:$0xff]  ;;  %v465_v9 = vld [vmem:[%s12524_s0 + $0xd08] sm:$0xff] }
  0x9f   :  { %v1137_v55 = vadd.f32 %v1136_v1, %v1135_v43  ;;  %v1906_v1 = vadd.f32 %v1905_v58, %v1904_v53  ;;  %v1911_v33 = vsel %vm1072_vm7, %v460_v10, 0.0  ;;  %v1403_v43 = vsel %vm1072_vm7, %v211_v21, 0.0  ;;  %v94_v53 = vld [vmem:[%s12524_s0 + $0x170] sm:$0xff] }
  0xa0   :  { %v1398_v24 = vadd.f32 %v1397_v5, %v1396_v11  ;;  %v1655_v25 = vadd.f32 %v1654_v6, %v1653_v12  ;;  %v1660_v44 = vsel %vm1072_vm7, %v337_v22, 0.0  ;;  %v1913_v45 = vsel %vm1072_vm7, %v461_v23, 0.0  ;;  %v214_v58 = vld [vmem:[%s12524_s0 + $0x530] sm:$0xff] }
  0xa1   :  { %v1139_v4 = vadd.f32 %v6170_v2, %v1137_v55  ;;  %v6288_v2 = vsel %vm1072_vm7, %v89_v54, 0.0  ;;  %v1908_v13 = vadd.f32 %v1907_v7, %v1906_v1  ;;  %v1405_v55 = vsel %vm1072_vm7, %v212_v34, 0.0  ;;  %v95_v1 = vld [vmem:[%s12524_s0 + $0x178] sm:$0xff]  ;;  %v342_v21 = vld [vmem:[%s12524_s0 + $0x930] sm:$0xff] }
  0xa2   :  { %v1400_v37 = vadd.f32 %v1399_v17, %v1398_v24  ;;  %v1657_v39 = vadd.f32 %v1656_v18, %v1655_v25  ;;  %v1662_v56 = vsel %vm1072_vm7, %v338_v35, 0.0  ;;  %v1915_v57 = vsel %vm1072_vm7, %v462_v36, 0.0  ;;  %v215_v7 = vld [vmem:[%s12524_s0 + $0x538] sm:$0xff]  ;;  %v466_v22 = vld [vmem:[%s12524_s0 + $0xd10] sm:$0xff] }
  0xa3   :  { %v1141_v16 = vadd.f32 %v6192_v14, %v1139_v4  ;;  %v6307_v14 = vsel %vm1072_vm7, %v90_v3, 0.0  ;;  %v1910_v28 = vadd.f32 %v1909_v19, %v1908_v13  ;;  %v1407_v4 = vsel %vm1072_vm7, %v213_v46, 0.0  ;;  %v96_v13 = vld [vmem:[%s12524_s0 + $0x180] sm:$0xff]  ;;  %v343_v34 = vld [vmem:[%s12524_s0 + $0x938] sm:$0xff] }
  0xa4   :  { %v1402_v49 = vadd.f32 %v1401_v31, %v1400_v37  ;;  %v1659_v51 = vadd.f32 %v1658_v32, %v1657_v39  ;;  %v1664_v5 = vsel %vm1072_vm7, %v339_v47, 0.0  ;;  %v1917_v6 = vsel %vm1072_vm7, %v463_v48, 0.0  ;;  %v216_v19 = vld [vmem:[%s12524_s0 + $0x540] sm:$0xff]  ;;  %v467_v35 = vld [vmem:[%s12524_s0 + $0xd18] sm:$0xff] }
  0xa5   :  { %v1143_v30 = vadd.f32 %v6198_v20, %v1141_v16  ;;  %v6326_v20 = vsel %vm1072_vm7, %v91_v15, 0.0  ;;  %v1912_v40 = vadd.f32 %v1911_v33, %v1910_v28  ;;  %v1409_v16 = vsel %vm1072_vm7, %v214_v58, 0.0  ;;  %v97_v28 = vld [vmem:[%s12524_s0 + $0x188] sm:$0xff]  ;;  %v344_v46 = vld [vmem:[%s12524_s0 + $0x940] sm:$0xff] }
  0xa6   :  { %v1404_v61 = vadd.f32 %v1403_v43, %v1402_v49  ;;  %v1661_v63 = vadd.f32 %v1660_v44, %v1659_v51  ;;  %v1666_v17 = vsel %vm1072_vm7, %v340_v59, 0.0  ;;  %v1919_v18 = vsel %vm1072_vm7, %v464_v60, 0.0  ;;  %v217_v33 = vld [vmem:[%s12524_s0 + $0x548] sm:$0xff]  ;;  %v468_v47 = vld [vmem:[%s12524_s0 + $0xd20] sm:$0xff] }
  0xa7   :  { %v1145_v42 = vadd.f32 %v6212_v26, %v1143_v30  ;;  %v6345_v26 = vsel %vm1072_vm7, %v92_v29, 0.0  ;;  %v1914_v52 = vadd.f32 %v1913_v45, %v1912_v40  ;;  %v1411_v30 = vsel %vm1072_vm7, %v215_v7, 0.0  ;;  %v98_v40 = vld [vmem:[%s12524_s0 + $0x190] sm:$0xff]  ;;  %v345_v58 = vld [vmem:[%s12524_s0 + $0x948] sm:$0xff] }
  0xa8   :  { %v1406_v10 = vadd.f32 %v1405_v55, %v1404_v61  ;;  %v1663_v11 = vadd.f32 %v1662_v56, %v1661_v63  ;;  %v1668_v31 = vsel %vm1072_vm7, %v341_v8, 0.0  ;;  %v1921_v32 = vsel %vm1072_vm7, %v465_v9, 0.0  ;;  %v218_v45 = vld [vmem:[%s12524_s0 + $0x550] sm:$0xff]  ;;  %v469_v59 = vld [vmem:[%s12524_s0 + $0xd28] sm:$0xff] }
  0xa9   :  { %v1147_v54 = vadd.f32 %v6215_v27, %v1145_v42  ;;  %v6364_v27 = vsel %vm1072_vm7, %v93_v41, 0.0  ;;  %v1916_v0 = vadd.f32 %v1915_v57, %v1914_v52  ;;  %v1413_v42 = vsel %vm1072_vm7, %v216_v19, 0.0  ;;  %v99_v52 = vld [vmem:[%s12524_s0 + $0x198] sm:$0xff]  ;;  %v346_v7 = vld [vmem:[%s12524_s0 + $0x950] sm:$0xff] }
  0xaa   :  { %v1408_v23 = vadd.f32 %v1407_v4, %v1406_v10  ;;  %v1665_v24 = vadd.f32 %v1664_v5, %v1663_v11  ;;  %v1670_v43 = vsel %vm1072_vm7, %v342_v21, 0.0  ;;  %v1923_v44 = vsel %vm1072_vm7, %v466_v22, 0.0  ;;  %v219_v57 = vld [vmem:[%s12524_s0 + $0x558] sm:$0xff]  ;;  %v470_v8 = vld [vmem:[%s12524_s0 + $0xd30] sm:$0xff] }
  0xab   :  { %v1149_v3 = vadd.f32 %v6233_v38, %v1147_v54  ;;  %v6383_v38 = vsel %vm1072_vm7, %v94_v53, 0.0  ;;  %v1918_v12 = vadd.f32 %v1917_v6, %v1916_v0  ;;  %v1415_v54 = vsel %vm1072_vm7, %v217_v33, 0.0  ;;  %v100_v0 = vld [vmem:[%s12524_s0 + $0x1a0] sm:$0xff]  ;;  %v347_v19 = vld [vmem:[%s12524_s0 + $0x958] sm:$0xff] }
  0xac   :  { %v1410_v36 = vadd.f32 %v1409_v16, %v1408_v23  ;;  %v1667_v37 = vadd.f32 %v1666_v17, %v1665_v24  ;;  %v1672_v55 = vsel %vm1072_vm7, %v343_v34, 0.0  ;;  %v1925_v56 = vsel %vm1072_vm7, %v467_v35, 0.0  ;;  %v220_v6 = vld [vmem:[%s12524_s0 + $0x560] sm:$0xff]  ;;  %v471_v21 = vld [vmem:[%s12524_s0 + $0xd38] sm:$0xff] }
  0xad   :  { %v1151_v15 = vadd.f32 %v6251_v50, %v1149_v3  ;;  %v6402_v50 = vsel %vm1072_vm7, %v95_v1, 0.0  ;;  %v1920_v25 = vadd.f32 %v1919_v18, %v1918_v12  ;;  %v1417_v3 = vsel %vm1072_vm7, %v218_v45, 0.0  ;;  %v101_v12 = vld [vmem:[%s12524_s0 + $0x1a8] sm:$0xff]  ;;  %v348_v33 = vld [vmem:[%s12524_s0 + $0x960] sm:$0xff] }
  0xae   :  { %v1412_v48 = vadd.f32 %v1411_v30, %v1410_v36  ;;  %v1669_v49 = vadd.f32 %v1668_v31, %v1667_v37  ;;  %v1674_v4 = vsel %vm1072_vm7, %v344_v46, 0.0  ;;  %v1927_v5 = vsel %vm1072_vm7, %v468_v47, 0.0  ;;  %v221_v18 = vld [vmem:[%s12524_s0 + $0x568] sm:$0xff]  ;;  %v472_v34 = vld [vmem:[%s12524_s0 + $0xd40] sm:$0xff] }
  0xaf   :  { %v1153_v29 = vadd.f32 %v6269_v62, %v1151_v15  ;;  %v6421_v62 = vsel %vm1072_vm7, %v96_v13, 0.0  ;;  %v1922_v39 = vadd.f32 %v1921_v32, %v1920_v25  ;;  %v1419_v15 = vsel %vm1072_vm7, %v219_v57, 0.0  ;;  %v102_v25 = vld [vmem:[%s12524_s0 + $0x1b0] sm:$0xff]  ;;  %v349_v45 = vld [vmem:[%s12524_s0 + $0x968] sm:$0xff] }
  0xb0   :  { %v1414_v60 = vadd.f32 %v1413_v42, %v1412_v48  ;;  %v1671_v61 = vadd.f32 %v1670_v43, %v1669_v49  ;;  %v1676_v16 = vsel %vm1072_vm7, %v345_v58, 0.0  ;;  %v1929_v17 = vsel %vm1072_vm7, %v469_v59, 0.0  ;;  %v222_v32 = vld [vmem:[%s12524_s0 + $0x570] sm:$0xff]  ;;  %v473_v46 = vld [vmem:[%s12524_s0 + $0xd48] sm:$0xff] }
  0xb1   :  { %v1155_v41 = vadd.f32 %v6288_v2, %v1153_v29  ;;  %v6440_v2 = vsel %vm1072_vm7, %v97_v28, 0.0  ;;  %v1924_v51 = vadd.f32 %v1923_v44, %v1922_v39  ;;  %v1421_v29 = vsel %vm1072_vm7, %v220_v6, 0.0  ;;  %v103_v39 = vld [vmem:[%s12524_s0 + $0x1b8] sm:$0xff]  ;;  %v350_v57 = vld [vmem:[%s12524_s0 + $0x970] sm:$0xff] }
  0xb2   :  { %v1416_v9 = vadd.f32 %v1415_v54, %v1414_v60  ;;  %v1673_v10 = vadd.f32 %v1672_v55, %v1671_v61  ;;  %v1678_v30 = vsel %vm1072_vm7, %v346_v7, 0.0  ;;  %v1931_v31 = vsel %vm1072_vm7, %v470_v8, 0.0  ;;  %v223_v44 = vld [vmem:[%s12524_s0 + $0x578] sm:$0xff]  ;;  %v474_v58 = vld [vmem:[%s12524_s0 + $0xd50] sm:$0xff] }
  0xb3   :  { %v1157_v53 = vadd.f32 %v6307_v14, %v1155_v41  ;;  %v6459_v14 = vsel %vm1072_vm7, %v98_v40, 0.0  ;;  %v1926_v63 = vadd.f32 %v1925_v56, %v1924_v51  ;;  %v1423_v41 = vsel %vm1072_vm7, %v221_v18, 0.0  ;;  %v104_v51 = vld [vmem:[%s12524_s0 + $0x1c0] sm:$0xff]  ;;  %v351_v6 = vld [vmem:[%s12524_s0 + $0x978] sm:$0xff] }
  0xb4   :  { %v1418_v22 = vadd.f32 %v1417_v3, %v1416_v9  ;;  %v1675_v23 = vadd.f32 %v1674_v4, %v1673_v10  ;;  %v1680_v42 = vsel %vm1072_vm7, %v347_v19, 0.0  ;;  %v1933_v43 = vsel %vm1072_vm7, %v471_v21, 0.0  ;;  %v224_v56 = vld [vmem:[%s12524_s0 + $0x580] sm:$0xff]  ;;  %v475_v7 = vld [vmem:[%s12524_s0 + $0xd58] sm:$0xff] }
  0xb5   :  { %v1159_v1 = vadd.f32 %v6326_v20, %v1157_v53  ;;  %v6478_v20 = vsel %vm1072_vm7, %v99_v52, 0.0  ;;  %v1928_v11 = vadd.f32 %v1927_v5, %v1926_v63  ;;  %v1425_v53 = vsel %vm1072_vm7, %v222_v32, 0.0  ;;  %v105_v63 = vld [vmem:[%s12524_s0 + $0x1c8] sm:$0xff]  ;;  %v352_v18 = vld [vmem:[%s12524_s0 + $0x980] sm:$0xff] }
  0xb6   :  { %v1420_v35 = vadd.f32 %v1419_v15, %v1418_v22  ;;  %v1677_v36 = vadd.f32 %v1676_v16, %v1675_v23  ;;  %v1682_v54 = vsel %vm1072_vm7, %v348_v33, 0.0  ;;  %v1935_v55 = vsel %vm1072_vm7, %v472_v34, 0.0  ;;  %v225_v5 = vld [vmem:[%s12524_s0 + $0x588] sm:$0xff]  ;;  %v476_v19 = vld [vmem:[%s12524_s0 + $0xd60] sm:$0xff] }
  0xb7   :  { %v1161_v13 = vadd.f32 %v6345_v26, %v1159_v1  ;;  %v6497_v26 = vsel %vm1072_vm7, %v100_v0, 0.0  ;;  %v1930_v24 = vadd.f32 %v1929_v17, %v1928_v11  ;;  %v1427_v1 = vsel %vm1072_vm7, %v223_v44, 0.0  ;;  %v106_v11 = vld [vmem:[%s12524_s0 + $0x1d0] sm:$0xff]  ;;  %v353_v32 = vld [vmem:[%s12524_s0 + $0x988] sm:$0xff] }
  0xb8   :  { %v1422_v47 = vadd.f32 %v1421_v29, %v1420_v35  ;;  %v1679_v48 = vadd.f32 %v1678_v30, %v1677_v36  ;;  %v1684_v3 = vsel %vm1072_vm7, %v349_v45, 0.0  ;;  %v1937_v4 = vsel %vm1072_vm7, %v473_v46, 0.0  ;;  %v226_v17 = vld [vmem:[%s12524_s0 + $0x590] sm:$0xff]  ;;  %v477_v33 = vld [vmem:[%s12524_s0 + $0xd68] sm:$0xff] }
  0xb9   :  { %v1163_v28 = vadd.f32 %v6364_v27, %v1161_v13  ;;  %v6516_v27 = vsel %vm1072_vm7, %v101_v12, 0.0  ;;  %v1932_v37 = vadd.f32 %v1931_v31, %v1930_v24  ;;  %v1429_v13 = vsel %vm1072_vm7, %v224_v56, 0.0  ;;  %v107_v24 = vld [vmem:[%s12524_s0 + $0x1d8] sm:$0xff]  ;;  %v354_v44 = vld [vmem:[%s12524_s0 + $0x990] sm:$0xff] }
  0xba   :  { %v1424_v59 = vadd.f32 %v1423_v41, %v1422_v47  ;;  %v1681_v60 = vadd.f32 %v1680_v42, %v1679_v48  ;;  %v1686_v15 = vsel %vm1072_vm7, %v350_v57, 0.0  ;;  %v1939_v16 = vsel %vm1072_vm7, %v474_v58, 0.0  ;;  %v227_v31 = vld [vmem:[%s12524_s0 + $0x598] sm:$0xff]  ;;  %v478_v45 = vld [vmem:[%s12524_s0 + $0xd70] sm:$0xff] }
  0xbb   :  { %v1165_v40 = vadd.f32 %v6383_v38, %v1163_v28  ;;  %v6535_v38 = vsel %vm1072_vm7, %v102_v25, 0.0  ;;  %v1934_v49 = vadd.f32 %v1933_v43, %v1932_v37  ;;  %v1431_v28 = vsel %vm1072_vm7, %v225_v5, 0.0  ;;  %v108_v37 = vld [vmem:[%s12524_s0 + $0x1e0] sm:$0xff]  ;;  %v355_v56 = vld [vmem:[%s12524_s0 + $0x998] sm:$0xff] }
  0xbc   :  { %v1426_v8 = vadd.f32 %v1425_v53, %v1424_v59  ;;  %v1683_v9 = vadd.f32 %v1682_v54, %v1681_v60  ;;  %v1688_v29 = vsel %vm1072_vm7, %v351_v6, 0.0  ;;  %v1941_v30 = vsel %vm1072_vm7, %v475_v7, 0.0  ;;  %v228_v43 = vld [vmem:[%s12524_s0 + $0x5a0] sm:$0xff]  ;;  %v479_v57 = vld [vmem:[%s12524_s0 + $0xd78] sm:$0xff] }
  0xbd   :  { %v1167_v52 = vadd.f32 %v6402_v50, %v1165_v40  ;;  %v6554_v50 = vsel %vm1072_vm7, %v103_v39, 0.0  ;;  %v1936_v61 = vadd.f32 %v1935_v55, %v1934_v49  ;;  %v1433_v40 = vsel %vm1072_vm7, %v226_v17, 0.0  ;;  %v109_v49 = vld [vmem:[%s12524_s0 + $0x1e8] sm:$0xff]  ;;  %v356_v5 = vld [vmem:[%s12524_s0 + $0x9a0] sm:$0xff] }
  0xbe   :  { %v1428_v21 = vadd.f32 %v1427_v1, %v1426_v8  ;;  %v1685_v22 = vadd.f32 %v1684_v3, %v1683_v9  ;;  %v1690_v41 = vsel %vm1072_vm7, %v352_v18, 0.0  ;;  %v1943_v42 = vsel %vm1072_vm7, %v476_v19, 0.0  ;;  %v229_v55 = vld [vmem:[%s12524_s0 + $0x5a8] sm:$0xff]  ;;  %v480_v6 = vld [vmem:[%s12524_s0 + $0xd80] sm:$0xff] }
  0xbf   :  { %v1169_v0 = vadd.f32 %v6421_v62, %v1167_v52  ;;  %v6573_v62 = vsel %vm1072_vm7, %v104_v51, 0.0  ;;  %v1938_v10 = vadd.f32 %v1937_v4, %v1936_v61  ;;  %v1435_v52 = vsel %vm1072_vm7, %v227_v31, 0.0  ;;  %v110_v61 = vld [vmem:[%s12524_s0 + $0x1f0] sm:$0xff]  ;;  %v357_v17 = vld [vmem:[%s12524_s0 + $0x9a8] sm:$0xff] }
  0xc0   :  { %v1430_v34 = vadd.f32 %v1429_v13, %v1428_v21  ;;  %v1687_v35 = vadd.f32 %v1686_v15, %v1685_v22  ;;  %v1692_v53 = vsel %vm1072_vm7, %v353_v32, 0.0  ;;  %v1945_v54 = vsel %vm1072_vm7, %v477_v33, 0.0  ;;  %v230_v4 = vld [vmem:[%s12524_s0 + $0x5b0] sm:$0xff]  ;;  %v481_v18 = vld [vmem:[%s12524_s0 + $0xd88] sm:$0xff] }
  0xc1   :  { %v1171_v12 = vadd.f32 %v6440_v2, %v1169_v0  ;;  %v6592_v2 = vsel %vm1072_vm7, %v105_v63, 0.0  ;;  %v1940_v23 = vadd.f32 %v1939_v16, %v1938_v10  ;;  %v1437_v0 = vsel %vm1072_vm7, %v228_v43, 0.0  ;;  %v111_v10 = vld [vmem:[%s12524_s0 + $0x1f8] sm:$0xff]  ;;  %v358_v31 = vld [vmem:[%s12524_s0 + $0x9b0] sm:$0xff] }
  0xc2   :  { %v1432_v46 = vadd.f32 %v1431_v28, %v1430_v34  ;;  %v1689_v47 = vadd.f32 %v1688_v29, %v1687_v35  ;;  %v1694_v1 = vsel %vm1072_vm7, %v354_v44, 0.0  ;;  %v1947_v3 = vsel %vm1072_vm7, %v478_v45, 0.0  ;;  %v231_v16 = vld [vmem:[%s12524_s0 + $0x5b8] sm:$0xff]  ;;  %v482_v32 = vld [vmem:[%s12524_s0 + $0xd90] sm:$0xff] }
  0xc3   :  { %v1173_v25 = vadd.f32 %v6459_v14, %v1171_v12  ;;  %v6611_v14 = vsel %vm1072_vm7, %v106_v11, 0.0  ;;  %v1942_v36 = vadd.f32 %v1941_v30, %v1940_v23  ;;  %v1439_v12 = vsel %vm1072_vm7, %v229_v55, 0.0  ;;  %v112_v23 = vld [vmem:[%s12524_s0 + $0x200] sm:$0xff]  ;;  %v359_v43 = vld [vmem:[%s12524_s0 + $0x9b8] sm:$0xff] }
  0xc4   :  { %v1434_v58 = vadd.f32 %v1433_v40, %v1432_v46  ;;  %v1691_v59 = vadd.f32 %v1690_v41, %v1689_v47  ;;  %v1696_v13 = vsel %vm1072_vm7, %v355_v56, 0.0  ;;  %v1949_v15 = vsel %vm1072_vm7, %v479_v57, 0.0  ;;  %v232_v30 = vld [vmem:[%s12524_s0 + $0x5c0] sm:$0xff]  ;;  %v483_v44 = vld [vmem:[%s12524_s0 + $0xd98] sm:$0xff] }
  0xc5   :  { %v1175_v39 = vadd.f32 %v6478_v20, %v1173_v25  ;;  %v6630_v20 = vsel %vm1072_vm7, %v107_v24, 0.0  ;;  %v1944_v48 = vadd.f32 %v1943_v42, %v1942_v36  ;;  %v1441_v25 = vsel %vm1072_vm7, %v230_v4, 0.0  ;;  %v113_v36 = vld [vmem:[%s12524_s0 + $0x208] sm:$0xff]  ;;  %v360_v55 = vld [vmem:[%s12524_s0 + $0x9c0] sm:$0xff] }
  0xc6   :  { %v1436_v7 = vadd.f32 %v1435_v52, %v1434_v58  ;;  %v1693_v8 = vadd.f32 %v1692_v53, %v1691_v59  ;;  %v1698_v28 = vsel %vm1072_vm7, %v356_v5, 0.0  ;;  %v1951_v29 = vsel %vm1072_vm7, %v480_v6, 0.0  ;;  %v233_v42 = vld [vmem:[%s12524_s0 + $0x5c8] sm:$0xff]  ;;  %v484_v56 = vld [vmem:[%s12524_s0 + $0xda0] sm:$0xff] }
  0xc7   :  { %v1177_v51 = vadd.f32 %v6497_v26, %v1175_v39  ;;  %v6649_v26 = vsel %vm1072_vm7, %v108_v37, 0.0  ;;  %v1946_v60 = vadd.f32 %v1945_v54, %v1944_v48  ;;  %v1443_v39 = vsel %vm1072_vm7, %v231_v16, 0.0  ;;  %v114_v48 = vld [vmem:[%s12524_s0 + $0x210] sm:$0xff]  ;;  %v361_v4 = vld [vmem:[%s12524_s0 + $0x9c8] sm:$0xff] }
  0xc8   :  { %v1438_v19 = vadd.f32 %v1437_v0, %v1436_v7  ;;  %v1695_v21 = vadd.f32 %v1694_v1, %v1693_v8  ;;  %v1700_v40 = vsel %vm1072_vm7, %v357_v17, 0.0  ;;  %v1953_v41 = vsel %vm1072_vm7, %v481_v18, 0.0  ;;  %v234_v54 = vld [vmem:[%s12524_s0 + $0x5d0] sm:$0xff]  ;;  %v485_v5 = vld [vmem:[%s12524_s0 + $0xda8] sm:$0xff] }
  0xc9   :  { %v1179_v63 = vadd.f32 %v6516_v27, %v1177_v51  ;;  %v6668_v27 = vsel %vm1072_vm7, %v109_v49, 0.0  ;;  %v1948_v9 = vadd.f32 %v1947_v3, %v1946_v60  ;;  %v1445_v51 = vsel %vm1072_vm7, %v232_v30, 0.0  ;;  %v115_v60 = vld [vmem:[%s12524_s0 + $0x218] sm:$0xff]  ;;  %v362_v16 = vld [vmem:[%s12524_s0 + $0x9d0] sm:$0xff] }
  0xca   :  { %v1440_v33 = vadd.f32 %v1439_v12, %v1438_v19  ;;  %v1697_v34 = vadd.f32 %v1696_v13, %v1695_v21  ;;  %v1702_v52 = vsel %vm1072_vm7, %v358_v31, 0.0  ;;  %v1955_v53 = vsel %vm1072_vm7, %v482_v32, 0.0  ;;  %v235_v3 = vld [vmem:[%s12524_s0 + $0x5d8] sm:$0xff]  ;;  %v486_v17 = vld [vmem:[%s12524_s0 + $0xdb0] sm:$0xff] }
  0xcb   :  { %v1181_v11 = vadd.f32 %v6535_v38, %v1179_v63  ;;  %v6687_v38 = vsel %vm1072_vm7, %v110_v61, 0.0  ;;  %v1950_v22 = vadd.f32 %v1949_v15, %v1948_v9  ;;  %v1447_v63 = vsel %vm1072_vm7, %v233_v42, 0.0  ;;  %v116_v9 = vld [vmem:[%s12524_s0 + $0x220] sm:$0xff]  ;;  %v363_v30 = vld [vmem:[%s12524_s0 + $0x9d8] sm:$0xff] }
  0xcc   :  { %v1442_v45 = vadd.f32 %v1441_v25, %v1440_v33  ;;  %v1699_v46 = vadd.f32 %v1698_v28, %v1697_v34  ;;  %v1704_v0 = vsel %vm1072_vm7, %v359_v43, 0.0  ;;  %v1957_v1 = vsel %vm1072_vm7, %v483_v44, 0.0  ;;  %v236_v15 = vld [vmem:[%s12524_s0 + $0x5e0] sm:$0xff]  ;;  %v487_v31 = vld [vmem:[%s12524_s0 + $0xdb8] sm:$0xff] }
  0xcd   :  { %v1183_v24 = vadd.f32 %v6554_v50, %v1181_v11  ;;  %v6706_v50 = vsel %vm1072_vm7, %v111_v10, 0.0  ;;  %v1952_v35 = vadd.f32 %v1951_v29, %v1950_v22  ;;  %v1449_v11 = vsel %vm1072_vm7, %v234_v54, 0.0  ;;  %v117_v22 = vld [vmem:[%s12524_s0 + $0x228] sm:$0xff]  ;;  %v364_v42 = vld [vmem:[%s12524_s0 + $0x9e0] sm:$0xff] }
  0xce   :  { %v1444_v57 = vadd.f32 %v1443_v39, %v1442_v45  ;;  %v1701_v58 = vadd.f32 %v1700_v40, %v1699_v46  ;;  %v1706_v12 = vsel %vm1072_vm7, %v360_v55, 0.0  ;;  %v1959_v13 = vsel %vm1072_vm7, %v484_v56, 0.0  ;;  %v237_v29 = vld [vmem:[%s12524_s0 + $0x5e8] sm:$0xff]  ;;  %v488_v43 = vld [vmem:[%s12524_s0 + $0xdc0] sm:$0xff] }
  0xcf   :  { %v1185_v37 = vadd.f32 %v6573_v62, %v1183_v24  ;;  %v6725_v62 = vsel %vm1072_vm7, %v112_v23, 0.0  ;;  %v1954_v47 = vadd.f32 %v1953_v41, %v1952_v35  ;;  %v1451_v24 = vsel %vm1072_vm7, %v235_v3, 0.0  ;;  %v118_v35 = vld [vmem:[%s12524_s0 + $0x230] sm:$0xff]  ;;  %v365_v54 = vld [vmem:[%s12524_s0 + $0x9e8] sm:$0xff] }
  0xd0   :  { %v1446_v6 = vadd.f32 %v1445_v51, %v1444_v57  ;;  %v1703_v7 = vadd.f32 %v1702_v52, %v1701_v58  ;;  %v1708_v25 = vsel %vm1072_vm7, %v361_v4, 0.0  ;;  %v1961_v28 = vsel %vm1072_vm7, %v485_v5, 0.0  ;;  %v238_v41 = vld [vmem:[%s12524_s0 + $0x5f0] sm:$0xff]  ;;  %v489_v55 = vld [vmem:[%s12524_s0 + $0xdc8] sm:$0xff] }
  0xd1   :  { %v1187_v49 = vadd.f32 %v6592_v2, %v1185_v37  ;;  %v6744_v2 = vsel %vm1072_vm7, %v113_v36, 0.0  ;;  %v1956_v59 = vadd.f32 %v1955_v53, %v1954_v47  ;;  %v1453_v37 = vsel %vm1072_vm7, %v236_v15, 0.0  ;;  %v119_v47 = vld [vmem:[%s12524_s0 + $0x238] sm:$0xff]  ;;  %v366_v3 = vld [vmem:[%s12524_s0 + $0x9f0] sm:$0xff] }
  0xd2   :  { %v1448_v18 = vadd.f32 %v1447_v63, %v1446_v6  ;;  %v1705_v19 = vadd.f32 %v1704_v0, %v1703_v7  ;;  %v1710_v39 = vsel %vm1072_vm7, %v362_v16, 0.0  ;;  %v1963_v40 = vsel %vm1072_vm7, %v486_v17, 0.0  ;;  %v239_v53 = vld [vmem:[%s12524_s0 + $0x5f8] sm:$0xff]  ;;  %v490_v4 = vld [vmem:[%s12524_s0 + $0xdd0] sm:$0xff] }
  0xd3   :  { %v1189_v61 = vadd.f32 %v6611_v14, %v1187_v49  ;;  %v6763_v14 = vsel %vm1072_vm7, %v114_v48, 0.0  ;;  %v1958_v8 = vadd.f32 %v1957_v1, %v1956_v59  ;;  %v1455_v49 = vsel %vm1072_vm7, %v237_v29, 0.0  ;;  %v120_v59 = vld [vmem:[%s12524_s0 + $0x240] sm:$0xff]  ;;  %v367_v15 = vld [vmem:[%s12524_s0 + $0x9f8] sm:$0xff] }
  0xd4   :  { %v1450_v32 = vadd.f32 %v1449_v11, %v1448_v18  ;;  %v1707_v33 = vadd.f32 %v1706_v12, %v1705_v19  ;;  %v1712_v51 = vsel %vm1072_vm7, %v363_v30, 0.0  ;;  %v1965_v52 = vsel %vm1072_vm7, %v487_v31, 0.0  ;;  %v240_v1 = vld [vmem:[%s12524_s0 + $0x600] sm:$0xff]  ;;  %v491_v16 = vld [vmem:[%s12524_s0 + $0xdd8] sm:$0xff] }
  0xd5   :  { %v1191_v10 = vadd.f32 %v6630_v20, %v1189_v61  ;;  %v6782_v20 = vsel %vm1072_vm7, %v115_v60, 0.0  ;;  %v1960_v21 = vadd.f32 %v1959_v13, %v1958_v8  ;;  %v1457_v61 = vsel %vm1072_vm7, %v238_v41, 0.0  ;;  %v121_v8 = vld [vmem:[%s12524_s0 + $0x248] sm:$0xff]  ;;  %v368_v29 = vld [vmem:[%s12524_s0 + $0xa00] sm:$0xff] }
  0xd6   :  { %v1452_v44 = vadd.f32 %v1451_v24, %v1450_v32  ;;  %v1709_v45 = vadd.f32 %v1708_v25, %v1707_v33  ;;  %v1714_v63 = vsel %vm1072_vm7, %v364_v42, 0.0  ;;  %v1967_v0 = vsel %vm1072_vm7, %v488_v43, 0.0  ;;  %v241_v13 = vld [vmem:[%s12524_s0 + $0x608] sm:$0xff]  ;;  %v492_v30 = vld [vmem:[%s12524_s0 + $0xde0] sm:$0xff] }
  0xd7   :  { %v1193_v23 = vadd.f32 %v6649_v26, %v1191_v10  ;;  %v6801_v26 = vsel %vm1072_vm7, %v116_v9, 0.0  ;;  %v1962_v34 = vadd.f32 %v1961_v28, %v1960_v21  ;;  %v1459_v10 = vsel %vm1072_vm7, %v239_v53, 0.0  ;;  %v122_v21 = vld [vmem:[%s12524_s0 + $0x250] sm:$0xff]  ;;  %v369_v41 = vld [vmem:[%s12524_s0 + $0xa08] sm:$0xff] }
  0xd8   :  { %v1454_v56 = vadd.f32 %v1453_v37, %v1452_v44  ;;  %v1711_v57 = vadd.f32 %v1710_v39, %v1709_v45  ;;  %v1716_v11 = vsel %vm1072_vm7, %v365_v54, 0.0  ;;  %v1969_v12 = vsel %vm1072_vm7, %v489_v55, 0.0  ;;  %v242_v28 = vld [vmem:[%s12524_s0 + $0x610] sm:$0xff]  ;;  %v493_v42 = vld [vmem:[%s12524_s0 + $0xde8] sm:$0xff] }
  0xd9   :  { %v1195_v36 = vadd.f32 %v6668_v27, %v1193_v23  ;;  %v6820_v27 = vsel %vm1072_vm7, %v117_v22, 0.0  ;;  %v1964_v46 = vadd.f32 %v1963_v40, %v1962_v34  ;;  %v1461_v23 = vsel %vm1072_vm7, %v240_v1, 0.0  ;;  %v123_v34 = vld [vmem:[%s12524_s0 + $0x258] sm:$0xff]  ;;  %v370_v53 = vld [vmem:[%s12524_s0 + $0xa10] sm:$0xff] }
  0xda   :  { %v1456_v5 = vadd.f32 %v1455_v49, %v1454_v56  ;;  %v1713_v6 = vadd.f32 %v1712_v51, %v1711_v57  ;;  %v1718_v24 = vsel %vm1072_vm7, %v366_v3, 0.0  ;;  %v1971_v25 = vsel %vm1072_vm7, %v490_v4, 0.0  ;;  %v243_v40 = vld [vmem:[%s12524_s0 + $0x618] sm:$0xff]  ;;  %v494_v54 = vld [vmem:[%s12524_s0 + $0xdf0] sm:$0xff] }
  0xdb   :  { %v1197_v48 = vadd.f32 %v6687_v38, %v1195_v36  ;;  %v6839_v38 = vsel %vm1072_vm7, %v118_v35, 0.0  ;;  %v1966_v58 = vadd.f32 %v1965_v52, %v1964_v46  ;;  %v1463_v36 = vsel %vm1072_vm7, %v241_v13, 0.0  ;;  %v124_v46 = vld [vmem:[%s12524_s0 + $0x260] sm:$0xff]  ;;  %v371_v1 = vld [vmem:[%s12524_s0 + $0xa18] sm:$0xff] }
  0xdc   :  { %v1458_v17 = vadd.f32 %v1457_v61, %v1456_v5  ;;  %v1715_v18 = vadd.f32 %v1714_v63, %v1713_v6  ;;  %v1720_v37 = vsel %vm1072_vm7, %v367_v15, 0.0  ;;  %v1973_v39 = vsel %vm1072_vm7, %v491_v16, 0.0  ;;  %v244_v52 = vld [vmem:[%s12524_s0 + $0x620] sm:$0xff]  ;;  %v495_v3 = vld [vmem:[%s12524_s0 + $0xdf8] sm:$0xff] }
  0xdd   :  { %v1199_v60 = vadd.f32 %v6706_v50, %v1197_v48  ;;  %v6858_v50 = vsel %vm1072_vm7, %v119_v47, 0.0  ;;  %v1968_v7 = vadd.f32 %v1967_v0, %v1966_v58  ;;  %v1465_v48 = vsel %vm1072_vm7, %v242_v28, 0.0  ;;  %v125_v58 = vld [vmem:[%s12524_s0 + $0x268] sm:$0xff]  ;;  %v372_v13 = vld [vmem:[%s12524_s0 + $0xa20] sm:$0xff] }
  0xde   :  { %v1460_v31 = vadd.f32 %v1459_v10, %v1458_v17  ;;  %v1717_v32 = vadd.f32 %v1716_v11, %v1715_v18  ;;  %v1722_v49 = vsel %vm1072_vm7, %v368_v29, 0.0  ;;  %v1975_v51 = vsel %vm1072_vm7, %v492_v30, 0.0  ;;  %v245_v0 = vld [vmem:[%s12524_s0 + $0x628] sm:$0xff]  ;;  %v496_v15 = vld [vmem:[%s12524_s0 + $0xe00] sm:$0xff] }
  0xdf   :  { %v1201_v9 = vadd.f32 %v6725_v62, %v1199_v60  ;;  %v6877_v62 = vsel %vm1072_vm7, %v120_v59, 0.0  ;;  %v1970_v19 = vadd.f32 %v1969_v12, %v1968_v7  ;;  %v1467_v60 = vsel %vm1072_vm7, %v243_v40, 0.0  ;;  %v126_v7 = vld [vmem:[%s12524_s0 + $0x270] sm:$0xff]  ;;  %v373_v28 = vld [vmem:[%s12524_s0 + $0xa28] sm:$0xff] }
  0xe0   :  { %v1462_v43 = vadd.f32 %v1461_v23, %v1460_v31  ;;  %v1719_v44 = vadd.f32 %v1718_v24, %v1717_v32  ;;  %v1724_v61 = vsel %vm1072_vm7, %v369_v41, 0.0  ;;  %v1977_v63 = vsel %vm1072_vm7, %v493_v42, 0.0  ;;  %v246_v12 = vld [vmem:[%s12524_s0 + $0x630] sm:$0xff]  ;;  %v497_v29 = vld [vmem:[%s12524_s0 + $0xe08] sm:$0xff] }
  0xe1   :  { %v1203_v22 = vadd.f32 %v6744_v2, %v1201_v9  ;;  %v6896_v2 = vsel %vm1072_vm7, %v121_v8, 0.0  ;;  %v1972_v33 = vadd.f32 %v1971_v25, %v1970_v19  ;;  %v1469_v9 = vsel %vm1072_vm7, %v244_v52, 0.0  ;;  %v127_v19 = vld [vmem:[%s12524_s0 + $0x278] sm:$0xff]  ;;  %v374_v40 = vld [vmem:[%s12524_s0 + $0xa30] sm:$0xff] }
  0xe2   :  { %v1464_v55 = vadd.f32 %v1463_v36, %v1462_v43  ;;  %v1721_v56 = vadd.f32 %v1720_v37, %v1719_v44  ;;  %v1726_v10 = vsel %vm1072_vm7, %v370_v53, 0.0  ;;  %v1979_v11 = vsel %vm1072_vm7, %v494_v54, 0.0  ;;  %v247_v25 = vld [vmem:[%s12524_s0 + $0x638] sm:$0xff]  ;;  %v498_v41 = vld [vmem:[%s12524_s0 + $0xe10] sm:$0xff] }
  0xe3   :  { %v1205_v35 = vadd.f32 %v6763_v14, %v1203_v22  ;;  %v6915_v14 = vsel %vm1072_vm7, %v122_v21, 0.0  ;;  %v1974_v45 = vadd.f32 %v1973_v39, %v1972_v33  ;;  %v1471_v22 = vsel %vm1072_vm7, %v245_v0, 0.0  ;;  %v128_v33 = vld [vmem:[%s12524_s0 + $0x280] sm:$0xff]  ;;  %v375_v52 = vld [vmem:[%s12524_s0 + $0xa38] sm:$0xff] }
  0xe4   :  { %v1466_v4 = vadd.f32 %v1465_v48, %v1464_v55  ;;  %v1723_v5 = vadd.f32 %v1722_v49, %v1721_v56  ;;  %v1728_v23 = vsel %vm1072_vm7, %v371_v1, 0.0  ;;  %v1981_v24 = vsel %vm1072_vm7, %v495_v3, 0.0  ;;  %v248_v39 = vld [vmem:[%s12524_s0 + $0x640] sm:$0xff]  ;;  %v499_v53 = vld [vmem:[%s12524_s0 + $0xe18] sm:$0xff] }
  0xe5   :  { %v1207_v47 = vadd.f32 %v6782_v20, %v1205_v35  ;;  %v6934_v20 = vsel %vm1072_vm7, %v123_v34, 0.0  ;;  %v1976_v57 = vadd.f32 %v1975_v51, %v1974_v45  ;;  %v1473_v35 = vsel %vm1072_vm7, %v246_v12, 0.0  ;;  %v129_v45 = vld [vmem:[%s12524_s0 + $0x288] sm:$0xff]  ;;  %v376_v0 = vld [vmem:[%s12524_s0 + $0xa40] sm:$0xff] }
  0xe6   :  { %v1468_v16 = vadd.f32 %v1467_v60, %v1466_v4  ;;  %v1725_v17 = vadd.f32 %v1724_v61, %v1723_v5  ;;  %v1730_v36 = vsel %vm1072_vm7, %v372_v13, 0.0  ;;  %v1983_v37 = vsel %vm1072_vm7, %v496_v15, 0.0  ;;  %v249_v51 = vld [vmem:[%s12524_s0 + $0x648] sm:$0xff]  ;;  %v500_v1 = vld [vmem:[%s12524_s0 + $0xe20] sm:$0xff] }
  0xe7   :  { %v1209_v59 = vadd.f32 %v6801_v26, %v1207_v47  ;;  %v6953_v26 = vsel %vm1072_vm7, %v124_v46, 0.0  ;;  %v1978_v6 = vadd.f32 %v1977_v63, %v1976_v57  ;;  %v1475_v47 = vsel %vm1072_vm7, %v247_v25, 0.0  ;;  %v130_v57 = vld [vmem:[%s12524_s0 + $0x290] sm:$0xff]  ;;  %v377_v12 = vld [vmem:[%s12524_s0 + $0xa48] sm:$0xff] }
  0xe8   :  { %v1470_v30 = vadd.f32 %v1469_v9, %v1468_v16  ;;  %v1727_v31 = vadd.f32 %v1726_v10, %v1725_v17  ;;  %v1732_v48 = vsel %vm1072_vm7, %v373_v28, 0.0  ;;  %v1985_v49 = vsel %vm1072_vm7, %v497_v29, 0.0  ;;  %v250_v63 = vld [vmem:[%s12524_s0 + $0x650] sm:$0xff]  ;;  %v501_v13 = vld [vmem:[%s12524_s0 + $0xe28] sm:$0xff] }
  0xe9   :  { %v1211_v8 = vadd.f32 %v6820_v27, %v1209_v59  ;;  %v6972_v27 = vsel %vm1072_vm7, %v125_v58, 0.0  ;;  %v1980_v18 = vadd.f32 %v1979_v11, %v1978_v6  ;;  %v1477_v59 = vsel %vm1072_vm7, %v248_v39, 0.0  ;;  %v131_v6 = vld [vmem:[%s12524_s0 + $0x298] sm:$0xff]  ;;  %v378_v25 = vld [vmem:[%s12524_s0 + $0xa50] sm:$0xff] }
  0xea   :  { %v1472_v42 = vadd.f32 %v1471_v22, %v1470_v30  ;;  %v1729_v43 = vadd.f32 %v1728_v23, %v1727_v31  ;;  %v1734_v60 = vsel %vm1072_vm7, %v374_v40, 0.0  ;;  %v1987_v61 = vsel %vm1072_vm7, %v498_v41, 0.0  ;;  %v251_v11 = vld [vmem:[%s12524_s0 + $0x658] sm:$0xff]  ;;  %v502_v28 = vld [vmem:[%s12524_s0 + $0xe30] sm:$0xff] }
  0xeb   :  { %v1213_v21 = vadd.f32 %v6839_v38, %v1211_v8  ;;  %v6991_v38 = vsel %vm1072_vm7, %v126_v7, 0.0  ;;  %v1982_v32 = vadd.f32 %v1981_v24, %v1980_v18  ;;  %v1479_v8 = vsel %vm1072_vm7, %v249_v51, 0.0  ;;  %v132_v18 = vld [vmem:[%s12524_s0 + $0x2a0] sm:$0xff]  ;;  %v379_v39 = vld [vmem:[%s12524_s0 + $0xa58] sm:$0xff] }
  0xec   :  { %v1474_v54 = vadd.f32 %v1473_v35, %v1472_v42  ;;  %v1731_v55 = vadd.f32 %v1730_v36, %v1729_v43  ;;  %v1736_v9 = vsel %vm1072_vm7, %v375_v52, 0.0  ;;  %v1989_v10 = vsel %vm1072_vm7, %v499_v53, 0.0  ;;  %v252_v24 = vld [vmem:[%s12524_s0 + $0x660] sm:$0xff]  ;;  %v503_v40 = vld [vmem:[%s12524_s0 + $0xe38] sm:$0xff] }
  0xed   :  { %v1215_v34 = vadd.f32 %v6858_v50, %v1213_v21  ;;  %v7010_v50 = vsel %vm1072_vm7, %v127_v19, 0.0  ;;  %v1984_v44 = vadd.f32 %v1983_v37, %v1982_v32  ;;  %v1481_v21 = vsel %vm1072_vm7, %v250_v63, 0.0  ;;  %v133_v32 = vld [vmem:[%s12524_s0 + $0x2a8] sm:$0xff]  ;;  %v380_v51 = vld [vmem:[%s12524_s0 + $0xa60] sm:$0xff] }
  0xee   :  { %v1476_v3 = vadd.f32 %v1475_v47, %v1474_v54  ;;  %v1733_v4 = vadd.f32 %v1732_v48, %v1731_v55  ;;  %v1738_v22 = vsel %vm1072_vm7, %v376_v0, 0.0  ;;  %v1991_v23 = vsel %vm1072_vm7, %v500_v1, 0.0  ;;  %v253_v37 = vld [vmem:[%s12524_s0 + $0x668] sm:$0xff]  ;;  %v504_v52 = vld [vmem:[%s12524_s0 + $0xe40] sm:$0xff] }
  0xef   :  { %v1217_v46 = vadd.f32 %v6877_v62, %v1215_v34  ;;  %v7029_v62 = vsel %vm1072_vm7, %v128_v33, 0.0  ;;  %v1986_v56 = vadd.f32 %v1985_v49, %v1984_v44  ;;  %v1483_v34 = vsel %vm1072_vm7, %v251_v11, 0.0  ;;  %v134_v44 = vld [vmem:[%s12524_s0 + $0x2b0] sm:$0xff]  ;;  %v381_v63 = vld [vmem:[%s12524_s0 + $0xa68] sm:$0xff] }
  0xf0   :  { %v1478_v15 = vadd.f32 %v1477_v59, %v1476_v3  ;;  %v1735_v16 = vadd.f32 %v1734_v60, %v1733_v4  ;;  %v1740_v35 = vsel %vm1072_vm7, %v377_v12, 0.0  ;;  %v1993_v36 = vsel %vm1072_vm7, %v501_v13, 0.0  ;;  %v254_v49 = vld [vmem:[%s12524_s0 + $0x670] sm:$0xff]  ;;  %v505_v0 = vld [vmem:[%s12524_s0 + $0xe48] sm:$0xff] }
  0xf1   :  { %v1219_v58 = vadd.f32 %v6896_v2, %v1217_v46  ;;  %v7048_v2 = vsel %vm1072_vm7, %v129_v45, 0.0  ;;  %v1988_v5 = vadd.f32 %v1987_v61, %v1986_v56  ;;  %v1485_v46 = vsel %vm1072_vm7, %v252_v24, 0.0  ;;  %v135_v56 = vld [vmem:[%s12524_s0 + $0x2b8] sm:$0xff]  ;;  %v382_v11 = vld [vmem:[%s12524_s0 + $0xa70] sm:$0xff] }
  0xf2   :  { %v1480_v29 = vadd.f32 %v1479_v8, %v1478_v15  ;;  %v1737_v30 = vadd.f32 %v1736_v9, %v1735_v16  ;;  %v1742_v47 = vsel %vm1072_vm7, %v378_v25, 0.0  ;;  %v1995_v48 = vsel %vm1072_vm7, %v502_v28, 0.0  ;;  %v255_v61 = vld [vmem:[%s12524_s0 + $0x678] sm:$0xff]  ;;  %v506_v12 = vld [vmem:[%s12524_s0 + $0xe50] sm:$0xff] }
  0xf3   :  { %v1221_v7 = vadd.f32 %v6915_v14, %v1219_v58  ;;  %v7067_v14 = vsel %vm1072_vm7, %v130_v57, 0.0  ;;  %v1990_v17 = vadd.f32 %v1989_v10, %v1988_v5  ;;  %v1487_v58 = vsel %vm1072_vm7, %v253_v37, 0.0  ;;  %v136_v5 = vld [vmem:[%s12524_s0 + $0x2c0] sm:$0xff]  ;;  %v383_v24 = vld [vmem:[%s12524_s0 + $0xa78] sm:$0xff] }
  0xf4   :  { %v1482_v41 = vadd.f32 %v1481_v21, %v1480_v29  ;;  %v1739_v42 = vadd.f32 %v1738_v22, %v1737_v30  ;;  %v1744_v59 = vsel %vm1072_vm7, %v379_v39, 0.0  ;;  %v1997_v60 = vsel %vm1072_vm7, %v503_v40, 0.0  ;;  %v256_v10 = vld [vmem:[%s12524_s0 + $0x680] sm:$0xff]  ;;  %v507_v25 = vld [vmem:[%s12524_s0 + $0xe58] sm:$0xff] }
  0xf5   :  { %v1223_v19 = vadd.f32 %v6934_v20, %v1221_v7  ;;  %v7086_v20 = vsel %vm1072_vm7, %v131_v6, 0.0  ;;  %v1992_v31 = vadd.f32 %v1991_v23, %v1990_v17  ;;  %v1489_v7 = vsel %vm1072_vm7, %v254_v49, 0.0  ;;  %v137_v17 = vld [vmem:[%s12524_s0 + $0x2c8] sm:$0xff]  ;;  %v384_v37 = vld [vmem:[%s12524_s0 + $0xa80] sm:$0xff] }
  0xf6   :  { %v1484_v53 = vadd.f32 %v1483_v34, %v1482_v41  ;;  %v1741_v54 = vadd.f32 %v1740_v35, %v1739_v42  ;;  %v1746_v8 = vsel %vm1072_vm7, %v380_v51, 0.0  ;;  %v1999_v9 = vsel %vm1072_vm7, %v504_v52, 0.0  ;;  %v257_v23 = vld [vmem:[%s12524_s0 + $0x688] sm:$0xff]  ;;  %v508_v39 = vld [vmem:[%s12524_s0 + $0xe60] sm:$0xff] }
  0xf7   :  { %v1225_v33 = vadd.f32 %v6953_v26, %v1223_v19  ;;  %v7105_v26 = vsel %vm1072_vm7, %v132_v18, 0.0  ;;  %v1994_v43 = vadd.f32 %v1993_v36, %v1992_v31  ;;  %v1491_v19 = vsel %vm1072_vm7, %v255_v61, 0.0  ;;  %v138_v31 = vld [vmem:[%s12524_s0 + $0x2d0] sm:$0xff]  ;;  %v385_v49 = vld [vmem:[%s12524_s0 + $0xa88] sm:$0xff] }
  0xf8   :  { %v1486_v1 = vadd.f32 %v1485_v46, %v1484_v53  ;;  %v1743_v3 = vadd.f32 %v1742_v47, %v1741_v54  ;;  %v1748_v21 = vsel %vm1072_vm7, %v381_v63, 0.0  ;;  %v2001_v22 = vsel %vm1072_vm7, %v505_v0, 0.0  ;;  %v258_v36 = vld [vmem:[%s12524_s0 + $0x690] sm:$0xff]  ;;  %v509_v51 = vld [vmem:[%s12524_s0 + $0xe68] sm:$0xff] }
  0xf9   :  { %v1227_v45 = vadd.f32 %v6972_v27, %v1225_v33  ;;  %v7124_v27 = vsel %vm1072_vm7, %v133_v32, 0.0  ;;  %v1996_v55 = vadd.f32 %v1995_v48, %v1994_v43  ;;  %v1493_v33 = vsel %vm1072_vm7, %v256_v10, 0.0  ;;  %v139_v43 = vld [vmem:[%s12524_s0 + $0x2d8] sm:$0xff]  ;;  %v386_v61 = vld [vmem:[%s12524_s0 + $0xa90] sm:$0xff] }
  0xfa   :  { %v1488_v13 = vadd.f32 %v1487_v58, %v1486_v1  ;;  %v1745_v15 = vadd.f32 %v1744_v59, %v1743_v3  ;;  %v1750_v34 = vsel %vm1072_vm7, %v382_v11, 0.0  ;;  %v2003_v35 = vsel %vm1072_vm7, %v506_v12, 0.0  ;;  %v259_v48 = vld [vmem:[%s12524_s0 + $0x698] sm:$0xff]  ;;  %v510_v63 = vld [vmem:[%s12524_s0 + $0xe70] sm:$0xff] }
  0xfb   :  { %v1229_v57 = vadd.f32 %v6991_v38, %v1227_v45  ;;  %v7143_v38 = vsel %vm1072_vm7, %v134_v44, 0.0  ;;  %v1998_v4 = vadd.f32 %v1997_v60, %v1996_v55  ;;  %v1495_v45 = vsel %vm1072_vm7, %v257_v23, 0.0  ;;  %v140_v55 = vld [vmem:[%s12524_s0 + $0x2e0] sm:$0xff]  ;;  %v387_v10 = vld [vmem:[%s12524_s0 + $0xa98] sm:$0xff] }
  0xfc   :  { %v1490_v28 = vadd.f32 %v1489_v7, %v1488_v13  ;;  %v1747_v29 = vadd.f32 %v1746_v8, %v1745_v15  ;;  %v1752_v46 = vsel %vm1072_vm7, %v383_v24, 0.0  ;;  %v2005_v47 = vsel %vm1072_vm7, %v507_v25, 0.0  ;;  %v260_v60 = vld [vmem:[%s12524_s0 + $0x6a0] sm:$0xff]  ;;  %v511_v11 = vld [vmem:[%s12524_s0 + $0xe78] sm:$0xff] }
  0xfd   :  { %v1231_v6 = vadd.f32 %v7010_v50, %v1229_v57  ;;  %v7162_v50 = vsel %vm1072_vm7, %v135_v56, 0.0  ;;  %v2000_v16 = vadd.f32 %v1999_v9, %v1998_v4  ;;  %v1497_v57 = vsel %vm1072_vm7, %v258_v36, 0.0  ;;  %v141_v4 = vld [vmem:[%s12524_s0 + $0x2e8] sm:$0xff]  ;;  %v388_v23 = vld [vmem:[%s12524_s0 + $0xaa0] sm:$0xff] }
  0xfe   :  { %v1492_v40 = vadd.f32 %v1491_v19, %v1490_v28  ;;  %v1749_v41 = vadd.f32 %v1748_v21, %v1747_v29  ;;  %v1754_v58 = vsel %vm1072_vm7, %v384_v37, 0.0  ;;  %v2007_v59 = vsel %vm1072_vm7, %v508_v39, 0.0  ;;  %v261_v9 = vld [vmem:[%s12524_s0 + $0x6a8] sm:$0xff]  ;;  %v512_v24 = vld [vmem:[%s12524_s0 + $0xe80] sm:$0xff] }
  0xff   :  { %v1233_v18 = vadd.f32 %v7029_v62, %v1231_v6  ;;  %v7181_v62 = vsel %vm1072_vm7, %v136_v5, 0.0  ;;  %v2002_v30 = vadd.f32 %v2001_v22, %v2000_v16  ;;  %v1499_v6 = vsel %vm1072_vm7, %v259_v48, 0.0  ;;  %v142_v16 = vld [vmem:[%s12524_s0 + $0x2f0] sm:$0xff]  ;;  %v389_v36 = vld [vmem:[%s12524_s0 + $0xaa8] sm:$0xff] }
 0x100   :  { %v1494_v52 = vadd.f32 %v1493_v33, %v1492_v40  ;;  %v1751_v53 = vadd.f32 %v1750_v34, %v1749_v41  ;;  %v1756_v7 = vsel %vm1072_vm7, %v385_v49, 0.0  ;;  %v2009_v8 = vsel %vm1072_vm7, %v509_v51, 0.0  ;;  %v262_v22 = vld [vmem:[%s12524_s0 + $0x6b0] sm:$0xff]  ;;  %v513_v37 = vld [vmem:[%s12524_s0 + $0xe88] sm:$0xff] }
 0x101   :  { %v1235_v32 = vadd.f32 %v7048_v2, %v1233_v18  ;;  %v7200_v2 = vsel %vm1072_vm7, %v137_v17, 0.0  ;;  %v2004_v42 = vadd.f32 %v2003_v35, %v2002_v30  ;;  %v1501_v18 = vsel %vm1072_vm7, %v260_v60, 0.0  ;;  %v143_v30 = vld [vmem:[%s12524_s0 + $0x2f8] sm:$0xff]  ;;  %v390_v48 = vld [vmem:[%s12524_s0 + $0xab0] sm:$0xff] }
 0x102   :  { %v1496_v0 = vadd.f32 %v1495_v45, %v1494_v52  ;;  %v1753_v1 = vadd.f32 %v1752_v46, %v1751_v53  ;;  %v1758_v19 = vsel %vm1072_vm7, %v386_v61, 0.0  ;;  %v2011_v21 = vsel %vm1072_vm7, %v510_v63, 0.0  ;;  %v263_v35 = vld [vmem:[%s12524_s0 + $0x6b8] sm:$0xff]  ;;  %v514_v49 = vld [vmem:[%s12524_s0 + $0xe90] sm:$0xff] }
 0x103   :  { %v1237_v44 = vadd.f32 %v7067_v14, %v1235_v32  ;;  %v7219_v14 = vsel %vm1072_vm7, %v138_v31, 0.0  ;;  %v2006_v54 = vadd.f32 %v2005_v47, %v2004_v42  ;;  %v1503_v32 = vsel %vm1072_vm7, %v261_v9, 0.0  ;;  %v144_v42 = vld [vmem:[%s12524_s0 + $0x300] sm:$0xff]  ;;  %v391_v60 = vld [vmem:[%s12524_s0 + $0xab8] sm:$0xff] }
 0x104   :  { %v1498_v12 = vadd.f32 %v1497_v57, %v1496_v0  ;;  %v1755_v13 = vadd.f32 %v1754_v58, %v1753_v1  ;;  %v1760_v33 = vsel %vm1072_vm7, %v387_v10, 0.0  ;;  %v2013_v34 = vsel %vm1072_vm7, %v511_v11, 0.0  ;;  %v264_v47 = vld [vmem:[%s12524_s0 + $0x6c0] sm:$0xff]  ;;  %v515_v61 = vld [vmem:[%s12524_s0 + $0xe98] sm:$0xff] }
 0x105   :  { %v1239_v56 = vadd.f32 %v7086_v20, %v1237_v44  ;;  %v7238_v20 = vsel %vm1072_vm7, %v139_v43, 0.0  ;;  %v2008_v3 = vadd.f32 %v2007_v59, %v2006_v54  ;;  %v1505_v44 = vsel %vm1072_vm7, %v262_v22, 0.0  ;;  %v145_v54 = vld [vmem:[%s12524_s0 + $0x308] sm:$0xff]  ;;  %v392_v9 = vld [vmem:[%s12524_s0 + $0xac0] sm:$0xff] }
 0x106   :  { %v1500_v25 = vadd.f32 %v1499_v6, %v1498_v12  ;;  %v1757_v28 = vadd.f32 %v1756_v7, %v1755_v13  ;;  %v1762_v45 = vsel %vm1072_vm7, %v388_v23, 0.0  ;;  %v2015_v46 = vsel %vm1072_vm7, %v512_v24, 0.0  ;;  %v265_v59 = vld [vmem:[%s12524_s0 + $0x6c8] sm:$0xff]  ;;  %v516_v10 = vld [vmem:[%s12524_s0 + $0xea0] sm:$0xff] }
 0x107   :  { %v1241_v5 = vadd.f32 %v7105_v26, %v1239_v56  ;;  %v7257_v26 = vsel %vm1072_vm7, %v140_v55, 0.0  ;;  %v2010_v15 = vadd.f32 %v2009_v8, %v2008_v3  ;;  %v1507_v56 = vsel %vm1072_vm7, %v263_v35, 0.0  ;;  %v146_v3 = vld [vmem:[%s12524_s0 + $0x310] sm:$0xff]  ;;  %v393_v22 = vld [vmem:[%s12524_s0 + $0xac8] sm:$0xff] }
 0x108   :  { %v1502_v39 = vadd.f32 %v1501_v18, %v1500_v25  ;;  %v1759_v40 = vadd.f32 %v1758_v19, %v1757_v28  ;;  %v1764_v57 = vsel %vm1072_vm7, %v389_v36, 0.0  ;;  %v2017_v58 = vsel %vm1072_vm7, %v513_v37, 0.0  ;;  %v266_v8 = vld [vmem:[%s12524_s0 + $0x6d0] sm:$0xff]  ;;  %v517_v23 = vld [vmem:[%s12524_s0 + $0xea8] sm:$0xff] }
 0x109   :  { %v1243_v17 = vadd.f32 %v7124_v27, %v1241_v5  ;;  %v7276_v27 = vsel %vm1072_vm7, %v141_v4, 0.0  ;;  %v2012_v29 = vadd.f32 %v2011_v21, %v2010_v15  ;;  %v1509_v5 = vsel %vm1072_vm7, %v264_v47, 0.0  ;;  %v147_v15 = vld [vmem:[%s12524_s0 + $0x318] sm:$0xff]  ;;  %v394_v35 = vld [vmem:[%s12524_s0 + $0xad0] sm:$0xff] }
 0x10a   :  { %v1504_v51 = vadd.f32 %v1503_v32, %v1502_v39  ;;  %v1761_v52 = vadd.f32 %v1760_v33, %v1759_v40  ;;  %v1766_v6 = vsel %vm1072_vm7, %v390_v48, 0.0  ;;  %v2019_v7 = vsel %vm1072_vm7, %v514_v49, 0.0  ;;  %v267_v21 = vld [vmem:[%s12524_s0 + $0x6d8] sm:$0xff]  ;;  %v518_v36 = vld [vmem:[%s12524_s0 + $0xeb0] sm:$0xff] }
 0x10b   :  { %v1245_v31 = vadd.f32 %v7143_v38, %v1243_v17  ;;  %v7295_v38 = vsel %vm1072_vm7, %v142_v16, 0.0  ;;  %v2014_v41 = vadd.f32 %v2013_v34, %v2012_v29  ;;  %v1511_v17 = vsel %vm1072_vm7, %v265_v59, 0.0  ;;  %v148_v29 = vld [vmem:[%s12524_s0 + $0x320] sm:$0xff]  ;;  %v395_v47 = vld [vmem:[%s12524_s0 + $0xad8] sm:$0xff] }
 0x10c   :  { %v1506_v63 = vadd.f32 %v1505_v44, %v1504_v51  ;;  %v1763_v0 = vadd.f32 %v1762_v45, %v1761_v52  ;;  %v1768_v18 = vsel %vm1072_vm7, %v391_v60, 0.0  ;;  %v2021_v19 = vsel %vm1072_vm7, %v515_v61, 0.0  ;;  %v268_v34 = vld [vmem:[%s12524_s0 + $0x6e0] sm:$0xff]  ;;  %v519_v48 = vld [vmem:[%s12524_s0 + $0xeb8] sm:$0xff] }
 0x10d   :  { %v1247_v43 = vadd.f32 %v7162_v50, %v1245_v31  ;;  %v7314_v50 = vsel %vm1072_vm7, %v143_v30, 0.0  ;;  %v2016_v53 = vadd.f32 %v2015_v46, %v2014_v41  ;;  %v1513_v31 = vsel %vm1072_vm7, %v266_v8, 0.0  ;;  %v149_v41 = vld [vmem:[%s12524_s0 + $0x328] sm:$0xff]  ;;  %v396_v59 = vld [vmem:[%s12524_s0 + $0xae0] sm:$0xff] }
 0x10e   :  { %v1508_v11 = vadd.f32 %v1507_v56, %v1506_v63  ;;  %v1765_v12 = vadd.f32 %v1764_v57, %v1763_v0  ;;  %v1770_v32 = vsel %vm1072_vm7, %v392_v9, 0.0  ;;  %v2023_v33 = vsel %vm1072_vm7, %v516_v10, 0.0  ;;  %v269_v46 = vld [vmem:[%s12524_s0 + $0x6e8] sm:$0xff]  ;;  %v520_v60 = vld [vmem:[%s12524_s0 + $0xec0] sm:$0xff] }
 0x10f   :  { %v1249_v55 = vadd.f32 %v7181_v62, %v1247_v43  ;;  %v7333_v62 = vsel %vm1072_vm7, %v144_v42, 0.0  ;;  %v2018_v1 = vadd.f32 %v2017_v58, %v2016_v53  ;;  %v1515_v43 = vsel %vm1072_vm7, %v267_v21, 0.0  ;;  %v150_v53 = vld [vmem:[%s12524_s0 + $0x330] sm:$0xff]  ;;  %v397_v8 = vld [vmem:[%s12524_s0 + $0xae8] sm:$0xff] }
 0x110   :  { %v1510_v24 = vadd.f32 %v1509_v5, %v1508_v11  ;;  %v1767_v25 = vadd.f32 %v1766_v6, %v1765_v12  ;;  %v1772_v44 = vsel %vm1072_vm7, %v393_v22, 0.0  ;;  %v2025_v45 = vsel %vm1072_vm7, %v517_v23, 0.0  ;;  %v270_v58 = vld [vmem:[%s12524_s0 + $0x6f0] sm:$0xff]  ;;  %v521_v9 = vld [vmem:[%s12524_s0 + $0xec8] sm:$0xff] }
 0x111   :  { %v1251_v4 = vadd.f32 %v7200_v2, %v1249_v55  ;;  %v7352_v2 = vsel %vm1072_vm7, %v145_v54, 0.0  ;;  %v2020_v13 = vadd.f32 %v2019_v7, %v2018_v1  ;;  %v1517_v55 = vsel %vm1072_vm7, %v268_v34, 0.0  ;;  %v151_v1 = vld [vmem:[%s12524_s0 + $0x338] sm:$0xff]  ;;  %v398_v21 = vld [vmem:[%s12524_s0 + $0xaf0] sm:$0xff] }
 0x112   :  { %v1512_v37 = vadd.f32 %v1511_v17, %v1510_v24  ;;  %v1769_v39 = vadd.f32 %v1768_v18, %v1767_v25  ;;  %v1774_v56 = vsel %vm1072_vm7, %v394_v35, 0.0  ;;  %v2027_v57 = vsel %vm1072_vm7, %v518_v36, 0.0  ;;  %v271_v7 = vld [vmem:[%s12524_s0 + $0x6f8] sm:$0xff]  ;;  %v522_v22 = vld [vmem:[%s12524_s0 + $0xed0] sm:$0xff] }
 0x113   :  { %v1253_v16 = vadd.f32 %v7219_v14, %v1251_v4  ;;  %v7371_v14 = vsel %vm1072_vm7, %v146_v3, 0.0  ;;  %v2022_v28 = vadd.f32 %v2021_v19, %v2020_v13  ;;  %v1519_v4 = vsel %vm1072_vm7, %v269_v46, 0.0  ;;  %v152_v13 = vld [vmem:[%s12524_s0 + $0x340] sm:$0xff]  ;;  %v399_v34 = vld [vmem:[%s12524_s0 + $0xaf8] sm:$0xff] }
 0x114   :  { %v1514_v49 = vadd.f32 %v1513_v31, %v1512_v37  ;;  %v1771_v51 = vadd.f32 %v1770_v32, %v1769_v39  ;;  %v1776_v5 = vsel %vm1072_vm7, %v395_v47, 0.0  ;;  %v2029_v6 = vsel %vm1072_vm7, %v519_v48, 0.0  ;;  %v272_v19 = vld [vmem:[%s12524_s0 + $0x700] sm:$0xff]  ;;  %v523_v35 = vld [vmem:[%s12524_s0 + $0xed8] sm:$0xff] }
 0x115   :  { %v1255_v30 = vadd.f32 %v7238_v20, %v1253_v16  ;;  %v7390_v20 = vsel %vm1072_vm7, %v147_v15, 0.0  ;;  %v2024_v40 = vadd.f32 %v2023_v33, %v2022_v28  ;;  %v1521_v16 = vsel %vm1072_vm7, %v270_v58, 0.0  ;;  %v153_v28 = vld [vmem:[%s12524_s0 + $0x348] sm:$0xff]  ;;  %v400_v46 = vld [vmem:[%s12524_s0 + $0xb00] sm:$0xff] }
 0x116   :  { %v1516_v61 = vadd.f32 %v1515_v43, %v1514_v49  ;;  %v1773_v63 = vadd.f32 %v1772_v44, %v1771_v51  ;;  %v1778_v17 = vsel %vm1072_vm7, %v396_v59, 0.0  ;;  %v2031_v18 = vsel %vm1072_vm7, %v520_v60, 0.0  ;;  %v273_v33 = vld [vmem:[%s12524_s0 + $0x708] sm:$0xff]  ;;  %v524_v47 = vld [vmem:[%s12524_s0 + $0xee0] sm:$0xff] }
 0x117   :  { %v1257_v42 = vadd.f32 %v7257_v26, %v1255_v30  ;;  %v7409_v26 = vsel %vm1072_vm7, %v148_v29, 0.0  ;;  %v2026_v52 = vadd.f32 %v2025_v45, %v2024_v40  ;;  %v1523_v30 = vsel %vm1072_vm7, %v271_v7, 0.0  ;;  %v154_v40 = vld [vmem:[%s12524_s0 + $0x350] sm:$0xff]  ;;  %v401_v58 = vld [vmem:[%s12524_s0 + $0xb08] sm:$0xff] }
 0x118   :  { %v1518_v10 = vadd.f32 %v1517_v55, %v1516_v61  ;;  %v1775_v11 = vadd.f32 %v1774_v56, %v1773_v63  ;;  %v1780_v31 = vsel %vm1072_vm7, %v397_v8, 0.0  ;;  %v2033_v32 = vsel %vm1072_vm7, %v521_v9, 0.0  ;;  %v274_v45 = vld [vmem:[%s12524_s0 + $0x710] sm:$0xff]  ;;  %v525_v59 = vld [vmem:[%s12524_s0 + $0xee8] sm:$0xff] }
 0x119   :  { %v1259_v54 = vadd.f32 %v7276_v27, %v1257_v42  ;;  %v7428_v27 = vsel %vm1072_vm7, %v149_v41, 0.0  ;;  %v2028_v0 = vadd.f32 %v2027_v57, %v2026_v52  ;;  %v1525_v42 = vsel %vm1072_vm7, %v272_v19, 0.0  ;;  %v155_v52 = vld [vmem:[%s12524_s0 + $0x358] sm:$0xff]  ;;  %v402_v7 = vld [vmem:[%s12524_s0 + $0xb10] sm:$0xff] }
 0x11a   :  { %v1520_v23 = vadd.f32 %v1519_v4, %v1518_v10  ;;  %v1777_v24 = vadd.f32 %v1776_v5, %v1775_v11  ;;  %v1782_v43 = vsel %vm1072_vm7, %v398_v21, 0.0  ;;  %v2035_v44 = vsel %vm1072_vm7, %v522_v22, 0.0  ;;  %v275_v57 = vld [vmem:[%s12524_s0 + $0x718] sm:$0xff]  ;;  %v526_v8 = vld [vmem:[%s12524_s0 + $0xef0] sm:$0xff] }
 0x11b   :  { %v1261_v3 = vadd.f32 %v7295_v38, %v1259_v54  ;;  %v7447_v38 = vsel %vm1072_vm7, %v150_v53, 0.0  ;;  %v2030_v12 = vadd.f32 %v2029_v6, %v2028_v0  ;;  %v1527_v54 = vsel %vm1072_vm7, %v273_v33, 0.0  ;;  %v156_v0 = vld [vmem:[%s12524_s0 + $0x360] sm:$0xff]  ;;  %v403_v19 = vld [vmem:[%s12524_s0 + $0xb18] sm:$0xff] }
 0x11c   :  { %v1522_v36 = vadd.f32 %v1521_v16, %v1520_v23  ;;  %v1779_v37 = vadd.f32 %v1778_v17, %v1777_v24  ;;  %v1784_v55 = vsel %vm1072_vm7, %v399_v34, 0.0  ;;  %v2037_v56 = vsel %vm1072_vm7, %v523_v35, 0.0  ;;  %v276_v6 = vld [vmem:[%s12524_s0 + $0x720] sm:$0xff]  ;;  %v527_v21 = vld [vmem:[%s12524_s0 + $0xef8] sm:$0xff] }
 0x11d   :  { %v1263_v15 = vadd.f32 %v7314_v50, %v1261_v3  ;;  %v7466_v50 = vsel %vm1072_vm7, %v151_v1, 0.0  ;;  %v2032_v25 = vadd.f32 %v2031_v18, %v2030_v12  ;;  %v1529_v3 = vsel %vm1072_vm7, %v274_v45, 0.0  ;;  %v157_v12 = vld [vmem:[%s12524_s0 + $0x368] sm:$0xff]  ;;  %v404_v33 = vld [vmem:[%s12524_s0 + $0xb20] sm:$0xff] }
 0x11e   :  { %v1524_v48 = vadd.f32 %v1523_v30, %v1522_v36  ;;  %v1781_v49 = vadd.f32 %v1780_v31, %v1779_v37  ;;  %v1786_v4 = vsel %vm1072_vm7, %v400_v46, 0.0  ;;  %v2039_v5 = vsel %vm1072_vm7, %v524_v47, 0.0  ;;  %v277_v18 = vld [vmem:[%s12524_s0 + $0x728] sm:$0xff]  ;;  %v528_v34 = vld [vmem:[%s12524_s0 + $0xf00] sm:$0xff] }
 0x11f   :  { %v1265_v29 = vadd.f32 %v7333_v62, %v1263_v15  ;;  %v7485_v62 = vsel %vm1072_vm7, %v152_v13, 0.0  ;;  %v2034_v39 = vadd.f32 %v2033_v32, %v2032_v25  ;;  %v1531_v15 = vsel %vm1072_vm7, %v275_v57, 0.0  ;;  %v158_v25 = vld [vmem:[%s12524_s0 + $0x370] sm:$0xff]  ;;  %v405_v45 = vld [vmem:[%s12524_s0 + $0xb28] sm:$0xff] }
 0x120   :  { %v1526_v60 = vadd.f32 %v1525_v42, %v1524_v48  ;;  %v1783_v61 = vadd.f32 %v1782_v43, %v1781_v49  ;;  %v1788_v16 = vsel %vm1072_vm7, %v401_v58, 0.0  ;;  %v2041_v17 = vsel %vm1072_vm7, %v525_v59, 0.0  ;;  %v278_v32 = vld [vmem:[%s12524_s0 + $0x730] sm:$0xff]  ;;  %v529_v46 = vld [vmem:[%s12524_s0 + $0xf08] sm:$0xff] }
 0x121   :  { %v1267_v41 = vadd.f32 %v7352_v2, %v1265_v29  ;;  %v7504_v2 = vsel %vm1072_vm7, %v153_v28, 0.0  ;;  %v2036_v51 = vadd.f32 %v2035_v44, %v2034_v39  ;;  %v1533_v29 = vsel %vm1072_vm7, %v276_v6, 0.0  ;;  %v159_v39 = vld [vmem:[%s12524_s0 + $0x378] sm:$0xff]  ;;  %v406_v57 = vld [vmem:[%s12524_s0 + $0xb30] sm:$0xff] }
 0x122   :  { %v1528_v9 = vadd.f32 %v1527_v54, %v1526_v60  ;;  %v1785_v10 = vadd.f32 %v1784_v55, %v1783_v61  ;;  %v1790_v30 = vsel %vm1072_vm7, %v402_v7, 0.0  ;;  %v2043_v31 = vsel %vm1072_vm7, %v526_v8, 0.0  ;;  %v279_v44 = vld [vmem:[%s12524_s0 + $0x738] sm:$0xff]  ;;  %v530_v58 = vld [vmem:[%s12524_s0 + $0xf10] sm:$0xff] }
 0x123   :  { %v1269_v53 = vadd.f32 %v7371_v14, %v1267_v41  ;;  %v7523_v14 = vsel %vm1072_vm7, %v154_v40, 0.0  ;;  %v2038_v63 = vadd.f32 %v2037_v56, %v2036_v51  ;;  %v1535_v41 = vsel %vm1072_vm7, %v277_v18, 0.0  ;;  %v160_v51 = vld [vmem:[%s12524_s0 + $0x380] sm:$0xff]  ;;  %v407_v6 = vld [vmem:[%s12524_s0 + $0xb38] sm:$0xff] }
 0x124   :  { %v1530_v22 = vadd.f32 %v1529_v3, %v1528_v9  ;;  %v1787_v23 = vadd.f32 %v1786_v4, %v1785_v10  ;;  %v1792_v42 = vsel %vm1072_vm7, %v403_v19, 0.0  ;;  %v2045_v43 = vsel %vm1072_vm7, %v527_v21, 0.0  ;;  %v280_v56 = vld [vmem:[%s12524_s0 + $0x740] sm:$0xff]  ;;  %v531_v7 = vld [vmem:[%s12524_s0 + $0xf18] sm:$0xff] }
 0x125   :  { %v1271_v1 = vadd.f32 %v7390_v20, %v1269_v53  ;;  %v7542_v20 = vsel %vm1072_vm7, %v155_v52, 0.0  ;;  %v2040_v11 = vadd.f32 %v2039_v5, %v2038_v63  ;;  %v1537_v53 = vsel %vm1072_vm7, %v278_v32, 0.0  ;;  %v161_v63 = vld [vmem:[%s12524_s0 + $0x388] sm:$0xff]  ;;  %v408_v18 = vld [vmem:[%s12524_s0 + $0xb40] sm:$0xff] }
 0x126   :  { %v1532_v35 = vadd.f32 %v1531_v15, %v1530_v22  ;;  %v1789_v36 = vadd.f32 %v1788_v16, %v1787_v23  ;;  %v1794_v54 = vsel %vm1072_vm7, %v404_v33, 0.0  ;;  %v2047_v55 = vsel %vm1072_vm7, %v528_v34, 0.0  ;;  %v281_v5 = vld [vmem:[%s12524_s0 + $0x748] sm:$0xff]  ;;  %v532_v19 = vld [vmem:[%s12524_s0 + $0xf20] sm:$0xff] }
 0x127   :  { %v1273_v13 = vadd.f32 %v7409_v26, %v1271_v1  ;;  %v7561_v26 = vsel %vm1072_vm7, %v156_v0, 0.0  ;;  %v2042_v24 = vadd.f32 %v2041_v17, %v2040_v11  ;;  %v1539_v1 = vsel %vm1072_vm7, %v279_v44, 0.0  ;;  %v162_v11 = vld [vmem:[%s12524_s0 + $0x390] sm:$0xff]  ;;  %v409_v32 = vld [vmem:[%s12524_s0 + $0xb48] sm:$0xff] }
 0x128   :  { %v1534_v47 = vadd.f32 %v1533_v29, %v1532_v35  ;;  %v1791_v48 = vadd.f32 %v1790_v30, %v1789_v36  ;;  %v1796_v3 = vsel %vm1072_vm7, %v405_v45, 0.0  ;;  %v2049_v4 = vsel %vm1072_vm7, %v529_v46, 0.0  ;;  %v282_v17 = vld [vmem:[%s12524_s0 + $0x750] sm:$0xff]  ;;  %v533_v33 = vld [vmem:[%s12524_s0 + $0xf28] sm:$0xff] }
 0x129   :  { %v1275_v28 = vadd.f32 %v7428_v27, %v1273_v13  ;;  %v7580_v27 = vsel %vm1072_vm7, %v157_v12, 0.0  ;;  %v2044_v37 = vadd.f32 %v2043_v31, %v2042_v24  ;;  %v1541_v13 = vsel %vm1072_vm7, %v280_v56, 0.0  ;;  %v163_v24 = vld [vmem:[%s12524_s0 + $0x398] sm:$0xff]  ;;  %v410_v44 = vld [vmem:[%s12524_s0 + $0xb50] sm:$0xff] }
 0x12a   :  { %v1536_v59 = vadd.f32 %v1535_v41, %v1534_v47  ;;  %v1793_v60 = vadd.f32 %v1792_v42, %v1791_v48  ;;  %v1798_v15 = vsel %vm1072_vm7, %v406_v57, 0.0  ;;  %v2051_v16 = vsel %vm1072_vm7, %v530_v58, 0.0  ;;  %v283_v31 = vld [vmem:[%s12524_s0 + $0x758] sm:$0xff]  ;;  %v534_v45 = vld [vmem:[%s12524_s0 + $0xf30] sm:$0xff] }
 0x12b   :  { %v1277_v40 = vadd.f32 %v7447_v38, %v1275_v28  ;;  %v7599_v38 = vsel %vm1072_vm7, %v158_v25, 0.0  ;;  %v2046_v49 = vadd.f32 %v2045_v43, %v2044_v37  ;;  %v1543_v28 = vsel %vm1072_vm7, %v281_v5, 0.0  ;;  %v164_v37 = vld [vmem:[%s12524_s0 + $0x3a0] sm:$0xff]  ;;  %v411_v56 = vld [vmem:[%s12524_s0 + $0xb58] sm:$0xff] }
 0x12c   :  { %v1538_v8 = vadd.f32 %v1537_v53, %v1536_v59  ;;  %v1795_v9 = vadd.f32 %v1794_v54, %v1793_v60  ;;  %v1800_v29 = vsel %vm1072_vm7, %v407_v6, 0.0  ;;  %v2053_v30 = vsel %vm1072_vm7, %v531_v7, 0.0  ;;  %v284_v43 = vld [vmem:[%s12524_s0 + $0x760] sm:$0xff]  ;;  %v535_v57 = vld [vmem:[%s12524_s0 + $0xf38] sm:$0xff]  ;;  %v537_v6 = vld [vmem:[%s12524_s0 + $0xf48] sm:$0xff] }
 0x12d   :  { %v1279_v52 = vadd.f32 %v7466_v50, %v1277_v40  ;;  %v7618_v50 = vsel %vm1072_vm7, %v159_v39, 0.0  ;;  %v2048_v61 = vadd.f32 %v2047_v55, %v2046_v49  ;;  %v1545_v40 = vsel %vm1072_vm7, %v282_v17, 0.0  ;;  %v165_v49 = vld [vmem:[%s12524_s0 + $0x3a8] sm:$0xff]  ;;  %v536_v5 = vld [vmem:[%s12524_s0 + $0xf40] sm:$0xff] }
 0x12e   :  { %v1540_v21 = vadd.f32 %v1539_v1, %v1538_v8  ;;  %v1797_v22 = vadd.f32 %v1796_v3, %v1795_v9  ;;  %v1802_v41 = vsel %vm1072_vm7, %v408_v18, 0.0  ;;  %v2055_v42 = vsel %vm1072_vm7, %v532_v19, 0.0  ;;  %v285_v55 = vld [vmem:[%s12524_s0 + $0x768] sm:$0xff]  ;;  %v538_v18 = vld [vmem:[%s12524_s0 + $0xf50] sm:$0xff] }
 0x12f   :  { %v1281_v0 = vadd.f32 %v7485_v62, %v1279_v52  ;;  %v7637_v62 = vsel %vm1072_vm7, %v160_v51, 0.0  ;;  %v2050_v10 = vadd.f32 %v2049_v4, %v2048_v61  ;;  %v1547_v52 = vsel %vm1072_vm7, %v283_v31, 0.0  ;;  %v412_v61 = vld [vmem:[%s12524_s0 + $0xb60] sm:$0xff]  ;;  %v286_v4 = vld [vmem:[%s12524_s0 + $0x770] sm:$0xff]  ;;  %v413_v17 = vld [vmem:[%s12524_s0 + $0xb68] sm:$0xff] }
 0x130   :  { %v1542_v34 = vadd.f32 %v1541_v13, %v1540_v21  ;;  %v1799_v35 = vadd.f32 %v1798_v15, %v1797_v22  ;;  %v1804_v53 = vsel %vm1072_vm7, %v409_v32, 0.0  ;;  %v2057_v54 = vsel %vm1072_vm7, %v533_v33, 0.0  ;;  %v414_v31 = vld [vmem:[%s12524_s0 + $0xb70] sm:$0xff]  ;;  %v539_v32 = vld [vmem:[%s12524_s0 + $0xf58] sm:$0xff] }
 0x131   :  { %v1283_v12 = vadd.f32 %v7504_v2, %v1281_v0  ;;  %v7656_v2 = vsel %vm1072_vm7, %v161_v63, 0.0  ;;  %v2052_v23 = vadd.f32 %v2051_v16, %v2050_v10  ;;  %v1549_v0 = vsel %vm1072_vm7, %v284_v43, 0.0  ;;  %v166_v10 = vld [vmem:[%s12524_s0 + $0x3b0] sm:$0xff]  ;;  %v287_v16 = vld [vmem:[%s12524_s0 + $0x778] sm:$0xff] }
 0x132   :  { %v1544_v46 = vadd.f32 %v1543_v28, %v1542_v34  ;;  %v1801_v47 = vadd.f32 %v1800_v29, %v1799_v35  ;;  %v1806_v1 = vsel %vm1072_vm7, %v410_v44, 0.0  ;;  %v2059_v3 = vsel %vm1072_vm7, %v534_v45, 0.0  ;;  %v415_v43 = vld [vmem:[%s12524_s0 + $0xb78] sm:$0xff]  ;;  %v540_v44 = vld [vmem:[%s12524_s0 + $0xf60] sm:$0xff] }
 0x133   :  { %v1285_v25 = vadd.f32 %v7523_v14, %v1283_v12  ;;  %v7675_v14 = vsel %vm1072_vm7, %v162_v11, 0.0  ;;  %v2054_v36 = vadd.f32 %v2053_v30, %v2052_v23  ;;  %v1551_v12 = vsel %vm1072_vm7, %v285_v55, 0.0  ;;  %v167_v23 = vld [vmem:[%s12524_s0 + $0x3b8] sm:$0xff]  ;;  %v288_v30 = vld [vmem:[%s12524_s0 + $0x780] sm:$0xff]  ;;  %v290_v55 = vld [vmem:[%s12524_s0 + $0x790] sm:$0xff] }
 0x134   :  { %v1546_v58 = vadd.f32 %v1545_v40, %v1544_v46  ;;  %v1803_v59 = vadd.f32 %v1802_v41, %v1801_v47  ;;  %v1808_v13 = vsel %vm1072_vm7, %v411_v56, 0.0  ;;  %v2061_v15 = vsel %vm1072_vm7, %v535_v57, 0.0  ;;  %v416_v56 = vld [vmem:[%s12524_s0 + $0xb80] sm:$0xff] }
 0x135   :  { %v1287_v39 = vadd.f32 %v7542_v20, %v1285_v25  ;;  %v7694_v20 = vsel %vm1072_vm7, %v163_v24, 0.0  ;;  %v2056_v48 = vadd.f32 %v2055_v42, %v2054_v36  ;;  %v1810_v21 = vsel %vm1072_vm7, %v412_v61, 0.0  ;;  %v168_v36 = vld [vmem:[%s12524_s0 + $0x3c0] sm:$0xff]  ;;  %v289_v42 = vld [vmem:[%s12524_s0 + $0x788] sm:$0xff] }
 0x136   :  { %v1548_v7 = vadd.f32 %v1547_v52, %v1546_v58  ;;  %v1805_v8 = vadd.f32 %v1804_v53, %v1803_v59  ;;  %v1553_v25 = vsel %vm1072_vm7, %v286_v4, 0.0  ;;  %v2063_v28 = vsel %vm1072_vm7, %v536_v5, 0.0  ;;  %v172_v4 = vld [vmem:[%s12524_s0 + $0x3e0] sm:$0xff]  ;;  %v291_v5 = vld [vmem:[%s12524_s0 + $0x798] sm:$0xff] }
 0x137   :  { %v1289_v51 = vadd.f32 %v7561_v26, %v1287_v39  ;;  %v7713_v26 = vsel %vm1072_vm7, %v164_v37, 0.0  ;;  %v2058_v60 = vadd.f32 %v2057_v54, %v2056_v48  ;;  %v2065_v29 = vsel %vm1072_vm7, %v537_v6, 0.0  ;;  %v169_v48 = vld [vmem:[%s12524_s0 + $0x3c8] sm:$0xff]  ;;  %v170_v54 = vld [vmem:[%s12524_s0 + $0x3d0] sm:$0xff] }
 0x138   :  { %v1550_v19 = vadd.f32 %v1549_v0, %v1548_v7  ;;  %v1555_v39 = vsel %vm1072_vm7, %v287_v16, 0.0  ;;  %v1812_v40 = vsel %vm1072_vm7, %v413_v17, 0.0  ;;  %v2067_v41 = vsel %vm1072_vm7, %v538_v18, 0.0  ;;  %v292_v16 = vld [vmem:[%s12524_s0 + $0x7a0] sm:$0xff]  ;;  %v417_v17 = vld [vmem:[%s12524_s0 + $0xb88] sm:$0xff] }
 0x139   :  { %v1291_v63 = vadd.f32 %v7580_v27, %v1289_v51  ;;  %v7732_v27 = vsel %vm1072_vm7, %v165_v49, 0.0  ;;  %v2060_v9 = vadd.f32 %v2059_v3, %v2058_v60  ;;  %v1557_v51 = vsel %vm1072_vm7, %v288_v30, 0.0  ;;  %v541_v60 = vld [vmem:[%s12524_s0 + $0xf68] sm:$0xff]  ;;  %v171_v3 = vld [vmem:[%s12524_s0 + $0x3d8] sm:$0xff] }
 0x13a   :  { %v1552_v33 = vadd.f32 %v1551_v12, %v1550_v19  ;;  %v1814_v52 = vsel %vm1072_vm7, %v414_v31, 0.0  ;;  %v2069_v53 = vsel %vm1072_vm7, %v539_v32, 0.0  ;;  %v1816_v0 = vsel %vm1072_vm7, %v415_v43, 0.0  ;;  %v293_v30 = vld [vmem:[%s12524_s0 + $0x7a8] sm:$0xff]  ;;  %v419_v31 = vld [vmem:[%s12524_s0 + $0xb98] sm:$0xff]  ;;  %v294_v43 = vld [vmem:[%s12524_s0 + $0x7b0] sm:$0xff] }
 0x13b   :  { %v1293_v11 = vadd.f32 %v7599_v38, %v1291_v63  ;;  %v1807_v38 = vadd.f32 %v1806_v1, %v1805_v8  ;;  %v2062_v22 = vadd.f32 %v2061_v15, %v2060_v9  ;;  %v1559_v63 = vsel %vm1072_vm7, %v289_v42, 0.0  ;;  %v173_v9 = vld [vmem:[%s12524_s0 + $0x3e8] sm:$0xff] }
 0x13c   :  { %v1554_v45 = vadd.f32 %v1553_v25, %v1552_v33  ;;  %v2071_v1 = vsel %vm1072_vm7, %v540_v44, 0.0  ;;  %v7835_v12 = vsel %vm1072_vm7, %v170_v54, 0.0  ;;  %v1818_v15 = vsel %vm1072_vm7, %v416_v56, 0.0  ;;  %v420_v44 = vld [vmem:[%s12524_s0 + $0xba0] sm:$0xff] }
 0x13d   :  { %v1295_v24 = vadd.f32 %v7618_v50, %v1293_v11  ;;  %v7768_v50 = vsel %vm1072_vm7, %v166_v10, 0.0  ;;  %v1809_v34 = vadd.f32 %v1808_v13, %v1807_v38  ;;  %v2064_v35 = vadd.f32 %v2063_v28, %v2062_v22  ;;  %v174_v10 = vld [vmem:[%s12524_s0 + $0x3f0] sm:$0xff]  ;;  %v296_v56 = vld [vmem:[%s12524_s0 + $0x7c0] sm:$0xff] }
 0x13e   :  { %v1556_v57 = vadd.f32 %v1555_v39, %v1554_v45  ;;  %v1561_v13 = vsel %vm1072_vm7, %v290_v55, 0.0  ;;  %v418_v22 = vld [vmem:[%s12524_s0 + $0xb90] sm:$0xff]  ;;  %v7857_v25 = vsel %vm1072_vm7, %v171_v3, 0.0  ;;  %v7860_v28 = vsel %vm1072_vm7, %v172_v4, 0.0  ;;  %v295_v55 = vld [vmem:[%s12524_s0 + $0x7b8] sm:$0xff] }
 0x13f   :  { %v1297_v37 = vadd.f32 %v7637_v62, %v1295_v24  ;;  %v7787_v62 = vsel %vm1072_vm7, %v167_v23, 0.0  ;;  %v1811_v46 = vadd.f32 %v1810_v21, %v1809_v34  ;;  %v2066_v47 = vadd.f32 %v2065_v29, %v2064_v35  ;;  %v175_v21 = vld [vmem:[%s12524_s0 + $0x3f8] sm:$0xff]  ;;  %v542_v23 = vld [vmem:[%s12524_s0 + $0xf70] sm:$0xff] }
 0x140   :  { %v1558_v6 = vadd.f32 %v1557_v51, %v1556_v57  ;;  %v1563_v29 = vsel %vm1072_vm7, %v291_v5, 0.0  ;;  %v7873_v32 = vsel %vm1072_vm7, %v173_v9, 0.0  ;;  %v7876_v33 = vsel %vm1072_vm7, %v174_v10, 0.0  ;;  %v297_v57 = vld [vmem:[%s12524_s0 + $0x7c8] sm:$0xff]  ;;  %v300_v5 = vld [vmem:[%s12524_s0 + $0x7e0] sm:$0xff] }
 0x141   :  { %v1299_v49 = vadd.f32 %v7656_v2, %v1297_v37  ;;  %v7806_v2 = vsel %vm1072_vm7, %v168_v36, 0.0  ;;  %v1813_v58 = vadd.f32 %v1812_v40, %v1811_v46  ;;  %v2068_v59 = vadd.f32 %v2067_v41, %v2066_v47  ;;  %v544_v36 = vld [vmem:[%s12524_s0 + $0xf80] sm:$0xff]  ;;  %v545_v37 = vld [vmem:[%s12524_s0 + $0xf88] sm:$0xff] }
 0x142   :  { %v1560_v18 = vadd.f32 %v1559_v63, %v1558_v6  ;;  %v1565_v40 = vsel %vm1072_vm7, %v292_v16, 0.0  ;;  %v1820_v41 = vsel %vm1072_vm7, %v417_v17, 0.0  ;;  %v7894_v45 = vsel %vm1072_vm7, %v175_v21, 0.0  ;;  %v299_v63 = vld [vmem:[%s12524_s0 + $0x7d8] sm:$0xff]  ;;  %v421_v6 = vld [vmem:[%s12524_s0 + $0xba8] sm:$0xff] }
 0x143   :  { %v1301_v61 = vadd.f32 %v7675_v14, %v1299_v49  ;;  %v7825_v14 = vsel %vm1072_vm7, %v169_v48, 0.0  ;;  %v1815_v7 = vadd.f32 %v1814_v52, %v1813_v58  ;;  %v2070_v8 = vadd.f32 %v2069_v53, %v2068_v59  ;;  %v546_v48 = vld [vmem:[%s12524_s0 + $0xf90] sm:$0xff]  ;;  %v547_v49 = vld [vmem:[%s12524_s0 + $0xf98] sm:$0xff] }
 0x144   :  { %v1562_v34 = vadd.f32 %v1561_v13, %v1560_v18  ;;  %v1822_v47 = vsel %vm1072_vm7, %v418_v22, 0.0  ;;  %v1567_v52 = vsel %vm1072_vm7, %v293_v30, 0.0  ;;  %v1824_v53 = vsel %vm1072_vm7, %v419_v31, 0.0  ;;  %v303_v18 = vld [vmem:[%s12524_s0 + $0x7f8] sm:$0xff] }
 0x145   :  { %v1303_v11 = vadd.f32 %v7694_v20, %v1301_v61  ;;  %v1817_v19 = vadd.f32 %v1816_v0, %v1815_v7  ;;  %v2072_v38 = vadd.f32 %v2071_v1, %v2070_v8  ;;  %v2073_v20 = vsel %vm1072_vm7, %v541_v60, 0.0  ;;  %v298_v61 = vld [vmem:[%s12524_s0 + $0x7d0] sm:$0xff]  ;;  %v423_v22 = vld [vmem:[%s12524_s0 + $0xbb8] sm:$0xff] }
 0x146   :  { %v1564_v46 = vadd.f32 %v1563_v29, %v1562_v34  ;;  %v2079_v59 = vsel %vm1072_vm7, %v544_v36, 0.0  ;;  %v2081_v60 = vsel %vm1072_vm7, %v545_v37, 0.0  ;;  %v1569_v1 = vsel %vm1072_vm7, %v294_v43, 0.0  ;;  %v426_v34 = vld [vmem:[%s12524_s0 + $0xbd0] sm:$0xff] }
 0x147   :  { %v1305_v24 = vadd.f32 %v7713_v26, %v1303_v11  ;;  %v543_v26 = vld [vmem:[%s12524_s0 + $0xf78] sm:$0xff]  ;;  %v1819_v35 = vadd.f32 %v1818_v15, %v1817_v19  ;;  %v2074_v42 = vadd.f32 %v2073_v20, %v2072_v38  ;;  %v1826_v3 = vsel %vm1072_vm7, %v420_v44, 0.0  ;;  %v302_v11 = vld [vmem:[%s12524_s0 + $0x7f0] sm:$0xff] }
 0x148   :  { %v2077_v54 = vsel %vm1072_vm7, %v543_v26, 0.0  ;;  %v1566_v58 = vadd.f32 %v1565_v40, %v1564_v46  ;;  %v2083_v9 = vsel %vm1072_vm7, %v546_v48, 0.0  ;;  %v7936_v10 = vsel %vm1072_vm7, %v547_v49, 0.0  ;;  %v422_v19 = vld [vmem:[%s12524_s0 + $0xbb0] sm:$0xff]  ;;  %v425_v26 = vld [vmem:[%s12524_s0 + $0xbc8] sm:$0xff]  ;;  %v428_v40 = vld [vmem:[%s12524_s0 + $0xbe0] sm:$0xff] }
 0x149   :  { %v1307_v39 = vadd.f32 %v7732_v27, %v1305_v24  ;;  %v2075_v27 = vsel %vm1072_vm7, %v542_v23, 0.0  ;;  %v1571_v15 = vsel %vm1072_vm7, %v295_v55, 0.0  ;;  %v1573_v16 = vsel %vm1072_vm7, %v296_v56, 0.0  ;;  %v424_v23 = vld [vmem:[%s12524_s0 + $0xbc0] sm:$0xff] }
 0x14a   :  { %v2076_v4 = vadd.f32 %v2075_v27, %v2074_v42  ;;  %v1568_v7 = vadd.f32 %v1567_v52, %v1566_v58  ;;  %v1575_v17 = vsel %vm1072_vm7, %v297_v57, 0.0  ;;  %v1577_v20 = vsel %vm1072_vm7, %v298_v61, 0.0  ;;  %v548_v46 = vld [vmem:[%s12524_s0 + $0xfa0] sm:$0xff]  ;;  %v562_v52 = vld [vmem:[%s12524_s0 + $0x1010] sm:$0xff]  ;;  %v429_v57 = vld [vmem:[%s12524_s0 + $0xbe8] sm:$0xff] }
 0x14b   :  { %v1309_v51 = vadd.f32 %v7768_v50, %v1307_v39  ;;  %v1821_v50 = vadd.f32 %v1820_v41, %v1819_v35  ;;  %v1579_v21 = vsel %vm1072_vm7, %v299_v63, 0.0  ;;  %v1581_v29 = vsel %vm1072_vm7, %v300_v5, 0.0  ;;  %v427_v39 = vld [vmem:[%s12524_s0 + $0xbd8] sm:$0xff] }
 0x14c   :  { %v1570_v38 = vadd.f32 %v1569_v1, %v1568_v7  ;;  %v1828_v30 = vsel %vm1072_vm7, %v421_v6, 0.0  ;;  %v2078_v31 = vadd.f32 %v2077_v54, %v2076_v4  ;;  %v7975_v37 = vsel %vm1072_vm7, %v302_v11, 0.0  ;;  %v563_v63 = vld [vmem:[%s12524_s0 + $0x1018] sm:$0xff]  ;;  %v430_v4 = vld [vmem:[%s12524_s0 + $0xbf0] sm:$0xff] }
 0x14d   :  { %v1311_v0 = vadd.f32 %v7787_v62, %v1309_v51  ;;  %v1823_v8 = vadd.f32 %v1822_v47, %v1821_v50  ;;  %v301_v62 = vld [vmem:[%s12524_s0 + $0x7e8] sm:$0xff]  ;;  %v7985_v42 = vsel %vm1072_vm7, %v303_v18, 0.0  ;;  %v1830_v43 = vsel %vm1072_vm7, %v422_v19, 0.0  ;;  %v560_v47 = vld [vmem:[%s12524_s0 + $0x1000] sm:$0xff] }
 0x14e   :  { %v1572_v35 = vadd.f32 %v1571_v15, %v1570_v38  ;;  %v7972_v36 = vsel %vm1072_vm7, %v301_v62, 0.0  ;;  %v2080_v44 = vadd.f32 %v2079_v59, %v2078_v31  ;;  %v1832_v49 = vsel %vm1072_vm7, %v423_v22, 0.0  ;;  %v561_v51 = vld [vmem:[%s12524_s0 + $0x1008] sm:$0xff]  ;;  %v550_v62 = vld [vmem:[%s12524_s0 + $0xfb0] sm:$0xff] }
 0x14f   :  { %v1313_v13 = vadd.f32 %v7806_v2, %v1311_v0  ;;  %v1825_v2 = vadd.f32 %v1824_v53, %v1823_v8  ;;  %v1836_v54 = vsel %vm1072_vm7, %v425_v26, 0.0  ;;  %v1838_v55 = vsel %vm1072_vm7, %v426_v34, 0.0  ;;  %v553_v34 = vld [vmem:[%s12524_s0 + $0xfc8] sm:$0xff] }
 0x150   :  { %v1574_v27 = vadd.f32 %v1573_v16, %v1572_v35  ;;  %v2082_v56 = vadd.f32 %v2081_v60, %v2080_v44  ;;  %v1840_v59 = vsel %vm1072_vm7, %v427_v39, 0.0  ;;  %v8010_v61 = vsel %vm1072_vm7, %v428_v40, 0.0  ;;  %v431_v16 = vld [vmem:[%s12524_s0 + $0xbf8] sm:$0xff] }
 0x151   :  { %v1315_v24 = vadd.f32 %v7825_v14, %v1313_v13  ;;  %v1827_v14 = vadd.f32 %v1826_v3, %v1825_v2  ;;  %v2087_v1 = vsel %vm1072_vm7, %v548_v46, 0.0  ;;  %v2117_v3 = vsel %vm1072_vm7, %v560_v47, 0.0 }
 0x152   :  { %v1576_v58 = vadd.f32 %v1575_v17, %v1574_v27  ;;  %v2084_v0 = vadd.f32 %v2083_v9, %v2082_v56  ;;  %v2118_v7 = vsel %vm1072_vm7, %v561_v51, 0.0  ;;  %v2120_v8 = vsel %vm1072_vm7, %v562_v52, 0.0  ;;  %v567_v27 = vld [vmem:[%s12524_s0 + $0x1038] sm:$0xff]  ;;  %v558_v56 = vld [vmem:[%s12524_s0 + $0xff0] sm:$0xff] }
 0x153   :  { %v1317_v41 = vadd.f32 %v7835_v12, %v1315_v24  ;;  %v1829_v48 = vadd.f32 %v1828_v30, %v1827_v14  ;;  %v1834_v12 = vsel %vm1072_vm7, %v424_v23, 0.0  ;;  %v1844_v11 = vsel %vm1072_vm7, %v429_v57, 0.0  ;;  %v552_v23 = vld [vmem:[%s12524_s0 + $0xfc0] sm:$0xff] }
 0x154   :  { %v1578_v5 = vadd.f32 %v1577_v20, %v1576_v58  ;;  %v2086_v13 = vadd.f32 %v7936_v10, %v2084_v0  ;;  %v2119_v15 = vadd.f32 %v2118_v7, %v2117_v3  ;;  %v2122_v38 = vsel %vm1072_vm7, %v563_v63, 0.0  ;;  %v551_v20 = vld [vmem:[%s12524_s0 + $0xfb8] sm:$0xff]  ;;  %v568_v57 = vld [vmem:[%s12524_s0 + $0x1040] sm:$0xff] }
 0x155   :  { %v1319_v53 = vadd.f32 %v7857_v25, %v1317_v41  ;;  %v1831_v50 = vadd.f32 %v1830_v43, %v1829_v48  ;;  %v549_v25 = vld [vmem:[%s12524_s0 + $0xfa8] sm:$0xff]  ;;  %v8048_v2 = vsel %vm1072_vm7, %v430_v4, 0.0  ;;  %v2091_v31 = vsel %vm1072_vm7, %v550_v62, 0.0  ;;  %v555_v41 = vld [vmem:[%s12524_s0 + $0xfd8] sm:$0xff]  ;;  %v570_v4 = vld [vmem:[%s12524_s0 + $0x1050] sm:$0xff] }
 0x156   :  { %v1580_v17 = vadd.f32 %v1579_v21, %v1578_v5  ;;  %v2089_v19 = vsel %vm1072_vm7, %v549_v25, 0.0  ;;  %v2088_v22 = vadd.f32 %v2087_v1, %v2086_v13  ;;  %v2121_v21 = vadd.f32 %v2120_v8, %v2119_v15  ;;  %v571_v5 = vld [vmem:[%s12524_s0 + $0x1058] sm:$0xff]  ;;  %v573_v15 = vld [vmem:[%s12524_s0 + $0x1068] sm:$0xff] }
 0x157   :  { %v1321_v60 = vadd.f32 %v7860_v28, %v1319_v53  ;;  %v1833_v6 = vadd.f32 %v1832_v49, %v1831_v50  ;;  %v564_v28 = vld [vmem:[%s12524_s0 + $0x1020] sm:$0xff]  ;;  %v1848_v14 = vsel %vm1072_vm7, %v431_v16, 0.0  ;;  %v2093_v46 = vsel %vm1072_vm7, %v551_v20, 0.0  ;;  %v574_v16 = vld [vmem:[%s12524_s0 + $0x1070] sm:$0xff]  ;;  %v575_v20 = vld [vmem:[%s12524_s0 + $0x1078] sm:$0xff] }
 0x158   :  { %v1582_v24 = vadd.f32 %v1581_v29, %v1580_v17  ;;  %v2124_v26 = vsel %vm1072_vm7, %v564_v28, 0.0  ;;  %v2090_v39 = vadd.f32 %v2089_v19, %v2088_v22  ;;  %v2123_v40 = vadd.f32 %v2122_v38, %v2121_v21  ;;  %v554_v29 = vld [vmem:[%s12524_s0 + $0xfd0] sm:$0xff]  ;;  %v688_v17 = vld [vmem:[%s12524_s0 + $0x1400] sm:$0xff] }
 0x159   :  { %v1323_v9 = vadd.f32 %v7873_v32, %v1321_v60  ;;  %v1835_v18 = vadd.f32 %v1834_v12, %v1833_v6  ;;  %v565_v32 = vld [vmem:[%s12524_s0 + $0x1028] sm:$0xff]  ;;  %v2095_v12 = vsel %vm1072_vm7, %v552_v23, 0.0  ;;  %v2099_v50 = vsel %vm1072_vm7, %v554_v29, 0.0 }
 0x15a   :  { %v1584_v43 = vadd.f32 %v7972_v36, %v1582_v24  ;;  %v2126_v47 = vsel %vm1072_vm7, %v565_v32, 0.0  ;;  %v2092_v49 = vadd.f32 %v2091_v31, %v2090_v39  ;;  %v2125_v51 = vadd.f32 %v2124_v26, %v2123_v40  ;;  %v557_v36 = vld [vmem:[%s12524_s0 + $0xfe8] sm:$0xff]  ;;  %v576_v32 = vld [vmem:[%s12524_s0 + $0x1080] sm:$0xff] }
 0x15b   :  { %v1325_v10 = vadd.f32 %v7876_v33, %v1323_v9  ;;  %v1837_v30 = vadd.f32 %v1836_v54, %v1835_v18  ;;  %v566_v33 = vld [vmem:[%s12524_s0 + $0x1030] sm:$0xff]  ;;  %v2097_v54 = vsel %vm1072_vm7, %v553_v34, 0.0  ;;  %v2101_v25 = vsel %vm1072_vm7, %v555_v41, 0.0  ;;  %v689_v24 = vld [vmem:[%s12524_s0 + $0x1408] sm:$0xff] }
 0x15c   :  { %v1586_v52 = vadd.f32 %v7975_v37, %v1584_v43  ;;  %v2094_v58 = vadd.f32 %v2093_v46, %v2092_v49  ;;  %v2127_v63 = vadd.f32 %v2126_v47, %v2125_v51  ;;  %v559_v37 = vld [vmem:[%s12524_s0 + $0xff8] sm:$0xff]  ;;  %v2130_v3 = vsel %vm1072_vm7, %v567_v27, 0.0  ;;  %v577_v29 = vld [vmem:[%s12524_s0 + $0x1088] sm:$0xff]  ;;  %v578_v41 = vld [vmem:[%s12524_s0 + $0x1090] sm:$0xff] }
 0x15d   :  { %v1327_v35 = vadd.f32 %v7894_v45, %v1325_v10  ;;  %v1839_v44 = vadd.f32 %v1838_v55, %v1837_v30  ;;  %v556_v45 = vld [vmem:[%s12524_s0 + $0xfe0] sm:$0xff]  ;;  %v2128_v55 = vsel %vm1072_vm7, %v566_v33, 0.0  ;;  %v2105_v8 = vsel %vm1072_vm7, %v557_v36, 0.0  ;;  %v690_v30 = vld [vmem:[%s12524_s0 + $0x1410] sm:$0xff]  ;;  %v691_v43 = vld [vmem:[%s12524_s0 + $0x1418] sm:$0xff] }
 0x15e   :  { %v1588_v60 = vadd.f32 %v7985_v42, %v1586_v52  ;;  %v2103_v1 = vsel %vm1072_vm7, %v556_v45, 0.0  ;;  %v2096_v7 = vadd.f32 %v2095_v12, %v2094_v58  ;;  %v2129_v62 = vadd.f32 %v2128_v55, %v2127_v63  ;;  %v572_v42 = vld [vmem:[%s12524_s0 + $0x1060] sm:$0xff]  ;;  %v579_v45 = vld [vmem:[%s12524_s0 + $0x1098] sm:$0xff]  ;;  %v582_v63 = vld [vmem:[%s12524_s0 + $0x10b0] sm:$0xff] }
 0x15f   :  { %v1328_v48 = vrot.slane %v1327_v35, 4  ;;  %v1841_v53 = vadd.f32 %v1840_v59, %v1839_v44  ;;  %v569_v59 = vld [vmem:[%s12524_s0 + $0x1048] sm:$0xff]  ;;  %v8114_v9 = vsel %vm1072_vm7, %v558_v56, 0.0  ;;  %v2132_v13 = vsel %vm1072_vm7, %v568_v57, 0.0  ;;  %v580_v51 = vld [vmem:[%s12524_s0 + $0x10a0] sm:$0xff] }
 0x160   :  { %v2098_v18 = vadd.f32 %v2097_v54, %v2096_v7  ;;  %v2131_v19 = vadd.f32 %v2130_v3, %v2129_v62  ;;  %v2134_v38 = vsel %vm1072_vm7, %v569_v59, 0.0  ;;  %v2136_v21 = vsel %vm1072_vm7, %v570_v4, 0.0  ;;  %v692_v36 = vld [vmem:[%s12524_s0 + $0x1420] sm:$0xff]  ;;  %v581_v56 = vld [vmem:[%s12524_s0 + $0x10a8] sm:$0xff] }
 0x161   :  { %v1843_v0 = vadd.f32 %v8010_v61, %v1841_v53  ;;  %v1329_v6 = vadd.f32 %v1328_v48, %v1327_v35  ;;  %v1589_v61 = vrot.slane %v1588_v60, 4  ;;  %v2138_v23 = vsel %vm1072_vm7, %v571_v5, 0.0  ;;  %v693_v59 = vld [vmem:[%s12524_s0 + $0x1428] sm:$0xff]  ;;  %v584_v62 = vld [vmem:[%s12524_s0 + $0x10c0] sm:$0xff] }
 0x162   :  { %v2100_v26 = vadd.f32 %v2099_v50, %v2098_v18  ;;  %v2133_v34 = vadd.f32 %v2132_v13, %v2131_v19  ;;  %v2140_v33 = vsel %vm1072_vm7, %v572_v42, 0.0  ;;  %v8148_v39 = vsel %vm1072_vm7, %v574_v16, 0.0  ;;  %v694_v42 = vld [vmem:[%s12524_s0 + $0x1430] sm:$0xff] }
 0x163   :  { %v1845_v28 = vadd.f32 %v1844_v11, %v1843_v0  ;;  %v8127_v11 = vsel %vm1072_vm7, %v559_v37, 0.0  ;;  %v1590_v10 = vadd.f32 %v1589_v61, %v1588_v60  ;;  %v1330_v31 = vrot.slane %v1329_v6, 2  ;;  %v583_v37 = vld [vmem:[%s12524_s0 + $0x10b8] sm:$0xff]  ;;  %v586_v16 = vld [vmem:[%s12524_s0 + $0x10d0] sm:$0xff] }
 0x164   :  { %v2378_v40 = vsel %vm1072_vm7, %v688_v17, 0.0  ;;  %v2135_v44 = vadd.f32 %v2134_v38, %v2133_v34  ;;  %v8161_v46 = vsel %vm1072_vm7, %v575_v20, 0.0  ;;  %v8164_v47 = vsel %vm1072_vm7, %v576_v32, 0.0  ;;  %v588_v20 = vld [vmem:[%s12524_s0 + $0x10e0] sm:$0xff]  ;;  %v695_v32 = vld [vmem:[%s12524_s0 + $0x1438] sm:$0xff]  ;;  %v589_v34 = vld [vmem:[%s12524_s0 + $0x10e8] sm:$0xff] }
 0x165   :  { %v1847_v22 = vadd.f32 %v8048_v2, %v1845_v28  ;;  %v2142_v2 = vsel %vm1072_vm7, %v573_v15, 0.0  ;;  %v1591_v27 = vrot.slane %v1590_v10, 2  ;;  %v2379_v49 = vsel %vm1072_vm7, %v689_v24, 0.0 }
 0x166   :  { %v2381_v12 = vsel %vm1072_vm7, %v690_v30, 0.0  ;;  %v1331_v52 = vadd.f32 %v1330_v31, %v1329_v6  ;;  %v2137_v54 = vadd.f32 %v2136_v21, %v2135_v44  ;;  %v2380_v55 = vadd.f32 %v2379_v49, %v2378_v40  ;;  %v700_v49 = vld [vmem:[%s12524_s0 + $0x1460] sm:$0xff] }
 0x167   :  { %v1849_v35 = vadd.f32 %v1848_v14, %v1847_v22  ;;  %v2102_v14 = vadd.f32 %v2101_v25, %v2100_v26  ;;  %v8181_v58 = vsel %vm1072_vm7, %v577_v29, 0.0  ;;  %v8184_v50 = vsel %vm1072_vm7, %v578_v41, 0.0  ;;  %v590_v41 = vld [vmem:[%s12524_s0 + $0x10f0] sm:$0xff] }
 0x168   :  { %v2383_v25 = vsel %vm1072_vm7, %v691_v43, 0.0  ;;  %v2139_v0 = vadd.f32 %v2138_v23, %v2137_v54  ;;  %v2382_v3 = vadd.f32 %v2381_v12, %v2380_v55  ;;  %v1592_v4 = vadd.f32 %v1591_v27, %v1590_v10  ;;  %v698_v43 = vld [vmem:[%s12524_s0 + $0x1450] sm:$0xff]  ;;  %v591_v27 = vld [vmem:[%s12524_s0 + $0x10f8] sm:$0xff] }
 0x169   :  { %v1850_v48 = vrot.slane %v1849_v35, 4  ;;  %v2104_v53 = vadd.f32 %v2103_v1, %v2102_v14  ;;  %v8197_v1 = vsel %vm1072_vm7, %v579_v45, 0.0  ;;  %v8200_v6 = vsel %vm1072_vm7, %v580_v51, 0.0  ;;  %v702_v54 = vld [vmem:[%s12524_s0 + $0x1470] sm:$0xff] }
 0x16a   :  { %v2385_v7 = vsel %vm1072_vm7, %v692_v36, 0.0  ;;  %v1332_v61 = vrot.slane %v1331_v52, 1  ;;  %v2141_v13 = vadd.f32 %v2140_v33, %v2139_v0  ;;  %v2384_v15 = vadd.f32 %v2383_v25, %v2382_v3  ;;  %v696_v33 = vld [vmem:[%s12524_s0 + $0x1440] sm:$0xff] }
 0x16b   :  { %v1851_v57 = vadd.f32 %v1850_v48, %v1849_v35  ;;  %v2106_v60 = vadd.f32 %v2105_v8, %v2104_v53  ;;  %v585_v8 = vld [vmem:[%s12524_s0 + $0x10c8] sm:$0xff]  ;;  %v8217_v17 = vsel %vm1072_vm7, %v581_v56, 0.0  ;;  %v8220_v18 = vsel %vm1072_vm7, %v582_v63, 0.0  ;;  %v699_v48 = vld [vmem:[%s12524_s0 + $0x1458] sm:$0xff]  ;;  %v816_v63 = vld [vmem:[%s12524_s0 + $0x1800] sm:$0xff] }
 0x16c   :  { %v8223_v19 = vsel %vm1072_vm7, %v583_v37, 0.0  ;;  %v2387_v38 = vsel %vm1072_vm7, %v693_v59, 0.0  ;;  %v2143_v21 = vadd.f32 %v2142_v2, %v2141_v13  ;;  %v2386_v23 = vadd.f32 %v2385_v7, %v2384_v15  ;;  %v701_v53 = vld [vmem:[%s12524_s0 + $0x1468] sm:$0xff] }
 0x16d   :  { %v1852_v5 = vrot.slane %v1851_v57, 2  ;;  %v2108_v28 = vadd.f32 %v8114_v9, %v2106_v60  ;;  %v587_v9 = vld [vmem:[%s12524_s0 + $0x10d8] sm:$0xff]  ;;  %v1593_v24 = vrot.slane %v1592_v4, 1  ;;  %v8237_v30 = vsel %vm1072_vm7, %v584_v62, 0.0  ;;  %v817_v37 = vld [vmem:[%s12524_s0 + $0x1808] sm:$0xff] }
 0x16e   :  { %v8240_v31 = vsel %vm1072_vm7, %v585_v8, 0.0  ;;  %v2389_v26 = vsel %vm1072_vm7, %v694_v42, 0.0  ;;  %v8252_v35 = vadd.f32 %v1332_v61, %v1331_v52  ;;  %v2145_v40 = vadd.f32 %v8148_v39, %v2143_v21  ;;  %v705_v42 = vld [vmem:[%s12524_s0 + $0x1488] sm:$0xff]  ;;  %v818_v61 = vld [vmem:[%s12524_s0 + $0x1810] sm:$0xff]  ;;  %v707_v21 = vld [vmem:[%s12524_s0 + $0x1498] sm:$0xff] }
 0x16f   :  { %v1853_v10 = vadd.f32 %v1852_v5, %v1851_v57  ;;  %v2110_v22 = vadd.f32 %v8127_v11, %v2108_v28  ;;  %v697_v11 = vld [vmem:[%s12524_s0 + $0x1448] sm:$0xff]  ;;  %v2388_v29 = vadd.f32 %v2387_v38, %v2386_v23  ;;  %v8262_v14 = vsel %vm1072_vm7, %v586_v16, 0.0  ;;  %v704_v5 = vld [vmem:[%s12524_s0 + $0x1480] sm:$0xff]  ;;  %v706_v38 = vld [vmem:[%s12524_s0 + $0x1490] sm:$0xff] }
 0x170   :  { %v8265_v44 = vsel %vm1072_vm7, %v587_v9, 0.0  ;;  %v8268_v45 = vsel %vm1072_vm7, %v588_v20, 0.0  ;;  %v2391_v39 = vsel %vm1072_vm7, %v695_v32, 0.0  ;;  %v2147_v36 = vadd.f32 %v8161_v46, %v2145_v40  ;;  %v703_v46 = vld [vmem:[%s12524_s0 + $0x1478] sm:$0xff]  ;;  %v708_v23 = vld [vmem:[%s12524_s0 + $0x14a0] sm:$0xff] }
 0x171   :  { %v2111_v2 = vrot.slane %v2110_v22, 4  ;;  %v1854_v12 = vrot.slane %v1853_v10, 1  ;;  %v2390_v52 = vadd.f32 %v2389_v26, %v2388_v29  ;;  %v8287_v55 = vadd.f32 %v1593_v24, %v1592_v4  ;;  %v592_v4 = vld [vmem:[%s12524_s0 + $0x1100] sm:$0xff]  ;;  %v819_v9 = vld [vmem:[%s12524_s0 + $0x1818] sm:$0xff] }
 0x172   :  { %v8290_v56 = vsel %vm1072_vm7, %v589_v34, 0.0  ;;  %v2393_v57 = vsel %vm1072_vm7, %v696_v33, 0.0  ;;  %v2395_v25 = vsel %vm1072_vm7, %v697_v11, 0.0  ;;  %v2149_v59 = vadd.f32 %v8164_v47, %v2147_v36  ;;  %v709_v11 = vld [vmem:[%s12524_s0 + $0x14a8] sm:$0xff] }
 0x173   :  { %v2112_v51 = vadd.f32 %v2111_v2, %v2110_v22  ;;  %v8305_v60 = vsel %vm1072_vm7, %v590_v41, 0.0  ;;  %v2392_v0 = vadd.f32 %v2391_v39, %v2390_v52  ;;  %v2397_v3 = vsel %vm1072_vm7, %v698_v43, 0.0  ;;  %v593_v22 = vld [vmem:[%s12524_s0 + $0x1108] sm:$0xff]  ;;  %v820_v2 = vld [vmem:[%s12524_s0 + $0x1820] sm:$0xff]  ;;  %v710_v43 = vld [vmem:[%s12524_s0 + $0x14b0] sm:$0xff] }
 0x174   :  { %v8315_v62 = vsel %vm1072_vm7, %v591_v27, 0.0  ;;  %v2399_v47 = vsel %vm1072_vm7, %v699_v48, 0.0  ;;  %v2401_v8 = vsel %vm1072_vm7, %v700_v49, 0.0  ;;  %v8325_v28 = vadd.f32 %v1854_v12, %v1853_v10  ;;  %v711_v39 = vld [vmem:[%s12524_s0 + $0x14b8] sm:$0xff]  ;;  %v821_v36 = vld [vmem:[%s12524_s0 + $0x1828] sm:$0xff] }
 0x175   :  { %v2113_v7 = vrot.slane %v2112_v51, 2  ;;  %v2151_v13 = vadd.f32 %v8181_v58, %v2149_v59  ;;  %v2394_v15 = vadd.f32 %v2393_v57, %v2392_v0  ;;  %v2403_v16 = vsel %vm1072_vm7, %v701_v53, 0.0  ;;  %v595_v57 = vld [vmem:[%s12524_s0 + $0x1118] sm:$0xff] }
 0x176   :  { %12534 = vst [vmem:[#allocation3_spill] sm:$0xff] %v8325_v28  ;;  %v8336_v20 = vsel %vm1072_vm7, %v702_v54, 0.0  ;;  %v8339_v32 = vsel %vm1072_vm7, %v703_v46, 0.0  ;;  %v2639_v10 = vsel %vm1072_vm7, %v816_v63, 0.0  ;;  %v2640_v58 = vsel %vm1072_vm7, %v817_v37, 0.0  ;;  %v713_v46 = vld [vmem:[%s12524_s0 + $0x14c8] sm:$0xff] }
 0x177   :  { %v2153_v24 = vadd.f32 %v8184_v50, %v2151_v13  ;;  %v8354_v26 = vsel %vm1072_vm7, %v592_v4, 0.0  ;;  %v2396_v34 = vadd.f32 %v2395_v25, %v2394_v15  ;;  %v8357_v33 = vsel %vm1072_vm7, %v704_v5, 0.0  ;;  %v712_v25 = vld [vmem:[%s12524_s0 + $0x14c0] sm:$0xff]  ;;  %v822_v4 = vld [vmem:[%s12524_s0 + $0x1830] sm:$0xff]  ;;  %v3221_v28 = vld [vmem:[%s12525_s1 + $0x18] sm:$0xff] }
 0x178   :  { %v2114_v40 = vadd.f32 %v2113_v7, %v2112_v51  ;;  %v8366_v29 = vsel %vm1072_vm7, %v705_v42, 0.0  ;;  %v2641_v50 = vadd.f32 %v2640_v58, %v2639_v10  ;;  %v2642_v41 = vsel %vm1072_vm7, %v818_v61, 0.0  ;;  %v594_v51 = vld [vmem:[%s12524_s0 + $0x1110] sm:$0xff]  ;;  %v596_v42 = vld [vmem:[%s12524_s0 + $0x1120] sm:$0xff]  ;;  %v715_v61 = vld [vmem:[%s12524_s0 + $0x14d8] sm:$0xff] }
 0x179   :  { %v2155_v27 = vadd.f32 %v8197_v1, %v2153_v24  ;;  %v2398_v48 = vadd.f32 %v2397_v3, %v2396_v34  ;;  %v8377_v49 = vsel %vm1072_vm7, %v706_v38, 0.0  ;;  %v2644_v12 = vsel %vm1072_vm7, %v819_v9, 0.0  ;;  %v714_v3 = vld [vmem:[%s12524_s0 + $0x14d0] sm:$0xff]  ;;  %v597_v10 = vld [vmem:[%s12524_s0 + $0x1128] sm:$0xff]  ;;  %v823_v58 = vld [vmem:[%s12524_s0 + $0x1838] sm:$0xff] }
 0x17a   :  { %v8387_v52 = vsel %vm1072_vm7, %v593_v22, 0.0  ;;  %v8390_v53 = vsel %vm1072_vm7, %v707_v21, 0.0  ;;  %v8393_v1 = vsel %vm1072_vm7, %v708_v23, 0.0  ;;  %v2643_v54 = vadd.f32 %v2642_v41, %v2641_v50  ;;  %v598_v23 = vld [vmem:[%s12524_s0 + $0x1130] sm:$0xff]  ;;  %v716_v24 = vld [vmem:[%s12524_s0 + $0x14e0] sm:$0xff] }
 0x17b   :  { %v2157_v63 = vadd.f32 %v8200_v6, %v2155_v27  ;;  %v2400_v37 = vadd.f32 %v2399_v47, %v2398_v48  ;;  %v8406_v59 = vsel %vm1072_vm7, %v709_v11, 0.0  ;;  %v2646_v0 = vsel %vm1072_vm7, %v820_v2, 0.0  ;;  %v824_v34 = vld [vmem:[%s12524_s0 + $0x1840] sm:$0xff] }
 0x17c   :  { %v2115_v5 = vrot.slane %v2114_v40, 1  ;;  %v8416_v7 = vsel %vm1072_vm7, %v710_v43, 0.0  ;;  %v8419_v6 = vsel %vm1072_vm7, %v711_v39, 0.0  ;;  %v2645_v47 = vadd.f32 %v2644_v12, %v2643_v54  ;;  %v717_v43 = vld [vmem:[%s12524_s0 + $0x14e8] sm:$0xff]  ;;  %v599_v12 = vld [vmem:[%s12524_s0 + $0x1138] sm:$0xff] }
 0x17d   :  { %v2159_v13 = vadd.f32 %v8217_v17, %v2157_v63  ;;  %v8429_v15 = vsel %vm1072_vm7, %v594_v51, 0.0  ;;  %v2402_v38 = vadd.f32 %v2401_v8, %v2400_v37  ;;  %v2648_v9 = vsel %vm1072_vm7, %v821_v36, 0.0  ;;  %v825_v39 = vld [vmem:[%s12524_s0 + $0x1848] sm:$0xff]  ;;  %v826_v51 = vld [vmem:[%s12524_s0 + $0x1850] sm:$0xff]  ;;  %v828_v63 = vld [vmem:[%s12524_s0 + $0x1860] sm:$0xff] }
 0x17e   :  { %v8439_v22 = vsel %vm1072_vm7, %v595_v57, 0.0  ;;  %v8442_v21 = vsel %vm1072_vm7, %v712_v25, 0.0  ;;  %v8445_v17 = vsel %vm1072_vm7, %v713_v46, 0.0  ;;  %v2647_v8 = vadd.f32 %v2646_v0, %v2645_v47  ;;  %v718_v46 = vld [vmem:[%s12524_s0 + $0x14f0] sm:$0xff] }
 0x17f   :  { %v2161_v11 = vadd.f32 %v8220_v18, %v2159_v13  ;;  %v2404_v2 = vadd.f32 %v2403_v16, %v2402_v38  ;;  %v8458_v50 = vsel %vm1072_vm7, %v714_v3, 0.0  ;;  %v2650_v41 = vsel %vm1072_vm7, %v822_v4, 0.0  ;;  %v829_v4 = vld [vmem:[%s12524_s0 + $0x1868] sm:$0xff]  ;;  %v719_v38 = vld [vmem:[%s12524_s0 + $0x14f8] sm:$0xff] }
 0x180   :  { %v8467_v27 = vadd.f32 %v2115_v5, %v2114_v40  ;;  %v8470_v48 = vsel %vm1072_vm7, %v596_v42, 0.0  ;;  %v8473_v18 = vsel %vm1072_vm7, %v715_v61, 0.0  ;;  %v2649_v16 = vadd.f32 %v2648_v9, %v2647_v8  ;;  %v827_v40 = vld [vmem:[%s12524_s0 + $0x1858] sm:$0xff]  ;;  %v830_v5 = vld [vmem:[%s12524_s0 + $0x1870] sm:$0xff]  ;;  %v601_v8 = vld [vmem:[%s12524_s0 + $0x1148] sm:$0xff] }
 0x181   :  { %v2163_v36 = vadd.f32 %v8223_v19, %v2161_v11  ;;  %v8486_v54 = vsel %vm1072_vm7, %v597_v10, 0.0  ;;  %v2406_v57 = vadd.f32 %v8336_v20, %v2404_v2  ;;  %v2652_v25 = vsel %vm1072_vm7, %v823_v58, 0.0  ;;  %v600_v20 = vld [vmem:[%s12524_s0 + $0x1140] sm:$0xff]  ;;  %v831_v9 = vld [vmem:[%s12524_s0 + $0x1878] sm:$0xff] }
 0x182   :  { %12535 = vst [vmem:[#allocation4_spill] sm:$0xff] %v8467_v27  ;;  %v8497_v37 = vsel %vm1072_vm7, %v598_v23, 0.0  ;;  %v8500_v19 = vsel %vm1072_vm7, %v716_v24, 0.0  ;;  %v2651_v0 = vadd.f32 %v2650_v41, %v2649_v16  ;;  %v2654_v3 = vsel %vm1072_vm7, %v824_v34, 0.0  ;;  %v832_v23 = vld [vmem:[%s12524_s0 + $0x1880] sm:$0xff]  ;;  %v833_v24 = vld [vmem:[%s12524_s0 + $0x1888] sm:$0xff] }
 0x183   :  { %v2165_v47 = vadd.f32 %v8237_v30, %v2163_v36  ;;  %v2408_v42 = vadd.f32 %v8339_v32, %v2406_v57  ;;  %v8515_v61 = vsel %vm1072_vm7, %v717_v43, 0.0  ;;  %v2656_v13 = vsel %vm1072_vm7, %v825_v39, 0.0  ;;  %v834_v43 = vld [vmem:[%s12524_s0 + $0x1890] sm:$0xff]  ;;  %v944_v39 = vld [vmem:[%s12524_s0 + $0x1c00] sm:$0xff]  ;;  %v945_v36 = vld [vmem:[%s12524_s0 + $0x1c08] sm:$0xff] }
 0x184   :  { %v8525_v10 = vsel %vm1072_vm7, %v599_v12, 0.0  ;;  %v2653_v58 = vadd.f32 %v2652_v25, %v2651_v0  ;;  %v2658_v30 = vsel %vm1072_vm7, %v826_v51, 0.0  ;;  %v2660_v32 = vsel %vm1072_vm7, %v827_v40, 0.0  ;;  %v720_v51 = vld [vmem:[%s12524_s0 + $0x1500] sm:$0xff]  ;;  %v835_v40 = vld [vmem:[%s12524_s0 + $0x1898] sm:$0xff] }
 0x185   :  { %v2167_v34 = vadd.f32 %v8240_v31, %v2165_v47  ;;  %v2410_v11 = vadd.f32 %v8357_v33, %v2408_v42  ;;  %v8541_v2 = vsel %vm1072_vm7, %v718_v46, 0.0  ;;  %v2662_v41 = vsel %vm1072_vm7, %v828_v63, 0.0  ;;  %v836_v0 = vld [vmem:[%s12524_s0 + $0x18a0] sm:$0xff]  ;;  %v837_v47 = vld [vmem:[%s12524_s0 + $0x18a8] sm:$0xff] }
 0x186   :  { %v8551_v16 = vsel %vm1072_vm7, %v600_v20, 0.0  ;;  %v2655_v12 = vadd.f32 %v2654_v3, %v2653_v58  ;;  %v2664_v31 = vsel %vm1072_vm7, %v829_v4, 0.0  ;;  %v8555_v33 = vsel %vm1072_vm7, %v830_v5, 0.0  ;;  %v946_v3 = vld [vmem:[%s12524_s0 + $0x1c10] sm:$0xff]  ;;  %v721_v58 = vld [vmem:[%s12524_s0 + $0x1508] sm:$0xff] }
 0x187   :  { %v2169_v57 = vadd.f32 %v8262_v14, %v2167_v34  ;;  %v2412_v25 = vadd.f32 %v8366_v29, %v2410_v11  ;;  %v8569_v46 = vsel %vm1072_vm7, %v719_v38, 0.0  ;;  %v8572_v63 = vsel %vm1072_vm7, %v831_v9, 0.0  ;;  %v602_v5 = vld [vmem:[%s12524_s0 + $0x1150] sm:$0xff]  ;;  %v839_v11 = vld [vmem:[%s12524_s0 + $0x18b8] sm:$0xff] }
 0x188   :  { %v8581_v20 = vsel %vm1072_vm7, %v601_v8, 0.0  ;;  %v2657_v14 = vadd.f32 %v2656_v13, %v2655_v12  ;;  %v8584_v29 = vsel %vm1072_vm7, %v832_v23, 0.0  ;;  %v8587_v4 = vsel %vm1072_vm7, %v833_v24, 0.0  ;;  %v947_v8 = vld [vmem:[%s12524_s0 + $0x1c18] sm:$0xff]  ;;  %v838_v34 = vld [vmem:[%s12524_s0 + $0x18b0] sm:$0xff] }
 0x189   :  { %v2171_v42 = vadd.f32 %v8265_v44, %v2169_v57  ;;  %v2414_v38 = vadd.f32 %v8377_v49, %v2412_v25  ;;  %v8598_v13 = vsel %vm1072_vm7, %v834_v43, 0.0  ;;  %v2900_v9 = vsel %vm1072_vm7, %v944_v39, 0.0  ;;  %v722_v25 = vld [vmem:[%s12524_s0 + $0x1510] sm:$0xff] }
 0x18a   :  { %v8608_v23 = vsel %vm1072_vm7, %v720_v51, 0.0  ;;  %v2659_v24 = vadd.f32 %v2658_v30, %v2657_v14  ;;  %v8611_v44 = vsel %vm1072_vm7, %v835_v40, 0.0  ;;  %v2901_v49 = vsel %vm1072_vm7, %v945_v36, 0.0  ;;  %v603_v51 = vld [vmem:[%s12524_s0 + $0x1158] sm:$0xff]  ;;  %v948_v40 = vld [vmem:[%s12524_s0 + $0x1c20] sm:$0xff] }
 0x18b   :  { %v2173_v43 = vadd.f32 %v8268_v45, %v2171_v42  ;;  %v2416_v39 = vadd.f32 %v8390_v53, %v2414_v38  ;;  %v8623_v12 = vsel %vm1072_vm7, %v836_v0, 0.0  ;;  %v2903_v30 = vsel %vm1072_vm7, %v946_v3, 0.0  ;;  %v840_v0 = vld [vmem:[%s12524_s0 + $0x18c0] sm:$0xff]  ;;  %v949_v42 = vld [vmem:[%s12524_s0 + $0x1c28] sm:$0xff] }
 0x18c   :  { %v8633_v36 = vsel %vm1072_vm7, %v602_v5, 0.0  ;;  %v2661_v57 = vadd.f32 %v2660_v32, %v2659_v24  ;;  %v8636_v45 = vsel %vm1072_vm7, %v837_v47, 0.0  ;;  %v2902_v53 = vadd.f32 %v2901_v49, %v2900_v9  ;;  %v841_v47 = vld [vmem:[%s12524_s0 + $0x18c8] sm:$0xff] }
 0x18d   :  { %v2175_v3 = vadd.f32 %v8290_v56, %v2173_v43  ;;  %v2418_v14 = vadd.f32 %v8393_v1, %v2416_v39  ;;  %v8647_v5 = vsel %vm1072_vm7, %v721_v58, 0.0  ;;  %v2905_v32 = vsel %vm1072_vm7, %v947_v8, 0.0  ;;  %v604_v58 = vld [vmem:[%s12524_s0 + $0x1160] sm:$0xff]  ;;  %v842_v8 = vld [vmem:[%s12524_s0 + $0x18d0] sm:$0xff] }
 0x18e   :  { %v2663_v38 = vadd.f32 %v2662_v41, %v2661_v57  ;;  %v8657_v9 = vsel %vm1072_vm7, %v838_v34, 0.0  ;;  %v8660_v56 = vsel %vm1072_vm7, %v839_v11, 0.0  ;;  %v2904_v1 = vadd.f32 %v2903_v30, %v2902_v53  ;;  %v723_v11 = vld [vmem:[%s12524_s0 + $0x1518] sm:$0xff]  ;;  %v950_v43 = vld [vmem:[%s12524_s0 + $0x1c30] sm:$0xff] }
 0x18f   :  { %v2177_v24 = vadd.f32 %v8305_v60, %v2175_v3  ;;  %v8670_v49 = vsel %vm1072_vm7, %v603_v51, 0.0  ;;  %v2420_v41 = vadd.f32 %v8406_v59, %v2418_v14  ;;  %v2907_v34 = vsel %vm1072_vm7, %v948_v40, 0.0  ;;  %v605_v59 = vld [vmem:[%s12524_s0 + $0x1168] sm:$0xff]  ;;  %v843_v40 = vld [vmem:[%s12524_s0 + $0x18d8] sm:$0xff] }
 0x190   :  { %v8681_v39 = vsel %vm1072_vm7, %v722_v25, 0.0  ;;  %v2665_v30 = vadd.f32 %v2664_v31, %v2663_v38  ;;  %v8684_v60 = vsel %vm1072_vm7, %v840_v0, 0.0  ;;  %v2906_v51 = vadd.f32 %v2905_v32, %v2904_v1  ;;  %v724_v0 = vld [vmem:[%s12524_s0 + $0x1520] sm:$0xff]  ;;  %v951_v3 = vld [vmem:[%s12524_s0 + $0x1c38] sm:$0xff] }
 0x191   :  { %v2179_v57 = vadd.f32 %v8315_v62, %v2177_v24  ;;  %v2422_v53 = vadd.f32 %v8416_v7, %v2420_v41  ;;  %v8695_v25 = vsel %vm1072_vm7, %v841_v47, 0.0  ;;  %v2909_v31 = vsel %vm1072_vm7, %v949_v42, 0.0  ;;  %v606_v47 = vld [vmem:[%s12524_s0 + $0x1170] sm:$0xff]  ;;  %v844_v42 = vld [vmem:[%s12524_s0 + $0x18e0] sm:$0xff] }
 0x192   :  { %v8705_v14 = vsel %vm1072_vm7, %v604_v58, 0.0  ;;  %v2667_v62 = vadd.f32 %v8555_v33, %v2665_v30  ;;  %v8709_v7 = vsel %vm1072_vm7, %v842_v8, 0.0  ;;  %v2908_v32 = vadd.f32 %v2907_v34, %v2906_v51  ;;  %v725_v8 = vld [vmem:[%s12524_s0 + $0x1528] sm:$0xff]  ;;  %v952_v24 = vld [vmem:[%s12524_s0 + $0x1c40] sm:$0xff] }
 0x193   :  { %v2181_v38 = vadd.f32 %v8354_v26, %v2179_v57  ;;  %v2424_v1 = vadd.f32 %v8419_v6, %v2422_v53  ;;  %v8720_v58 = vsel %vm1072_vm7, %v723_v11, 0.0  ;;  %v2911_v33 = vsel %vm1072_vm7, %v950_v43, 0.0  ;;  %v607_v11 = vld [vmem:[%s12524_s0 + $0x1178] sm:$0xff]  ;;  %v845_v43 = vld [vmem:[%s12524_s0 + $0x18e8] sm:$0xff] }
 0x194   :  { %v8730_v41 = vsel %vm1072_vm7, %v605_v59, 0.0  ;;  %v2669_v26 = vadd.f32 %v8572_v63, %v2667_v62  ;;  %v8734_v6 = vsel %vm1072_vm7, %v843_v40, 0.0  ;;  %v2910_v34 = vadd.f32 %v2909_v31, %v2908_v32  ;;  %v726_v40 = vld [vmem:[%s12524_s0 + $0x1530] sm:$0xff]  ;;  %v953_v57 = vld [vmem:[%s12524_s0 + $0x1c48] sm:$0xff] }
 0x195   :  { %v2183_v30 = vadd.f32 %v8387_v52, %v2181_v38  ;;  %v2426_v51 = vadd.f32 %v8442_v21, %v2424_v1  ;;  %v8745_v59 = vsel %vm1072_vm7, %v724_v0, 0.0  ;;  %v2913_v63 = vsel %vm1072_vm7, %v951_v3, 0.0  ;;  %v608_v0 = vld [vmem:[%s12524_s0 + $0x1180] sm:$0xff]  ;;  %v846_v3 = vld [vmem:[%s12524_s0 + $0x18f0] sm:$0xff] }
 0x196   :  { %v8755_v53 = vsel %vm1072_vm7, %v606_v47, 0.0  ;;  %v2671_v52 = vadd.f32 %v8584_v29, %v2669_v26  ;;  %v8759_v21 = vsel %vm1072_vm7, %v844_v42, 0.0  ;;  %v2912_v31 = vadd.f32 %v2911_v33, %v2910_v34  ;;  %v727_v42 = vld [vmem:[%s12524_s0 + $0x1538] sm:$0xff]  ;;  %v954_v38 = vld [vmem:[%s12524_s0 + $0x1c50] sm:$0xff] }
 0x197   :  { %v2185_v62 = vadd.f32 %v8429_v15, %v2183_v30  ;;  %v2428_v32 = vadd.f32 %v8445_v17, %v2426_v51  ;;  %v8770_v47 = vsel %vm1072_vm7, %v725_v8, 0.0  ;;  %v2915_v29 = vsel %vm1072_vm7, %v952_v24, 0.0  ;;  %v609_v8 = vld [vmem:[%s12524_s0 + $0x1188] sm:$0xff]  ;;  %v847_v24 = vld [vmem:[%s12524_s0 + $0x18f8] sm:$0xff] }
 0x198   :  { %v8780_v1 = vsel %vm1072_vm7, %v607_v11, 0.0  ;;  %v2673_v15 = vadd.f32 %v8587_v4, %v2671_v52  ;;  %v8784_v17 = vsel %vm1072_vm7, %v845_v43, 0.0  ;;  %v2914_v33 = vadd.f32 %v2913_v63, %v2912_v31  ;;  %v728_v43 = vld [vmem:[%s12524_s0 + $0x1540] sm:$0xff]  ;;  %v955_v30 = vld [vmem:[%s12524_s0 + $0x1c58] sm:$0xff] }
 0x199   :  { %v2187_v26 = vadd.f32 %v8439_v22, %v2185_v62  ;;  %v2430_v34 = vadd.f32 %v8458_v50, %v2428_v32  ;;  %v8795_v11 = vsel %vm1072_vm7, %v726_v40, 0.0  ;;  %v2917_v4 = vsel %vm1072_vm7, %v953_v57, 0.0  ;;  %v610_v40 = vld [vmem:[%s12524_s0 + $0x1190] sm:$0xff]  ;;  %v848_v57 = vld [vmem:[%s12524_s0 + $0x1900] sm:$0xff] }
 0x19a   :  { %v8805_v51 = vsel %vm1072_vm7, %v608_v0, 0.0  ;;  %v2675_v22 = vadd.f32 %v8598_v13, %v2673_v15  ;;  %v8809_v50 = vsel %vm1072_vm7, %v846_v3, 0.0  ;;  %v2916_v63 = vadd.f32 %v2915_v29, %v2914_v33  ;;  %v729_v3 = vld [vmem:[%s12524_s0 + $0x1548] sm:$0xff]  ;;  %v956_v62 = vld [vmem:[%s12524_s0 + $0x1c60] sm:$0xff] }
 0x19b   :  { %v2189_v52 = vadd.f32 %v8470_v48, %v2187_v26  ;;  %v2432_v31 = vadd.f32 %v8473_v18, %v2430_v34  ;;  %v8820_v0 = vsel %vm1072_vm7, %v727_v42, 0.0  ;;  %v2919_v13 = vsel %vm1072_vm7, %v954_v38, 0.0  ;;  %v611_v42 = vld [vmem:[%s12524_s0 + $0x1198] sm:$0xff]  ;;  %v849_v38 = vld [vmem:[%s12524_s0 + $0x1908] sm:$0xff] }
 0x19c   :  { %v8830_v32 = vsel %vm1072_vm7, %v609_v8, 0.0  ;;  %v2677_v48 = vadd.f32 %v8611_v44, %v2675_v22  ;;  %v8834_v18 = vsel %vm1072_vm7, %v847_v24, 0.0  ;;  %v2918_v29 = vadd.f32 %v2917_v4, %v2916_v63  ;;  %v730_v24 = vld [vmem:[%s12524_s0 + $0x1550] sm:$0xff]  ;;  %v957_v26 = vld [vmem:[%s12524_s0 + $0x1c68] sm:$0xff] }
 0x19d   :  { %v2191_v15 = vadd.f32 %v8486_v54, %v2189_v52  ;;  %v2434_v33 = vadd.f32 %v8500_v19, %v2432_v31  ;;  %v8845_v8 = vsel %vm1072_vm7, %v728_v43, 0.0  ;;  %v2921_v44 = vsel %vm1072_vm7, %v955_v30, 0.0  ;;  %v612_v43 = vld [vmem:[%s12524_s0 + $0x11a0] sm:$0xff]  ;;  %v850_v30 = vld [vmem:[%s12524_s0 + $0x1910] sm:$0xff] }
 0x19e   :  { %v8855_v34 = vsel %vm1072_vm7, %v610_v40, 0.0  ;;  %v2679_v54 = vadd.f32 %v8623_v12, %v2677_v48  ;;  %v8859_v19 = vsel %vm1072_vm7, %v848_v57, 0.0  ;;  %v2920_v4 = vadd.f32 %v2919_v13, %v2918_v29  ;;  %v731_v57 = vld [vmem:[%s12524_s0 + $0x1558] sm:$0xff]  ;;  %v958_v52 = vld [vmem:[%s12524_s0 + $0x1c70] sm:$0xff] }
 0x19f   :  { %v2193_v22 = vadd.f32 %v8497_v37, %v2191_v15  ;;  %v2436_v63 = vadd.f32 %v8515_v61, %v2434_v33  ;;  %v8870_v40 = vsel %vm1072_vm7, %v729_v3, 0.0  ;;  %v2923_v12 = vsel %vm1072_vm7, %v956_v62, 0.0  ;;  %v613_v3 = vld [vmem:[%s12524_s0 + $0x11a8] sm:$0xff]  ;;  %v851_v62 = vld [vmem:[%s12524_s0 + $0x1918] sm:$0xff] }
 0x1a0   :  { %v8880_v31 = vsel %vm1072_vm7, %v611_v42, 0.0  ;;  %v2681_v37 = vadd.f32 %v8636_v45, %v2679_v54  ;;  %v8884_v61 = vsel %vm1072_vm7, %v849_v38, 0.0  ;;  %v2922_v13 = vadd.f32 %v2921_v44, %v2920_v4  ;;  %v732_v38 = vld [vmem:[%s12524_s0 + $0x1560] sm:$0xff]  ;;  %v959_v15 = vld [vmem:[%s12524_s0 + $0x1c78] sm:$0xff] }
 0x1a1   :  { %v2195_v48 = vadd.f32 %v8525_v10, %v2193_v22  ;;  %v2438_v29 = vadd.f32 %v8541_v2, %v2436_v63  ;;  %v8895_v42 = vsel %vm1072_vm7, %v730_v24, 0.0  ;;  %v2925_v45 = vsel %vm1072_vm7, %v957_v26, 0.0  ;;  %v614_v24 = vld [vmem:[%s12524_s0 + $0x11b0] sm:$0xff]  ;;  %v852_v26 = vld [vmem:[%s12524_s0 + $0x1920] sm:$0xff] }
 0x1a2   :  { %v8905_v33 = vsel %vm1072_vm7, %v612_v43, 0.0  ;;  %v2683_v10 = vadd.f32 %v8657_v9, %v2681_v37  ;;  %v8909_v2 = vsel %vm1072_vm7, %v850_v30, 0.0  ;;  %v2924_v44 = vadd.f32 %v2923_v12, %v2922_v13  ;;  %v733_v30 = vld [vmem:[%s12524_s0 + $0x1568] sm:$0xff]  ;;  %v960_v22 = vld [vmem:[%s12524_s0 + $0x1c80] sm:$0xff] }
 0x1a3   :  { %v2197_v54 = vadd.f32 %v8551_v16, %v2195_v48  ;;  %v2440_v4 = vadd.f32 %v8569_v46, %v2438_v29  ;;  %v8920_v43 = vsel %vm1072_vm7, %v731_v57, 0.0  ;;  %v2927_v9 = vsel %vm1072_vm7, %v958_v52, 0.0  ;;  %v615_v57 = vld [vmem:[%s12524_s0 + $0x11b8] sm:$0xff]  ;;  %v853_v52 = vld [vmem:[%s12524_s0 + $0x1928] sm:$0xff] }
 0x1a4   :  { %v8930_v63 = vsel %vm1072_vm7, %v613_v3, 0.0  ;;  %v2685_v16 = vadd.f32 %v8660_v56, %v2683_v10  ;;  %v8934_v46 = vsel %vm1072_vm7, %v851_v62, 0.0  ;;  %v2926_v12 = vadd.f32 %v2925_v45, %v2924_v44  ;;  %v734_v62 = vld [vmem:[%s12524_s0 + $0x1570] sm:$0xff]  ;;  %v961_v48 = vld [vmem:[%s12524_s0 + $0x1c88] sm:$0xff] }
 0x1a5   :  { %v2199_v37 = vadd.f32 %v8581_v20, %v2197_v54  ;;  %v2442_v13 = vadd.f32 %v8608_v23, %v2440_v4  ;;  %v8945_v3 = vsel %vm1072_vm7, %v732_v38, 0.0  ;;  %v2929_v56 = vsel %vm1072_vm7, %v959_v15, 0.0  ;;  %v616_v38 = vld [vmem:[%s12524_s0 + $0x11c0] sm:$0xff]  ;;  %v854_v15 = vld [vmem:[%s12524_s0 + $0x1930] sm:$0xff] }
 0x1a6   :  { %v8955_v29 = vsel %vm1072_vm7, %v614_v24, 0.0  ;;  %v2687_v20 = vadd.f32 %v8684_v60, %v2685_v16  ;;  %v8959_v23 = vsel %vm1072_vm7, %v852_v26, 0.0  ;;  %v2928_v45 = vadd.f32 %v2927_v9, %v2926_v12  ;;  %v735_v26 = vld [vmem:[%s12524_s0 + $0x1578] sm:$0xff]  ;;  %v962_v54 = vld [vmem:[%s12524_s0 + $0x1c90] sm:$0xff] }
 0x1a7   :  { %v2201_v10 = vadd.f32 %v8633_v36, %v2199_v37  ;;  %v2444_v44 = vadd.f32 %v8647_v5, %v2442_v13  ;;  %v8970_v24 = vsel %vm1072_vm7, %v733_v30, 0.0  ;;  %v2931_v60 = vsel %vm1072_vm7, %v960_v22, 0.0  ;;  %v617_v30 = vld [vmem:[%s12524_s0 + $0x11c8] sm:$0xff]  ;;  %v855_v22 = vld [vmem:[%s12524_s0 + $0x1938] sm:$0xff] }
 0x1a8   :  { %v8980_v4 = vsel %vm1072_vm7, %v615_v57, 0.0  ;;  %v2689_v36 = vadd.f32 %v8695_v25, %v2687_v20  ;;  %v8984_v5 = vsel %vm1072_vm7, %v853_v52, 0.0  ;;  %v2930_v9 = vadd.f32 %v2929_v56, %v2928_v45  ;;  %v736_v52 = vld [vmem:[%s12524_s0 + $0x1580] sm:$0xff]  ;;  %v963_v37 = vld [vmem:[%s12524_s0 + $0x1c98] sm:$0xff] }
 0x1a9   :  { %v2203_v16 = vadd.f32 %v8670_v49, %v2201_v10  ;;  %v2446_v12 = vadd.f32 %v8681_v39, %v2444_v44  ;;  %v8995_v57 = vsel %vm1072_vm7, %v734_v62, 0.0  ;;  %v2933_v25 = vsel %vm1072_vm7, %v961_v48, 0.0  ;;  %v618_v62 = vld [vmem:[%s12524_s0 + $0x11d0] sm:$0xff]  ;;  %v856_v48 = vld [vmem:[%s12524_s0 + $0x1940] sm:$0xff] }
 0x1aa   :  { %v9005_v13 = vsel %vm1072_vm7, %v616_v38, 0.0  ;;  %v2691_v49 = vadd.f32 %v8709_v7, %v2689_v36  ;;  %v9009_v39 = vsel %vm1072_vm7, %v854_v15, 0.0  ;;  %v2932_v56 = vadd.f32 %v2931_v60, %v2930_v9  ;;  %v737_v15 = vld [vmem:[%s12524_s0 + $0x1588] sm:$0xff]  ;;  %v964_v10 = vld [vmem:[%s12524_s0 + $0x1ca0] sm:$0xff] }
 0x1ab   :  { %v2205_v20 = vadd.f32 %v8705_v14, %v2203_v16  ;;  %v2448_v45 = vadd.f32 %v8720_v58, %v2446_v12  ;;  %v9020_v38 = vsel %vm1072_vm7, %v735_v26, 0.0  ;;  %v2935_v7 = vsel %vm1072_vm7, %v962_v54, 0.0  ;;  %v619_v26 = vld [vmem:[%s12524_s0 + $0x11d8] sm:$0xff]  ;;  %v857_v54 = vld [vmem:[%s12524_s0 + $0x1948] sm:$0xff] }
 0x1ac   :  { %v9030_v44 = vsel %vm1072_vm7, %v617_v30, 0.0  ;;  %v2693_v14 = vadd.f32 %v8734_v6, %v2691_v49  ;;  %v9034_v58 = vsel %vm1072_vm7, %v855_v22, 0.0  ;;  %v2934_v60 = vadd.f32 %v2933_v25, %v2932_v56  ;;  %v738_v22 = vld [vmem:[%s12524_s0 + $0x1590] sm:$0xff]  ;;  %v965_v16 = vld [vmem:[%s12524_s0 + $0x1ca8] sm:$0xff] }
 0x1ad   :  { %v2207_v36 = vadd.f32 %v8730_v41, %v2205_v20  ;;  %v2450_v9 = vadd.f32 %v8745_v59, %v2448_v45  ;;  %v9045_v30 = vsel %vm1072_vm7, %v736_v52, 0.0  ;;  %v2937_v6 = vsel %vm1072_vm7, %v963_v37, 0.0  ;;  %v620_v52 = vld [vmem:[%s12524_s0 + $0x11e0] sm:$0xff]  ;;  %v858_v37 = vld [vmem:[%s12524_s0 + $0x1950] sm:$0xff] }
 0x1ae   :  { %v9055_v12 = vsel %vm1072_vm7, %v618_v62, 0.0  ;;  %v2695_v41 = vadd.f32 %v8759_v21, %v2693_v14  ;;  %v9059_v59 = vsel %vm1072_vm7, %v856_v48, 0.0  ;;  %v2936_v25 = vadd.f32 %v2935_v7, %v2934_v60  ;;  %v739_v48 = vld [vmem:[%s12524_s0 + $0x1598] sm:$0xff]  ;;  %v966_v20 = vld [vmem:[%s12524_s0 + $0x1cb0] sm:$0xff] }
 0x1af   :  { %v2209_v49 = vadd.f32 %v8755_v53, %v2207_v36  ;;  %v2452_v56 = vadd.f32 %v8770_v47, %v2450_v9  ;;  %v9070_v62 = vsel %vm1072_vm7, %v737_v15, 0.0  ;;  %v2939_v21 = vsel %vm1072_vm7, %v964_v10, 0.0  ;;  %v621_v15 = vld [vmem:[%s12524_s0 + $0x11e8] sm:$0xff]  ;;  %v859_v10 = vld [vmem:[%s12524_s0 + $0x1958] sm:$0xff] }
 0x1b0   :  { %v9080_v45 = vsel %vm1072_vm7, %v619_v26, 0.0  ;;  %v2697_v53 = vadd.f32 %v8784_v17, %v2695_v41  ;;  %v9084_v47 = vsel %vm1072_vm7, %v857_v54, 0.0  ;;  %v2938_v7 = vadd.f32 %v2937_v6, %v2936_v25  ;;  %v740_v54 = vld [vmem:[%s12524_s0 + $0x15a0] sm:$0xff]  ;;  %v967_v36 = vld [vmem:[%s12524_s0 + $0x1cb8] sm:$0xff] }
 0x1b1   :  { %v2211_v14 = vadd.f32 %v8780_v1, %v2209_v49  ;;  %v2454_v60 = vadd.f32 %v8795_v11, %v2452_v56  ;;  %v9095_v26 = vsel %vm1072_vm7, %v738_v22, 0.0  ;;  %v2941_v17 = vsel %vm1072_vm7, %v965_v16, 0.0  ;;  %v622_v22 = vld [vmem:[%s12524_s0 + $0x11f0] sm:$0xff]  ;;  %v860_v16 = vld [vmem:[%s12524_s0 + $0x1960] sm:$0xff] }
 0x1b2   :  { %v9105_v9 = vsel %vm1072_vm7, %v620_v52, 0.0  ;;  %v2699_v1 = vadd.f32 %v8809_v50, %v2697_v53  ;;  %v9109_v11 = vsel %vm1072_vm7, %v858_v37, 0.0  ;;  %v2940_v6 = vadd.f32 %v2939_v21, %v2938_v7  ;;  %v741_v37 = vld [vmem:[%s12524_s0 + $0x15a8] sm:$0xff]  ;;  %v968_v49 = vld [vmem:[%s12524_s0 + $0x1cc0] sm:$0xff] }
 0x1b3   :  { %v2213_v41 = vadd.f32 %v8805_v51, %v2211_v14  ;;  %v2456_v25 = vadd.f32 %v8820_v0, %v2454_v60  ;;  %v9120_v52 = vsel %vm1072_vm7, %v739_v48, 0.0  ;;  %v2943_v50 = vsel %vm1072_vm7, %v966_v20, 0.0  ;;  %v623_v48 = vld [vmem:[%s12524_s0 + $0x11f8] sm:$0xff]  ;;  %v861_v20 = vld [vmem:[%s12524_s0 + $0x1968] sm:$0xff] }
 0x1b4   :  { %v9130_v56 = vsel %vm1072_vm7, %v621_v15, 0.0  ;;  %v2701_v51 = vadd.f32 %v8834_v18, %v2699_v1  ;;  %v9134_v0 = vsel %vm1072_vm7, %v859_v10, 0.0  ;;  %v2942_v21 = vadd.f32 %v2941_v17, %v2940_v6  ;;  %v742_v10 = vld [vmem:[%s12524_s0 + $0x15b0] sm:$0xff]  ;;  %v969_v14 = vld [vmem:[%s12524_s0 + $0x1cc8] sm:$0xff] }
 0x1b5   :  { %v2215_v53 = vadd.f32 %v8830_v32, %v2213_v41  ;;  %v2458_v7 = vadd.f32 %v8845_v8, %v2456_v25  ;;  %v9145_v15 = vsel %vm1072_vm7, %v740_v54, 0.0  ;;  %v2945_v18 = vsel %vm1072_vm7, %v967_v36, 0.0  ;;  %v624_v54 = vld [vmem:[%s12524_s0 + $0x1200] sm:$0xff]  ;;  %v862_v36 = vld [vmem:[%s12524_s0 + $0x1970] sm:$0xff] }
 0x1b6   :  { %v9155_v60 = vsel %vm1072_vm7, %v622_v22, 0.0  ;;  %v2703_v32 = vadd.f32 %v8859_v19, %v2701_v51  ;;  %v9159_v8 = vsel %vm1072_vm7, %v860_v16, 0.0  ;;  %v2944_v17 = vadd.f32 %v2943_v50, %v2942_v21  ;;  %v743_v16 = vld [vmem:[%s12524_s0 + $0x15b8] sm:$0xff]  ;;  %v970_v41 = vld [vmem:[%s12524_s0 + $0x1cd0] sm:$0xff] }
 0x1b7   :  { %v2217_v1 = vadd.f32 %v8855_v34, %v2215_v53  ;;  %v2460_v6 = vadd.f32 %v8870_v40, %v2458_v7  ;;  %v9170_v22 = vsel %vm1072_vm7, %v741_v37, 0.0  ;;  %v2947_v19 = vsel %vm1072_vm7, %v968_v49, 0.0  ;;  %v625_v37 = vld [vmem:[%s12524_s0 + $0x1208] sm:$0xff]  ;;  %v863_v49 = vld [vmem:[%s12524_s0 + $0x1978] sm:$0xff] }
 0x1b8   :  { %v9180_v25 = vsel %vm1072_vm7, %v623_v48, 0.0  ;;  %v2705_v34 = vadd.f32 %v8884_v61, %v2703_v32  ;;  %v9184_v40 = vsel %vm1072_vm7, %v861_v20, 0.0  ;;  %v2946_v50 = vadd.f32 %v2945_v18, %v2944_v17  ;;  %v744_v20 = vld [vmem:[%s12524_s0 + $0x15c0] sm:$0xff]  ;;  %v971_v53 = vld [vmem:[%s12524_s0 + $0x1cd8] sm:$0xff] }
 0x1b9   :  { %v2219_v51 = vadd.f32 %v8880_v31, %v2217_v1  ;;  %v2462_v21 = vadd.f32 %v8895_v42, %v2460_v6  ;;  %v9195_v48 = vsel %vm1072_vm7, %v742_v10, 0.0  ;;  %v2949_v61 = vsel %vm1072_vm7, %v969_v14, 0.0  ;;  %v626_v10 = vld [vmem:[%s12524_s0 + $0x1210] sm:$0xff]  ;;  %v864_v14 = vld [vmem:[%s12524_s0 + $0x1980] sm:$0xff] }
 0x1ba   :  { %v9205_v7 = vsel %vm1072_vm7, %v624_v54, 0.0  ;;  %v2707_v31 = vadd.f32 %v8909_v2, %v2705_v34  ;;  %v9209_v42 = vsel %vm1072_vm7, %v862_v36, 0.0  ;;  %v2948_v18 = vadd.f32 %v2947_v19, %v2946_v50  ;;  %v745_v36 = vld [vmem:[%s12524_s0 + $0x15c8] sm:$0xff]  ;;  %v972_v1 = vld [vmem:[%s12524_s0 + $0x1ce0] sm:$0xff] }
 0x1bb   :  { %v2221_v32 = vadd.f32 %v8905_v33, %v2219_v51  ;;  %v2464_v17 = vadd.f32 %v8920_v43, %v2462_v21  ;;  %v9220_v54 = vsel %vm1072_vm7, %v743_v16, 0.0  ;;  %v2951_v2 = vsel %vm1072_vm7, %v970_v41, 0.0  ;;  %v627_v16 = vld [vmem:[%s12524_s0 + $0x1218] sm:$0xff]  ;;  %v865_v41 = vld [vmem:[%s12524_s0 + $0x1988] sm:$0xff] }
 0x1bc   :  { %v9230_v6 = vsel %vm1072_vm7, %v625_v37, 0.0  ;;  %v2709_v33 = vadd.f32 %v8934_v46, %v2707_v31  ;;  %v9234_v43 = vsel %vm1072_vm7, %v863_v49, 0.0  ;;  %v2950_v19 = vadd.f32 %v2949_v61, %v2948_v18  ;;  %v746_v49 = vld [vmem:[%s12524_s0 + $0x15d0] sm:$0xff]  ;;  %v973_v51 = vld [vmem:[%s12524_s0 + $0x1ce8] sm:$0xff] }
 0x1bd   :  { %v2223_v34 = vadd.f32 %v8930_v63, %v2221_v32  ;;  %v2466_v50 = vadd.f32 %v8945_v3, %v2464_v17  ;;  %v9245_v37 = vsel %vm1072_vm7, %v744_v20, 0.0  ;;  %v2953_v46 = vsel %vm1072_vm7, %v971_v53, 0.0  ;;  %v628_v20 = vld [vmem:[%s12524_s0 + $0x1220] sm:$0xff]  ;;  %v866_v53 = vld [vmem:[%s12524_s0 + $0x1990] sm:$0xff] }
 0x1be   :  { %v9255_v21 = vsel %vm1072_vm7, %v626_v10, 0.0  ;;  %v2711_v63 = vadd.f32 %v8959_v23, %v2709_v33  ;;  %v9259_v3 = vsel %vm1072_vm7, %v864_v14, 0.0  ;;  %v2952_v61 = vadd.f32 %v2951_v2, %v2950_v19  ;;  %v747_v14 = vld [vmem:[%s12524_s0 + $0x15d8] sm:$0xff]  ;;  %v974_v32 = vld [vmem:[%s12524_s0 + $0x1cf0] sm:$0xff] }
 0x1bf   :  { %v2225_v31 = vadd.f32 %v8955_v29, %v2223_v34  ;;  %v2468_v18 = vadd.f32 %v8970_v24, %v2466_v50  ;;  %v9270_v10 = vsel %vm1072_vm7, %v745_v36, 0.0  ;;  %v2955_v23 = vsel %vm1072_vm7, %v972_v1, 0.0  ;;  %v629_v36 = vld [vmem:[%s12524_s0 + $0x1228] sm:$0xff]  ;;  %v867_v1 = vld [vmem:[%s12524_s0 + $0x1998] sm:$0xff] }
 0x1c0   :  { %v9280_v17 = vsel %vm1072_vm7, %v627_v16, 0.0  ;;  %v2713_v29 = vadd.f32 %v8984_v5, %v2711_v63  ;;  %v9284_v24 = vsel %vm1072_vm7, %v865_v41, 0.0  ;;  %v2954_v2 = vadd.f32 %v2953_v46, %v2952_v61  ;;  %v748_v41 = vld [vmem:[%s12524_s0 + $0x15e0] sm:$0xff]  ;;  %v975_v34 = vld [vmem:[%s12524_s0 + $0x1cf8] sm:$0xff] }
 0x1c1   :  { %v2227_v33 = vadd.f32 %v8980_v4, %v2225_v31  ;;  %v2470_v19 = vadd.f32 %v8995_v57, %v2468_v18  ;;  %v9295_v16 = vsel %vm1072_vm7, %v746_v49, 0.0  ;;  %v2957_v5 = vsel %vm1072_vm7, %v973_v51, 0.0  ;;  %v630_v49 = vld [vmem:[%s12524_s0 + $0x1230] sm:$0xff]  ;;  %v868_v51 = vld [vmem:[%s12524_s0 + $0x19a0] sm:$0xff] }
 0x1c2   :  { %v9305_v50 = vsel %vm1072_vm7, %v628_v20, 0.0  ;;  %v2715_v4 = vadd.f32 %v9009_v39, %v2713_v29  ;;  %v9309_v57 = vsel %vm1072_vm7, %v866_v53, 0.0  ;;  %v2956_v46 = vadd.f32 %v2955_v23, %v2954_v2  ;;  %v749_v53 = vld [vmem:[%s12524_s0 + $0x15e8] sm:$0xff]  ;;  %v976_v31 = vld [vmem:[%s12524_s0 + $0x1d00] sm:$0xff] }
 0x1c3   :  { %v2229_v63 = vadd.f32 %v9005_v13, %v2227_v33  ;;  %v2472_v61 = vadd.f32 %v9020_v38, %v2470_v19  ;;  %v9320_v20 = vsel %vm1072_vm7, %v747_v14, 0.0  ;;  %v2959_v39 = vsel %vm1072_vm7, %v974_v32, 0.0  ;;  %v631_v14 = vld [vmem:[%s12524_s0 + $0x1238] sm:$0xff]  ;;  %v869_v32 = vld [vmem:[%s12524_s0 + $0x19a8] sm:$0xff] }
 0x1c4   :  { %v9330_v18 = vsel %vm1072_vm7, %v629_v36, 0.0  ;;  %v2717_v13 = vadd.f32 %v9034_v58, %v2715_v4  ;;  %v9334_v38 = vsel %vm1072_vm7, %v867_v1, 0.0  ;;  %v2958_v23 = vadd.f32 %v2957_v5, %v2956_v46  ;;  %v750_v1 = vld [vmem:[%s12524_s0 + $0x15f0] sm:$0xff]  ;;  %v977_v33 = vld [vmem:[%s12524_s0 + $0x1d08] sm:$0xff] }
 0x1c5   :  { %v2231_v29 = vadd.f32 %v9030_v44, %v2229_v63  ;;  %v2474_v2 = vadd.f32 %v9045_v30, %v2472_v61  ;;  %v9345_v36 = vsel %vm1072_vm7, %v748_v41, 0.0  ;;  %v2961_v58 = vsel %vm1072_vm7, %v975_v34, 0.0  ;;  %v632_v41 = vld [vmem:[%s12524_s0 + $0x1240] sm:$0xff]  ;;  %v870_v34 = vld [vmem:[%s12524_s0 + $0x19b0] sm:$0xff] }
 0x1c6   :  { %v9355_v19 = vsel %vm1072_vm7, %v630_v49, 0.0  ;;  %v2719_v44 = vadd.f32 %v9059_v59, %v2717_v13  ;;  %v9359_v30 = vsel %vm1072_vm7, %v868_v51, 0.0  ;;  %v2960_v5 = vadd.f32 %v2959_v39, %v2958_v23  ;;  %v751_v51 = vld [vmem:[%s12524_s0 + $0x15f8] sm:$0xff]  ;;  %v978_v63 = vld [vmem:[%s12524_s0 + $0x1d10] sm:$0xff] }
 0x1c7   :  { %v2233_v4 = vadd.f32 %v9055_v12, %v2231_v29  ;;  %v2476_v46 = vadd.f32 %v9070_v62, %v2474_v2  ;;  %v9370_v49 = vsel %vm1072_vm7, %v749_v53, 0.0  ;;  %v2963_v59 = vsel %vm1072_vm7, %v976_v31, 0.0  ;;  %v633_v53 = vld [vmem:[%s12524_s0 + $0x1248] sm:$0xff]  ;;  %v871_v31 = vld [vmem:[%s12524_s0 + $0x19b8] sm:$0xff] }
 0x1c8   :  { %v9380_v61 = vsel %vm1072_vm7, %v631_v14, 0.0  ;;  %v2721_v12 = vadd.f32 %v9084_v47, %v2719_v44  ;;  %v9384_v62 = vsel %vm1072_vm7, %v869_v32, 0.0  ;;  %v2962_v39 = vadd.f32 %v2961_v58, %v2960_v5  ;;  %v752_v32 = vld [vmem:[%s12524_s0 + $0x1600] sm:$0xff]  ;;  %v979_v29 = vld [vmem:[%s12524_s0 + $0x1d18] sm:$0xff] }
 0x1c9   :  { %v2235_v13 = vadd.f32 %v9080_v45, %v2233_v4  ;;  %v2478_v23 = vadd.f32 %v9095_v26, %v2476_v46  ;;  %v9395_v14 = vsel %vm1072_vm7, %v750_v1, 0.0  ;;  %v2965_v47 = vsel %vm1072_vm7, %v977_v33, 0.0  ;;  %v634_v1 = vld [vmem:[%s12524_s0 + $0x1250] sm:$0xff]  ;;  %v872_v33 = vld [vmem:[%s12524_s0 + $0x19c0] sm:$0xff] }
 0x1ca   :  { %v9405_v2 = vsel %vm1072_vm7, %v632_v41, 0.0  ;;  %v2723_v45 = vadd.f32 %v9109_v11, %v2721_v12  ;;  %v9409_v26 = vsel %vm1072_vm7, %v870_v34, 0.0  ;;  %v2964_v58 = vadd.f32 %v2963_v59, %v2962_v39  ;;  %v753_v34 = vld [vmem:[%s12524_s0 + $0x1608] sm:$0xff]  ;;  %v980_v4 = vld [vmem:[%s12524_s0 + $0x1d20] sm:$0xff] }
 0x1cb   :  { %v2237_v44 = vadd.f32 %v9105_v9, %v2235_v13  ;;  %v2480_v5 = vadd.f32 %v9120_v52, %v2478_v23  ;;  %v9420_v41 = vsel %vm1072_vm7, %v751_v51, 0.0  ;;  %v2967_v11 = vsel %vm1072_vm7, %v978_v63, 0.0  ;;  %v635_v51 = vld [vmem:[%s12524_s0 + $0x1258] sm:$0xff]  ;;  %v873_v63 = vld [vmem:[%s12524_s0 + $0x19c8] sm:$0xff] }
 0x1cc   :  { %v9430_v46 = vsel %vm1072_vm7, %v633_v53, 0.0  ;;  %v2725_v9 = vadd.f32 %v9134_v0, %v2723_v45  ;;  %v9434_v52 = vsel %vm1072_vm7, %v871_v31, 0.0  ;;  %v2966_v59 = vadd.f32 %v2965_v47, %v2964_v58  ;;  %v754_v31 = vld [vmem:[%s12524_s0 + $0x1610] sm:$0xff]  ;;  %v981_v13 = vld [vmem:[%s12524_s0 + $0x1d28] sm:$0xff] }
 0x1cd   :  { %v2239_v12 = vadd.f32 %v9130_v56, %v2237_v44  ;;  %v2482_v39 = vadd.f32 %v9145_v15, %v2480_v5  ;;  %v9445_v53 = vsel %vm1072_vm7, %v752_v32, 0.0  ;;  %v2969_v0 = vsel %vm1072_vm7, %v979_v29, 0.0  ;;  %v636_v32 = vld [vmem:[%s12524_s0 + $0x1260] sm:$0xff]  ;;  %v874_v29 = vld [vmem:[%s12524_s0 + $0x19d0] sm:$0xff] }
 0x1ce   :  { %v9455_v23 = vsel %vm1072_vm7, %v634_v1, 0.0  ;;  %v2727_v56 = vadd.f32 %v9159_v8, %v2725_v9  ;;  %v9459_v15 = vsel %vm1072_vm7, %v872_v33, 0.0  ;;  %v2968_v47 = vadd.f32 %v2967_v11, %v2966_v59  ;;  %v755_v33 = vld [vmem:[%s12524_s0 + $0x1618] sm:$0xff]  ;;  %v982_v44 = vld [vmem:[%s12524_s0 + $0x1d30] sm:$0xff] }
 0x1cf   :  { %v2241_v45 = vadd.f32 %v9155_v60, %v2239_v12  ;;  %v2484_v58 = vadd.f32 %v9170_v22, %v2482_v39  ;;  %v9470_v1 = vsel %vm1072_vm7, %v753_v34, 0.0  ;;  %v2971_v8 = vsel %vm1072_vm7, %v980_v4, 0.0  ;;  %v637_v34 = vld [vmem:[%s12524_s0 + $0x1268] sm:$0xff]  ;;  %v875_v4 = vld [vmem:[%s12524_s0 + $0x19d8] sm:$0xff] }
 0x1d0   :  { %v9480_v5 = vsel %vm1072_vm7, %v635_v51, 0.0  ;;  %v2729_v60 = vadd.f32 %v9184_v40, %v2727_v56  ;;  %v9484_v22 = vsel %vm1072_vm7, %v873_v63, 0.0  ;;  %v2970_v11 = vadd.f32 %v2969_v0, %v2968_v47  ;;  %v756_v63 = vld [vmem:[%s12524_s0 + $0x1620] sm:$0xff]  ;;  %v983_v12 = vld [vmem:[%s12524_s0 + $0x1d38] sm:$0xff] }
 0x1d1   :  { %v2243_v9 = vadd.f32 %v9180_v25, %v2241_v45  ;;  %v2486_v59 = vadd.f32 %v9195_v48, %v2484_v58  ;;  %v9495_v51 = vsel %vm1072_vm7, %v754_v31, 0.0  ;;  %v2973_v40 = vsel %vm1072_vm7, %v981_v13, 0.0  ;;  %v638_v31 = vld [vmem:[%s12524_s0 + $0x1270] sm:$0xff]  ;;  %v876_v13 = vld [vmem:[%s12524_s0 + $0x19e0] sm:$0xff] }
 0x1d2   :  { %v9505_v39 = vsel %vm1072_vm7, %v636_v32, 0.0  ;;  %v2731_v25 = vadd.f32 %v9209_v42, %v2729_v60  ;;  %v9509_v48 = vsel %vm1072_vm7, %v874_v29, 0.0  ;;  %v2972_v0 = vadd.f32 %v2971_v8, %v2970_v11  ;;  %v757_v29 = vld [vmem:[%s12524_s0 + $0x1628] sm:$0xff]  ;;  %v984_v45 = vld [vmem:[%s12524_s0 + $0x1d40] sm:$0xff] }
 0x1d3   :  { %v2245_v56 = vadd.f32 %v9205_v7, %v2243_v9  ;;  %v2488_v47 = vadd.f32 %v9220_v54, %v2486_v59  ;;  %v9520_v32 = vsel %vm1072_vm7, %v755_v33, 0.0  ;;  %v2975_v42 = vsel %vm1072_vm7, %v982_v44, 0.0  ;;  %v639_v33 = vld [vmem:[%s12524_s0 + $0x1278] sm:$0xff]  ;;  %v877_v44 = vld [vmem:[%s12524_s0 + $0x19e8] sm:$0xff] }
 0x1d4   :  { %v9530_v58 = vsel %vm1072_vm7, %v637_v34, 0.0  ;;  %v2733_v7 = vadd.f32 %v9234_v43, %v2731_v25  ;;  %v9534_v54 = vsel %vm1072_vm7, %v875_v4, 0.0  ;;  %v2974_v8 = vadd.f32 %v2973_v40, %v2972_v0  ;;  %v758_v4 = vld [vmem:[%s12524_s0 + $0x1630] sm:$0xff]  ;;  %v985_v9 = vld [vmem:[%s12524_s0 + $0x1d48] sm:$0xff] }
 0x1d5   :  { %v2247_v60 = vadd.f32 %v9230_v6, %v2245_v56  ;;  %v2490_v11 = vadd.f32 %v9245_v37, %v2488_v47  ;;  %v9545_v34 = vsel %vm1072_vm7, %v756_v63, 0.0  ;;  %v2977_v43 = vsel %vm1072_vm7, %v983_v12, 0.0  ;;  %v640_v63 = vld [vmem:[%s12524_s0 + $0x1280] sm:$0xff]  ;;  %v878_v12 = vld [vmem:[%s12524_s0 + $0x19f0] sm:$0xff] }
 0x1d6   :  { %v9555_v59 = vsel %vm1072_vm7, %v638_v31, 0.0  ;;  %v2735_v6 = vadd.f32 %v9259_v3, %v2733_v7  ;;  %v9559_v37 = vsel %vm1072_vm7, %v876_v13, 0.0  ;;  %v2976_v40 = vadd.f32 %v2975_v42, %v2974_v8  ;;  %v759_v13 = vld [vmem:[%s12524_s0 + $0x1638] sm:$0xff]  ;;  %v986_v56 = vld [vmem:[%s12524_s0 + $0x1d50] sm:$0xff] }
 0x1d7   :  { %v2249_v25 = vadd.f32 %v9255_v21, %v2247_v60  ;;  %v2492_v0 = vadd.f32 %v9270_v10, %v2490_v11  ;;  %v9570_v31 = vsel %vm1072_vm7, %v757_v29, 0.0  ;;  %v2979_v3 = vsel %vm1072_vm7, %v984_v45, 0.0  ;;  %v641_v29 = vld [vmem:[%s12524_s0 + $0x1288] sm:$0xff]  ;;  %v879_v45 = vld [vmem:[%s12524_s0 + $0x19f8] sm:$0xff] }
 0x1d8   :  { %v9580_v47 = vsel %vm1072_vm7, %v639_v33, 0.0  ;;  %v2737_v21 = vadd.f32 %v9284_v24, %v2735_v6  ;;  %v9584_v10 = vsel %vm1072_vm7, %v877_v44, 0.0  ;;  %v2978_v42 = vadd.f32 %v2977_v43, %v2976_v40  ;;  %v760_v44 = vld [vmem:[%s12524_s0 + $0x1640] sm:$0xff]  ;;  %v987_v60 = vld [vmem:[%s12524_s0 + $0x1d58] sm:$0xff] }
 0x1d9   :  { %v2251_v7 = vadd.f32 %v9280_v17, %v2249_v25  ;;  %v2494_v8 = vadd.f32 %v9295_v16, %v2492_v0  ;;  %v9595_v33 = vsel %vm1072_vm7, %v758_v4, 0.0  ;;  %v2981_v24 = vsel %vm1072_vm7, %v985_v9, 0.0  ;;  %v642_v4 = vld [vmem:[%s12524_s0 + $0x1290] sm:$0xff]  ;;  %v880_v9 = vld [vmem:[%s12524_s0 + $0x1a00] sm:$0xff] }
 0x1da   :  { %v9605_v11 = vsel %vm1072_vm7, %v640_v63, 0.0  ;;  %v2739_v17 = vadd.f32 %v9309_v57, %v2737_v21  ;;  %v9609_v16 = vsel %vm1072_vm7, %v878_v12, 0.0  ;;  %v2980_v43 = vadd.f32 %v2979_v3, %v2978_v42  ;;  %v761_v12 = vld [vmem:[%s12524_s0 + $0x1648] sm:$0xff]  ;;  %v988_v25 = vld [vmem:[%s12524_s0 + $0x1d60] sm:$0xff] }
 0x1db   :  { %v2253_v6 = vadd.f32 %v9305_v50, %v2251_v7  ;;  %v2496_v40 = vadd.f32 %v9320_v20, %v2494_v8  ;;  %v9620_v63 = vsel %vm1072_vm7, %v759_v13, 0.0  ;;  %v2983_v57 = vsel %vm1072_vm7, %v986_v56, 0.0  ;;  %v643_v13 = vld [vmem:[%s12524_s0 + $0x1298] sm:$0xff]  ;;  %v881_v56 = vld [vmem:[%s12524_s0 + $0x1a08] sm:$0xff] }
 0x1dc   :  { %v9630_v0 = vsel %vm1072_vm7, %v641_v29, 0.0  ;;  %v2741_v50 = vadd.f32 %v9334_v38, %v2739_v17  ;;  %v9634_v20 = vsel %vm1072_vm7, %v879_v45, 0.0  ;;  %v2982_v3 = vadd.f32 %v2981_v24, %v2980_v43  ;;  %v762_v45 = vld [vmem:[%s12524_s0 + $0x1650] sm:$0xff]  ;;  %v989_v7 = vld [vmem:[%s12524_s0 + $0x1d68] sm:$0xff] }
 0x1dd   :  { %v2255_v21 = vadd.f32 %v9330_v18, %v2253_v6  ;;  %v2498_v42 = vadd.f32 %v9345_v36, %v2496_v40  ;;  %v9645_v29 = vsel %vm1072_vm7, %v760_v44, 0.0  ;;  %v2985_v38 = vsel %vm1072_vm7, %v987_v60, 0.0  ;;  %v644_v44 = vld [vmem:[%s12524_s0 + $0x12a0] sm:$0xff]  ;;  %v882_v60 = vld [vmem:[%s12524_s0 + $0x1a10] sm:$0xff] }
 0x1de   :  { %v9655_v8 = vsel %vm1072_vm7, %v642_v4, 0.0  ;;  %v2743_v18 = vadd.f32 %v9359_v30, %v2741_v50  ;;  %v9659_v36 = vsel %vm1072_vm7, %v880_v9, 0.0  ;;  %v2984_v24 = vadd.f32 %v2983_v57, %v2982_v3  ;;  %v763_v9 = vld [vmem:[%s12524_s0 + $0x1658] sm:$0xff]  ;;  %v990_v6 = vld [vmem:[%s12524_s0 + $0x1d70] sm:$0xff] }
 0x1df   :  { %v2257_v17 = vadd.f32 %v9355_v19, %v2255_v21  ;;  %v2500_v43 = vadd.f32 %v9370_v49, %v2498_v42  ;;  %v9670_v4 = vsel %vm1072_vm7, %v761_v12, 0.0  ;;  %v2987_v30 = vsel %vm1072_vm7, %v988_v25, 0.0  ;;  %v645_v12 = vld [vmem:[%s12524_s0 + $0x12a8] sm:$0xff]  ;;  %v883_v25 = vld [vmem:[%s12524_s0 + $0x1a18] sm:$0xff] }
 0x1e0   :  { %v9680_v40 = vsel %vm1072_vm7, %v643_v13, 0.0  ;;  %v2745_v19 = vadd.f32 %v9384_v62, %v2743_v18  ;;  %v9684_v49 = vsel %vm1072_vm7, %v881_v56, 0.0  ;;  %v2986_v57 = vadd.f32 %v2985_v38, %v2984_v24  ;;  %v764_v56 = vld [vmem:[%s12524_s0 + $0x1660] sm:$0xff]  ;;  %v991_v21 = vld [vmem:[%s12524_s0 + $0x1d78] sm:$0xff] }
 0x1e1   :  { %v2259_v50 = vadd.f32 %v9380_v61, %v2257_v17  ;;  %v2502_v3 = vadd.f32 %v9395_v14, %v2500_v43  ;;  %v9695_v13 = vsel %vm1072_vm7, %v762_v45, 0.0  ;;  %v2989_v62 = vsel %vm1072_vm7, %v989_v7, 0.0  ;;  %v646_v45 = vld [vmem:[%s12524_s0 + $0x12b0] sm:$0xff]  ;;  %v884_v7 = vld [vmem:[%s12524_s0 + $0x1a20] sm:$0xff] }
 0x1e2   :  { %v9705_v42 = vsel %vm1072_vm7, %v644_v44, 0.0  ;;  %v2747_v61 = vadd.f32 %v9409_v26, %v2745_v19  ;;  %v9709_v14 = vsel %vm1072_vm7, %v882_v60, 0.0  ;;  %v2988_v38 = vadd.f32 %v2987_v30, %v2986_v57  ;;  %v765_v60 = vld [vmem:[%s12524_s0 + $0x1668] sm:$0xff]  ;;  %v992_v17 = vld [vmem:[%s12524_s0 + $0x1d80] sm:$0xff] }
 0x1e3   :  { %v2261_v18 = vadd.f32 %v9405_v2, %v2259_v50  ;;  %v2504_v24 = vadd.f32 %v9420_v41, %v2502_v3  ;;  %v9720_v44 = vsel %vm1072_vm7, %v763_v9, 0.0  ;;  %v2991_v26 = vsel %vm1072_vm7, %v990_v6, 0.0  ;;  %v647_v9 = vld [vmem:[%s12524_s0 + $0x12b8] sm:$0xff]  ;;  %v885_v6 = vld [vmem:[%s12524_s0 + $0x1a28] sm:$0xff] }
 0x1e4   :  { %v9730_v43 = vsel %vm1072_vm7, %v645_v12, 0.0  ;;  %v2749_v2 = vadd.f32 %v9434_v52, %v2747_v61  ;;  %v9734_v41 = vsel %vm1072_vm7, %v883_v25, 0.0  ;;  %v2990_v30 = vadd.f32 %v2989_v62, %v2988_v38  ;;  %v766_v25 = vld [vmem:[%s12524_s0 + $0x1670] sm:$0xff]  ;;  %v993_v50 = vld [vmem:[%s12524_s0 + $0x1d88] sm:$0xff] }
 0x1e5   :  { %v2263_v19 = vadd.f32 %v9430_v46, %v2261_v18  ;;  %v2506_v57 = vadd.f32 %v9445_v53, %v2504_v24  ;;  %v9745_v12 = vsel %vm1072_vm7, %v764_v56, 0.0  ;;  %v2993_v52 = vsel %vm1072_vm7, %v991_v21, 0.0  ;;  %v648_v56 = vld [vmem:[%s12524_s0 + $0x12c0] sm:$0xff]  ;;  %v886_v21 = vld [vmem:[%s12524_s0 + $0x1a30] sm:$0xff] }
 0x1e6   :  { %v9755_v3 = vsel %vm1072_vm7, %v646_v45, 0.0  ;;  %v2751_v46 = vadd.f32 %v9459_v15, %v2749_v2  ;;  %v9759_v53 = vsel %vm1072_vm7, %v884_v7, 0.0  ;;  %v2992_v62 = vadd.f32 %v2991_v26, %v2990_v30  ;;  %v767_v7 = vld [vmem:[%s12524_s0 + $0x1678] sm:$0xff]  ;;  %v994_v18 = vld [vmem:[%s12524_s0 + $0x1d90] sm:$0xff] }
 0x1e7   :  { %v2265_v61 = vadd.f32 %v9455_v23, %v2263_v19  ;;  %v2508_v38 = vadd.f32 %v9470_v1, %v2506_v57  ;;  %v9770_v45 = vsel %vm1072_vm7, %v765_v60, 0.0  ;;  %v2995_v15 = vsel %vm1072_vm7, %v992_v17, 0.0  ;;  %v649_v60 = vld [vmem:[%s12524_s0 + $0x12c8] sm:$0xff]  ;;  %v887_v17 = vld [vmem:[%s12524_s0 + $0x1a38] sm:$0xff] }
 0x1e8   :  { %v9780_v24 = vsel %vm1072_vm7, %v647_v9, 0.0  ;;  %v2753_v23 = vadd.f32 %v9484_v22, %v2751_v46  ;;  %v9784_v1 = vsel %vm1072_vm7, %v885_v6, 0.0  ;;  %v2994_v26 = vadd.f32 %v2993_v52, %v2992_v62  ;;  %v768_v6 = vld [vmem:[%s12524_s0 + $0x1680] sm:$0xff]  ;;  %v995_v19 = vld [vmem:[%s12524_s0 + $0x1d98] sm:$0xff] }
 0x1e9   :  { %v2267_v2 = vadd.f32 %v9480_v5, %v2265_v61  ;;  %v2510_v30 = vadd.f32 %v9495_v51, %v2508_v38  ;;  %v9795_v9 = vsel %vm1072_vm7, %v766_v25, 0.0  ;;  %v2997_v22 = vsel %vm1072_vm7, %v993_v50, 0.0  ;;  %v650_v25 = vld [vmem:[%s12524_s0 + $0x12d0] sm:$0xff]  ;;  %v888_v50 = vld [vmem:[%s12524_s0 + $0x1a40] sm:$0xff] }
 0x1ea   :  { %v9805_v57 = vsel %vm1072_vm7, %v648_v56, 0.0  ;;  %v2755_v5 = vadd.f32 %v9509_v48, %v2753_v23  ;;  %v9809_v51 = vsel %vm1072_vm7, %v886_v21, 0.0  ;;  %v2996_v52 = vadd.f32 %v2995_v15, %v2994_v26  ;;  %v769_v21 = vld [vmem:[%s12524_s0 + $0x1688] sm:$0xff]  ;;  %v996_v61 = vld [vmem:[%s12524_s0 + $0x1da0] sm:$0xff] }
 0x1eb   :  { %v2269_v46 = vadd.f32 %v9505_v39, %v2267_v2  ;;  %v2512_v62 = vadd.f32 %v9520_v32, %v2510_v30  ;;  %v9820_v56 = vsel %vm1072_vm7, %v767_v7, 0.0  ;;  %v2999_v48 = vsel %vm1072_vm7, %v994_v18, 0.0  ;;  %v651_v7 = vld [vmem:[%s12524_s0 + $0x12d8] sm:$0xff]  ;;  %v889_v18 = vld [vmem:[%s12524_s0 + $0x1a48] sm:$0xff] }
 0x1ec   :  { %v9830_v38 = vsel %vm1072_vm7, %v649_v60, 0.0  ;;  %v2757_v39 = vadd.f32 %v9534_v54, %v2755_v5  ;;  %v9834_v32 = vsel %vm1072_vm7, %v887_v17, 0.0  ;;  %v2998_v15 = vadd.f32 %v2997_v22, %v2996_v52  ;;  %v770_v17 = vld [vmem:[%s12524_s0 + $0x1690] sm:$0xff]  ;;  %v997_v2 = vld [vmem:[%s12524_s0 + $0x1da8] sm:$0xff] }
 0x1ed   :  { %v2271_v23 = vadd.f32 %v9530_v58, %v2269_v46  ;;  %v2514_v26 = vadd.f32 %v9545_v34, %v2512_v62  ;;  %v9845_v60 = vsel %vm1072_vm7, %v768_v6, 0.0  ;;  %v3001_v54 = vsel %vm1072_vm7, %v995_v19, 0.0  ;;  %v652_v6 = vld [vmem:[%s12524_s0 + $0x12e0] sm:$0xff]  ;;  %v890_v19 = vld [vmem:[%s12524_s0 + $0x1a50] sm:$0xff] }
 0x1ee   :  { %v9855_v30 = vsel %vm1072_vm7, %v650_v25, 0.0  ;;  %v2759_v58 = vadd.f32 %v9559_v37, %v2757_v39  ;;  %v9859_v34 = vsel %vm1072_vm7, %v888_v50, 0.0  ;;  %v3000_v22 = vadd.f32 %v2999_v48, %v2998_v15  ;;  %v771_v50 = vld [vmem:[%s12524_s0 + $0x1698] sm:$0xff]  ;;  %v998_v46 = vld [vmem:[%s12524_s0 + $0x1db0] sm:$0xff] }
 0x1ef   :  { %v2273_v5 = vadd.f32 %v9555_v59, %v2271_v23  ;;  %v2516_v52 = vadd.f32 %v9570_v31, %v2514_v26  ;;  %v9870_v25 = vsel %vm1072_vm7, %v769_v21, 0.0  ;;  %v3003_v37 = vsel %vm1072_vm7, %v996_v61, 0.0  ;;  %v653_v21 = vld [vmem:[%s12524_s0 + $0x12e8] sm:$0xff]  ;;  %v891_v61 = vld [vmem:[%s12524_s0 + $0x1a58] sm:$0xff] }
 0x1f0   :  { %v9880_v62 = vsel %vm1072_vm7, %v651_v7, 0.0  ;;  %v2761_v59 = vadd.f32 %v9584_v10, %v2759_v58  ;;  %v9884_v31 = vsel %vm1072_vm7, %v889_v18, 0.0  ;;  %v3002_v48 = vadd.f32 %v3001_v54, %v3000_v22  ;;  %v772_v18 = vld [vmem:[%s12524_s0 + $0x16a0] sm:$0xff]  ;;  %v999_v23 = vld [vmem:[%s12524_s0 + $0x1db8] sm:$0xff] }
 0x1f1   :  { %v2275_v39 = vadd.f32 %v9580_v47, %v2273_v5  ;;  %v2518_v15 = vadd.f32 %v9595_v33, %v2516_v52  ;;  %v9895_v7 = vsel %vm1072_vm7, %v770_v17, 0.0  ;;  %v3005_v10 = vsel %vm1072_vm7, %v997_v2, 0.0  ;;  %v654_v17 = vld [vmem:[%s12524_s0 + $0x12f0] sm:$0xff]  ;;  %v892_v2 = vld [vmem:[%s12524_s0 + $0x1a60] sm:$0xff] }
 0x1f2   :  { %v9905_v26 = vsel %vm1072_vm7, %v652_v6, 0.0  ;;  %v2763_v47 = vadd.f32 %v9609_v16, %v2761_v59  ;;  %v9909_v33 = vsel %vm1072_vm7, %v890_v19, 0.0  ;;  %v3004_v54 = vadd.f32 %v3003_v37, %v3002_v48  ;;  %v773_v19 = vld [vmem:[%s12524_s0 + $0x16a8] sm:$0xff]  ;;  %v1000_v5 = vld [vmem:[%s12524_s0 + $0x1dc0] sm:$0xff] }
 0x1f3   :  { %v2277_v58 = vadd.f32 %v9605_v11, %v2275_v39  ;;  %v2520_v22 = vadd.f32 %v9620_v63, %v2518_v15  ;;  %v9920_v6 = vsel %vm1072_vm7, %v771_v50, 0.0  ;;  %v3007_v16 = vsel %vm1072_vm7, %v998_v46, 0.0  ;;  %v655_v50 = vld [vmem:[%s12524_s0 + $0x12f8] sm:$0xff]  ;;  %v893_v46 = vld [vmem:[%s12524_s0 + $0x1a68] sm:$0xff] }
 0x1f4   :  { %v9930_v52 = vsel %vm1072_vm7, %v653_v21, 0.0  ;;  %v2765_v11 = vadd.f32 %v9634_v20, %v2763_v47  ;;  %v9934_v63 = vsel %vm1072_vm7, %v891_v61, 0.0  ;;  %v3006_v37 = vadd.f32 %v3005_v10, %v3004_v54  ;;  %v774_v61 = vld [vmem:[%s12524_s0 + $0x16b0] sm:$0xff]  ;;  %v1001_v39 = vld [vmem:[%s12524_s0 + $0x1dc8] sm:$0xff] }
 0x1f5   :  { %v2279_v59 = vadd.f32 %v9630_v0, %v2277_v58  ;;  %v2522_v48 = vadd.f32 %v9645_v29, %v2520_v22  ;;  %v9945_v21 = vsel %vm1072_vm7, %v772_v18, 0.0  ;;  %v3009_v20 = vsel %vm1072_vm7, %v999_v23, 0.0  ;;  %v656_v18 = vld [vmem:[%s12524_s0 + $0x1300] sm:$0xff]  ;;  %v894_v23 = vld [vmem:[%s12524_s0 + $0x1a70] sm:$0xff] }
 0x1f6   :  { %v9955_v15 = vsel %vm1072_vm7, %v654_v17, 0.0  ;;  %v2767_v0 = vadd.f32 %v9659_v36, %v2765_v11  ;;  %v9959_v29 = vsel %vm1072_vm7, %v892_v2, 0.0  ;;  %v3008_v10 = vadd.f32 %v3007_v16, %v3006_v37  ;;  %v775_v2 = vld [vmem:[%s12524_s0 + $0x16b8] sm:$0xff]  ;;  %v1002_v58 = vld [vmem:[%s12524_s0 + $0x1dd0] sm:$0xff] }
 0x1f7   :  { %v2281_v47 = vadd.f32 %v9655_v8, %v2279_v59  ;;  %v2524_v54 = vadd.f32 %v9670_v4, %v2522_v48  ;;  %v9970_v17 = vsel %vm1072_vm7, %v773_v19, 0.0  ;;  %v3011_v36 = vsel %vm1072_vm7, %v1000_v5, 0.0  ;;  %v657_v19 = vld [vmem:[%s12524_s0 + $0x1308] sm:$0xff]  ;;  %v895_v5 = vld [vmem:[%s12524_s0 + $0x1a78] sm:$0xff] }
 0x1f8   :  { %v9980_v22 = vsel %vm1072_vm7, %v655_v50, 0.0  ;;  %v2769_v8 = vadd.f32 %v9684_v49, %v2767_v0  ;;  %v9984_v4 = vsel %vm1072_vm7, %v893_v46, 0.0  ;;  %v3010_v16 = vadd.f32 %v3009_v20, %v3008_v10  ;;  %v776_v46 = vld [vmem:[%s12524_s0 + $0x16c0] sm:$0xff]  ;;  %v1003_v59 = vld [vmem:[%s12524_s0 + $0x1dd8] sm:$0xff] }
 0x1f9   :  { %v2283_v11 = vadd.f32 %v9680_v40, %v2281_v47  ;;  %v2526_v37 = vadd.f32 %v9695_v13, %v2524_v54  ;;  %v9995_v50 = vsel %vm1072_vm7, %v774_v61, 0.0  ;;  %v3013_v49 = vsel %vm1072_vm7, %v1001_v39, 0.0  ;;  %v658_v61 = vld [vmem:[%s12524_s0 + $0x1310] sm:$0xff]  ;;  %v896_v39 = vld [vmem:[%s12524_s0 + $0x1a80] sm:$0xff] }
 0x1fa   :  { %v10005_v48 = vsel %vm1072_vm7, %v656_v18, 0.0  ;;  %v2771_v40 = vadd.f32 %v9709_v14, %v2769_v8  ;;  %v10009_v13 = vsel %vm1072_vm7, %v894_v23, 0.0  ;;  %v3012_v20 = vadd.f32 %v3011_v36, %v3010_v16  ;;  %v777_v23 = vld [vmem:[%s12524_s0 + $0x16c8] sm:$0xff]  ;;  %v1004_v47 = vld [vmem:[%s12524_s0 + $0x1de0] sm:$0xff] }
 0x1fb   :  { %v2285_v0 = vadd.f32 %v9705_v42, %v2283_v11  ;;  %v2528_v10 = vadd.f32 %v9720_v44, %v2526_v37  ;;  %v10020_v18 = vsel %vm1072_vm7, %v775_v2, 0.0  ;;  %v3015_v14 = vsel %vm1072_vm7, %v1002_v58, 0.0  ;;  %v659_v2 = vld [vmem:[%s12524_s0 + $0x1318] sm:$0xff]  ;;  %v897_v58 = vld [vmem:[%s12524_s0 + $0x1a88] sm:$0xff] }
 0x1fc   :  { %v10030_v54 = vsel %vm1072_vm7, %v657_v19, 0.0  ;;  %v2773_v42 = vadd.f32 %v9734_v41, %v2771_v40  ;;  %v10034_v44 = vsel %vm1072_vm7, %v895_v5, 0.0  ;;  %v3014_v36 = vadd.f32 %v3013_v49, %v3012_v20  ;;  %v778_v5 = vld [vmem:[%s12524_s0 + $0x16d0] sm:$0xff]  ;;  %v1005_v11 = vld [vmem:[%s12524_s0 + $0x1de8] sm:$0xff] }
 0x1fd   :  { %v2287_v8 = vadd.f32 %v9730_v43, %v2285_v0  ;;  %v2530_v16 = vadd.f32 %v9745_v12, %v2528_v10  ;;  %v10045_v19 = vsel %vm1072_vm7, %v776_v46, 0.0  ;;  %v3017_v41 = vsel %vm1072_vm7, %v1003_v59, 0.0  ;;  %v660_v46 = vld [vmem:[%s12524_s0 + $0x1320] sm:$0xff]  ;;  %v898_v59 = vld [vmem:[%s12524_s0 + $0x1a90] sm:$0xff] }
 0x1fe   :  { %v10055_v37 = vsel %vm1072_vm7, %v658_v61, 0.0  ;;  %v2775_v43 = vadd.f32 %v9759_v53, %v2773_v42  ;;  %v10059_v12 = vsel %vm1072_vm7, %v896_v39, 0.0  ;;  %v3016_v49 = vadd.f32 %v3015_v14, %v3014_v36  ;;  %v779_v39 = vld [vmem:[%s12524_s0 + $0x16d8] sm:$0xff]  ;;  %v1006_v0 = vld [vmem:[%s12524_s0 + $0x1df0] sm:$0xff] }
 0x1ff   :  { %v2289_v40 = vadd.f32 %v9755_v3, %v2287_v8  ;;  %v2532_v20 = vadd.f32 %v9770_v45, %v2530_v16  ;;  %v10070_v61 = vsel %vm1072_vm7, %v777_v23, 0.0  ;;  %v3019_v53 = vsel %vm1072_vm7, %v1004_v47, 0.0  ;;  %v661_v23 = vld [vmem:[%s12524_s0 + $0x1328] sm:$0xff]  ;;  %v899_v47 = vld [vmem:[%s12524_s0 + $0x1a98] sm:$0xff] }
 0x200   :  { %v10080_v10 = vsel %vm1072_vm7, %v659_v2, 0.0  ;;  %v2777_v3 = vadd.f32 %v9784_v1, %v2775_v43  ;;  %v10084_v45 = vsel %vm1072_vm7, %v897_v58, 0.0  ;;  %v3018_v14 = vadd.f32 %v3017_v41, %v3016_v49  ;;  %v780_v58 = vld [vmem:[%s12524_s0 + $0x16e0] sm:$0xff]  ;;  %v1007_v8 = vld [vmem:[%s12524_s0 + $0x1df8] sm:$0xff] }
 0x201   :  { %v2291_v42 = vadd.f32 %v9780_v24, %v2289_v40  ;;  %v2534_v36 = vadd.f32 %v9795_v9, %v2532_v20  ;;  %v10095_v2 = vsel %vm1072_vm7, %v778_v5, 0.0  ;;  %v3021_v1 = vsel %vm1072_vm7, %v1005_v11, 0.0  ;;  %v662_v5 = vld [vmem:[%s12524_s0 + $0x1330] sm:$0xff]  ;;  %v900_v11 = vld [vmem:[%s12524_s0 + $0x1aa0] sm:$0xff] }
 0x202   :  { %v10105_v16 = vsel %vm1072_vm7, %v660_v46, 0.0  ;;  %v2779_v24 = vadd.f32 %v9809_v51, %v2777_v3  ;;  %v10109_v9 = vsel %vm1072_vm7, %v898_v59, 0.0  ;;  %v3020_v41 = vadd.f32 %v3019_v53, %v3018_v14  ;;  %v781_v59 = vld [vmem:[%s12524_s0 + $0x16e8] sm:$0xff]  ;;  %v1008_v40 = vld [vmem:[%s12524_s0 + $0x1e00] sm:$0xff] }
 0x203   :  { %v2293_v43 = vadd.f32 %v9805_v57, %v2291_v42  ;;  %v2536_v49 = vadd.f32 %v9820_v56, %v2534_v36  ;;  %v10120_v46 = vsel %vm1072_vm7, %v779_v39, 0.0  ;;  %v3023_v51 = vsel %vm1072_vm7, %v1006_v0, 0.0  ;;  %v663_v39 = vld [vmem:[%s12524_s0 + $0x1338] sm:$0xff]  ;;  %v901_v0 = vld [vmem:[%s12524_s0 + $0x1aa8] sm:$0xff] }
 0x204   :  { %v10130_v20 = vsel %vm1072_vm7, %v661_v23, 0.0  ;;  %v2781_v57 = vadd.f32 %v9834_v32, %v2779_v24  ;;  %v10134_v56 = vsel %vm1072_vm7, %v899_v47, 0.0  ;;  %v3022_v53 = vadd.f32 %v3021_v1, %v3020_v41  ;;  %v782_v47 = vld [vmem:[%s12524_s0 + $0x16f0] sm:$0xff]  ;;  %v1009_v42 = vld [vmem:[%s12524_s0 + $0x1e08] sm:$0xff] }
 0x205   :  { %v2295_v3 = vadd.f32 %v9830_v38, %v2293_v43  ;;  %v2538_v14 = vadd.f32 %v9845_v60, %v2536_v49  ;;  %v10145_v23 = vsel %vm1072_vm7, %v780_v58, 0.0  ;;  %v3025_v32 = vsel %vm1072_vm7, %v1007_v8, 0.0  ;;  %v664_v58 = vld [vmem:[%s12524_s0 + $0x1340] sm:$0xff]  ;;  %v902_v8 = vld [vmem:[%s12524_s0 + $0x1ab0] sm:$0xff] }
 0x206   :  { %v10155_v36 = vsel %vm1072_vm7, %v662_v5, 0.0  ;;  %v2783_v38 = vadd.f32 %v9859_v34, %v2781_v57  ;;  %v10159_v60 = vsel %vm1072_vm7, %v900_v11, 0.0  ;;  %v3024_v1 = vadd.f32 %v3023_v51, %v3022_v53  ;;  %v783_v11 = vld [vmem:[%s12524_s0 + $0x16f8] sm:$0xff]  ;;  %v1010_v43 = vld [vmem:[%s12524_s0 + $0x1e10] sm:$0xff] }
 0x207   :  { %v2297_v24 = vadd.f32 %v9855_v30, %v2295_v3  ;;  %v2540_v41 = vadd.f32 %v9870_v25, %v2538_v14  ;;  %v10170_v5 = vsel %vm1072_vm7, %v781_v59, 0.0  ;;  %v3027_v34 = vsel %vm1072_vm7, %v1008_v40, 0.0  ;;  %v665_v59 = vld [vmem:[%s12524_s0 + $0x1348] sm:$0xff]  ;;  %v903_v40 = vld [vmem:[%s12524_s0 + $0x1ab8] sm:$0xff] }
 0x208   :  { %v10180_v49 = vsel %vm1072_vm7, %v663_v39, 0.0  ;;  %v2785_v30 = vadd.f32 %v9884_v31, %v2783_v38  ;;  %v10184_v25 = vsel %vm1072_vm7, %v901_v0, 0.0  ;;  %v3026_v51 = vadd.f32 %v3025_v32, %v3024_v1  ;;  %v784_v0 = vld [vmem:[%s12524_s0 + $0x1700] sm:$0xff]  ;;  %v1011_v3 = vld [vmem:[%s12524_s0 + $0x1e18] sm:$0xff] }
 0x209   :  { %v2299_v57 = vadd.f32 %v9880_v62, %v2297_v24  ;;  %v2542_v53 = vadd.f32 %v9895_v7, %v2540_v41  ;;  %v10195_v39 = vsel %vm1072_vm7, %v782_v47, 0.0  ;;  %v3029_v31 = vsel %vm1072_vm7, %v1009_v42, 0.0  ;;  %v666_v47 = vld [vmem:[%s12524_s0 + $0x1350] sm:$0xff]  ;;  %v904_v42 = vld [vmem:[%s12524_s0 + $0x1ac0] sm:$0xff] }
 0x20a   :  { %v10205_v14 = vsel %vm1072_vm7, %v664_v58, 0.0  ;;  %v2787_v62 = vadd.f32 %v9909_v33, %v2785_v30  ;;  %v10209_v7 = vsel %vm1072_vm7, %v902_v8, 0.0  ;;  %v3028_v32 = vadd.f32 %v3027_v34, %v3026_v51  ;;  %v785_v8 = vld [vmem:[%s12524_s0 + $0x1708] sm:$0xff]  ;;  %v1012_v24 = vld [vmem:[%s12524_s0 + $0x1e20] sm:$0xff] }
 0x20b   :  { %v2301_v38 = vadd.f32 %v9905_v26, %v2299_v57  ;;  %v2544_v1 = vadd.f32 %v9920_v6, %v2542_v53  ;;  %v10220_v58 = vsel %vm1072_vm7, %v783_v11, 0.0  ;;  %v3031_v33 = vsel %vm1072_vm7, %v1010_v43, 0.0  ;;  %v667_v11 = vld [vmem:[%s12524_s0 + $0x1358] sm:$0xff]  ;;  %v905_v43 = vld [vmem:[%s12524_s0 + $0x1ac8] sm:$0xff] }
 0x20c   :  { %v10230_v41 = vsel %vm1072_vm7, %v665_v59, 0.0  ;;  %v2789_v26 = vadd.f32 %v9934_v63, %v2787_v62  ;;  %v10234_v6 = vsel %vm1072_vm7, %v903_v40, 0.0  ;;  %v3030_v34 = vadd.f32 %v3029_v31, %v3028_v32  ;;  %v786_v40 = vld [vmem:[%s12524_s0 + $0x1710] sm:$0xff]  ;;  %v1013_v57 = vld [vmem:[%s12524_s0 + $0x1e28] sm:$0xff] }
 0x20d   :  { %v2303_v30 = vadd.f32 %v9930_v52, %v2301_v38  ;;  %v2546_v51 = vadd.f32 %v9945_v21, %v2544_v1  ;;  %v10245_v59 = vsel %vm1072_vm7, %v784_v0, 0.0  ;;  %v3033_v63 = vsel %vm1072_vm7, %v1011_v3, 0.0  ;;  %v668_v0 = vld [vmem:[%s12524_s0 + $0x1360] sm:$0xff]  ;;  %v906_v3 = vld [vmem:[%s12524_s0 + $0x1ad0] sm:$0xff] }
 0x20e   :  { %v10255_v53 = vsel %vm1072_vm7, %v666_v47, 0.0  ;;  %v2791_v52 = vadd.f32 %v9959_v29, %v2789_v26  ;;  %v10259_v21 = vsel %vm1072_vm7, %v904_v42, 0.0  ;;  %v3032_v31 = vadd.f32 %v3031_v33, %v3030_v34  ;;  %v787_v42 = vld [vmem:[%s12524_s0 + $0x1718] sm:$0xff]  ;;  %v1014_v38 = vld [vmem:[%s12524_s0 + $0x1e30] sm:$0xff] }
 0x20f   :  { %v2305_v62 = vadd.f32 %v9955_v15, %v2303_v30  ;;  %v2548_v32 = vadd.f32 %v9970_v17, %v2546_v51  ;;  %v10270_v47 = vsel %vm1072_vm7, %v785_v8, 0.0  ;;  %v3035_v29 = vsel %vm1072_vm7, %v1012_v24, 0.0  ;;  %v669_v8 = vld [vmem:[%s12524_s0 + $0x1368] sm:$0xff]  ;;  %v907_v24 = vld [vmem:[%s12524_s0 + $0x1ad8] sm:$0xff] }
 0x210   :  { %v10280_v1 = vsel %vm1072_vm7, %v667_v11, 0.0  ;;  %v2793_v15 = vadd.f32 %v9984_v4, %v2791_v52  ;;  %v10284_v17 = vsel %vm1072_vm7, %v905_v43, 0.0  ;;  %v3034_v33 = vadd.f32 %v3033_v63, %v3032_v31  ;;  %v788_v43 = vld [vmem:[%s12524_s0 + $0x1720] sm:$0xff]  ;;  %v1015_v30 = vld [vmem:[%s12524_s0 + $0x1e38] sm:$0xff] }
 0x211   :  { %v2307_v26 = vadd.f32 %v9980_v22, %v2305_v62  ;;  %v2550_v34 = vadd.f32 %v9995_v50, %v2548_v32  ;;  %v10295_v11 = vsel %vm1072_vm7, %v786_v40, 0.0  ;;  %v3037_v4 = vsel %vm1072_vm7, %v1013_v57, 0.0  ;;  %v670_v40 = vld [vmem:[%s12524_s0 + $0x1370] sm:$0xff]  ;;  %v908_v57 = vld [vmem:[%s12524_s0 + $0x1ae0] sm:$0xff] }
 0x212   :  { %v10305_v51 = vsel %vm1072_vm7, %v668_v0, 0.0  ;;  %v2795_v22 = vadd.f32 %v10009_v13, %v2793_v15  ;;  %v10309_v50 = vsel %vm1072_vm7, %v906_v3, 0.0  ;;  %v3036_v63 = vadd.f32 %v3035_v29, %v3034_v33  ;;  %v789_v3 = vld [vmem:[%s12524_s0 + $0x1728] sm:$0xff]  ;;  %v1016_v62 = vld [vmem:[%s12524_s0 + $0x1e40] sm:$0xff] }
 0x213   :  { %v2309_v52 = vadd.f32 %v10005_v48, %v2307_v26  ;;  %v2552_v31 = vadd.f32 %v10020_v18, %v2550_v34  ;;  %v10320_v0 = vsel %vm1072_vm7, %v787_v42, 0.0  ;;  %v3039_v13 = vsel %vm1072_vm7, %v1014_v38, 0.0  ;;  %v671_v42 = vld [vmem:[%s12524_s0 + $0x1378] sm:$0xff]  ;;  %v909_v38 = vld [vmem:[%s12524_s0 + $0x1ae8] sm:$0xff] }
 0x214   :  { %v10330_v32 = vsel %vm1072_vm7, %v669_v8, 0.0  ;;  %v2797_v48 = vadd.f32 %v10034_v44, %v2795_v22  ;;  %v10334_v18 = vsel %vm1072_vm7, %v907_v24, 0.0  ;;  %v3038_v29 = vadd.f32 %v3037_v4, %v3036_v63  ;;  %v790_v24 = vld [vmem:[%s12524_s0 + $0x1730] sm:$0xff]  ;;  %v1017_v26 = vld [vmem:[%s12524_s0 + $0x1e48] sm:$0xff] }
 0x215   :  { %v2311_v15 = vadd.f32 %v10030_v54, %v2309_v52  ;;  %v2554_v33 = vadd.f32 %v10045_v19, %v2552_v31  ;;  %v10345_v8 = vsel %vm1072_vm7, %v788_v43, 0.0  ;;  %v3041_v44 = vsel %vm1072_vm7, %v1015_v30, 0.0  ;;  %v672_v43 = vld [vmem:[%s12524_s0 + $0x1380] sm:$0xff]  ;;  %v910_v30 = vld [vmem:[%s12524_s0 + $0x1af0] sm:$0xff] }
 0x216   :  { %v10355_v34 = vsel %vm1072_vm7, %v670_v40, 0.0  ;;  %v2799_v54 = vadd.f32 %v10059_v12, %v2797_v48  ;;  %v10359_v19 = vsel %vm1072_vm7, %v908_v57, 0.0  ;;  %v3040_v4 = vadd.f32 %v3039_v13, %v3038_v29  ;;  %v791_v57 = vld [vmem:[%s12524_s0 + $0x1738] sm:$0xff]  ;;  %v1018_v52 = vld [vmem:[%s12524_s0 + $0x1e50] sm:$0xff] }
 0x217   :  { %v2313_v22 = vadd.f32 %v10055_v37, %v2311_v15  ;;  %v2556_v63 = vadd.f32 %v10070_v61, %v2554_v33  ;;  %v10370_v40 = vsel %vm1072_vm7, %v789_v3, 0.0  ;;  %v3043_v12 = vsel %vm1072_vm7, %v1016_v62, 0.0  ;;  %v673_v3 = vld [vmem:[%s12524_s0 + $0x1388] sm:$0xff]  ;;  %v911_v62 = vld [vmem:[%s12524_s0 + $0x1af8] sm:$0xff] }
 0x218   :  { %v10380_v31 = vsel %vm1072_vm7, %v671_v42, 0.0  ;;  %v2801_v37 = vadd.f32 %v10084_v45, %v2799_v54  ;;  %v10384_v61 = vsel %vm1072_vm7, %v909_v38, 0.0  ;;  %v3042_v13 = vadd.f32 %v3041_v44, %v3040_v4  ;;  %v792_v38 = vld [vmem:[%s12524_s0 + $0x1740] sm:$0xff]  ;;  %v1019_v15 = vld [vmem:[%s12524_s0 + $0x1e58] sm:$0xff] }
 0x219   :  { %v2315_v48 = vadd.f32 %v10080_v10, %v2313_v22  ;;  %v2558_v29 = vadd.f32 %v10095_v2, %v2556_v63  ;;  %v10395_v42 = vsel %vm1072_vm7, %v790_v24, 0.0  ;;  %v3045_v45 = vsel %vm1072_vm7, %v1017_v26, 0.0  ;;  %v674_v24 = vld [vmem:[%s12524_s0 + $0x1390] sm:$0xff]  ;;  %v912_v26 = vld [vmem:[%s12524_s0 + $0x1b00] sm:$0xff] }
 0x21a   :  { %v10405_v33 = vsel %vm1072_vm7, %v672_v43, 0.0  ;;  %v2803_v10 = vadd.f32 %v10109_v9, %v2801_v37  ;;  %v10409_v2 = vsel %vm1072_vm7, %v910_v30, 0.0  ;;  %v3044_v44 = vadd.f32 %v3043_v12, %v3042_v13  ;;  %v793_v30 = vld [vmem:[%s12524_s0 + $0x1748] sm:$0xff]  ;;  %v1020_v22 = vld [vmem:[%s12524_s0 + $0x1e60] sm:$0xff] }
 0x21b   :  { %v2317_v54 = vadd.f32 %v10105_v16, %v2315_v48  ;;  %v2560_v4 = vadd.f32 %v10120_v46, %v2558_v29  ;;  %v10420_v43 = vsel %vm1072_vm7, %v791_v57, 0.0  ;;  %v3047_v9 = vsel %vm1072_vm7, %v1018_v52, 0.0  ;;  %v675_v57 = vld [vmem:[%s12524_s0 + $0x1398] sm:$0xff]  ;;  %v913_v52 = vld [vmem:[%s12524_s0 + $0x1b08] sm:$0xff] }
 0x21c   :  { %v10430_v63 = vsel %vm1072_vm7, %v673_v3, 0.0  ;;  %v2805_v16 = vadd.f32 %v10134_v56, %v2803_v10  ;;  %v10434_v46 = vsel %vm1072_vm7, %v911_v62, 0.0  ;;  %v3046_v12 = vadd.f32 %v3045_v45, %v3044_v44  ;;  %v794_v62 = vld [vmem:[%s12524_s0 + $0x1750] sm:$0xff]  ;;  %v1021_v48 = vld [vmem:[%s12524_s0 + $0x1e68] sm:$0xff] }
 0x21d   :  { %v2319_v37 = vadd.f32 %v10130_v20, %v2317_v54  ;;  %v2562_v13 = vadd.f32 %v10145_v23, %v2560_v4  ;;  %v10445_v3 = vsel %vm1072_vm7, %v792_v38, 0.0  ;;  %v3049_v56 = vsel %vm1072_vm7, %v1019_v15, 0.0  ;;  %v676_v38 = vld [vmem:[%s12524_s0 + $0x13a0] sm:$0xff]  ;;  %v914_v15 = vld [vmem:[%s12524_s0 + $0x1b10] sm:$0xff] }
 0x21e   :  { %v10455_v29 = vsel %vm1072_vm7, %v674_v24, 0.0  ;;  %v2807_v20 = vadd.f32 %v10159_v60, %v2805_v16  ;;  %v10459_v23 = vsel %vm1072_vm7, %v912_v26, 0.0  ;;  %v3048_v45 = vadd.f32 %v3047_v9, %v3046_v12  ;;  %v795_v26 = vld [vmem:[%s12524_s0 + $0x1758] sm:$0xff]  ;;  %v1022_v54 = vld [vmem:[%s12524_s0 + $0x1e70] sm:$0xff] }
 0x21f   :  { %v2321_v10 = vadd.f32 %v10155_v36, %v2319_v37  ;;  %v2564_v44 = vadd.f32 %v10170_v5, %v2562_v13  ;;  %v10470_v24 = vsel %vm1072_vm7, %v793_v30, 0.0  ;;  %v3051_v60 = vsel %vm1072_vm7, %v1020_v22, 0.0  ;;  %v677_v30 = vld [vmem:[%s12524_s0 + $0x13a8] sm:$0xff]  ;;  %v915_v22 = vld [vmem:[%s12524_s0 + $0x1b18] sm:$0xff] }
 0x220   :  { %v10480_v4 = vsel %vm1072_vm7, %v675_v57, 0.0  ;;  %v2809_v36 = vadd.f32 %v10184_v25, %v2807_v20  ;;  %v10484_v5 = vsel %vm1072_vm7, %v913_v52, 0.0  ;;  %v3050_v9 = vadd.f32 %v3049_v56, %v3048_v45  ;;  %v796_v52 = vld [vmem:[%s12524_s0 + $0x1760] sm:$0xff]  ;;  %v1023_v37 = vld [vmem:[%s12524_s0 + $0x1e78] sm:$0xff] }
 0x221   :  { %v2323_v16 = vadd.f32 %v10180_v49, %v2321_v10  ;;  %v2566_v12 = vadd.f32 %v10195_v39, %v2564_v44  ;;  %v10495_v57 = vsel %vm1072_vm7, %v794_v62, 0.0  ;;  %v3053_v25 = vsel %vm1072_vm7, %v1021_v48, 0.0  ;;  %v678_v62 = vld [vmem:[%s12524_s0 + $0x13b0] sm:$0xff]  ;;  %v916_v48 = vld [vmem:[%s12524_s0 + $0x1b20] sm:$0xff] }
 0x222   :  { %v10505_v13 = vsel %vm1072_vm7, %v676_v38, 0.0  ;;  %v2811_v49 = vadd.f32 %v10209_v7, %v2809_v36  ;;  %v10509_v39 = vsel %vm1072_vm7, %v914_v15, 0.0  ;;  %v3052_v56 = vadd.f32 %v3051_v60, %v3050_v9  ;;  %v797_v15 = vld [vmem:[%s12524_s0 + $0x1768] sm:$0xff]  ;;  %v1024_v10 = vld [vmem:[%s12524_s0 + $0x1e80] sm:$0xff] }
 0x223   :  { %v2325_v20 = vadd.f32 %v10205_v14, %v2323_v16  ;;  %v2568_v45 = vadd.f32 %v10220_v58, %v2566_v12  ;;  %v10520_v38 = vsel %vm1072_vm7, %v795_v26, 0.0  ;;  %v3055_v7 = vsel %vm1072_vm7, %v1022_v54, 0.0  ;;  %v679_v26 = vld [vmem:[%s12524_s0 + $0x13b8] sm:$0xff]  ;;  %v917_v54 = vld [vmem:[%s12524_s0 + $0x1b28] sm:$0xff] }
 0x224   :  { %v10530_v44 = vsel %vm1072_vm7, %v677_v30, 0.0  ;;  %v2813_v14 = vadd.f32 %v10234_v6, %v2811_v49  ;;  %v10534_v58 = vsel %vm1072_vm7, %v915_v22, 0.0  ;;  %v3054_v60 = vadd.f32 %v3053_v25, %v3052_v56  ;;  %v798_v22 = vld [vmem:[%s12524_s0 + $0x1770] sm:$0xff]  ;;  %v1025_v16 = vld [vmem:[%s12524_s0 + $0x1e88] sm:$0xff] }
 0x225   :  { %v2327_v36 = vadd.f32 %v10230_v41, %v2325_v20  ;;  %v2570_v9 = vadd.f32 %v10245_v59, %v2568_v45  ;;  %v10545_v30 = vsel %vm1072_vm7, %v796_v52, 0.0  ;;  %v3057_v6 = vsel %vm1072_vm7, %v1023_v37, 0.0  ;;  %v680_v52 = vld [vmem:[%s12524_s0 + $0x13c0] sm:$0xff]  ;;  %v918_v37 = vld [vmem:[%s12524_s0 + $0x1b30] sm:$0xff] }
 0x226   :  { %v10555_v12 = vsel %vm1072_vm7, %v678_v62, 0.0  ;;  %v2815_v41 = vadd.f32 %v10259_v21, %v2813_v14  ;;  %v10559_v59 = vsel %vm1072_vm7, %v916_v48, 0.0  ;;  %v3056_v25 = vadd.f32 %v3055_v7, %v3054_v60  ;;  %v799_v48 = vld [vmem:[%s12524_s0 + $0x1778] sm:$0xff]  ;;  %v1026_v20 = vld [vmem:[%s12524_s0 + $0x1e90] sm:$0xff] }
 0x227   :  { %v2329_v49 = vadd.f32 %v10255_v53, %v2327_v36  ;;  %v2572_v56 = vadd.f32 %v10270_v47, %v2570_v9  ;;  %v10570_v62 = vsel %vm1072_vm7, %v797_v15, 0.0  ;;  %v3059_v21 = vsel %vm1072_vm7, %v1024_v10, 0.0  ;;  %v681_v15 = vld [vmem:[%s12524_s0 + $0x13c8] sm:$0xff]  ;;  %v919_v10 = vld [vmem:[%s12524_s0 + $0x1b38] sm:$0xff] }
 0x228   :  { %v10580_v45 = vsel %vm1072_vm7, %v679_v26, 0.0  ;;  %v2817_v53 = vadd.f32 %v10284_v17, %v2815_v41  ;;  %v10584_v47 = vsel %vm1072_vm7, %v917_v54, 0.0  ;;  %v3058_v7 = vadd.f32 %v3057_v6, %v3056_v25  ;;  %v800_v54 = vld [vmem:[%s12524_s0 + $0x1780] sm:$0xff]  ;;  %v1027_v36 = vld [vmem:[%s12524_s0 + $0x1e98] sm:$0xff] }
 0x229   :  { %v2331_v14 = vadd.f32 %v10280_v1, %v2329_v49  ;;  %v2574_v60 = vadd.f32 %v10295_v11, %v2572_v56  ;;  %v10595_v26 = vsel %vm1072_vm7, %v798_v22, 0.0  ;;  %v3061_v17 = vsel %vm1072_vm7, %v1025_v16, 0.0  ;;  %v682_v22 = vld [vmem:[%s12524_s0 + $0x13d0] sm:$0xff]  ;;  %v920_v16 = vld [vmem:[%s12524_s0 + $0x1b40] sm:$0xff] }
 0x22a   :  { %v10605_v9 = vsel %vm1072_vm7, %v680_v52, 0.0  ;;  %v2819_v1 = vadd.f32 %v10309_v50, %v2817_v53  ;;  %v10609_v11 = vsel %vm1072_vm7, %v918_v37, 0.0  ;;  %v3060_v6 = vadd.f32 %v3059_v21, %v3058_v7  ;;  %v801_v37 = vld [vmem:[%s12524_s0 + $0x1788] sm:$0xff]  ;;  %v1028_v49 = vld [vmem:[%s12524_s0 + $0x1ea0] sm:$0xff] }
 0x22b   :  { %v2333_v41 = vadd.f32 %v10305_v51, %v2331_v14  ;;  %v2576_v25 = vadd.f32 %v10320_v0, %v2574_v60  ;;  %v10620_v52 = vsel %vm1072_vm7, %v799_v48, 0.0  ;;  %v3063_v50 = vsel %vm1072_vm7, %v1026_v20, 0.0  ;;  %v683_v48 = vld [vmem:[%s12524_s0 + $0x13d8] sm:$0xff]  ;;  %v921_v20 = vld [vmem:[%s12524_s0 + $0x1b48] sm:$0xff] }
 0x22c   :  { %v10630_v56 = vsel %vm1072_vm7, %v681_v15, 0.0  ;;  %v2821_v51 = vadd.f32 %v10334_v18, %v2819_v1  ;;  %v10634_v0 = vsel %vm1072_vm7, %v919_v10, 0.0  ;;  %v3062_v21 = vadd.f32 %v3061_v17, %v3060_v6  ;;  %v802_v10 = vld [vmem:[%s12524_s0 + $0x1790] sm:$0xff]  ;;  %v1029_v14 = vld [vmem:[%s12524_s0 + $0x1ea8] sm:$0xff] }
 0x22d   :  { %v2335_v53 = vadd.f32 %v10330_v32, %v2333_v41  ;;  %v2578_v7 = vadd.f32 %v10345_v8, %v2576_v25  ;;  %v10645_v15 = vsel %vm1072_vm7, %v800_v54, 0.0  ;;  %v3065_v18 = vsel %vm1072_vm7, %v1027_v36, 0.0  ;;  %v684_v54 = vld [vmem:[%s12524_s0 + $0x13e0] sm:$0xff]  ;;  %v922_v36 = vld [vmem:[%s12524_s0 + $0x1b50] sm:$0xff] }
 0x22e   :  { %v10655_v60 = vsel %vm1072_vm7, %v682_v22, 0.0  ;;  %v2823_v32 = vadd.f32 %v10359_v19, %v2821_v51  ;;  %v10659_v8 = vsel %vm1072_vm7, %v920_v16, 0.0  ;;  %v3064_v17 = vadd.f32 %v3063_v50, %v3062_v21  ;;  %v803_v16 = vld [vmem:[%s12524_s0 + $0x1798] sm:$0xff]  ;;  %v1030_v41 = vld [vmem:[%s12524_s0 + $0x1eb0] sm:$0xff] }
 0x22f   :  { %v2337_v1 = vadd.f32 %v10355_v34, %v2335_v53  ;;  %v2580_v6 = vadd.f32 %v10370_v40, %v2578_v7  ;;  %v10670_v22 = vsel %vm1072_vm7, %v801_v37, 0.0  ;;  %v3067_v19 = vsel %vm1072_vm7, %v1028_v49, 0.0  ;;  %v685_v37 = vld [vmem:[%s12524_s0 + $0x13e8] sm:$0xff]  ;;  %v923_v49 = vld [vmem:[%s12524_s0 + $0x1b58] sm:$0xff] }
 0x230   :  { %v10680_v25 = vsel %vm1072_vm7, %v683_v48, 0.0  ;;  %v2825_v34 = vadd.f32 %v10384_v61, %v2823_v32  ;;  %v10684_v40 = vsel %vm1072_vm7, %v921_v20, 0.0  ;;  %v3066_v50 = vadd.f32 %v3065_v18, %v3064_v17  ;;  %v804_v20 = vld [vmem:[%s12524_s0 + $0x17a0] sm:$0xff]  ;;  %v1031_v53 = vld [vmem:[%s12524_s0 + $0x1eb8] sm:$0xff] }
 0x231   :  { %v2339_v51 = vadd.f32 %v10380_v31, %v2337_v1  ;;  %v2582_v21 = vadd.f32 %v10395_v42, %v2580_v6  ;;  %v10695_v48 = vsel %vm1072_vm7, %v802_v10, 0.0  ;;  %v3069_v61 = vsel %vm1072_vm7, %v1029_v14, 0.0  ;;  %v686_v10 = vld [vmem:[%s12524_s0 + $0x13f0] sm:$0xff]  ;;  %v924_v14 = vld [vmem:[%s12524_s0 + $0x1b60] sm:$0xff] }
 0x232   :  { %v10705_v7 = vsel %vm1072_vm7, %v684_v54, 0.0  ;;  %v2827_v31 = vadd.f32 %v10409_v2, %v2825_v34  ;;  %v10709_v42 = vsel %vm1072_vm7, %v922_v36, 0.0  ;;  %v3068_v18 = vadd.f32 %v3067_v19, %v3066_v50  ;;  %v805_v36 = vld [vmem:[%s12524_s0 + $0x17a8] sm:$0xff]  ;;  %v1032_v1 = vld [vmem:[%s12524_s0 + $0x1ec0] sm:$0xff] }
 0x233   :  { %v2341_v32 = vadd.f32 %v10405_v33, %v2339_v51  ;;  %v2584_v17 = vadd.f32 %v10420_v43, %v2582_v21  ;;  %v10720_v54 = vsel %vm1072_vm7, %v803_v16, 0.0  ;;  %v3071_v2 = vsel %vm1072_vm7, %v1030_v41, 0.0  ;;  %v687_v16 = vld [vmem:[%s12524_s0 + $0x13f8] sm:$0xff]  ;;  %v925_v41 = vld [vmem:[%s12524_s0 + $0x1b68] sm:$0xff] }
 0x234   :  { %v10730_v6 = vsel %vm1072_vm7, %v685_v37, 0.0  ;;  %v2829_v33 = vadd.f32 %v10434_v46, %v2827_v31  ;;  %v10734_v43 = vsel %vm1072_vm7, %v923_v49, 0.0  ;;  %v3070_v19 = vadd.f32 %v3069_v61, %v3068_v18  ;;  %v806_v49 = vld [vmem:[%s12524_s0 + $0x17b0] sm:$0xff]  ;;  %v1033_v51 = vld [vmem:[%s12524_s0 + $0x1ec8] sm:$0xff] }
 0x235   :  { %v2343_v34 = vadd.f32 %v10430_v63, %v2341_v32  ;;  %v2586_v50 = vadd.f32 %v10445_v3, %v2584_v17  ;;  %v10745_v37 = vsel %vm1072_vm7, %v804_v20, 0.0  ;;  %v3073_v46 = vsel %vm1072_vm7, %v1031_v53, 0.0  ;;  %v807_v20 = vld [vmem:[%s12524_s0 + $0x17b8] sm:$0xff]  ;;  %v926_v53 = vld [vmem:[%s12524_s0 + $0x1b70] sm:$0xff] }
 0x236   :  { %v10755_v21 = vsel %vm1072_vm7, %v686_v10, 0.0  ;;  %v2831_v63 = vadd.f32 %v10459_v23, %v2829_v33  ;;  %v10759_v3 = vsel %vm1072_vm7, %v924_v14, 0.0  ;;  %v3072_v61 = vadd.f32 %v3071_v2, %v3070_v19  ;;  %v927_v14 = vld [vmem:[%s12524_s0 + $0x1b78] sm:$0xff]  ;;  %v1034_v32 = vld [vmem:[%s12524_s0 + $0x1ed0] sm:$0xff] }
 0x237   :  { %v2345_v31 = vadd.f32 %v10455_v29, %v2343_v34  ;;  %v2588_v18 = vadd.f32 %v10470_v24, %v2586_v50  ;;  %v10770_v10 = vsel %vm1072_vm7, %v805_v36, 0.0  ;;  %v3075_v23 = vsel %vm1072_vm7, %v1032_v1, 0.0  ;;  %v808_v36 = vld [vmem:[%s12524_s0 + $0x17c0] sm:$0xff]  ;;  %v1035_v34 = vld [vmem:[%s12524_s0 + $0x1ed8] sm:$0xff] }
 0x238   :  { %v10780_v17 = vsel %vm1072_vm7, %v687_v16, 0.0  ;;  %v2833_v29 = vadd.f32 %v10484_v5, %v2831_v63  ;;  %v10784_v24 = vsel %vm1072_vm7, %v925_v41, 0.0  ;;  %v3074_v2 = vadd.f32 %v3073_v46, %v3072_v61  ;;  %v928_v1 = vld [vmem:[%s12524_s0 + $0x1b80] sm:$0xff]  ;;  %v809_v41 = vld [vmem:[%s12524_s0 + $0x17c8] sm:$0xff] }
 0x239   :  { %v2347_v33 = vadd.f32 %v10480_v4, %v2345_v31  ;;  %v2590_v19 = vadd.f32 %v10495_v57, %v2588_v18  ;;  %v10795_v16 = vsel %vm1072_vm7, %v806_v49, 0.0  ;;  %v3077_v5 = vsel %vm1072_vm7, %v1033_v51, 0.0  ;;  %v929_v49 = vld [vmem:[%s12524_s0 + $0x1b88] sm:$0xff]  ;;  %v1036_v51 = vld [vmem:[%s12524_s0 + $0x1ee0] sm:$0xff] }
 0x23a   :  { %v10805_v50 = vsel %vm1072_vm7, %v807_v20, 0.0  ;;  %v2835_v4 = vadd.f32 %v10509_v39, %v2833_v29  ;;  %v10809_v57 = vsel %vm1072_vm7, %v926_v53, 0.0  ;;  %v3076_v46 = vadd.f32 %v3075_v23, %v3074_v2  ;;  %v810_v53 = vld [vmem:[%s12524_s0 + $0x17d0] sm:$0xff]  ;;  %v1037_v31 = vld [vmem:[%s12524_s0 + $0x1ee8] sm:$0xff] }
 0x23b   :  { %v2349_v63 = vadd.f32 %v10505_v13, %v2347_v33  ;;  %v2592_v61 = vadd.f32 %v10520_v38, %v2590_v19  ;;  %v10820_v20 = vsel %vm1072_vm7, %v927_v14, 0.0  ;;  %v3079_v39 = vsel %vm1072_vm7, %v1034_v32, 0.0  ;;  %v930_v14 = vld [vmem:[%s12524_s0 + $0x1b90] sm:$0xff]  ;;  %v1039_v33 = vld [vmem:[%s12524_s0 + $0x1ef8] sm:$0xff] }
 0x23c   :  { %v10830_v18 = vsel %vm1072_vm7, %v808_v36, 0.0  ;;  %v2837_v13 = vadd.f32 %v10534_v58, %v2835_v4  ;;  %v10834_v38 = vsel %vm1072_vm7, %v928_v1, 0.0  ;;  %v3078_v23 = vadd.f32 %v3077_v5, %v3076_v46  ;;  %v1038_v32 = vld [vmem:[%s12524_s0 + $0x1ef0] sm:$0xff]  ;;  %v811_v1 = vld [vmem:[%s12524_s0 + $0x17d8] sm:$0xff] }
 0x23d   :  { %v2351_v29 = vadd.f32 %v10530_v44, %v2349_v63  ;;  %v2594_v2 = vadd.f32 %v10545_v30, %v2592_v61  ;;  %v10845_v36 = vsel %vm1072_vm7, %v809_v41, 0.0  ;;  %v3081_v58 = vsel %vm1072_vm7, %v1035_v34, 0.0  ;;  %v931_v41 = vld [vmem:[%s12524_s0 + $0x1b98] sm:$0xff]  ;;  %v1040_v34 = vld [vmem:[%s12524_s0 + $0x1f00] sm:$0xff]  ;;  %v1041_v63 = vld [vmem:[%s12524_s0 + $0x1f08] sm:$0xff] }
 0x23e   :  { %v2839_v19 = vadd.f32 %v10559_v59, %v2837_v13  ;;  %v10856_v5 = vsel %vm1072_vm7, %v929_v49, 0.0  ;;  %v3080_v44 = vadd.f32 %v3079_v39, %v3078_v23  ;;  %v3083_v30 = vsel %vm1072_vm7, %v1036_v51, 0.0  ;;  %v812_v51 = vld [vmem:[%s12524_s0 + $0x17e0] sm:$0xff] }
 0x23f   :  { %v2353_v4 = vadd.f32 %v10555_v12, %v2351_v29  ;;  %v2596_v46 = vadd.f32 %v10570_v62, %v2594_v2  ;;  %v10868_v59 = vsel %vm1072_vm7, %v810_v53, 0.0  ;;  %v3085_v49 = vsel %vm1072_vm7, %v1037_v31, 0.0  ;;  %v813_v53 = vld [vmem:[%s12524_s0 + $0x17e8] sm:$0xff]  ;;  %v932_v31 = vld [vmem:[%s12524_s0 + $0x1ba0] sm:$0xff]  ;;  %v1043_v29 = vld [vmem:[%s12524_s0 + $0x1f18] sm:$0xff] }
 0x240   :  { %v2841_v61 = vadd.f32 %v10584_v47, %v2839_v19  ;;  %v10879_v39 = vsel %vm1072_vm7, %v930_v14, 0.0  ;;  %v3082_v12 = vadd.f32 %v3081_v58, %v3080_v44  ;;  %v3087_v62 = vsel %vm1072_vm7, %v1038_v32, 0.0  ;;  %v1042_v32 = vld [vmem:[%s12524_s0 + $0x1f10] sm:$0xff] }
 0x241   :  { %v2355_v13 = vadd.f32 %v10580_v45, %v2353_v4  ;;  %v2598_v23 = vadd.f32 %v10595_v26, %v2596_v46  ;;  %v10891_v47 = vsel %vm1072_vm7, %v811_v1, 0.0  ;;  %v3089_v14 = vsel %vm1072_vm7, %v1039_v33, 0.0  ;;  %v814_v1 = vld [vmem:[%s12524_s0 + $0x17f0] sm:$0xff]  ;;  %v933_v33 = vld [vmem:[%s12524_s0 + $0x1ba8] sm:$0xff] }
 0x242   :  { %v2843_v2 = vadd.f32 %v10609_v11, %v2841_v61  ;;  %v10902_v58 = vsel %vm1072_vm7, %v931_v41, 0.0  ;;  %v3084_v45 = vadd.f32 %v3083_v30, %v3082_v12  ;;  %v3091_v26 = vsel %vm1072_vm7, %v1040_v34, 0.0  ;;  %v1044_v30 = vld [vmem:[%s12524_s0 + $0x1f20] sm:$0xff]  ;;  %v1045_v34 = vld [vmem:[%s12524_s0 + $0x1f28] sm:$0xff] }
 0x243   :  { %v2357_v19 = vadd.f32 %v10605_v9, %v2355_v13  ;;  %v2600_v44 = vadd.f32 %v10620_v52, %v2598_v23  ;;  %v10914_v11 = vsel %vm1072_vm7, %v812_v51, 0.0  ;;  %v3093_v41 = vsel %vm1072_vm7, %v1041_v63, 0.0  ;;  %v815_v51 = vld [vmem:[%s12524_s0 + $0x17f8] sm:$0xff] }
 0x244   :  { %v10924_v4 = vsel %vm1072_vm7, %v813_v53, 0.0  ;;  %v2845_v9 = vadd.f32 %v10634_v0, %v2843_v2  ;;  %v10928_v52 = vsel %vm1072_vm7, %v932_v31, 0.0  ;;  %v3086_v46 = vadd.f32 %v3085_v49, %v3084_v45  ;;  %v3218_v0 = vld [vmem:[%s12525_s1] sm:$0xff]  ;;  %v3219_v49 = vld [vmem:[%s12525_s1 + $0x8] sm:$0xff]  ;;  %v934_v53 = vld [vmem:[%s12524_s0 + $0x1bb0] sm:$0xff] }
 0x245   :  { %v2359_v63 = vadd.f32 %v10630_v56, %v2357_v19  ;;  %v2602_v61 = vadd.f32 %v10645_v15, %v2600_v44  ;;  %v3095_v12 = vsel %vm1072_vm7, %v1042_v32, 0.0  ;;  %v10937_v13 = vsel %vm1072_vm7, %v1043_v29, 0.0  ;;  %v1046_v56 = vld [vmem:[%s12524_s0 + $0x1f30] sm:$0xff] }
 0x246   :  { %v10952_v15 = vsel %vm1072_vm7, %v814_v1, 0.0  ;;  %v2847_v31 = vadd.f32 %v10659_v8, %v2845_v9  ;;  %v10956_v23 = vsel %vm1072_vm7, %v933_v33, 0.0  ;;  %v3088_v32 = vadd.f32 %v3087_v62, %v3086_v46  ;;  %v3220_v1 = vld [vmem:[%s12525_s1 + $0x10] sm:$0xff]  ;;  %v3250_v8 = vld [vmem:[%s12525_s1 + $0x100] sm:$0xff]  ;;  %v1047_v62 = vld [vmem:[%s12524_s0 + $0x1f38] sm:$0xff] }
 0x247   :  { %v2361_v29 = vadd.f32 %v10655_v60, %v2359_v63  ;;  %v2604_v2 = vadd.f32 %v10670_v22, %v2602_v61  ;;  %v10961_v45 = vsel %vm1072_vm7, %v1044_v30, 0.0  ;;  %v10964_v19 = vsel %vm1072_vm7, %v1045_v34, 0.0  ;;  %v3251_v60 = vld [vmem:[%s12525_s1 + $0x108] sm:$0xff]  ;;  %v935_v22 = vld [vmem:[%s12524_s0 + $0x1bb8] sm:$0xff]  ;;  %v1048_v33 = vld [vmem:[%s12524_s0 + $0x1f40] sm:$0xff] }
 0x248   :  { %v10985_v44 = vsel %vm1072_vm7, %v815_v51, 0.0  ;;  %v2849_v30 = vadd.f32 %v10684_v40, %v2847_v31  ;;  %v3090_v34 = vadd.f32 %v3089_v14, %v3088_v32  ;;  %v3474_v9 = vadd.f32 %v3219_v49, %v3218_v0  ;;  %v3252_v40 = vld [vmem:[%s12525_s1 + $0x110] sm:$0xff] }
 0x249   :  { %v2363_v46 = vadd.f32 %v10680_v25, %v2361_v29  ;;  %v2606_v63 = vadd.f32 %v10695_v48, %v2604_v2  ;;  %v10991_v61 = vsel %vm1072_vm7, %v934_v53, 0.0  ;;  %v10994_v27 = vsel %vm1072_vm7, %v1046_v56, 0.0  ;;  %v1049_v25 = vld [vmem:[%s12524_s0 + $0x1f48] sm:$0xff]  ;;  %v1050_v48 = vld [vmem:[%s12524_s0 + $0x1f50] sm:$0xff]  ;;  %v3222_v29 = vld [vmem:[%s12525_s1 + $0x20] sm:$0xff] }
 0x24a   :  { %v2851_v14 = vadd.f32 %v10709_v42, %v2849_v30  ;;  %v3092_v51 = vadd.f32 %v3091_v26, %v3090_v34  ;;  %v3475_v0 = vadd.f32 %v3474_v9, %v3220_v1  ;;  %v3511_v49 = vadd.f32 %v3251_v60, %v3250_v8  ;;  %v3253_v42 = vld [vmem:[%s12525_s1 + $0x118] sm:$0xff]  ;;  %v1052_v2 = vld [vmem:[%s12524_s0 + $0x1f60] sm:$0xff] }
 0x24b   :  { %v2608_v53 = vadd.f32 %v10720_v54, %v2606_v63  ;;  %v11011_v56 = vsel %vm1072_vm7, %v935_v22, 0.0  ;;  %v11014_v31 = vsel %vm1072_vm7, %v1047_v62, 0.0  ;;  %v11017_v32 = vsel %vm1072_vm7, %v1048_v33, 0.0  ;;  %v936_v54 = vld [vmem:[%s12524_s0 + $0x1bc0] sm:$0xff]  ;;  %v1051_v26 = vld [vmem:[%s12524_s0 + $0x1f58] sm:$0xff]  ;;  %v1053_v62 = vld [vmem:[%s12524_s0 + $0x1f68] sm:$0xff] }
 0x24c   :  { %v2853_v1 = vadd.f32 %v10734_v43, %v2851_v14  ;;  %v3094_v8 = vadd.f32 %v3093_v41, %v3092_v51  ;;  %v3476_v60 = vadd.f32 %v3475_v0, %v3221_v28  ;;  %v3512_v22 = vadd.f32 %v3511_v49, %v3252_v40  ;;  %v3223_v43 = vld [vmem:[%s12525_s1 + $0x28] sm:$0xff]  ;;  %v1054_v40 = vld [vmem:[%s12524_s0 + $0x1f70] sm:$0xff] }
 0x24d   :  { %v2365_v33 = vadd.f32 %v10705_v7, %v2363_v46  ;;  %v2610_v30 = vadd.f32 %v10745_v37, %v2608_v53  ;;  %v11041_v34 = vsel %vm1072_vm7, %v1049_v25, 0.0  ;;  %v11044_v9 = vsel %vm1072_vm7, %v1050_v48, 0.0  ;;  %v937_v28 = vld [vmem:[%s12524_s0 + $0x1bc8] sm:$0xff]  ;;  %v3254_v7 = vld [vmem:[%s12525_s1 + $0x120] sm:$0xff]  ;;  %v938_v51 = vld [vmem:[%s12524_s0 + $0x1bd0] sm:$0xff] }
 0x24e   :  { %v2855_v41 = vadd.f32 %v10759_v3, %v2853_v1  ;;  %v3096_v63 = vadd.f32 %v3095_v12, %v3094_v8  ;;  %v3477_v37 = vadd.f32 %v3476_v60, %v3222_v29  ;;  %v3513_v46 = vadd.f32 %v3512_v22, %v3253_v42  ;;  %v3224_v12 = vld [vmem:[%s12525_s1 + $0x30] sm:$0xff]  ;;  %v3255_v29 = vld [vmem:[%s12525_s1 + $0x128] sm:$0xff] }
 0x24f   :  { %v2612_v25 = vadd.f32 %v10770_v10, %v2610_v30  ;;  %v11061_v48 = vsel %vm1072_vm7, %v936_v54, 0.0  ;;  %v11064_v14 = vsel %vm1072_vm7, %v1051_v26, 0.0  ;;  %v11067_v3 = vsel %vm1072_vm7, %v1052_v2, 0.0  ;;  %v1055_v10 = vld [vmem:[%s12524_s0 + $0x1f78] sm:$0xff]  ;;  %v3283_v1 = vld [vmem:[%s12525_s1 + $0x208] sm:$0xff] }
 0x250   :  { %v2857_v0 = vadd.f32 %v10784_v24, %v2855_v41  ;;  %v3098_v49 = vadd.f32 %v10937_v13, %v3096_v63  ;;  %v11081_v53 = vsel %vm1072_vm7, %v1053_v62, 0.0  ;;  %v3478_v42 = vadd.f32 %v3477_v37, %v3223_v43  ;;  %v3225_v24 = vld [vmem:[%s12525_s1 + $0x38] sm:$0xff]  ;;  %v3282_v13 = vld [vmem:[%s12525_s1 + $0x200] sm:$0xff]  ;;  %v3256_v62 = vld [vmem:[%s12525_s1 + $0x130] sm:$0xff] }
 0x251   :  { %v2367_v54 = vadd.f32 %v10730_v6, %v2365_v33  ;;  %v2614_v26 = vadd.f32 %v10795_v16, %v2612_v25  ;;  %v11089_v2 = vsel %vm1072_vm7, %v937_v28, 0.0  ;;  %v3514_v8 = vadd.f32 %v3513_v46, %v3254_v7  ;;  %v1056_v6 = vld [vmem:[%s12524_s0 + $0x1f80] sm:$0xff]  ;;  %v939_v63 = vld [vmem:[%s12524_s0 + $0x1bd8] sm:$0xff] }
 0x252   :  { %v2859_v16 = vadd.f32 %v10809_v57, %v2857_v0  ;;  %v3100_v60 = vadd.f32 %v10961_v45, %v3098_v49  ;;  %v11106_v22 = vsel %vm1072_vm7, %v1054_v40, 0.0  ;;  %v3479_v33 = vadd.f32 %v3478_v42, %v3224_v12  ;;  %v3226_v57 = vld [vmem:[%s12525_s1 + $0x40] sm:$0xff]  ;;  %v3284_v45 = vld [vmem:[%s12525_s1 + $0x210] sm:$0xff]  ;;  %v3257_v46 = vld [vmem:[%s12525_s1 + $0x138] sm:$0xff] }
 0x253   :  { %v2616_v30 = vadd.f32 %v10805_v50, %v2614_v26  ;;  %v11113_v43 = vsel %vm1072_vm7, %v938_v51, 0.0  ;;  %v11116_v28 = vsel %vm1072_vm7, %v1055_v10, 0.0  ;;  %v3515_v41 = vadd.f32 %v3514_v8, %v3255_v29  ;;  %v1057_v50 = vld [vmem:[%s12524_s0 + $0x1f88] sm:$0xff]  ;;  %v940_v49 = vld [vmem:[%s12524_s0 + $0x1be0] sm:$0xff] }
 0x254   :  { %v2861_v7 = vadd.f32 %v10820_v20, %v2859_v16  ;;  %v3102_v37 = vadd.f32 %v10964_v19, %v3100_v60  ;;  %v3480_v40 = vadd.f32 %v3479_v33, %v3225_v24  ;;  %v3548_v25 = vadd.f32 %v3283_v1, %v3282_v13  ;;  %v3227_v0 = vld [vmem:[%s12525_s1 + $0x48] sm:$0xff]  ;;  %v3285_v20 = vld [vmem:[%s12525_s1 + $0x218] sm:$0xff]  ;;  %v3258_v29 = vld [vmem:[%s12525_s1 + $0x140] sm:$0xff] }
 0x255   :  { %v2369_v12 = vadd.f32 %v10755_v21, %v2367_v54  ;;  %v2618_v51 = vadd.f32 %v10830_v18, %v2616_v30  ;;  %v11138_v10 = vsel %vm1072_vm7, %v1056_v6, 0.0  ;;  %v3516_v19 = vadd.f32 %v3515_v41, %v3256_v62  ;;  %v941_v8 = vld [vmem:[%s12524_s0 + $0x1be8] sm:$0xff]  ;;  %v3229_v41 = vld [vmem:[%s12525_s1 + $0x58] sm:$0xff] }
 0x256   :  { %v2863_v21 = vadd.f32 %v10834_v38, %v2861_v7  ;;  %v3104_v18 = vadd.f32 %v10994_v27, %v3102_v37  ;;  %v3481_v42 = vadd.f32 %v3480_v40, %v3226_v57  ;;  %v3549_v54 = vadd.f32 %v3548_v25, %v3284_v45  ;;  %v3228_v38 = vld [vmem:[%s12525_s1 + $0x50] sm:$0xff]  ;;  %v3286_v27 = vld [vmem:[%s12525_s1 + $0x220] sm:$0xff]  ;;  %v3259_v60 = vld [vmem:[%s12525_s1 + $0x148] sm:$0xff] }
 0x257   :  { %v2620_v26 = vadd.f32 %v10845_v36, %v2618_v51  ;;  %v11156_v24 = vsel %vm1072_vm7, %v939_v63, 0.0  ;;  %v11159_v13 = vsel %vm1072_vm7, %v1057_v50, 0.0  ;;  %v3517_v1 = vadd.f32 %v3516_v19, %v3257_v46  ;;  %v1058_v36 = vld [vmem:[%s12524_s0 + $0x1f90] sm:$0xff]  ;;  %v1059_v63 = vld [vmem:[%s12524_s0 + $0x1f98] sm:$0xff]  ;;  %v3314_v19 = vld [vmem:[%s12525_s1 + $0x300] sm:$0xff] }
 0x258   :  { %v2865_v6 = vadd.f32 %v10856_v5, %v2863_v21  ;;  %v3106_v16 = vadd.f32 %v11014_v31, %v3104_v18  ;;  %v3482_v62 = vadd.f32 %v3481_v42, %v3227_v0  ;;  %v3550_v33 = vadd.f32 %v3549_v54, %v3285_v20  ;;  %v3287_v5 = vld [vmem:[%s12525_s1 + $0x228] sm:$0xff]  ;;  %v3260_v50 = vld [vmem:[%s12525_s1 + $0x150] sm:$0xff] }
 0x259   :  { %v2371_v30 = vadd.f32 %v10780_v17, %v2369_v12  ;;  %v2622_v57 = vadd.f32 %v10868_v59, %v2620_v26  ;;  %v11181_v45 = vsel %vm1072_vm7, %v940_v49, 0.0  ;;  %v3518_v31 = vadd.f32 %v3517_v1, %v3258_v29  ;;  %v942_v46 = vld [vmem:[%s12524_s0 + $0x1bf0] sm:$0xff]  ;;  %v3315_v49 = vld [vmem:[%s12525_s1 + $0x308] sm:$0xff] }
 0x25a   :  { %v2867_v17 = vadd.f32 %v10879_v39, %v2865_v6  ;;  %v3108_v59 = vadd.f32 %v11017_v32, %v3106_v16  ;;  %v3483_v7 = vadd.f32 %v3482_v62, %v3228_v38  ;;  %v3551_v37 = vadd.f32 %v3550_v33, %v3286_v27  ;;  %v3230_v39 = vld [vmem:[%s12525_s1 + $0x60] sm:$0xff]  ;;  %v3288_v32 = vld [vmem:[%s12525_s1 + $0x230] sm:$0xff]  ;;  %v3231_v26 = vld [vmem:[%s12525_s1 + $0x68] sm:$0xff] }
 0x25b   :  { %v2624_v40 = vadd.f32 %v10891_v47, %v2622_v57  ;;  %v11202_v25 = vsel %vm1072_vm7, %v941_v8, 0.0  ;;  %v11205_v12 = vsel %vm1072_vm7, %v1058_v36, 0.0  ;;  %v3519_v51 = vadd.f32 %v3518_v31, %v3259_v60  ;;  %v3261_v47 = vld [vmem:[%s12525_s1 + $0x158] sm:$0xff]  ;;  %v3262_v8 = vld [vmem:[%s12525_s1 + $0x160] sm:$0xff]  ;;  %v3316_v36 = vld [vmem:[%s12525_s1 + $0x310] sm:$0xff] }
 0x25c   :  { %v2869_v0 = vadd.f32 %v10902_v58, %v2867_v17  ;;  %v3110_v20 = vadd.f32 %v11041_v34, %v3108_v59  ;;  %v3484_v21 = vadd.f32 %v3483_v7, %v3229_v41  ;;  %v3552_v18 = vadd.f32 %v3551_v37, %v3287_v5  ;;  %v943_v58 = vld [vmem:[%s12524_s0 + $0x1bf8] sm:$0xff]  ;;  %v1060_v34 = vld [vmem:[%s12524_s0 + $0x1fa0] sm:$0xff] }
 0x25d   :  { %v2372_v29 = vrot.slane %v2371_v30, 4  ;;  %v2626_v42 = vadd.f32 %v10914_v11, %v2624_v40  ;;  %v11232_v54 = vsel %vm1072_vm7, %v1059_v63, 0.0  ;;  %v3520_v38 = vadd.f32 %v3519_v51, %v3260_v50  ;;  %v3289_v11 = vld [vmem:[%s12525_s1 + $0x238] sm:$0xff]  ;;  %v3290_v31 = vld [vmem:[%s12525_s1 + $0x240] sm:$0xff]  ;;  %v3264_v51 = vld [vmem:[%s12525_s1 + $0x170] sm:$0xff] }
 0x25e   :  { %v2871_v27 = vadd.f32 %v10928_v52, %v2869_v0  ;;  %v3112_v1 = vadd.f32 %v11044_v9, %v3110_v20  ;;  %v3485_v6 = vadd.f32 %v3484_v21, %v3230_v39  ;;  %v3553_v16 = vadd.f32 %v3552_v18, %v3288_v32  ;;  %v3232_v9 = vld [vmem:[%s12525_s1 + $0x70] sm:$0xff]  ;;  %v3317_v63 = vld [vmem:[%s12525_s1 + $0x318] sm:$0xff]  ;;  %v3291_v0 = vld [vmem:[%s12525_s1 + $0x248] sm:$0xff] }
 0x25f   :  { %v2628_v60 = vadd.f32 %v10924_v4, %v2626_v42  ;;  %v11250_v52 = vsel %vm1072_vm7, %v942_v46, 0.0  ;;  %v3521_v62 = vadd.f32 %v3520_v38, %v3261_v47  ;;  %v3585_v33 = vadd.f32 %v3315_v49, %v3314_v19  ;;  %v3263_v4 = vld [vmem:[%s12525_s1 + $0x168] sm:$0xff]  ;;  %v3233_v50 = vld [vmem:[%s12525_s1 + $0x78] sm:$0xff]  ;;  %v3318_v20 = vld [vmem:[%s12525_s1 + $0x320] sm:$0xff] }
 0x260   :  { %v2873_v57 = vadd.f32 %v10956_v23, %v2871_v27  ;;  %v3114_v41 = vadd.f32 %v11064_v14, %v3112_v1  ;;  %v11258_v5 = vsel %vm1072_vm7, %v1060_v34, 0.0  ;;  %v3486_v17 = vadd.f32 %v3485_v6, %v3231_v26  ;;  %v1061_v23 = vld [vmem:[%s12524_s0 + $0x1fa8] sm:$0xff]  ;;  %v1062_v14 = vld [vmem:[%s12524_s0 + $0x1fb0] sm:$0xff]  ;;  %v1063_v21 = vld [vmem:[%s12524_s0 + $0x1fb8] sm:$0xff] }
 0x261   :  { %v11276_v59 = vsel %vm1072_vm7, %v943_v58, 0.0  ;;  %v3522_v7 = vadd.f32 %v3521_v62, %v3262_v8  ;;  %v3554_v37 = vadd.f32 %v3553_v16, %v3289_v11  ;;  %v3586_v46 = vadd.f32 %v3585_v33, %v3316_v36  ;;  %v3319_v42 = vld [vmem:[%s12525_s1 + $0x328] sm:$0xff]  ;;  %v3346_v38 = vld [vmem:[%s12525_s1 + $0x400] sm:$0xff]  ;;  %v3320_v62 = vld [vmem:[%s12525_s1 + $0x330] sm:$0xff] }
 0x262   :  { %v2373_v40 = vadd.f32 %v2372_v29, %v2371_v30  ;;  %v2875_v39 = vadd.f32 %v10991_v61, %v2873_v57  ;;  %v3116_v32 = vadd.f32 %v11067_v3, %v3114_v41  ;;  %v3487_v47 = vadd.f32 %v3486_v17, %v3232_v9  ;;  %v3234_v61 = vld [vmem:[%s12525_s1 + $0x80] sm:$0xff]  ;;  %v3292_v29 = vld [vmem:[%s12525_s1 + $0x250] sm:$0xff]  ;;  %v3347_v27 = vld [vmem:[%s12525_s1 + $0x408] sm:$0xff] }
 0x263   :  { %v2630_v19 = vadd.f32 %v10952_v15, %v2628_v60  ;;  %v3523_v3 = vadd.f32 %v3522_v7, %v3263_v4  ;;  %v3555_v30 = vadd.f32 %v3554_v37, %v3290_v31  ;;  %v3587_v49 = vadd.f32 %v3586_v46, %v3317_v63  ;;  %v3265_v15 = vld [vmem:[%s12525_s1 + $0x178] sm:$0xff]  ;;  %v3266_v60 = vld [vmem:[%s12525_s1 + $0x180] sm:$0xff] }
 0x264   :  { %v2877_v18 = vadd.f32 %v11011_v56, %v2875_v39  ;;  %v3118_v58 = vadd.f32 %v11081_v53, %v3116_v32  ;;  %v11302_v34 = vsel %vm1072_vm7, %v1061_v23, 0.0  ;;  %v3488_v26 = vadd.f32 %v3487_v47, %v3233_v50  ;;  %v3235_v53 = vld [vmem:[%s12525_s1 + $0x88] sm:$0xff]  ;;  %v3293_v9 = vld [vmem:[%s12525_s1 + $0x258] sm:$0xff] }
 0x265   :  { %v11314_v56 = vsel %vm1072_vm7, %v1062_v14, 0.0  ;;  %v3524_v1 = vadd.f32 %v3523_v3, %v3264_v51  ;;  %v3556_v8 = vadd.f32 %v3555_v30, %v3291_v0  ;;  %v3588_v11 = vadd.f32 %v3587_v49, %v3318_v20  ;;  %v3267_v23 = vld [vmem:[%s12525_s1 + $0x188] sm:$0xff]  ;;  %v3321_v14 = vld [vmem:[%s12525_s1 + $0x338] sm:$0xff]  ;;  %v3268_v20 = vld [vmem:[%s12525_s1 + $0x190] sm:$0xff] }
 0x266   :  { %v2374_v36 = vrot.slane %v2373_v40, 2  ;;  %v2879_v6 = vadd.f32 %v11061_v48, %v2877_v18  ;;  %v3120_v16 = vadd.f32 %v11106_v22, %v3118_v58  ;;  %v3489_v33 = vadd.f32 %v3488_v26, %v3234_v61  ;;  %v3236_v48 = vld [vmem:[%s12525_s1 + $0x90] sm:$0xff]  ;;  %v3295_v47 = vld [vmem:[%s12525_s1 + $0x268] sm:$0xff] }
 0x267   :  { %v2632_v57 = vadd.f32 %v10985_v44, %v2630_v19  ;;  %v3348_v22 = vld [vmem:[%s12525_s1 + $0x410] sm:$0xff]  ;;  %v3525_v41 = vadd.f32 %v3524_v1, %v3265_v15  ;;  %v3557_v4 = vadd.f32 %v3556_v8, %v3292_v29  ;;  %v3589_v31 = vadd.f32 %v3588_v11, %v3319_v42  ;;  %v3294_v44 = vld [vmem:[%s12525_s1 + $0x260] sm:$0xff]  ;;  %v3269_v42 = vld [vmem:[%s12525_s1 + $0x198] sm:$0xff] }
 0x268   :  { %v2881_v63 = vadd.f32 %v11089_v2, %v2879_v6  ;;  %v3122_v17 = vadd.f32 %v11116_v28, %v3120_v16  ;;  %v3490_v50 = vadd.f32 %v3489_v33, %v3235_v53  ;;  %v3622_v7 = vadd.f32 %v3347_v27, %v3346_v38  ;;  %v3237_v2 = vld [vmem:[%s12525_s1 + $0x98] sm:$0xff]  ;;  %v3322_v19 = vld [vmem:[%s12525_s1 + $0x340] sm:$0xff]  ;;  %v3323_v26 = vld [vmem:[%s12525_s1 + $0x348] sm:$0xff] }
 0x269   :  { %v11355_v37 = vsel %vm1072_vm7, %v1063_v21, 0.0  ;;  %v3349_v28 = vld [vmem:[%s12525_s1 + $0x418] sm:$0xff]  ;;  %v3526_v46 = vadd.f32 %v3525_v41, %v3266_v60  ;;  %v3558_v39 = vadd.f32 %v3557_v4, %v3293_v9  ;;  %v3590_v32 = vadd.f32 %v3589_v31, %v3320_v62  ;;  %v3239_v38 = vld [vmem:[%s12525_s1 + $0xa8] sm:$0xff]  ;;  %v3270_v16 = vld [vmem:[%s12525_s1 + $0x1a0] sm:$0xff] }
 0x26a   :  { %v2883_v51 = vadd.f32 %v11113_v43, %v2881_v63  ;;  %v3124_v0 = vadd.f32 %v11138_v10, %v3122_v17  ;;  %v3491_v61 = vadd.f32 %v3490_v50, %v3236_v48  ;;  %v3623_v3 = vadd.f32 %v3622_v7, %v3348_v22  ;;  %v1064_v43 = vld [vmem:[%s12524_s0 + $0x1fc0] sm:$0xff]  ;;  %v3297_v60 = vld [vmem:[%s12525_s1 + $0x278] sm:$0xff]  ;;  %v3324_v9 = vld [vmem:[%s12525_s1 + $0x350] sm:$0xff] }
 0x26b   :  { %v2375_v30 = vadd.f32 %v2374_v36, %v2373_v40  ;;  %v3238_v10 = vld [vmem:[%s12525_s1 + $0xa0] sm:$0xff]  ;;  %v3527_v49 = vadd.f32 %v3526_v46, %v3267_v23  ;;  %v3559_v21 = vadd.f32 %v3558_v39, %v3294_v44  ;;  %v3591_v18 = vadd.f32 %v3590_v32, %v3321_v14  ;;  %v3296_v40 = vld [vmem:[%s12525_s1 + $0x270] sm:$0xff]  ;;  %v3271_v23 = vld [vmem:[%s12525_s1 + $0x1a8] sm:$0xff] }
 0x26c   :  { %v2633_v58 = vrot.slane %v2632_v57, 4  ;;  %v2885_v15 = vadd.f32 %v11156_v24, %v2883_v51  ;;  %v3126_v29 = vadd.f32 %v11159_v13, %v3124_v0  ;;  %v3492_v53 = vadd.f32 %v3491_v61, %v3237_v2  ;;  %v3350_v24 = vld [vmem:[%s12525_s1 + $0x420] sm:$0xff]  ;;  %v3240_v48 = vld [vmem:[%s12525_s1 + $0xb0] sm:$0xff]  ;;  %v3325_v14 = vld [vmem:[%s12525_s1 + $0x358] sm:$0xff] }
 0x26d   :  { %v3528_v13 = vadd.f32 %v3527_v49, %v3268_v20  ;;  %v3560_v27 = vadd.f32 %v3559_v21, %v3295_v47  ;;  %v3592_v1 = vadd.f32 %v3591_v18, %v3322_v19  ;;  %v3624_v8 = vadd.f32 %v3623_v3, %v3349_v28  ;;  %v3298_v44 = vld [vmem:[%s12525_s1 + $0x280] sm:$0xff]  ;;  %v3272_v0 = vld [vmem:[%s12525_s1 + $0x1b0] sm:$0xff]  ;;  %v3299_v20 = vld [vmem:[%s12525_s1 + $0x288] sm:$0xff] }
 0x26e   :  { %v2887_v11 = vadd.f32 %v11181_v45, %v2885_v15  ;;  %v3128_v36 = vadd.f32 %v11205_v12, %v3126_v29  ;;  %v11400_v6 = vsel %vm1072_vm7, %v1064_v43, 0.0  ;;  %v3493_v62 = vadd.f32 %v3492_v53, %v3238_v10  ;;  %v1065_v45 = vld [vmem:[%s12524_s0 + $0x1fc8] sm:$0xff]  ;;  %v1066_v12 = vld [vmem:[%s12524_s0 + $0x1fd0] sm:$0xff]  ;;  %v3326_v47 = vld [vmem:[%s12525_s1 + $0x360] sm:$0xff] }
 0x26f   :  { %v2376_v33 = vrot.slane %v2375_v30, 1  ;;  %v3529_v22 = vadd.f32 %v3528_v13, %v3269_v42  ;;  %v3561_v41 = vadd.f32 %v3560_v27, %v3296_v40  ;;  %v3593_v4 = vadd.f32 %v3592_v1, %v3323_v26  ;;  %v3242_v61 = vld [vmem:[%s12525_s1 + $0xc0] sm:$0xff]  ;;  %v3352_v3 = vld [vmem:[%s12525_s1 + $0x430] sm:$0xff]  ;;  %v3379_v43 = vld [vmem:[%s12525_s1 + $0x508] sm:$0xff] }
 0x270   :  { %v11420_v31 = vadd.f32 %v2633_v58, %v2632_v57  ;;  %v2889_v63 = vadd.f32 %v11202_v25, %v2887_v11  ;;  %v3130_v17 = vadd.f32 %v11232_v54, %v3128_v36  ;;  %v3494_v50 = vadd.f32 %v3493_v62, %v3239_v38  ;;  %v3241_v57 = vld [vmem:[%s12525_s1 + $0xb8] sm:$0xff]  ;;  %v3351_v25 = vld [vmem:[%s12525_s1 + $0x428] sm:$0xff]  ;;  %v3378_v54 = vld [vmem:[%s12525_s1 + $0x500] sm:$0xff] }
 0x271   :  { %v3530_v7 = vadd.f32 %v3529_v22, %v3270_v16  ;;  %v3562_v2 = vadd.f32 %v3561_v41, %v3297_v60  ;;  %v3594_v28 = vadd.f32 %v3593_v4, %v3324_v9  ;;  %v3625_v46 = vadd.f32 %v3624_v8, %v3350_v24  ;;  %v3273_v15 = vld [vmem:[%s12525_s1 + $0x1b8] sm:$0xff]  ;;  %v3300_v29 = vld [vmem:[%s12525_s1 + $0x290] sm:$0xff]  ;;  %v3327_v42 = vld [vmem:[%s12525_s1 + $0x368] sm:$0xff] }
 0x272   :  { %v2891_v39 = vadd.f32 %v11250_v52, %v2889_v63  ;;  %v3132_v32 = vadd.f32 %v11258_v5, %v3130_v17  ;;  %v11445_v51 = vsel %vm1072_vm7, %v1065_v45, 0.0  ;;  %v3495_v19 = vadd.f32 %v3494_v50, %v3240_v48  ;;  %v1067_v52 = vld [vmem:[%s12524_s0 + $0x1fd8] sm:$0xff]  ;;  %v3380_v53 = vld [vmem:[%s12525_s1 + $0x510] sm:$0xff]  ;;  %v3274_v11 = vld [vmem:[%s12525_s1 + $0x1c0] sm:$0xff] }
 0x273   :  { %v11459_v5 = vadd.f32 %v2376_v33, %v2375_v30  ;;  %v3531_v10 = vadd.f32 %v3530_v7, %v3271_v23  ;;  %v3563_v49 = vadd.f32 %v3562_v2, %v3298_v44  ;;  %v3595_v21 = vadd.f32 %v3594_v28, %v3325_v14  ;;  %v3353_v26 = vld [vmem:[%s12525_s1 + $0x438] sm:$0xff]  ;;  %v3328_v16 = vld [vmem:[%s12525_s1 + $0x370] sm:$0xff]  ;;  %v3243_v63 = vld [vmem:[%s12525_s1 + $0xc8] sm:$0xff] }
 0x274   :  { %v2635_v18 = vrot.slane %v11420_v31, 2  ;;  %v3134_v30 = vadd.f32 %v11302_v34, %v3132_v32  ;;  %v11473_v58 = vsel %vm1072_vm7, %v1066_v12, 0.0  ;;  %v3496_v40 = vadd.f32 %v3495_v19, %v3241_v57  ;;  %v1068_v34 = vld [vmem:[%s12524_s0 + $0x1fe0] sm:$0xff]  ;;  %v3301_v36 = vld [vmem:[%s12525_s1 + $0x298] sm:$0xff]  ;;  %v3355_v14 = vld [vmem:[%s12525_s1 + $0x448] sm:$0xff] }
 0x275   :  { %v3532_v38 = vadd.f32 %v3531_v10, %v3272_v0  ;;  %v3564_v24 = vadd.f32 %v3563_v49, %v3299_v20  ;;  %v3596_v13 = vadd.f32 %v3595_v21, %v3326_v47  ;;  %v3626_v27 = vadd.f32 %v3625_v46, %v3351_v25  ;;  %v3381_v62 = vld [vmem:[%s12525_s1 + $0x518] sm:$0xff]  ;;  %v3302_v17 = vld [vmem:[%s12525_s1 + $0x2a0] sm:$0xff]  ;;  %v3303_v32 = vld [vmem:[%s12525_s1 + $0x2a8] sm:$0xff] }
 0x276   :  { %v2893_v1 = vadd.f32 %v11276_v59, %v2891_v39  ;;  %v3136_v8 = vadd.f32 %v11314_v56, %v3134_v30  ;;  %v3497_v60 = vadd.f32 %v3496_v40, %v3242_v61  ;;  %v3659_v9 = vadd.f32 %v3379_v43, %v3378_v54  ;;  %v1069_v59 = vld [vmem:[%s12524_s0 + $0x1fe8] sm:$0xff]  ;;  %v3354_v56 = vld [vmem:[%s12525_s1 + $0x440] sm:$0xff]  ;;  %v3329_v23 = vld [vmem:[%s12525_s1 + $0x378] sm:$0xff] }
 0x277   :  { %v3533_v45 = vadd.f32 %v3532_v38, %v3273_v15  ;;  %v3565_v12 = vadd.f32 %v3564_v24, %v3300_v29  ;;  %v3597_v33 = vadd.f32 %v3596_v13, %v3327_v42  ;;  %v3627_v48 = vadd.f32 %v3626_v27, %v3352_v3  ;;  %v3382_v50 = vld [vmem:[%s12525_s1 + $0x520] sm:$0xff]  ;;  %v3275_v39 = vld [vmem:[%s12525_s1 + $0x1c8] sm:$0xff]  ;;  %v3244_v49 = vld [vmem:[%s12525_s1 + $0xd0] sm:$0xff] }
 0x278   :  { %v3138_v22 = vadd.f32 %v11355_v37, %v3136_v8  ;;  %v3145_v41 = vsel %vm1072_vm7, %v1067_v52, 0.0  ;;  %v11516_v4 = vsel %vm1072_vm7, %v1068_v34, 0.0  ;;  %v3660_v44 = vadd.f32 %v3659_v9, %v3380_v53  ;;  %v1070_v37 = vld [vmem:[%s12524_s0 + $0x1ff0] sm:$0xff]  ;;  %v3330_v0 = vld [vmem:[%s12525_s1 + $0x380] sm:$0xff]  ;;  %v3357_v15 = vld [vmem:[%s12525_s1 + $0x458] sm:$0xff] }
 0x279   :  { %v3534_v57 = vadd.f32 %v3533_v45, %v3274_v11  ;;  %v3566_v25 = vadd.f32 %v3565_v12, %v3301_v36  ;;  %v3598_v54 = vadd.f32 %v3597_v33, %v3328_v16  ;;  %v3628_v7 = vadd.f32 %v3627_v48, %v3353_v26  ;;  %v3304_v21 = vld [vmem:[%s12525_s1 + $0x2b0] sm:$0xff]  ;;  %v3305_v27 = vld [vmem:[%s12525_s1 + $0x2b8] sm:$0xff]  ;;  %v3358_v36 = vld [vmem:[%s12525_s1 + $0x460] sm:$0xff] }
 0x27a   :  { %v2636_v2 = vadd.f32 %v2635_v18, %v11420_v31  ;;  %v2894_v28 = vrot.slane %v2893_v1, 4  ;;  %v3140_v46 = vadd.f32 %v11400_v6, %v3138_v22  ;;  %v3661_v20 = vadd.f32 %v3660_v44, %v3381_v62  ;;  %v3356_v31 = vld [vmem:[%s12525_s1 + $0x450] sm:$0xff]  ;;  %v3383_v6 = vld [vmem:[%s12525_s1 + $0x528] sm:$0xff]  ;;  %v3245_v12 = vld [vmem:[%s12525_s1 + $0xd8] sm:$0xff] }
 0x27b   :  { %v3498_v47 = vadd.f32 %v3497_v60, %v3243_v63  ;;  %v3567_v19 = vadd.f32 %v3566_v25, %v3302_v17  ;;  %v3599_v52 = vadd.f32 %v3598_v54, %v3329_v23  ;;  %v3629_v61 = vadd.f32 %v3628_v7, %v3354_v56  ;;  %v3331_v18 = vld [vmem:[%s12525_s1 + $0x388] sm:$0xff]  ;;  %v3384_v29 = vld [vmem:[%s12525_s1 + $0x530] sm:$0xff]  ;;  %v3306_v33 = vld [vmem:[%s12525_s1 + $0x2c0] sm:$0xff] }
 0x27c   :  { %v3142_v3 = vadd.f32 %v11445_v51, %v3140_v46  ;;  %v3149_v43 = vsel %vm1072_vm7, %v1069_v59, 0.0  ;;  %v11556_v10 = vsel %vm1072_vm7, %v1070_v37, 0.0  ;;  %v3662_v30 = vadd.f32 %v3661_v20, %v3382_v50  ;;  %v1071_v51 = vld [vmem:[%s12524_s0 + $0x1ff8] sm:$0xff]  ;;  %v3276_v13 = vld [vmem:[%s12525_s1 + $0x1d0] sm:$0xff]  ;;  %v3411_v63 = vld [vmem:[%s12525_s1 + $0x608] sm:$0xff] }
 0x27d   :  { %v3535_v42 = vadd.f32 %v3534_v57, %v3275_v39  ;;  %v3568_v40 = vadd.f32 %v3567_v19, %v3303_v32  ;;  %v3600_v34 = vadd.f32 %v3599_v52, %v3330_v0  ;;  %v3630_v26 = vadd.f32 %v3629_v61, %v3355_v14  ;;  %v3332_v8 = vld [vmem:[%s12525_s1 + $0x390] sm:$0xff]  ;;  %v3333_v48 = vld [vmem:[%s12525_s1 + $0x398] sm:$0xff]  ;;  %v3307_v54 = vld [vmem:[%s12525_s1 + $0x2c8] sm:$0xff] }
 0x27e   :  { %v2637_v53 = vrot.slane %v2636_v2, 1  ;;  %v2895_v38 = vadd.f32 %v2894_v28, %v2893_v1  ;;  %v3144_v24 = vadd.f32 %v11473_v58, %v3142_v3  ;;  %v3663_v11 = vadd.f32 %v3662_v30, %v3383_v6  ;;  %v3385_v58 = vld [vmem:[%s12525_s1 + $0x538] sm:$0xff]  ;;  %v3386_v1 = vld [vmem:[%s12525_s1 + $0x540] sm:$0xff]  ;;  %v3308_v19 = vld [vmem:[%s12525_s1 + $0x2d0] sm:$0xff] }
 0x27f   :  { %v3499_v16 = vadd.f32 %v3498_v47, %v3244_v49  ;;  %v3569_v60 = vadd.f32 %v3568_v40, %v3304_v21  ;;  %v3601_v9 = vadd.f32 %v3600_v34, %v3331_v18  ;;  %v3631_v59 = vadd.f32 %v3630_v26, %v3356_v31  ;;  %v3277_v25 = vld [vmem:[%s12525_s1 + $0x1d8] sm:$0xff]  ;;  %v3334_v7 = vld [vmem:[%s12525_s1 + $0x3a0] sm:$0xff]  ;;  %v3335_v52 = vld [vmem:[%s12525_s1 + $0x3a8] sm:$0xff] }
 0x280   :  { %v3146_v56 = vadd.f32 %v3145_v41, %v3144_v24  ;;  %v3153_v62 = vsel %vm1072_vm7, %v1071_v51, 0.0  ;;  %v3182_v45 = vsel %vm3181_vm0, %v8287_v55, %v8252_v35  ;;  %v3664_v22 = vadd.f32 %v3663_v11, %v3384_v29  ;;  %v3359_v41 = vld [vmem:[%s12525_s1 + $0x468] sm:$0xff]  ;;  %v3410_v55 = vld [vmem:[%s12525_s1 + $0x600] sm:$0xff]  ;;  %v3388_v49 = vld [vmem:[%s12525_s1 + $0x550] sm:$0xff] }
 0x281   :  { %v3387_v35 = vld [vmem:[%s12525_s1 + $0x548] sm:$0xff]  ;;  %v3536_v17 = vadd.f32 %v3535_v42, %v3276_v13  ;;  %v3570_v23 = vadd.f32 %v3569_v60, %v3305_v27  ;;  %v3602_v44 = vadd.f32 %v3601_v9, %v3332_v8  ;;  %v3632_v37 = vadd.f32 %v3631_v59, %v3357_v15  ;;  %v12536_v31 = vld [vmem:[#allocation3_spill] sm:$0xff]  ;;  %v3413_v21 = vld [vmem:[%s12525_s1 + $0x618] sm:$0xff] }
 0x282   :  { %v11620_v14 = vadd.f32 %v2637_v53, %v2636_v2  ;;  %v2896_v50 = vrot.slane %v2895_v38, 2  ;;  %v3148_v57 = vadd.f32 %v11516_v4, %v3146_v56  ;;  %v3360_v2 = vld [vmem:[%s12525_s1 + $0x470] sm:$0xff]  ;;  %v3665_v28 = vadd.f32 %v3664_v22, %v3385_v58  ;;  %v3246_v47 = vld [vmem:[%s12525_s1 + $0xe0] sm:$0xff]  ;;  %v3309_v34 = vld [vmem:[%s12525_s1 + $0x2d8] sm:$0xff] }
 0x283   :  { %v3412_v4 = vld [vmem:[%s12525_s1 + $0x610] sm:$0xff]  ;;  %v3500_v46 = vadd.f32 %v3499_v16, %v3245_v12  ;;  %v3571_v39 = vadd.f32 %v3570_v23, %v3306_v33  ;;  %v3603_v32 = vadd.f32 %v3602_v44, %v3333_v48  ;;  %v3633_v0 = vadd.f32 %v3632_v37, %v3358_v36  ;;  %v3278_v40 = vld [vmem:[%s12525_s1 + $0x1e0] sm:$0xff]  ;;  %v3247_v60 = vld [vmem:[%s12525_s1 + $0xe8] sm:$0xff] }
 0x284   :  { %v3150_v20 = vadd.f32 %v3149_v43, %v3148_v57  ;;  %v3184_v6 = vsel %vm3183_vm1, %v12536_v31, %v3182_v45  ;;  %v3666_v61 = vadd.f32 %v3665_v28, %v3386_v1  ;;  %v3696_v3 = vadd.f32 %v3411_v63, %v3410_v55  ;;  %v3361_v43 = vld [vmem:[%s12525_s1 + $0x478] sm:$0xff]  ;;  %v3336_v26 = vld [vmem:[%s12525_s1 + $0x3b0] sm:$0xff]  ;;  %v3414_v13 = vld [vmem:[%s12525_s1 + $0x620] sm:$0xff] }
 0x285   :  { %v3537_v18 = vadd.f32 %v3536_v17, %v3277_v25  ;;  %v3572_v30 = vadd.f32 %v3571_v39, %v3307_v54  ;;  %v3604_v51 = vadd.f32 %v3603_v32, %v3334_v7  ;;  %v3634_v15 = vadd.f32 %v3633_v0, %v3359_v41  ;;  %v12537_v1 = vld [vmem:[#allocation4_spill] sm:$0xff]  ;;  %v3310_v9 = vld [vmem:[%s12525_s1 + $0x2e0] sm:$0xff]  ;;  %v3337_v59 = vld [vmem:[%s12525_s1 + $0x3b8] sm:$0xff] }
 0x286   :  { %v2897_v29 = vadd.f32 %v2896_v50, %v2895_v38  ;;  %v3152_v42 = vadd.f32 %v11556_v10, %v3150_v20  ;;  %v3667_v53 = vadd.f32 %v3666_v61, %v3387_v35  ;;  %v3697_v24 = vadd.f32 %v3696_v3, %v3412_v4  ;;  %v3362_v38 = vld [vmem:[%s12525_s1 + $0x480] sm:$0xff]  ;;  %v3389_v10 = vld [vmem:[%s12525_s1 + $0x558] sm:$0xff]  ;;  %v3415_v33 = vld [vmem:[%s12525_s1 + $0x628] sm:$0xff] }
 0x287   :  { %v3501_v27 = vadd.f32 %v3500_v46, %v3246_v47  ;;  %v3573_v8 = vadd.f32 %v3572_v30, %v3308_v19  ;;  %v3605_v11 = vadd.f32 %v3604_v51, %v3335_v52  ;;  %v3635_v36 = vadd.f32 %v3634_v15, %v3360_v2  ;;  %v3390_v12 = vld [vmem:[%s12525_s1 + $0x560] sm:$0xff]  ;;  %v3279_v17 = vld [vmem:[%s12525_s1 + $0x1e8] sm:$0xff]  ;;  %v3392_v25 = vld [vmem:[%s12525_s1 + $0x570] sm:$0xff] }
 0x288   :  { %v3154_v58 = vadd.f32 %v3153_v62, %v3152_v42  ;;  %v3186_v16 = vsel %vm3185_vm2, %v12537_v1, %v3184_v6  ;;  %v3668_v56 = vadd.f32 %v3667_v53, %v3388_v49  ;;  %v3698_v45 = vadd.f32 %v3697_v24, %v3413_v21  ;;  %v3363_v62 = vld [vmem:[%s12525_s1 + $0x488] sm:$0xff]  ;;  %v3338_v44 = vld [vmem:[%s12525_s1 + $0x3c0] sm:$0xff]  ;;  %v3416_v54 = vld [vmem:[%s12525_s1 + $0x630] sm:$0xff] }
 0x289   :  { %v3538_v48 = vadd.f32 %v3537_v18, %v3278_v40  ;;  %v3574_v22 = vadd.f32 %v3573_v8, %v3309_v34  ;;  %v3606_v41 = vadd.f32 %v3605_v11, %v3336_v26  ;;  %v3636_v35 = vadd.f32 %v3635_v36, %v3361_v43  ;;  %v3311_v23 = vld [vmem:[%s12525_s1 + $0x2e8] sm:$0xff]  ;;  %v3248_v32 = vld [vmem:[%s12525_s1 + $0xf0] sm:$0xff]  ;;  %v3365_v47 = vld [vmem:[%s12525_s1 + $0x498] sm:$0xff] }
 0x28a   :  { %v2898_v55 = vrot.slane %v2897_v29, 1  ;;  %v3155_v63 = vrot.slane %v3154_v58, 4  ;;  %v3669_v37 = vadd.f32 %v3668_v56, %v3389_v10  ;;  %v3699_v50 = vadd.f32 %v3698_v45, %v3414_v13  ;;  %v3391_v57 = vld [vmem:[%s12525_s1 + $0x568] sm:$0xff]  ;;  %v3364_v20 = vld [vmem:[%s12525_s1 + $0x490] sm:$0xff]  ;;  %v3417_v19 = vld [vmem:[%s12525_s1 + $0x638] sm:$0xff] }
 0x28b   :  { %v3502_v7 = vadd.f32 %v3501_v27, %v3247_v60  ;;  %v3575_v2 = vadd.f32 %v3574_v22, %v3310_v9  ;;  %v3607_v28 = vadd.f32 %v3606_v41, %v3337_v59  ;;  %v3637_v4 = vadd.f32 %v3636_v35, %v3362_v38  ;;  %v3339_v0 = vld [vmem:[%s12525_s1 + $0x3c8] sm:$0xff]  ;;  %v3280_v21 = vld [vmem:[%s12525_s1 + $0x1f0] sm:$0xff]  ;;  %v3394_v40 = vld [vmem:[%s12525_s1 + $0x580] sm:$0xff] }
 0x28c   :  { %v3156_v46 = vadd.f32 %v3155_v63, %v3154_v58  ;;  %v3188_v39 = vsel %vm3187_vm3, %v11459_v5, %v3186_v16  ;;  %v3670_v31 = vadd.f32 %v3669_v37, %v3390_v12  ;;  %v3700_v6 = vadd.f32 %v3699_v50, %v3415_v33  ;;  %v3393_v5 = vld [vmem:[%s12525_s1 + $0x578] sm:$0xff]  ;;  %v3312_v18 = vld [vmem:[%s12525_s1 + $0x2f0] sm:$0xff]  ;;  %v3418_v34 = vld [vmem:[%s12525_s1 + $0x640] sm:$0xff] }
 0x28d   :  { %v3539_v52 = vadd.f32 %v3538_v48, %v3279_v17  ;;  %v3576_v61 = vadd.f32 %v3575_v2, %v3311_v23  ;;  %v3608_v3 = vadd.f32 %v3607_v28, %v3338_v44  ;;  %v3638_v43 = vadd.f32 %v3637_v4, %v3363_v62  ;;  %v3340_v30 = vld [vmem:[%s12525_s1 + $0x3d0] sm:$0xff]  ;;  %v3442_v26 = vld [vmem:[%s12525_s1 + $0x700] sm:$0xff]  ;;  %v3443_v53 = vld [vmem:[%s12525_s1 + $0x708] sm:$0xff] }
 0x28e   :  { %v3157_v49 = vrot.slane %v3156_v46, 2  ;;  %v3671_v51 = vadd.f32 %v3670_v31, %v3391_v57  ;;  %v3701_v15 = vadd.f32 %v3700_v6, %v3416_v54  ;;  %v2899_v42 = vadd.f32 %v2898_v55, %v2897_v29  ;;  %v3249_v27 = vld [vmem:[%s12525_s1 + $0xf8] sm:$0xff]  ;;  %v3366_v11 = vld [vmem:[%s12525_s1 + $0x4a0] sm:$0xff]  ;;  %v3367_v1 = vld [vmem:[%s12525_s1 + $0x4a8] sm:$0xff] }
 0x28f   :  { %v3503_v24 = vadd.f32 %v3502_v7, %v3248_v32  ;;  %v3609_v38 = vadd.f32 %v3608_v3, %v3339_v0  ;;  %v3639_v10 = vadd.f32 %v3638_v43, %v3364_v20  ;;  %v3190_v13 = vsel %vm3189_vm4, %v11620_v14, %v3188_v39  ;;  %v3341_v8 = vld [vmem:[%s12525_s1 + $0x3d8] sm:$0xff]  ;;  %v3419_v14 = vld [vmem:[%s12525_s1 + $0x648] sm:$0xff]  ;;  %v3444_v16 = vld [vmem:[%s12525_s1 + $0x710] sm:$0xff] }
 0x290   :  { %v3158_v29 = vadd.f32 %v3157_v49, %v3156_v46  ;;  %v3672_v36 = vadd.f32 %v3671_v51, %v3392_v25  ;;  %v3702_v58 = vadd.f32 %v3701_v15, %v3417_v19  ;;  %v3540_v60 = vadd.f32 %v3539_v52, %v3280_v21  ;;  %v3281_v62 = vld [vmem:[%s12525_s1 + $0x1f8] sm:$0xff]  ;;  %v3342_v33 = vld [vmem:[%s12525_s1 + $0x3e0] sm:$0xff]  ;;  %v3395_v55 = vld [vmem:[%s12525_s1 + $0x588] sm:$0xff] }
 0x291   :  { %v3577_v9 = vadd.f32 %v3576_v61, %v3312_v18  ;;  %v3610_v59 = vadd.f32 %v3609_v38, %v3340_v30  ;;  %v3640_v56 = vadd.f32 %v3639_v10, %v3365_v47  ;;  %v3313_v12 = vld [vmem:[%s12525_s1 + $0x2f8] sm:$0xff]  ;;  %v3733_v41 = vadd.f32 %v3443_v53, %v3442_v26  ;;  %v3420_v63 = vld [vmem:[%s12525_s1 + $0x650] sm:$0xff]  ;;  %v3343_v57 = vld [vmem:[%s12525_s1 + $0x3e8] sm:$0xff] }
 0x292   :  { %v3159_v45 = vrot.slane %v3158_v29, 1  ;;  %v3673_v48 = vadd.f32 %v3672_v36, %v3393_v5  ;;  %v3703_v22 = vadd.f32 %v3702_v58, %v3418_v34  ;;  %v3192_v35 = vsel %vm3191_vm5, %v2899_v42, %v3190_v13  ;;  %v3445_v17 = vld [vmem:[%s12525_s1 + $0x718] sm:$0xff]  ;;  %v3368_v25 = vld [vmem:[%s12525_s1 + $0x4b0] sm:$0xff]  ;;  %v3446_v46 = vld [vmem:[%s12525_s1 + $0x720] sm:$0xff] }
 0x293   :  { %v3504_v23 = vadd.f32 %v3503_v24, %v3249_v27  ;;  %v3611_v44 = vadd.f32 %v3610_v59, %v3341_v8  ;;  %v3641_v37 = vadd.f32 %v3640_v56, %v3366_v11  ;;  %v3734_v2 = vadd.f32 %v3733_v41, %v3444_v16  ;;  %v3396_v28 = vld [vmem:[%s12525_s1 + $0x590] sm:$0xff]  ;;  %v3421_v4 = vld [vmem:[%s12525_s1 + $0x658] sm:$0xff]  ;;  %v3422_v3 = vld [vmem:[%s12525_s1 + $0x660] sm:$0xff] }
 0x294   :  { %v3160_v50 = vadd.f32 %v3159_v45, %v3158_v29  ;;  %v3674_v54 = vadd.f32 %v3673_v48, %v3394_v40  ;;  %v3704_v7 = vadd.f32 %v3703_v22, %v3419_v14  ;;  %v3541_v39 = vadd.f32 %v3540_v60, %v3281_v62  ;;  %v3344_v6 = vld [vmem:[%s12525_s1 + $0x3f0] sm:$0xff]  ;;  %v3369_v47 = vld [vmem:[%s12525_s1 + $0x4b8] sm:$0xff]  ;;  %v3447_v43 = vld [vmem:[%s12525_s1 + $0x728] sm:$0xff] }
 0x295   :  { %v3578_v32 = vadd.f32 %v3577_v9, %v3313_v12  ;;  %v3612_v0 = vadd.f32 %v3611_v44, %v3342_v33  ;;  %v3642_v20 = vadd.f32 %v3641_v37, %v3367_v1  ;;  %v3735_v52 = vadd.f32 %v3734_v2, %v3445_v17  ;;  %v3397_v61 = vld [vmem:[%s12525_s1 + $0x598] sm:$0xff]  ;;  %v3370_v30 = vld [vmem:[%s12525_s1 + $0x4c0] sm:$0xff]  ;;  %v3423_v26 = vld [vmem:[%s12525_s1 + $0x668] sm:$0xff] }
 0x296   :  { %v3194_v31 = vsel %vm3193_vm6, %v3160_v50, %v3192_v35  ;;  %v3675_v5 = vadd.f32 %v3674_v54, %v3395_v55  ;;  %v3705_v19 = vadd.f32 %v3704_v7, %v3420_v63  ;;  %v3345_v18 = vld [vmem:[%s12525_s1 + $0x3f8] sm:$0xff]  ;;  %v3505_v51 = vrot.slane %v3504_v23, 4  ;;  %v3398_v34 = vld [vmem:[%s12525_s1 + $0x5a0] sm:$0xff]  ;;  %v3448_v53 = vld [vmem:[%s12525_s1 + $0x730] sm:$0xff] }
 0x297   :  { %4928 = vmatmul.msk.f32.vlgmr.msra.gmra.mxu0 %vm1072_vm7, %v3194_v31  ;;  %v3613_v49 = vadd.f32 %v3612_v0, %v3343_v57  ;;  %v3643_v21 = vadd.f32 %v3642_v20, %v3368_v25  ;;  %v3736_v40 = vadd.f32 %v3735_v52, %v3446_v46  ;;  %v3542_v24 = vrot.slane %v3541_v39, 4  ;;  %v3371_v13 = vld [vmem:[%s12525_s1 + $0x4c8] sm:$0xff]  ;;  %v3424_v58 = vld [vmem:[%s12525_s1 + $0x670] sm:$0xff]  ;;  %v3449_v1 = vld [vmem:[%s12525_s1 + $0x738] sm:$0xff] }
 0x298   :  { %v3676_v15 = vadd.f32 %v3675_v5, %v3396_v28  ;;  %v3706_v42 = vadd.f32 %v3705_v19, %v3421_v4  ;;  %v3579_v38 = vrot.slane %v3578_v32, 4  ;;  %v3399_v36 = vld [vmem:[%s12525_s1 + $0x5a8] sm:$0xff]  ;;  %v3372_v60 = vld [vmem:[%s12525_s1 + $0x4d0] sm:$0xff]  ;;  %v3506_v9 = vadd.f32 %v3505_v51, %v3504_v23  ;;  %v3425_v12 = vld [vmem:[%s12525_s1 + $0x678] sm:$0xff] }
 0x299   :  { %v3614_v10 = vadd.f32 %v3613_v49, %v3344_v6  ;;  %v3644_v29 = vadd.f32 %v3643_v21, %v3369_v47  ;;  %v3737_v11 = vadd.f32 %v3736_v40, %v3447_v43  ;;  %v3400_v62 = vld [vmem:[%s12525_s1 + $0x5b0] sm:$0xff]  ;;  %v3450_v33 = vld [vmem:[%s12525_s1 + $0x740] sm:$0xff]  ;;  %v3543_v48 = vadd.f32 %v3542_v24, %v3541_v39  ;;  %v3373_v55 = vld [vmem:[%s12525_s1 + $0x4d8] sm:$0xff] }
 0x29a   :  { %v3677_v27 = vadd.f32 %v3676_v15, %v3397_v61  ;;  %v3707_v8 = vadd.f32 %v3706_v42, %v3422_v3  ;;  %v3580_v22 = vadd.f32 %v3579_v38, %v3578_v32  ;;  %v3401_v44 = vld [vmem:[%s12525_s1 + $0x5b8] sm:$0xff]  ;;  %v3426_v37 = vld [vmem:[%s12525_s1 + $0x680] sm:$0xff]  ;;  %v3451_v50 = vld [vmem:[%s12525_s1 + $0x748] sm:$0xff]  ;;  %v3507_v32 = vrot.slane %v3506_v9, 2 }
 0x29b   :  { %v3615_v14 = vadd.f32 %v3614_v10, %v3345_v18  ;;  %v3645_v16 = vadd.f32 %v3644_v29, %v3370_v30  ;;  %v3738_v45 = vadd.f32 %v3737_v11, %v3448_v53  ;;  %v3374_v54 = vld [vmem:[%s12525_s1 + $0x4e0] sm:$0xff]  ;;  %v3427_v46 = vld [vmem:[%s12525_s1 + $0x688] sm:$0xff]  ;;  %v3452_v39 = vld [vmem:[%s12525_s1 + $0x750] sm:$0xff]  ;;  %v3544_v0 = vrot.slane %v3543_v48, 2 }
 0x29c   :  { %v3678_v59 = vadd.f32 %v3677_v27, %v3398_v34  ;;  %v3708_v56 = vadd.f32 %v3707_v8, %v3423_v26  ;;  %v3402_v4 = vld [vmem:[%s12525_s1 + $0x5c0] sm:$0xff]  ;;  %v3581_v20 = vrot.slane %v3580_v22, 2  ;;  %v3375_v6 = vld [vmem:[%s12525_s1 + $0x4e8] sm:$0xff]  ;;  %v3428_v61 = vld [vmem:[%s12525_s1 + $0x690] sm:$0xff]  ;;  %v3508_v34 = vadd.f32 %v3507_v32, %v3506_v9 }
 0x29d   :  { %v3616_v41 = vrot.slane %v3615_v14, 4  ;;  %v3646_v35 = vadd.f32 %v3645_v16, %v3371_v13  ;;  %v3739_v23 = vadd.f32 %v3738_v45, %v3449_v1  ;;  %v3403_v52 = vld [vmem:[%s12525_s1 + $0x5c8] sm:$0xff]  ;;  %v3453_v3 = vld [vmem:[%s12525_s1 + $0x758] sm:$0xff]  ;;  %v3376_v21 = vld [vmem:[%s12525_s1 + $0x4f0] sm:$0xff]  ;;  %v3545_v26 = vadd.f32 %v3544_v0, %v3543_v48 }
 0x29e   :  { %v3679_v63 = vadd.f32 %v3678_v59, %v3399_v36  ;;  %v3709_v17 = vadd.f32 %v3708_v56, %v3424_v58  ;;  %v3404_v15 = vld [vmem:[%s12525_s1 + $0x5d0] sm:$0xff]  ;;  %v3429_v42 = vld [vmem:[%s12525_s1 + $0x698] sm:$0xff]  ;;  %v3454_v40 = vld [vmem:[%s12525_s1 + $0x760] sm:$0xff]  ;;  %v3582_v53 = vadd.f32 %v3581_v20, %v3580_v22  ;;  %v3509_v56 = vrot.slane %v3508_v34, 1 }
 0x29f   :  { %v3617_v57 = vadd.f32 %v3616_v41, %v3615_v14  ;;  %v3647_v25 = vadd.f32 %v3646_v35, %v3372_v60  ;;  %v3740_v28 = vadd.f32 %v3739_v23, %v3450_v33  ;;  %v3377_v38 = vld [vmem:[%s12525_s1 + $0x4f8] sm:$0xff]  ;;  %v3430_v8 = vld [vmem:[%s12525_s1 + $0x6a0] sm:$0xff]  ;;  %v3455_v11 = vld [vmem:[%s12525_s1 + $0x768] sm:$0xff]  ;;  %v3546_v45 = vrot.slane %v3545_v26, 1 }
 0x2a0   :  { %v3680_v7 = vadd.f32 %v3679_v63, %v3400_v62  ;;  %v3710_v2 = vadd.f32 %v3709_v17, %v3425_v12  ;;  %v3405_v27 = vld [vmem:[%s12525_s1 + $0x5d8] sm:$0xff]  ;;  %v3406_v60 = vld [vmem:[%s12525_s1 + $0x5e0] sm:$0xff]  ;;  %v3431_v9 = vld [vmem:[%s12525_s1 + $0x6a8] sm:$0xff]  ;;  %v3583_v62 = vrot.slane %v3582_v53, 1 }
 0x2a1   :  { %v3648_v31 = vadd.f32 %v3647_v25, %v3373_v55  ;;  %v3741_v19 = vadd.f32 %v3740_v28, %v3451_v50  ;;  %v3618_v43 = vrot.slane %v3617_v57, 2  ;;  %v3456_v59 = vld [vmem:[%s12525_s1 + $0x770] sm:$0xff]  ;;  %v3407_v41 = vld [vmem:[%s12525_s1 + $0x5e8] sm:$0xff]  ;;  %v3457_v55 = vld [vmem:[%s12525_s1 + $0x778] sm:$0xff]  ;;  %v3547_v28 = vadd.f32 %v3546_v45, %v3545_v26 }
 0x2a2   :  { %v3681_v47 = vadd.f32 %v3680_v7, %v3401_v44  ;;  %v3711_v5 = vadd.f32 %v3710_v2, %v3426_v37  ;;  %v3432_v35 = vld [vmem:[%s12525_s1 + $0x6b0] sm:$0xff]  ;;  %v3433_v44 = vld [vmem:[%s12525_s1 + $0x6b8] sm:$0xff]  ;;  %v3458_v37 = vld [vmem:[%s12525_s1 + $0x780] sm:$0xff]  ;;  %v3510_v2 = vadd.f32 %v3509_v56, %v3508_v34 }
 0x2a3   :  { %v3649_v49 = vadd.f32 %v3648_v31, %v3374_v54  ;;  %v3742_v51 = vadd.f32 %v3741_v19, %v3452_v39  ;;  %v3619_v36 = vadd.f32 %v3618_v43, %v3617_v57  ;;  %v3408_v23 = vld [vmem:[%s12525_s1 + $0x5f0] sm:$0xff]  ;;  %v3409_v54 = vld [vmem:[%s12525_s1 + $0x5f8] sm:$0xff]  ;;  %v3459_v7 = vld [vmem:[%s12525_s1 + $0x788] sm:$0xff] }
 0x2a4   :  { %v3682_v18 = vadd.f32 %v3681_v47, %v3402_v4  ;;  %v3712_v30 = vadd.f32 %v3711_v5, %v3427_v46  ;;  %v3584_v4 = vadd.f32 %v3583_v62, %v3582_v53  ;;  %v4274_v39 = vld [vmem:[%s12529_s3 + $0x10] sm:$0xff]  ;;  %v3435_v34 = vld [vmem:[%s12525_s1 + $0x6c8] sm:$0xff]  ;;  %v3437_v45 = vld [vmem:[%s12525_s1 + $0x6d8] sm:$0xff] }
 0x2a5   :  { %v3650_v24 = vadd.f32 %v3649_v49, %v3375_v6  ;;  %v3743_v13 = vadd.f32 %v3742_v51, %v3453_v3  ;;  %v3620_v63 = vrot.slane %v3619_v36, 1  ;;  %v4278_v32 = vld [vmem:[%s12529_s3 + $0x30] sm:$0xff]  ;;  %v3462_v62 = vld [vmem:[%s12525_s1 + $0x7a0] sm:$0xff] }
 0x2a6   :  { %v3683_v10 = vadd.f32 %v3682_v18, %v3403_v52  ;;  %v3713_v29 = vadd.f32 %v3712_v30, %v3428_v61  ;;  %v4282_v0 = vld [vmem:[%s12529_s3 + $0x50] sm:$0xff]  ;;  %v4350_v52 = vadd.f32 %v4278_v32, %v4274_v39  ;;  %v3434_v61 = vld [vmem:[%s12525_s1 + $0x6c0] sm:$0xff] }
 0x2a7   :  { %v3651_v58 = vadd.f32 %v3650_v24, %v3376_v21  ;;  %v3744_v16 = vadd.f32 %v3743_v13, %v3454_v40  ;;  %v4286_v47 = vld [vmem:[%s12529_s3 + $0x70] sm:$0xff]  ;;  %v3621_v3 = vadd.f32 %v3620_v63, %v3619_v36  ;;  %v3461_v36 = vld [vmem:[%s12525_s1 + $0x798] sm:$0xff]  ;;  %v3798_v63 = vsel %vm3181_vm0, %v3547_v28, %v3510_v2 }
 0x2a8   :  { %v3684_v1 = vadd.f32 %v3683_v10, %v3404_v15  ;;  %v3714_v14 = vadd.f32 %v3713_v29, %v3429_v42  ;;  %v4290_v5 = vld [vmem:[%s12529_s3 + $0x90] sm:$0xff]  ;;  %v4378_v18 = vadd.f32 %v4286_v47, %v4282_v0  ;;  %v4351_v40 = vrot.slane %v4350_v52, 4 }
 0x2a9   :  { %v3652_v12 = vadd.f32 %v3651_v58, %v3377_v38  ;;  %v3745_v22 = vadd.f32 %v3744_v16, %v3455_v11  ;;  %v4294_v19 = vld [vmem:[%s12529_s3 + $0xb0] sm:$0xff] }
 0x2aa   :  { %v3685_v33 = vadd.f32 %v3684_v1, %v3405_v27  ;;  %v3715_v48 = vadd.f32 %v3714_v14, %v3430_v8  ;;  %v4298_v49 = vld [vmem:[%s12529_s3 + $0xd0] sm:$0xff]  ;;  %v4406_v30 = vadd.f32 %v4294_v19, %v4290_v5  ;;  %v4379_v24 = vrot.slane %v4378_v18, 4 }
 0x2ab   :  { %v3653_v17 = vrot.slane %v3652_v12, 4  ;;  %v3746_v25 = vadd.f32 %v3745_v22, %v3456_v59  ;;  %v4302_v21 = vld [vmem:[%s12529_s3 + $0xf0] sm:$0xff]  ;;  %v4352_v8 = vadd.f32 %v4351_v40, %v4350_v52 }
 0x2ac   :  { %v3686_v50 = vadd.f32 %v3685_v33, %v3406_v60  ;;  %v3716_v57 = vadd.f32 %v3715_v48, %v3431_v9  ;;  %v3460_v26 = vld [vmem:[%s12525_s1 + $0x790] sm:$0xff]  ;;  %v4407_v38 = vrot.slane %v4406_v30, 4  ;;  %v4434_v10 = vadd.f32 %v4302_v21, %v4298_v49 }
 0x2ad   :  { %v3654_v46 = vadd.f32 %v3653_v17, %v3652_v12  ;;  %v3747_v6 = vadd.f32 %v3746_v25, %v3457_v55  ;;  %v3436_v11 = vld [vmem:[%s12525_s1 + $0x6d0] sm:$0xff]  ;;  %v4380_v1 = vadd.f32 %v4379_v24, %v4378_v18  ;;  %v4353_v56 = vrot.slane %v4352_v8, 2  ;;  %v3438_v17 = vld [vmem:[%s12525_s1 + $0x6e0] sm:$0xff] }
 0x2ae   :  { %v3687_v20 = vadd.f32 %v3686_v50, %v3407_v41  ;;  %v3717_v31 = vadd.f32 %v3716_v57, %v3432_v35  ;;  %v4408_v14 = vadd.f32 %v4407_v38, %v4406_v30  ;;  %v4435_v16 = vrot.slane %v4434_v10, 4  ;;  %v4306_v39 = vld [vmem:[%s12529_s3 + $0x110] sm:$0xff]  ;;  %v3465_v30 = vld [vmem:[%s12525_s1 + $0x7b8] sm:$0xff] }
 0x2af   :  { %v3655_v43 = vrot.slane %v3654_v46, 2  ;;  %v3748_v42 = vadd.f32 %v3747_v6, %v3458_v37  ;;  %v4381_v33 = vrot.slane %v4380_v1, 2  ;;  %v3799_v37 = vsel %vm3183_vm1, %v3584_v4, %v3798_v63  ;;  %v4310_v4 = vld [vmem:[%s12529_s3 + $0x130] sm:$0xff] }
 0x2b0   :  { %v3688_v51 = vadd.f32 %v3687_v20, %v3408_v23  ;;  %v3718_v15 = vadd.f32 %v3717_v31, %v3433_v44  ;;  %v4409_v48 = vrot.slane %v4408_v14, 2  ;;  %v4436_v22 = vadd.f32 %v4435_v16, %v4434_v10  ;;  %v3463_v23 = vld [vmem:[%s12525_s1 + $0x7a8] sm:$0xff]  ;;  %v3464_v44 = vld [vmem:[%s12525_s1 + $0x7b0] sm:$0xff] }
 0x2b1   :  { %v3656_v53 = vadd.f32 %v3655_v43, %v3654_v46  ;;  %v3749_v27 = vadd.f32 %v3748_v42, %v3459_v7  ;;  %v4354_v50 = vadd.f32 %v4353_v56, %v4352_v8  ;;  %v4382_v57 = vadd.f32 %v4381_v33, %v4380_v1  ;;  %v4314_v0 = vld [vmem:[%s12529_s3 + $0x150] sm:$0xff]  ;;  %v4579_v56 = vld [vmem:[%s12522_s10 + $0x98] sm:$0xff]  ;;  %v4561_v33 = vld [vmem:[%s12522_s10 + $0x8] sm:$0xff] }
 0x2b2   :  { %v3689_v29 = vadd.f32 %v3688_v51, %v3409_v54  ;;  %v3719_v13 = vadd.f32 %v3718_v15, %v3434_v61  ;;  %v4410_v25 = vadd.f32 %v4409_v48, %v4408_v14  ;;  %v3439_v54 = vld [vmem:[%s12525_s1 + $0x6e8] sm:$0xff]  ;;  %v3800_v46 = vsel %vm3185_vm2, %v3621_v3, %v3799_v37  ;;  %v4318_v20 = vld [vmem:[%s12529_s3 + $0x170] sm:$0xff] }
 0x2b3   :  { %v3657_v58 = vrot.slane %v3656_v53, 1  ;;  %v3750_v59 = vadd.f32 %v3749_v27, %v3460_v26  ;;  %v4322_v31 = vld [vmem:[%s12529_s3 + $0x190] sm:$0xff]  ;;  %v4355_v6 = vrot.slane %v4354_v50, 1  ;;  %v4383_v47 = vrot.slane %v4382_v57, 1  ;;  %v3466_v26 = vld [vmem:[%s12525_s1 + $0x7c0] sm:$0xff]  ;;  %v4609_v37 = vld [vmem:[%s12522_s10 + $0x188] sm:$0xff] }
 0x2b4   :  { %v3690_v60 = vrot.slane %v3689_v29, 4  ;;  %v3720_v9 = vadd.f32 %v3719_v13, %v3435_v34  ;;  %v4411_v5 = vrot.slane %v4410_v25, 1  ;;  %v4326_v3 = vld [vmem:[%s12529_s3 + $0x1b0] sm:$0xff]  ;;  %v4437_v21 = vrot.slane %v4436_v22, 2  ;;  %v3441_v34 = vld [vmem:[%s12525_s1 + $0x6f8] sm:$0xff]  ;;  %v4580_v27 = vld [vmem:[%s12522_s10 + $0xa0] sm:$0xff] }
 0x2b5   :  { %v3658_v12 = vadd.f32 %v3657_v58, %v3656_v53  ;;  %v3751_v55 = vadd.f32 %v3750_v59, %v3461_v36  ;;  %v4330_v43 = vld [vmem:[%s12529_s3 + $0x1d0] sm:$0xff]  ;;  %v4356_v51 = vadd.f32 %v4355_v6, %v4354_v50  ;;  %v4384_v15 = vadd.f32 %v4383_v47, %v4382_v57  ;;  %v4563_v13 = vld [vmem:[%s12522_s10 + $0x18] sm:$0xff]  ;;  %4723 = vmatpush.msrb.mxu1 %v4580_v27  ;;  %v4288_v27 = vld [vmem:[%s12529_s3 + $0x80] sm:$0xff] }
 0x2b6   :  { %v3691_v41 = vadd.f32 %v3690_v60, %v3689_v29  ;;  %v3721_v35 = vadd.f32 %v3720_v9, %v3436_v11  ;;  %v4334_v49 = vld [vmem:[%s12529_s3 + $0x1f0] sm:$0xff]  ;;  %v12050_v42 = vadd.f32 %v4411_v5, %v4410_v25  ;;  %v4462_v40 = vadd.f32 %v4310_v4, %v4306_v39  ;;  %v3467_v29 = vld [vmem:[%s12525_s1 + $0x7c8] sm:$0xff]  ;;  %4704 = vmatpush.msrb.mxu0 %v4563_v13  ;;  %v4611_v9 = vld [vmem:[%s12522_s10 + $0x198] sm:$0xff] }
 0x2b7   :  { %v3752_v28 = vadd.f32 %v3751_v55, %v3462_v62  ;;  %v3801_v32 = vsel %vm3187_vm3, %v3658_v12, %v3800_v46  ;;  %v3440_v18 = vld [vmem:[%s12525_s1 + $0x6f0] sm:$0xff]  ;;  %v4438_v10 = vadd.f32 %v4437_v21, %v4436_v22  ;;  %v4490_v36 = vadd.f32 %v4318_v20, %v4314_v0  ;;  %4764 = vmatpush.msrb.mxu3 %v4611_v9  ;;  %v4593_v62 = vld [vmem:[%s12522_s10 + $0x108] sm:$0xff]  ;;  %v4608_v0 = vld [vmem:[%s12522_s10 + $0x180] sm:$0xff] }
 0x2b8   :  { %v3692_v7 = vrot.slane %v3691_v41, 2  ;;  %v3722_v2 = vadd.f32 %v3721_v35, %v3437_v45  ;;  %v4594_v8 = vld [vmem:[%s12522_s10 + $0x110] sm:$0xff]  ;;  %v4463_v11 = vrot.slane %v4462_v40, 4  ;;  %v4518_v58 = vadd.f32 %v4326_v3, %v4322_v31  ;;  %4724 = vmatpush.msrb.mxu1 %v4579_v56  ;;  %v4272_v20 = vld [vmem:[%s12529_s3] sm:$0xff]  ;;  %v3469_v6 = vld [vmem:[%s12525_s1 + $0x7d8] sm:$0xff] }
 0x2b9   :  { %v3753_v61 = vadd.f32 %v3752_v28, %v3463_v23  ;;  %v4546_v1 = vadd.f32 %v4334_v49, %v4330_v43  ;;  %v4562_v59 = vld [vmem:[%s12522_s10 + $0x10] sm:$0xff]  ;;  %v4439_v45 = vrot.slane %v4438_v10, 1  ;;  %4745 = vmatpush.msrb.mxu2 %v4594_v8  ;;  %v4491_v22 = vrot.slane %v4490_v36, 4  ;;  %v4577_v28 = vld [vmem:[%s12522_s10 + $0x88] sm:$0xff]  ;;  %v4276_v31 = vld [vmem:[%s12529_s3 + $0x20] sm:$0xff] }
 0x2ba   :  { %v3693_v19 = vadd.f32 %v3692_v7, %v3691_v41  ;;  %v3723_v52 = vadd.f32 %v3722_v2, %v3438_v17  ;;  %v4610_v12 = vld [vmem:[%s12522_s10 + $0x190] sm:$0xff]  ;;  %v4464_v48 = vadd.f32 %v4463_v11, %v4462_v40  ;;  %v4519_v41 = vrot.slane %v4518_v58, 4  ;;  %4705 = vmatpush.msrb.mxu0 %v4562_v59  ;;  %v4560_v2 = vld [vmem:[%s12522_s10] sm:$0xff] }
 0x2bb   :  { %v3754_v38 = vadd.f32 %v3753_v61, %v3464_v44  ;;  %v4547_v35 = vrot.slane %v4546_v1, 4  ;;  %v4578_v23 = vld [vmem:[%s12522_s10 + $0x90] sm:$0xff]  ;;  %v4592_v44 = vld [vmem:[%s12522_s10 + $0x100] sm:$0xff]  ;;  %4746 = vmatpush.msrb.mxu2 %v4593_v62  ;;  %4765 = vmatpush.msrb.mxu3 %v4610_v12  ;;  %v4440_v57 = vadd.f32 %v4439_v45, %v4438_v10  ;;  %v4336_v40 = vadd.f32 %v4276_v31, %v4272_v20 }
 0x2bc   :  { %v3694_v53 = vrot.slane %v3693_v19, 1  ;;  %v3724_v24 = vadd.f32 %v3723_v52, %v3439_v54  ;;  %v3468_v50 = vld [vmem:[%s12525_s1 + $0x7d0] sm:$0xff]  ;;  %v4465_v25 = vrot.slane %v4464_v48, 2  ;;  %v4492_v54 = vadd.f32 %v4491_v22, %v4490_v36  ;;  %4706 = vmatpush.msrb.mxu0 %v4561_v33  ;;  %4725 = vmatpush.msrb.mxu1 %v4578_v23  ;;  %v4280_v61 = vld [vmem:[%s12529_s3 + $0x40] sm:$0xff] }
 0x2bd   :  { %v3755_v60 = vadd.f32 %v3754_v38, %v3465_v30  ;;  %v4520_v7 = vadd.f32 %v4519_v41, %v4518_v58  ;;  %v4548_v4 = vadd.f32 %v4547_v35, %v4546_v1  ;;  %4747 = vmatpush.msrb.mxu2 %v4592_v44  ;;  %4766 = vmatpush.msrb.mxu3 %v4609_v37  ;;  %v4284_v3 = vld [vmem:[%s12529_s3 + $0x60] sm:$0xff]  ;;  %v3471_v38 = vld [vmem:[%s12525_s1 + $0x7e8] sm:$0xff]  ;;  %v4337_v8 = vrot.slane %v4336_v40, 4  ;;  %v3472_v9 = vld [vmem:[%s12525_s1 + $0x7f0] sm:$0xff] }
 0x2be   :  { %v3695_v14 = vadd.f32 %v3694_v53, %v3693_v19  ;;  %v3725_v16 = vadd.f32 %v3724_v24, %v3440_v18  ;;  %v4466_v47 = vadd.f32 %v4465_v25, %v4464_v48  ;;  %v4493_v5 = vrot.slane %v4492_v54, 2  ;;  %4707 = vmatpush.msrb.mxu0 %v4560_v2  ;;  %4726 = vmatpush.msrb.mxu1 %v4577_v28  ;;  %v3470_v30 = vld [vmem:[%s12525_s1 + $0x7e0] sm:$0xff]  ;;  %v3473_v41 = vld [vmem:[%s12525_s1 + $0x7f8] sm:$0xff] }
 0x2bf   :  { %v3756_v63 = vadd.f32 %v3755_v60, %v3466_v26  ;;  %v4521_v19 = vrot.slane %v4520_v7, 2  ;;  %v4549_v21 = vrot.slane %v4548_v4, 2  ;;  %4767 = vmatpush.msrb.mxu3 %v4608_v0  ;;  %v4364_v24 = vadd.f32 %v4284_v3, %v4280_v61  ;;  %v4292_v1 = vld [vmem:[%s12529_s3 + $0xa0] sm:$0xff] }
 0x2c0   :  { %v3726_v55 = vadd.f32 %v3725_v16, %v3441_v34  ;;  %v12089_v17 = vsel %vm3189_vm4, %v3695_v14, %v3801_v32  ;;  %v4674_v32 = vsel %vm3181_vm0, %v4384_v15, %v4356_v51  ;;  %v4467_v51 = vrot.slane %v4466_v47, 1  ;;  %v4296_v14 = vld [vmem:[%s12529_s3 + $0xc0] sm:$0xff] }
 0x2c1   :  { %v3757_v39 = vadd.f32 %v3756_v63, %v3467_v29  ;;  %v4675_v52 = vsel %vm3183_vm1, %v12050_v42, %v4674_v32  ;;  %v4494_v15 = vadd.f32 %v4493_v5, %v4492_v54  ;;  %v4522_v42 = vadd.f32 %v4521_v19, %v4520_v7  ;;  %v4300_v16 = vld [vmem:[%s12529_s3 + $0xe0] sm:$0xff] }
 0x2c2   :  { %v3727_v46 = vrot.slane %v3726_v55, 4  ;;  %v4676_v18 = vsel %vm3185_vm2, %v4440_v57, %v4675_v52  ;;  %v4550_v53 = vadd.f32 %v4549_v21, %v4548_v4  ;;  %v4468_v10 = vadd.f32 %v4467_v51, %v4466_v47  ;;  %v4308_v63 = vld [vmem:[%s12529_s3 + $0x120] sm:$0xff] }
 0x2c3   :  { %v3758_v49 = vadd.f32 %v3757_v39, %v3468_v50  ;;  %v4495_v29 = vrot.slane %v4494_v15, 1  ;;  %v4523_v13 = vrot.slane %v4522_v42, 1  ;;  %v4365_v60 = vrot.slane %v4364_v24, 4  ;;  %v4312_v54 = vld [vmem:[%s12529_s3 + $0x140] sm:$0xff] }
 0x2c4   :  { %v3728_v43 = vadd.f32 %v3727_v46, %v3726_v55  ;;  %v4551_v58 = vrot.slane %v4550_v53, 1  ;;  %v4677_v45 = vsel %vm3187_vm3, %v4468_v10, %v4676_v18  ;;  %v4338_v62 = vadd.f32 %v4337_v8, %v4336_v40  ;;  %v4304_v55 = vld [vmem:[%s12529_s3 + $0x100] sm:$0xff]  ;;  %v4279_v8 = vld [vmem:[%s12529_s3 + $0x38] sm:$0xff] }
 0x2c5   :  { %v3759_v26 = vadd.f32 %v3758_v49, %v3469_v6  ;;  %v4496_v59 = vadd.f32 %v4495_v29, %v4494_v15  ;;  %v4524_v56 = vadd.f32 %v4523_v13, %v4522_v42  ;;  %v4366_v22 = vadd.f32 %v4365_v60, %v4364_v24  ;;  %v4316_v7 = vld [vmem:[%s12529_s3 + $0x160] sm:$0xff] }
 0x2c6   :  { %v3729_v34 = vrot.slane %v3728_v43, 2  ;;  %v4552_v48 = vadd.f32 %v4551_v58, %v4550_v53  ;;  %v4339_v23 = vrot.slane %v4338_v62, 2  ;;  %v4392_v44 = vadd.f32 %v4292_v1, %v4288_v27  ;;  %v4320_v46 = vld [vmem:[%s12529_s3 + $0x180] sm:$0xff]  ;;  %v4275_v27 = vld [vmem:[%s12529_s3 + $0x18] sm:$0xff] }
 0x2c7   :  { %v3760_v36 = vadd.f32 %v3759_v26, %v3470_v30  ;;  %v4678_v35 = vsel %vm3189_vm4, %v4496_v59, %v4677_v45  ;;  %v4420_v37 = vadd.f32 %v4300_v16, %v4296_v14  ;;  %v4367_v2 = vrot.slane %v4366_v22, 2  ;;  %v4324_v39 = vld [vmem:[%s12529_s3 + $0x1a0] sm:$0xff] }
 0x2c8   :  { %v3730_v11 = vadd.f32 %v3729_v34, %v3728_v43  ;;  %v4679_v25 = vsel %vm3191_vm5, %v4524_v56, %v4678_v35  ;;  %v4340_v4 = vadd.f32 %v4339_v23, %v4338_v62  ;;  %v4393_v32 = vrot.slane %v4392_v44, 4  ;;  %v4328_v43 = vld [vmem:[%s12529_s3 + $0x1c0] sm:$0xff]  ;;  %v4283_v62 = vld [vmem:[%s12529_s3 + $0x58] sm:$0xff] }
 0x2c9   :  { %v3761_v33 = vadd.f32 %v3760_v36, %v3471_v38  ;;  %v4680_v28 = vsel %vm3193_vm6, %v4552_v48, %v4679_v25  ;;  %v4421_v0 = vrot.slane %v4420_v37, 4  ;;  %v4368_v6 = vadd.f32 %v4367_v2, %v4366_v22  ;;  %v4332_v49 = vld [vmem:[%s12529_s3 + $0x1e0] sm:$0xff]  ;;  %v4291_v25 = vld [vmem:[%s12529_s3 + $0x98] sm:$0xff] }
 0x2ca   :  { %v3731_v12 = vrot.slane %v3730_v11, 1  ;;  %4748 = vmatmul.f32.vlgmr.msrb.gmra.mxu2 %v4680_v28  ;;  %v4448_v47 = vadd.f32 %v4308_v63, %v4304_v55  ;;  %v4341_v5 = vrot.slane %v4340_v4, 1  ;;  %v4394_v19 = vadd.f32 %v4393_v32, %v4392_v44  ;;  %v4576_v24 = vld [vmem:[%s12522_s10 + $0x80] sm:$0xff] }
 0x2cb   :  { %v3762_v57 = vadd.f32 %v3761_v33, %v3472_v9  ;;  %v4422_v52 = vadd.f32 %v4421_v0, %v4420_v37  ;;  %v4476_v61 = vadd.f32 %v4316_v7, %v4312_v54  ;;  %v4369_v21 = vrot.slane %v4368_v6, 1  ;;  %4727 = vmatpush.msrb.mxu1 %v4576_v24  ;;  %v4295_v54 = vld [vmem:[%s12529_s3 + $0xb8] sm:$0xff] }
 0x2cc   :  { %v3732_v50 = vadd.f32 %v3731_v12, %v3730_v11  ;;  %v4449_v18 = vrot.slane %v4448_v47, 4  ;;  %v4342_v30 = vadd.f32 %v4341_v5, %v4340_v4  ;;  %v4395_v51 = vrot.slane %v4394_v19, 2  ;;  %v4287_v12 = vld [vmem:[%s12529_s3 + $0x78] sm:$0xff] }
 0x2cd   :  { %v3763_v20 = vadd.f32 %v3762_v57, %v3473_v41  ;;  %v4423_v15 = vrot.slane %v4422_v52, 2  ;;  %v4477_v42 = vrot.slane %v4476_v61, 4  ;;  %v4370_v34 = vadd.f32 %v4369_v21, %v4368_v6  ;;  %v4299_v4 = vld [vmem:[%s12529_s3 + $0xd8] sm:$0xff] }
 0x2ce   :  { %v12179_v31 = vsel %vm3191_vm5, %v3732_v50, %v12089_v17  ;;  %v4504_v17 = vadd.f32 %v4324_v39, %v4320_v46  ;;  %v4450_v26 = vadd.f32 %v4449_v18, %v4448_v47  ;;  %v4396_v38 = vadd.f32 %v4395_v51, %v4394_v19  ;;  %v4307_v6 = vld [vmem:[%s12529_s3 + $0x118] sm:$0xff] }
 0x2cf   :  { %v3764_v3 = vrot.slane %v3763_v20, 4  ;;  %v4424_v10 = vadd.f32 %v4423_v15, %v4422_v52  ;;  %v4478_v29 = vadd.f32 %v4477_v42, %v4476_v61  ;;  %v4532_v13 = vadd.f32 %v4332_v49, %v4328_v43  ;;  %v4311_v47 = vld [vmem:[%s12529_s3 + $0x138] sm:$0xff] }
 0x2d0   :  { %v4505_v53 = vrot.slane %v4504_v17, 4  ;;  %v4451_v36 = vrot.slane %v4450_v26, 2  ;;  %v4660_v1 = vsel %vm3181_vm0, %v4370_v34, %v4342_v30  ;;  %v4397_v14 = vrot.slane %v4396_v38, 1  ;;  %v4315_v43 = vld [vmem:[%s12529_s3 + $0x158] sm:$0xff] }
 0x2d1   :  { %v3765_v40 = vadd.f32 %v3764_v3, %v3763_v20  ;;  %v4425_v16 = vrot.slane %v4424_v10, 1  ;;  %v4479_v60 = vrot.slane %v4478_v29, 2  ;;  %v4533_v9 = vrot.slane %v4532_v13, 4  ;;  %v4303_v20 = vld [vmem:[%s12529_s3 + $0xf8] sm:$0xff] }
 0x2d2   :  { %v4506_v58 = vadd.f32 %v4505_v53, %v4504_v17  ;;  %v4452_v56 = vadd.f32 %v4451_v36, %v4450_v26  ;;  %v4357_v33 = vadd.f32 %v4279_v8, %v4275_v27  ;;  %v4398_v48 = vadd.f32 %v4397_v14, %v4396_v38  ;;  %v4319_v49 = vld [vmem:[%s12529_s3 + $0x178] sm:$0xff] }
 0x2d3   :  { %v3766_v11 = vrot.slane %v3765_v40, 2  ;;  %v4426_v22 = vadd.f32 %v4425_v16, %v4424_v10  ;;  %v4480_v41 = vadd.f32 %v4479_v60, %v4478_v29  ;;  %v4534_v35 = vadd.f32 %v4533_v9, %v4532_v13  ;;  %v4327_v30 = vld [vmem:[%s12529_s3 + $0x1b8] sm:$0xff]  ;;  %v4273_v60 = vld [vmem:[%s12529_s3 + $0x8] sm:$0xff] }
 0x2d4   :  { %v4507_v45 = vrot.slane %v4506_v58, 2  ;;  %v4453_v63 = vrot.slane %v4452_v56, 1  ;;  %v4358_v44 = vrot.slane %v4357_v33, 4  ;;  %v4661_v57 = vsel %vm3183_vm1, %v4398_v48, %v4660_v1  ;;  %v4331_v29 = vld [vmem:[%s12529_s3 + $0x1d8] sm:$0xff]  ;;  %v4277_v9 = vld [vmem:[%s12529_s3 + $0x28] sm:$0xff] }
 0x2d5   :  { %v3767_v59 = vadd.f32 %v3766_v11, %v3765_v40  ;;  %v4481_v37 = vrot.slane %v4480_v41, 1  ;;  %v4535_v50 = vrot.slane %v4534_v35, 2  ;;  %v4385_v7 = vadd.f32 %v4287_v12, %v4283_v62  ;;  %v4335_v13 = vld [vmem:[%s12529_s3 + $0x1f8] sm:$0xff] }
 0x2d6   :  { %v4508_v23 = vadd.f32 %v4507_v45, %v4506_v58  ;;  %v4454_v28 = vadd.f32 %v4453_v63, %v4452_v56  ;;  %v4662_v39 = vsel %vm3185_vm2, %v4426_v22, %v4661_v57  ;;  %v4359_v5 = vadd.f32 %v4358_v44, %v4357_v33  ;;  %v4860_v12 = vld [vmem:[%s12530_s12 + $0x178] sm:$0xff]  ;;  %v4859_v33 = vld [vmem:[%s12530_s12 + $0x170] sm:$0xff] }
 0x2d7   :  { %v3768_v55 = vrot.slane %v3767_v59, 1  ;;  %v4482_v32 = vadd.f32 %v4481_v37, %v4480_v41  ;;  %v4536_v0 = vadd.f32 %v4535_v50, %v4534_v35  ;;  %v4386_v19 = vrot.slane %v4385_v7, 4  ;;  %v4804_v48 = vld [vmem:[%s12530_s12 + $0xf8] sm:$0xff]  ;;  %4861 = vmatpush.msra.mxu2 %v4860_v12 }
 0x2d8   :  { %v4509_v46 = vrot.slane %v4508_v23, 1  ;;  %v4663_v3 = vsel %vm3187_vm3, %v4454_v28, %v4662_v39  ;;  %v4413_v21 = vadd.f32 %v4295_v54, %v4291_v25  ;;  %v4360_v51 = vrot.slane %v4359_v5, 2  ;;  %4805 = vmatpush.msra.mxu0 %v4804_v48  ;;  %v4788_v63 = vld [vmem:[%s12530_s12 + $0x78] sm:$0xff]  ;;  %v4858_v25 = vld [vmem:[%s12530_s12 + $0x168] sm:$0xff]  ;;  %v4787_v54 = vld [vmem:[%s12530_s12 + $0x70] sm:$0xff] }
 0x2d9   :  { %v3769_v2 = vadd.f32 %v3768_v55, %v3767_v59  ;;  %v4537_v18 = vrot.slane %v4536_v0, 1  ;;  %v4664_v17 = vsel %vm3189_vm4, %v4482_v32, %v4663_v3  ;;  %v4387_v15 = vadd.f32 %v4386_v19, %v4385_v7  ;;  %v4802_v7 = vld [vmem:[%s12530_s12 + $0xe8] sm:$0xff]  ;;  %4862 = vmatpush.msra.mxu2 %v4859_v33  ;;  %v4857_v19 = vld [vmem:[%s12530_s12 + $0x160] sm:$0xff] }
 0x2da   :  { %v4510_v61 = vadd.f32 %v4509_v46, %v4508_v23  ;;  %v4414_v40 = vrot.slane %v4413_v21, 4  ;;  %v4441_v34 = vadd.f32 %v4303_v20, %v4299_v4  ;;  %v4469_v26 = vadd.f32 %v4311_v47, %v4307_v6  ;;  %v4803_v23 = vld [vmem:[%s12530_s12 + $0xf0] sm:$0xff]  ;;  %v4281_v39 = vld [vmem:[%s12529_s3 + $0x48] sm:$0xff] }
 0x2db   :  { %v3804_v52 = vsel %vm3193_vm6, %v3769_v2, %v12179_v31  ;;  %v4323_v31 = vld [vmem:[%s12529_s3 + $0x198] sm:$0xff]  ;;  %v4538_v53 = vadd.f32 %v4537_v18, %v4536_v0  ;;  %v4361_v24 = vadd.f32 %v4360_v51, %v4359_v5  ;;  %v4388_v38 = vrot.slane %v4387_v15, 2  ;;  %4806 = vmatpush.msra.mxu0 %v4803_v23  ;;  %v4786_v32 = vld [vmem:[%s12530_s12 + $0x68] sm:$0xff]  ;;  %4863 = vmatpush.msra.mxu2 %v4858_v25  ;;  %v4785_v18 = vld [vmem:[%s12530_s12 + $0x60] sm:$0xff] }
 0x2dc   :  { %3822 = vmatmul.f32.vlgmr.msra.gmra.mxu1 %v3804_v52  ;;  %v4665_v42 = vsel %vm3191_vm5, %v4510_v61, %v4664_v17  ;;  %v4497_v10 = vadd.f32 %v4319_v49, %v4315_v43  ;;  %v4415_v27 = vadd.f32 %v4414_v40, %v4413_v21  ;;  %v4442_v8 = vrot.slane %v4441_v34, 4  ;;  %v4285_v5 = vld [vmem:[%s12529_s3 + $0x68] sm:$0xff]  ;;  %v4801_v52 = vld [vmem:[%s12530_s12 + $0xe0] sm:$0xff]  ;;  %v4800_v40 = vld [vmem:[%s12530_s12 + $0xd8] sm:$0xff] }
 0x2dd   :  { %v4470_v11 = vrot.slane %v4469_v26, 4  ;;  %v4525_v36 = vadd.f32 %v4327_v30, %v4323_v31  ;;  %v4666_v58 = vsel %vm3193_vm6, %v4538_v53, %v4665_v42  ;;  %v4362_v1 = vrot.slane %v4361_v24, 1  ;;  %4825 = vmatpush.msra.mxu1 %v4788_v63  ;;  %v4289_v49 = vld [vmem:[%s12529_s3 + $0x88] sm:$0xff]  ;;  %4807 = vmatpush.msra.mxu0 %v4802_v7  ;;  %v4856_v42 = vld [vmem:[%s12530_s12 + $0x158] sm:$0xff] }
 0x2de   :  { %v4389_v14 = vadd.f32 %v4388_v38, %v4387_v15  ;;  %v4498_v16 = vrot.slane %v4497_v10, 4  ;;  %4708 = vmatmul.f32.vlgmr.msrb.gmra.mxu0 %v4666_v58  ;;  %v4416_v59 = vrot.slane %v4415_v27, 2  ;;  %v4443_v56 = vadd.f32 %v4442_v8, %v4441_v34  ;;  %v4293_v15 = vld [vmem:[%s12529_s3 + $0xa8] sm:$0xff]  ;;  %4864 = vmatpush.msra.mxu2 %v4857_v19  ;;  %v4855_v58 = vld [vmem:[%s12530_s12 + $0x150] sm:$0xff] }
 0x2df   :  { %v4471_v45 = vadd.f32 %v4470_v11, %v4469_v26  ;;  %v4526_v62 = vrot.slane %v4525_v36, 4  ;;  %v4363_v22 = vadd.f32 %v4362_v1, %v4361_v24  ;;  %v4553_v55 = vadd.f32 %v4335_v13, %v4331_v29  ;;  %4826 = vmatpush.msra.mxu1 %v4787_v54  ;;  %v4297_v53 = vld [vmem:[%s12529_s3 + $0xc8] sm:$0xff]  ;;  %4808 = vmatpush.msra.mxu0 %v4801_v52  ;;  %v4784_v29 = vld [vmem:[%s12530_s12 + $0x58] sm:$0xff]  ;;  %v4799_v1 = vld [vmem:[%s12530_s12 + $0xd0] sm:$0xff] }
 0x2e0   :  { %v4390_v41 = vrot.slane %v4389_v14, 1  ;;  %v4499_v35 = vadd.f32 %v4498_v16, %v4497_v10  ;;  %v4417_v44 = vadd.f32 %v4416_v59, %v4415_v27  ;;  %v4444_v37 = vrot.slane %v4443_v56, 2  ;;  %v4301_v24 = vld [vmem:[%s12529_s3 + $0xe8] sm:$0xff]  ;;  %4865 = vmatpush.msra.mxu2 %v4856_v42 }
 0x2e1   :  { %v4472_v50 = vrot.slane %v4471_v45, 2  ;;  %v4527_v57 = vadd.f32 %v4526_v62, %v4525_v36  ;;  %v4554_v46 = vrot.slane %v4553_v55, 4  ;;  %v4343_v4 = vadd.f32 %v4277_v9, %v4273_v60  ;;  %4827 = vmatpush.msra.mxu1 %v4786_v32  ;;  %v4305_v36 = vld [vmem:[%s12529_s3 + $0x108] sm:$0xff]  ;;  %4809 = vmatpush.msra.mxu0 %v4800_v40 }
 0x2e2   :  { %v4391_v2 = vadd.f32 %v4390_v41, %v4389_v14  ;;  %v4500_v28 = vrot.slane %v4499_v35, 2  ;;  %v4418_v0 = vrot.slane %v4417_v44, 1  ;;  %v4445_v20 = vadd.f32 %v4444_v37, %v4443_v56  ;;  %v4309_v60 = vld [vmem:[%s12529_s3 + $0x128] sm:$0xff]  ;;  %v4783_v56 = vld [vmem:[%s12530_s12 + $0x50] sm:$0xff]  ;;  %4866 = vmatpush.msra.mxu2 %v4855_v58 }
 0x2e3   :  { %v4473_v6 = vadd.f32 %v4472_v50, %v4471_v45  ;;  %v4528_v47 = vrot.slane %v4527_v57, 2  ;;  %v4555_v3 = vadd.f32 %v4554_v46, %v4553_v55  ;;  %v4344_v21 = vrot.slane %v4343_v4, 4  ;;  %4828 = vmatpush.msra.mxu1 %v4785_v18  ;;  %v4897_v45 = vld [vmem:[%s12530_s12 + $0x1f8] sm:$0xff]  ;;  %v4313_v33 = vld [vmem:[%s12529_s3 + $0x148] sm:$0xff]  ;;  %4810 = vmatpush.msra.mxu0 %v4799_v1  ;;  %v4779_v1 = vld [vmem:[%s12530_s12 + $0x30] sm:$0xff] }
 0x2e4   :  { %v4501_v61 = vadd.f32 %v4500_v28, %v4499_v35  ;;  %v4681_v43 = vsel %vm3181_vm0, %v4391_v2, %v4363_v22  ;;  %v4419_v17 = vadd.f32 %v4418_v0, %v4417_v44  ;;  %v4446_v31 = vrot.slane %v4445_v20, 1  ;;  %v4854_v41 = vld [vmem:[%s12530_s12 + $0x148] sm:$0xff]  ;;  %4898 = vmatpush.msra.mxu3 %v4897_v45 }
 0x2e5   :  { %v4474_v30 = vrot.slane %v4473_v6, 1  ;;  %v4529_v51 = vadd.f32 %v4528_v47, %v4527_v57  ;;  %v4556_v26 = vrot.slane %v4555_v3, 2  ;;  %v4345_v38 = vadd.f32 %v4344_v21, %v4343_v4  ;;  %4829 = vmatpush.msra.mxu1 %v4784_v29  ;;  %v4798_v35 = vld [vmem:[%s12530_s12 + $0xc8] sm:$0xff]  ;;  %v4896_v57 = vld [vmem:[%s12530_s12 + $0x1f0] sm:$0xff]  ;;  %4867 = vmatpush.msra.mxu2 %v4854_v41  ;;  %v4797_v47 = vld [vmem:[%s12530_s12 + $0xc0] sm:$0xff] }
 0x2e6   :  { %v4502_v34 = vrot.slane %v4501_v61, 1  ;;  %v4371_v10 = vadd.f32 %v4285_v5, %v4281_v39  ;;  %v4447_v13 = vadd.f32 %v4446_v31, %v4445_v20  ;;  %v4682_v11 = vsel %vm3183_vm1, %v4419_v17, %v4681_v43  ;;  %v4317_v23 = vld [vmem:[%s12529_s3 + $0x168] sm:$0xff]  ;;  %v4853_v39 = vld [vmem:[%s12530_s12 + $0x140] sm:$0xff]  ;;  %4811 = vmatpush.msra.mxu0 %v4798_v35  ;;  %v4852_v43 = vld [vmem:[%s12530_s12 + $0x138] sm:$0xff]  ;;  %4899 = vmatpush.msra.mxu3 %v4896_v57 }
 0x2e7   :  { %v4475_v27 = vadd.f32 %v4474_v30, %v4473_v6  ;;  %v4530_v8 = vrot.slane %v4529_v51, 1  ;;  %v4557_v16 = vadd.f32 %v4556_v26, %v4555_v3  ;;  %v4346_v9 = vrot.slane %v4345_v38, 2  ;;  %v4782_v50 = vld [vmem:[%s12530_s12 + $0x48] sm:$0xff]  ;;  %4830 = vmatpush.msra.mxu1 %v4783_v56  ;;  %4868 = vmatpush.msra.mxu2 %v4853_v39  ;;  %v4796_v31 = vld [vmem:[%s12530_s12 + $0xb8] sm:$0xff]  ;;  %v4795_v29 = vld [vmem:[%s12530_s12 + $0xb0] sm:$0xff] }
 0x2e8   :  { %v4503_v14 = vadd.f32 %v4502_v34, %v4501_v61  ;;  %v4372_v59 = vrot.slane %v4371_v10, 4  ;;  %v4683_v12 = vsel %vm3185_vm2, %v4447_v13, %v4682_v11  ;;  %v4399_v48 = vadd.f32 %v4293_v15, %v4289_v49  ;;  %v4321_v54 = vld [vmem:[%s12529_s3 + $0x188] sm:$0xff]  ;;  %v4781_v49 = vld [vmem:[%s12530_s12 + $0x40] sm:$0xff]  ;;  %4812 = vmatpush.msra.mxu0 %v4797_v47  ;;  %v4851_v34 = vld [vmem:[%s12530_s12 + $0x130] sm:$0xff] }
 0x2e9   :  { %v4531_v62 = vadd.f32 %v4530_v8, %v4529_v51  ;;  %v4427_v22 = vadd.f32 %v4301_v24, %v4297_v53  ;;  %v4558_v55 = vrot.slane %v4557_v16, 1  ;;  %v4684_v63 = vsel %vm3187_vm3, %v4475_v27, %v4683_v12  ;;  %v4325_v7 = vld [vmem:[%s12529_s3 + $0x1a8] sm:$0xff]  ;;  %4831 = vmatpush.msra.mxu1 %v4782_v50  ;;  %v4780_v26 = vld [vmem:[%s12530_s12 + $0x38] sm:$0xff]  ;;  %4869 = vmatpush.msra.mxu2 %v4852_v43  ;;  %v4894_v13 = vld [vmem:[%s12530_s12 + $0x1e0] sm:$0xff] }
 0x2ea   :  { %v4347_v44 = vadd.f32 %v4346_v9, %v4345_v38  ;;  %v4373_v37 = vadd.f32 %v4372_v59, %v4371_v10  ;;  %v4685_v25 = vsel %vm3189_vm4, %v4503_v14, %v4684_v63  ;;  %v4400_v2 = vrot.slane %v4399_v48, 4  ;;  %v4329_v0 = vld [vmem:[%s12529_s3 + $0x1c8] sm:$0xff]  ;;  %4813 = vmatpush.msra.mxu0 %v4796_v31  ;;  %v4893_v59 = vld [vmem:[%s12530_s12 + $0x1d8] sm:$0xff]  ;;  %v4892_v63 = vld [vmem:[%s12530_s12 + $0x1d0] sm:$0xff] }
 0x2eb   :  { %v4428_v28 = vrot.slane %v4427_v22, 4  ;;  %v4455_v46 = vadd.f32 %v4309_v60, %v4305_v36  ;;  %v4559_v4 = vadd.f32 %v4558_v55, %v4557_v16  ;;  %v4686_v32 = vsel %vm3191_vm5, %v4531_v62, %v4685_v25  ;;  %v4333_v5 = vld [vmem:[%s12529_s3 + $0x1e8] sm:$0xff]  ;;  %4832 = vmatpush.msra.mxu1 %v4781_v49  ;;  %4870 = vmatpush.msra.mxu2 %v4851_v34  ;;  %v4793_v55 = vld [vmem:[%s12530_s12 + $0xa0] sm:$0xff]  ;;  %v4848_v57 = vld [vmem:[%s12530_s12 + $0x118] sm:$0xff] }
 0x2ec   :  { %v4348_v20 = vrot.slane %v4347_v44, 1  ;;  %v4374_v6 = vrot.slane %v4373_v37, 2  ;;  %v4401_v19 = vadd.f32 %v4400_v2, %v4399_v48  ;;  %v4483_v3 = vadd.f32 %v4317_v23, %v4313_v33  ;;  %v4895_v30 = vld [vmem:[%s12530_s12 + $0x1e8] sm:$0xff]  ;;  %4814 = vmatpush.msra.mxu0 %v4795_v29  ;;  %v4849_v33 = vld [vmem:[%s12530_s12 + $0x120] sm:$0xff]  ;;  %v4792_v2 = vld [vmem:[%s12530_s12 + $0x98] sm:$0xff] }
 0x2ed   :  { %v4429_v52 = vadd.f32 %v4428_v28, %v4427_v22  ;;  %v4456_v61 = vrot.slane %v4455_v46, 4  ;;  %v4687_v21 = vsel %vm3193_vm6, %v4559_v4, %v4686_v32  ;;  %v4511_v17 = vadd.f32 %v4325_v7, %v4321_v54  ;;  %v4850_v58 = vld [vmem:[%s12530_s12 + $0x128] sm:$0xff]  ;;  %4900 = vmatpush.msra.mxu3 %v4895_v30  ;;  %4833 = vmatpush.msra.mxu1 %v4780_v26  ;;  %v4777_v25 = vld [vmem:[%s12530_s12 + $0x20] sm:$0xff]  ;;  %v4847_v4 = vld [vmem:[%s12530_s12 + $0x110] sm:$0xff]  ;;  %v4268_v30 = vpop.f32.mrf.mxu3 }
 0x2ee   :  { %v4375_v18 = vadd.f32 %v4374_v6, %v4373_v37  ;;  %4768 = vmatmul.f32.vlgmr.msrb.gmra.mxu3 %v4687_v21  ;;  %v4402_v51 = vrot.slane %v4401_v19, 2  ;;  %v4484_v40 = vrot.slane %v4483_v3, 4  ;;  %v4349_v53 = vadd.f32 %v4348_v20, %v4347_v44  ;;  %v4794_v9 = vld [vmem:[%s12530_s12 + $0xa8] sm:$0xff]  ;;  %4871 = vmatpush.msra.mxu2 %v4850_v58  ;;  %v4776_v32 = vld [vmem:[%s12530_s12 + $0x18] sm:$0xff]  ;;  %v4791_v26 = vld [vmem:[%s12530_s12 + $0x90] sm:$0xff] }
 0x2ef   :  { %v4430_v15 = vrot.slane %v4429_v52, 2  ;;  %v4457_v42 = vadd.f32 %v4456_v61, %v4455_v46  ;;  %v4512_v38 = vrot.slane %v4511_v17, 4  ;;  %v4539_v10 = vadd.f32 %v4333_v5, %v4329_v0  ;;  %v4778_v48 = vld [vmem:[%s12530_s12 + $0x28] sm:$0xff]  ;;  %4901 = vmatpush.msra.mxu3 %v4894_v13  ;;  %4834 = vmatpush.msra.mxu1 %v4779_v1  ;;  %v4890_v13 = vld [vmem:[%s12530_s12 + $0x1c0] sm:$0xff]  ;;  %v4888_v58 = vld [vmem:[%s12530_s12 + $0x1b0] sm:$0xff] }
 0x2f0   :  { %v4376_v24 = vrot.slane %v4375_v18, 1  ;;  %v4403_v27 = vadd.f32 %v4402_v51, %v4401_v19  ;;  %v4485_v36 = vadd.f32 %v4484_v40, %v4483_v3  ;;  %4815 = vmatpush.msra.mxu0 %v4794_v9  ;;  %4872 = vmatpush.msra.mxu2 %v4849_v33  ;;  %v4846_v19 = vld [vmem:[%s12530_s12 + $0x108] sm:$0xff]  ;;  %v4932_v33 = vld [vmem:[%s12531_s11] ss:$0 sm:$0xff] }
 0x2f1   :  { %v4431_v8 = vadd.f32 %v4430_v15, %v4429_v52  ;;  %v4458_v11 = vrot.slane %v4457_v42, 2  ;;  %v4513_v16 = vadd.f32 %v4512_v38, %v4511_v17  ;;  %v4540_v60 = vrot.slane %v4539_v10, 4  ;;  %4902 = vmatpush.msra.mxu3 %v4893_v59  ;;  %4835 = vmatpush.msra.mxu1 %v4778_v48  ;;  %v4248_v17 = vpop.f32.mrf.mxu2  ;;  %v4930_v15 = vld [vmem:[%s12527_s5] ss:$0 sm:$0xff]  ;;  %v4891_v38 = vld [vmem:[%s12530_s12 + $0x1c8] sm:$0xff] }
 0x2f2   :  { %v4377_v14 = vadd.f32 %v4376_v24, %v4375_v18  ;;  %v4404_v56 = vrot.slane %v4403_v27, 1  ;;  %v4486_v12 = vrot.slane %v4485_v36, 2  ;;  %4816 = vmatpush.msra.mxu0 %v4793_v55  ;;  %4873 = vmatpush.msra.mxu2 %v4848_v57  ;;  %v4929_v18 = vld [vmem:[%s12526_s9] ss:$0 sm:$0xff]  ;;  %v4774_v29 = vld [vmem:[%s12530_s12 + $0x8] sm:$0xff] }
 0x2f3   :  { %v4432_v45 = vrot.slane %v4431_v8, 1  ;;  %v4459_v62 = vadd.f32 %v4458_v11, %v4457_v42  ;;  %v4514_v22 = vrot.slane %v4513_v16, 2  ;;  %v4541_v41 = vadd.f32 %v4540_v60, %v4539_v10  ;;  %4903 = vmatpush.msra.mxu3 %v4892_v63  ;;  %4836 = vmatpush.msra.mxu1 %v4777_v25  ;;  %v4845_v24 = vld [vmem:[%s12530_s12 + $0x100] sm:$0xff]  ;;  %v4790_v10 = vld [vmem:[%s12530_s12 + $0x88] sm:$0xff] }
 0x2f4   :  { %v4667_v35 = vsel %vm3181_vm0, %v4377_v14, %v4349_v53  ;;  %v4405_v23 = vadd.f32 %v4404_v56, %v4403_v27  ;;  %v4487_v50 = vadd.f32 %v4486_v12, %v4485_v36  ;;  %4817 = vmatpush.msra.mxu0 %v4792_v2  ;;  %4874 = vmatpush.msra.mxu2 %v4847_v4  ;;  %v4775_v53 = vld [vmem:[%s12530_s12 + $0x10] sm:$0xff]  ;;  %v4789_v27 = vld [vmem:[%s12530_s12 + $0x80] sm:$0xff]  ;;  %v4889_v36 = vld [vmem:[%s12530_s12 + $0x1b8] sm:$0xff] }
 0x2f5   :  { %v4433_v44 = vadd.f32 %v4432_v45, %v4431_v8  ;;  %v4460_v37 = vrot.slane %v4459_v62, 1  ;;  %v4515_v54 = vadd.f32 %v4514_v22, %v4513_v16  ;;  %v4542_v7 = vrot.slane %v4541_v41, 2  ;;  %4837 = vmatpush.msra.mxu1 %v4776_v32  ;;  %4904 = vmatpush.msra.mxu3 %v4891_v38  ;;  %v4773_v11 = vld [vmem:[%s12530_s12] sm:$0xff]  ;;  %v4887_v1 = vld [vmem:[%s12530_s12 + $0x1a8] sm:$0xff]  ;;  %v4885_v56 = vld [vmem:[%s12530_s12 + $0x198] sm:$0xff] }
 0x2f6   :  { %v4488_v46 = vrot.slane %v4487_v50, 1  ;;  %v4668_v39 = vsel %vm3183_vm1, %v4405_v23, %v4667_v35  ;;  %4875 = vmatpush.msra.mxu2 %v4846_v19  ;;  %v4249_v31 = vadd.f32 %v4929_v18, %v4248_v17  ;;  %4818 = vmatpush.msra.mxu0 %v4791_v26  ;;  %v4931_v14 = vld [vmem:[%s12528_s7] ss:$0 sm:$0xff]  ;;  %v4884_v45 = vld [vmem:[%s12530_s12 + $0x190] sm:$0xff] }
 0x2f7   :  { %v4461_v28 = vadd.f32 %v4460_v37, %v4459_v62  ;;  %v4516_v0 = vrot.slane %v4515_v54, 1  ;;  %v4543_v20 = vadd.f32 %v4542_v7, %v4541_v41  ;;  %v4669_v6 = vsel %vm3185_vm2, %v4433_v44, %v4668_v39  ;;  %4838 = vmatpush.msra.mxu1 %v4775_v53  ;;  %4905 = vmatpush.msra.mxu3 %v4890_v13  ;;  %v4886_v59 = vld [vmem:[%s12530_s12 + $0x1a0] sm:$0xff]  ;;  %v4883_v62 = vld [vmem:[%s12530_s12 + $0x188] sm:$0xff] }
 0x2f8   :  { %v4489_v47 = vadd.f32 %v4488_v46, %v4487_v50  ;;  %v4269_v51 = vadd.f32 %v4268_v30, %v4249_v31  ;;  %4876 = vmatpush.msra.mxu2 %v4845_v24  ;;  %4819 = vmatpush.msra.mxu0 %v4790_v10  ;;  %v4882_v12 = vld [vmem:[%s12530_s12 + $0x180] sm:$0xff] }
 0x2f9   :  { %v4670_v5 = vsel %vm3187_vm3, %v4461_v28, %v4669_v6  ;;  %v4517_v52 = vadd.f32 %v4516_v0, %v4515_v54  ;;  %v4544_v61 = vrot.slane %v4543_v20, 1  ;;  %4839 = vmatpush.msra.mxu1 %v4774_v29  ;;  %4906 = vmatpush.msra.mxu3 %v4889_v36  ;;  %v4920_v28 = vstv %s12532_s13 }
 0x2fa   :  { %v4671_v3 = vsel %vm3189_vm4, %v4489_v47, %v4670_v5  ;;  %v4271_v40 = vmax.f32 %v4269_v51, 0.0  ;;  %4820 = vmatpush.msra.mxu0 %v4789_v27 }
 0x2fb   :  { %v4545_v43 = vadd.f32 %v4544_v61, %v4543_v20  ;;  %v4672_v49 = vsel %vm3191_vm5, %v4517_v52, %v4671_v3  ;;  %4840 = vmatpush.msra.mxu1 %v4773_v11  ;;  %4907 = vmatpush.msra.mxu3 %v4888_v58 }
 0x2fc   :  { %4877 = vmatmul.f32.vlgmr.msra.gmra.mxu2 %v4271_v40 }
 0x2fd   :  { %v4673_v21 = vsel %vm3193_vm6, %v4545_v43, %v4672_v49  ;;  %4908 = vmatpush.msra.mxu3 %v4887_v1 }
 0x2fe   :  { %4728 = vmatmul.f32.vlgmr.msrb.gmra.mxu1 %v4673_v21 }
 0x2ff   :  { %4909 = vmatpush.msra.mxu3 %v4886_v59 }
 0x301   :  { %4910 = vmatpush.msra.mxu3 %v4885_v56 }
 0x303   :  { %4911 = vmatpush.msra.mxu3 %v4884_v45 }
 0x305   :  { %4912 = vmatpush.msra.mxu3 %v4883_v62 }
 0x307   :  { %4913 = vmatpush.msra.mxu3 %v4882_v12 }
 0x314   :  { %v3214_v42 = vpop.f32.mrf.mxu0 }
 0x315   :  { %v3215_v34 = vadd.f32 %v4930_v15, %v3214_v42 }
 0x317   :  { %v3217_v8 = vmax.f32 %v3215_v34, 0.0 }
 0x319   :  { %4841 = vmatmul.f32.vlgmr.msra.gmra.mxu1 %v3217_v8 }
 0x34d   :  { %v4749_v35 = vpop.f32.mrf.mxu2 }
 0x359   :  { %v3823_v16 = vpop.f32.mrf.mxu1 }
 0x35a   :  { %v3824_v60 = vadd.f32 %v4931_v14, %v3823_v16 }
 0x35b   :  { %v4709_v48 = vpop.f32.mrf.mxu0 }
 0x35c   :  { %v3826_v9 = vmax.f32 %v3824_v60, 0.0  ;;  %v4710_v22 = vadd.f32 %v4932_v33, %v4709_v48 }
 0x35e   :  { %4821 = vmatmul.f32.vlgmr.msra.gmra.mxu0 %v3826_v9 }
 0x371   :  { %v4769_v63 = vpop.f32.mrf.mxu3 }
 0x37b   :  { %v4729_v41 = vpop.f32.mrf.mxu1 }
 0x37c   :  { %v4730_v55 = vadd.f32 %v4729_v41, %v4710_v22 }
 0x37e   :  { %v4750_v23 = vadd.f32 %v4749_v35, %v4730_v55 }
 0x37f   :  { %v4878_v54 = vpop.f32.mrf.mxu2 }
 0x380   :  { %v4770_v44 = vadd.f32 %v4769_v63, %v4750_v23 }
 0x382   :  { %v4772_v37 = vmax.f32 %v4770_v44, 0.0 }
 0x384   :  { %4914 = vmatmul.f32.vlgmr.msra.gmra.mxu3 %v4772_v37 }
 0x396   :  { %v4842_v57 = vpop.f32.mrf.mxu1 }
 0x3db   :  { %v4822_v50 = vpop.f32.mrf.mxu0 }
 0x3dc   :  { %v4843_v25 = vadd.f32 %v4842_v57, %v4822_v50 }
 0x3de   :  { %v4881_v7 = vadd.f32 %v4878_v54, %v4843_v25 }
 0x407   :  { %v4915_v2 = vpop.f32.mrf.mxu3 }
 0x408   :  { %v4918_v46 = vadd.f32 %v4915_v2, %v4881_v7 }
 0x40a   :  { %v4921_v39 = vadd.f32 %v4920_v28, %v4918_v46 }
 0x40c   :  { %4923 = vst.msk [vmem:[%s12533_s14] sm:$0xff] %vm4922_vm8, %v4921_v39 }

</bundles_post_ra>
